<compile_context>
chip_gen: v5e
topology: v5e:2x2
jax: 0.10.0
libtpu: 0.0.40
codegen_flags: <defaults>
</compile_context>

<pallas_src>
import numpy as np
import jax
import jax.numpy as jnp
from jax.experimental import pallas as pl
from jax.experimental.pallas import tpu as pltpu

LANE = 128                       # channel dims padded to multiples of the lane width
TM_MAX = 512                     # max spatial-row tile (multiple of 16 for bf16 packing)
POS_CH = 4
VMEM_LIMIT = 40 * 1024 * 1024    # explicit budget, leaves headroom on v7x (64 MiB/TC)
ACT_DTYPE = jnp.bfloat16         # inter-layer activation storage dtype


def _round_up(x, m):
    return (x + m - 1) // m * m


def _cdiv(a, b):
    return -(-a // b)


def _gelu(x):
    # tanh-approx GELU (clean VPU/EUP lowering on Mosaic)
    return jax.nn.gelu(x, approximate=True)


# ----------------------------------------------------------------------------
# Pallas kernels
# ----------------------------------------------------------------------------

def _resblock_kernel(x_ref, w0_ref, b0_ref, w1_ref, b1_ref, ws_ref, bs_ref,
                     o_ref):
    """Fused 1x1-conv residual block (no FiLM). x_ref: (TM, Cin_p) bf16."""
    xb = x_ref[...]                                   # bf16 tile used directly as MXU LHS
    skip = jnp.dot(xb, ws_ref[...], preferred_element_type=jnp.float32) + bs_ref[...]
    h = _gelu(xb.astype(jnp.float32)).astype(jnp.bfloat16)
    h = jnp.dot(h, w0_ref[...], preferred_element_type=jnp.float32) + b0_ref[...]
    h = _gelu(h).astype(jnp.bfloat16)
    h = jnp.dot(h, w1_ref[...], preferred_element_type=jnp.float32) + b1_ref[...]
    # 0.1 residual scale already folded into w1/b1 at build time.
    o_ref[...] = (skip + h).astype(o_ref.dtype)


def _film_resblock_kernel(x_ref, c_ref, w0_ref, b0_ref, w1_ref, b1_ref,
                          ws_ref, bs_ref, o_ref):
    """FiLM (x*s + m) followed by the fused residual block. c_ref: (2, Cin_p) f32."""
    cm = c_ref[0:1, :]
    cs = c_ref[1:2, :]
    x = x_ref[...].astype(jnp.float32) * cs + cm
    xb = x.astype(jnp.bfloat16)
    skip = jnp.dot(xb, ws_ref[...], preferred_element_type=jnp.float32) + bs_ref[...]
    h = _gelu(x).astype(jnp.bfloat16)
    h = jnp.dot(h, w0_ref[...], preferred_element_type=jnp.float32) + b0_ref[...]
    h = _gelu(h).astype(jnp.bfloat16)
    h = jnp.dot(h, w1_ref[...], preferred_element_type=jnp.float32) + b1_ref[...]
    o_ref[...] = (skip + h).astype(o_ref.dtype)


def _const_spec(shape):
    """Weight/bias BlockSpec with a constant index_map.  These tiles are never
    re-fetched, so request single buffering (saves VMEM, esp. on v7x).  Falls
    back to the default double buffer if pipeline_mode is unsupported."""
    idx = lambda b, t: (0, 0)
    try:
        return pl.BlockSpec(shape, idx, pipeline_mode=pl.Buffered(1))
    except Exception:  # pragma: no cover - older BlockSpec signature
        return pl.BlockSpec(shape, idx)


def _pick_tile(N, cin_p, chid_p, cout_p):
    """Balanced row tiling with a VMEM-footprint-derived cap (v7x-safe)."""
    # double-buffered bf16 in/out tiles + ~4 f32-width temporaries per row
    per_row = 2 * 2 * (cin_p + cout_p) + 4 * 4 * max(cin_p, chid_p, cout_p)
    weight_bytes = 2 * (cin_p * chid_p + chid_p * cout_p + cin_p * cout_p) \
        + 4 * (chid_p + 2 * cout_p)
    budget = max(VMEM_LIMIT - 2 * weight_bytes, 1 << 20)
    cap = max(16, min(TM_MAX, (budget // per_row) // 16 * 16))
    nt = max(1, _cdiv(N, cap))
    tm = _round_up(_cdiv(N, nt), 16)
    return tm, nt, nt * tm


def resblock_pallas(slab, block, cond=None):
    """slab: (B, H, W, Cin_p) bf16, channel-padded; cond: (B, 2, Cin_p) f32 or None.
    Returns (B, H, W, Cout_p) bf16 (channel-padded; padded channels are exactly 0
    because padded input channels, weight rows/cols, biases and cond are 0)."""
    B, H, W, cin_p = slab.shape
    chid_p = block['w0'].shape[1]
    cout_p = block['w1'].shape[1]
    N = H * W

    tm, nt, n_p = _pick_tile(N, cin_p, chid_p, cout_p)

    x2d = slab.reshape(B, N, cin_p)
    if n_p != N:
        x2d = jnp.pad(x2d, ((0, 0), (0, n_p - N), (0, 0)))

    w_specs = [
        _const_spec((cin_p, chid_p)),
        _const_spec((1, chid_p)),
        _const_spec((chid_p, cout_p)),
        _const_spec((1, cout_p)),
        _const_spec((cin_p, cout_p)),
        _const_spec((1, cout_p)),
    ]
    weights = (block['w0'], block['b0'], block['w1'], block['b1'],
               block['ws'], block['bs'])
    x_spec = pl.BlockSpec((None, tm, cin_p), lambda b, t: (b, t, 0))

    if cond is None:
        kernel = _resblock_kernel
        in_specs = [x_spec] + w_specs
        args = (x2d,) + weights
    else:
        kernel = _film_resblock_kernel
        cond_spec = pl.BlockSpec((None, 2, cin_p), lambda b, t: (b, 0, 0))
        in_specs = [x_spec, cond_spec] + w_specs
        args = (x2d, cond) + weights

    out = pl.pallas_call(
        kernel,
        out_shape=jax.ShapeDtypeStruct((B, n_p, cout_p), ACT_DTYPE),
        grid=(B, nt),
        in_specs=in_specs,
        out_specs=pl.BlockSpec((None, tm, cout_p), lambda b, t: (b, t, 0)),
        compiler_params=pltpu.CompilerParams(
            dimension_semantics=("parallel", "parallel"),
            vmem_limit_bytes=VMEM_LIMIT),
    )(*args)
    if n_p != N:
        out = out[:, :N]
    return out.reshape(B, H, W, cout_p)


# ----------------------------------------------------------------------------
# Plain-JAX glue (Sobel grads + pos enc + channel pad fused into ONE slab pass,
# bilinear resize, tiny latent path)
# ----------------------------------------------------------------------------

def make_resblock_input(x, c_true, cin_p, pos=None):
    """Assumed SinSobel(c, 3, 1): cat([x, sin(sobel_x(x)), sin(sobel_y(x))], C),
    plus optional positional encoding and zero channel padding to the kernel's
    128-aligned width, all materialized once as a bf16 slab.
    x: (B, H, W, >= c_true); only the first c_true channels are real."""
    x = x[..., :c_true]
    B, H, W, _ = x.shape
    xp = jnp.pad(x, ((0, 0), (1, 1), (1, 1), (0, 0)))

    def sh(dy, dx):
        return xp[:, 1 + dy:1 + dy + H, 1 + dx:1 + dx + W, :]

    gx = (sh(-1, 1) + 2.0 * sh(0, 1) + sh(1, 1)) - (sh(-1, -1) + 2.0 * sh(0, -1) + sh(1, -1))
    gy = (sh(1, -1) + 2.0 * sh(1, 0) + sh(1, 1)) - (sh(-1, -1) + 2.0 * sh(-1, 0) + sh(-1, 1))
    parts = [x, jnp.sin(gx), jnp.sin(gy)]
    used = 3 * c_true
    if pos is not None:
        parts.append(jnp.broadcast_to(pos, (B,) + pos.shape[1:]).astype(x.dtype))
        used += pos.shape[-1]
    assert used <= cin_p
    if cin_p > used:
        parts.append(jnp.zeros((B, H, W, cin_p - used), x.dtype))
    slab = jnp.concatenate(parts, axis=-1).astype(ACT_DTYPE)
    return slab, used


def sin_cos_pos_encoding_2d(size):
    """Assumed sin_cos_pos_encoding_nd(size, 2, 1): (1, size, size, 4) NHWC."""
    c = (jnp.arange(size, dtype=jnp.float32) + 0.5) / size * (2.0 * np.pi)
    y = jnp.broadcast_to(c[:, None], (size, size))
    x = jnp.broadcast_to(c[None, :], (size, size))
    pe = jnp.stack([jnp.sin(y), jnp.cos(y), jnp.sin(x), jnp.cos(x)], axis=-1)
    return pe[None]


def downsample_half(x):
    """F.interpolate(scale=0.5, bilinear, align_corners=False) == 2x2 mean pool."""
    B, H, W, C = x.shape
    y = x.astype(jnp.float32).reshape(B, H // 2, 2, W // 2, 2, C).mean(axis=(2, 4))
    return y.astype(x.dtype)


def _upsample_axis_2x(x, axis):
    n = x.shape[axis]
    j = np.arange(2 * n)
    k = j // 2
    lo = np.clip(np.where(j % 2 == 0, k - 1, k), 0, n - 1)
    hi = np.clip(np.where(j % 2 == 0, k, k + 1), 0, n - 1)
    wlo = np.where(j % 2 == 0, 0.25, 0.75).astype(np.float32)
    xlo = jnp.take(x, jnp.asarray(lo), axis=axis).astype(jnp.float32)
    xhi = jnp.take(x, jnp.asarray(hi), axis=axis).astype(jnp.float32)
    shape = [1] * x.ndim
    shape[axis] = 2 * n
    w = jnp.asarray(wlo).reshape(shape)
    return (xlo * w + xhi * (1.0 - w)).astype(x.dtype)


def upsample_2x(x):
    """F.interpolate(scale=2.0, bilinear, align_corners=False), exact weights."""
    return _upsample_axis_2x(_upsample_axis_2x(x, 1), 2)


def linear_resblock_jax(x, block):
    """Tiny (B, C) LinearResidualBlock in plain JAX (exact erf GELU, B=2 < 8 sublanes)."""
    (w0, b0), (w1, b1), (ws, bs) = block
    skip = x @ ws + bs
    h = jax.nn.gelu(x, approximate=False)
    h = h @ w0 + b0
    h = jax.nn.gelu(h, approximate=False)
    h = h @ w1 + b1
    return skip + 0.1 * h


# ----------------------------------------------------------------------------
# Parameter construction (deterministic, synthetic, padded for the kernels)
# ----------------------------------------------------------------------------

def _init_linear(key, cin, cout):
    kw, kb = jax.random.split(key)
    s = 1.0 / np.sqrt(cin)
    w = jax.random.uniform(kw, (cin, cout), jnp.float32, -s, s)
    b = jax.random.uniform(kb, (cout,), jnp.float32, -s, s)
    return w, b


def _init_padded_block(key, fin, fout, fhid):
    """Resblock weights: zero-padded to 128-multiples, stored bf16 (biases f32).
    The 0.1 residual scale is folded into w1/b1 (kernel does skip + branch)."""
    k0, k1, ks = jax.random.split(key, 3)
    w0, b0 = _init_linear(k0, fin, fhid)
    w1, b1 = _init_linear(k1, fhid, fout)
    ws, bs = _init_linear(ks, fin, fout)
    w1 = w1 * 0.1
    b1 = b1 * 0.1
    fin_p, fhid_p, fout_p = (_round_up(c, LANE) for c in (fin, fhid, fout))

    def padw(w, rp, cp):
        return jnp.pad(w, ((0, rp - w.shape[0]), (0, cp - w.shape[1]))
                       ).astype(jnp.bfloat16)

    def padb(b, cp):
        return jnp.pad(b, ((0, cp - b.shape[0]),)).reshape(1, cp)

    return dict(w0=padw(w0, fin_p, fhid_p), b0=padb(b0, fhid_p),
                w1=padw(w1, fhid_p, fout_p), b1=padb(b1, fout_p),
                ws=padw(ws, fin_p, fout_p), bs=padb(bs, fout_p),
                cin=fin, chid=fhid, cout=fout)


def _init_plain_block(key, fin, fout, fhid):
    k0, k1, ks = jax.random.split(key, 3)
    return (_init_linear(k0, fin, fhid), _init_linear(k1, fhid, fout),
            _init_linear(ks, fin, fout))


def build_residual_u(key, fin, fout, image_size, layer_factor=4, lat_size=64):
    n_layers = int(np.log2(image_size)) + 1
    f_size = (np.concatenate([
        np.linspace(fin, layer_factor * (fin + fout) / 2, n_layers),
        np.linspace(layer_factor * (fin + fout) / 2, fout, n_layers + 1)])
        * np.concatenate([
            np.linspace(1, n_layers, n_layers),
            np.linspace(n_layers, 1, n_layers + 1)])).astype(int).tolist()

    keys = iter(jax.random.split(key, 64))

    down = []
    for l in range(n_layers):
        in_ch = f_size[l] * 3 + (POS_CH if l < n_layers - 1 else 0)
        down.append(_init_padded_block(next(keys), in_ch, f_size[l + 1], f_size[l]))

    # LinearResidualBlock(f_size[n_layers], lat_size), assumed hidden = mean
    auto_lat = _init_plain_block(next(keys), f_size[n_layers], lat_size,
                                 (f_size[n_layers] + lat_size) // 2)

    up, cond_ws, cond_bs, cond_off = [], [], [], []
    off = 0
    for l in range(n_layers, 2 * n_layers):
        base = f_size[l] + (f_size[n_layers + (n_layers - l)] if l > n_layers else 0)
        ci = base * 3
        w, b = _init_linear(next(keys), lat_size, 2 * ci)   # [m | s] column layout
        cond_ws.append(w)
        cond_bs.append(b)
        cond_off.append((off, ci))
        off += 2 * ci
        up.append(_init_padded_block(next(keys), ci, f_size[l + 1], f_size[l + 1]))

    # Batch all per-layer cond Linears into one GEMM on lat.
    cond_w = jnp.concatenate(cond_ws, axis=1)
    cond_b = jnp.concatenate(cond_bs, axis=0)

    pos_enc = [sin_cos_pos_encoding_2d(image_size // 2 ** l)
               for l in range(n_layers - 1)]

    return dict(n_layers=n_layers, f_size=f_size, down=down, auto_lat=auto_lat,
                up=up, cond_w=cond_w, cond_b=cond_b, cond_off=cond_off,
                pos_enc=pos_enc, lat_size=lat_size)


# ----------------------------------------------------------------------------
# Forward pass (auto_condition=True, ext_condition=False, enc_position=True)
# ----------------------------------------------------------------------------

def residual_u_forward(params, x_nhwc):
    n_layers = params['n_layers']
    f_size = params['f_size']
    B = x_nhwc.shape[0]

    x_l = []
    new_x = x_nhwc
    cur_c = f_size[0]

    # ---- down path (no FiLM -> specialized kernel) ----
    for l in range(n_layers):
        blk = params['down'][l]
        pos = params['pos_enc'][l] if l < n_layers - 1 else None
        slab, used = make_resblock_input(new_x, cur_c, blk['w0'].shape[0], pos)
        assert used == blk['cin']
        new_x = resblock_pallas(slab, blk)                 # (B,H,W,Cout_p) bf16, padded
        cur_c = blk['cout']
        if l < n_layers - 1:
            x_l.append((new_x, cur_c))
            new_x = downsample_half(new_x)

    # ---- auto-conditioning latent (tiny, 1x1 spatial -> plain JAX) ----
    flat = new_x[:, 0, 0, :cur_c].astype(jnp.float32)      # (B, f_size[n_layers])
    lat = linear_resblock_jax(flat, params['auto_lat'])
    lat = jax.nn.gelu(lat, approximate=False)              # F.gelu (exact erf)

    # ---- all per-layer cond projections in ONE batched GEMM ----
    cond_all = lat @ params['cond_w'] + params['cond_b']   # (B, sum_l 2*Ci)

    # ---- up path (FiLM kernel, cond passed as one merged (B,2,Cin_p) ref) ----
    for l in range(n_layers):
        blk = params['up'][l]
        if l > 0:
            skip_x, skip_c = x_l[n_layers - 1 - l]
            new_x = jnp.concatenate([new_x[..., :cur_c], skip_x[..., :skip_c]], axis=-1)
            cur_c = cur_c + skip_c
        slab, used = make_resblock_input(new_x, cur_c, blk['w0'].shape[0], None)
        off, ci = params['cond_off'][l]
        assert used == ci == blk['cin']                    # guard against shape drift
        cm = cond_all[:, off:off + ci]
        cs = cond_all[:, off + ci:off + 2 * ci]
        cond = jnp.stack([cm, cs], axis=1)                 # (B, 2, ci) f32
        cond = jnp.pad(cond, ((0, 0), (0, 0), (0, blk['w0'].shape[0] - ci)))
        new_x = resblock_pallas(slab, blk, cond)
        cur_c = blk['cout']
        if l < n_layers - 1:
            new_x = upsample_2x(new_x)

    return new_x[..., :cur_c].astype(jnp.float32)


# ----------------------------------------------------------------------------
if __name__ == "__main__":
    key = jax.random.PRNGKey(0)
    k_param, k_x = jax.random.split(key)

    B, FIN, FOUT, IMG = 2, 4, 4, 16
    params = build_residual_u(k_param, FIN, FOUT, IMG, layer_factor=4, lat_size=64)

    # PyTorch-style NCHW input, converted to NHWC for the kernel layout.
    x_nchw = jax.random.normal(k_x, (B, FIN, IMG, IMG), dtype=jnp.float32)
    x_nhwc = jnp.transpose(x_nchw, (0, 2, 3, 1))

    fwd = jax.jit(lambda x: residual_u_forward(params, x))
    out_nhwc = fwd(x_nhwc)
    out_nchw = jnp.transpose(out_nhwc, (0, 3, 1, 2))
    jax.block_until_ready(out_nchw)

    assert out_nchw.shape == (B, FOUT, IMG, IMG), out_nchw.shape
    assert bool(jnp.all(jnp.isfinite(out_nchw)))
    print("KERNEL_OK")
</pallas_src>

<mosaic_0001>
module attributes {stable_mosaic.version = 11 : i64} {
  func.func @_resblock_kernel(%arg0: i32, %arg1: i32, %arg2: memref<1x256x128xbf16, #tpu.memory_space<vmem>>, %arg3: memref<128x128xbf16, #tpu.memory_space<vmem>>, %arg4: memref<1x128xf32, #tpu.memory_space<vmem>>, %arg5: memref<128x128xbf16, #tpu.memory_space<vmem>>, %arg6: memref<1x128xf32, #tpu.memory_space<vmem>>, %arg7: memref<128x128xbf16, #tpu.memory_space<vmem>>, %arg8: memref<1x128xf32, #tpu.memory_space<vmem>>, %arg9: memref<1x256x128xbf16, #tpu.memory_space<vmem>>) attributes {dimension_semantics = [#tpu.dimension_semantics<parallel>, #tpu.dimension_semantics<parallel>], iteration_bounds = array<i64: 2, 1>, scalar_prefetch = 0 : i64, scratch_operands = 0 : i64, tpu.core_type = #tpu.core_type<tc>, window_params = [{transform_indices = @transform_0, window_bounds = array<i64: 1, 256, 128>}, {pipeline_mode = #tpu.pipeline_mode<synchronous>, transform_indices = @transform_1, window_bounds = array<i64: 128, 128>}, {pipeline_mode = #tpu.pipeline_mode<synchronous>, transform_indices = @transform_2, window_bounds = array<i64: 1, 128>}, {pipeline_mode = #tpu.pipeline_mode<synchronous>, transform_indices = @transform_3, window_bounds = array<i64: 128, 128>}, {pipeline_mode = #tpu.pipeline_mode<synchronous>, transform_indices = @transform_4, window_bounds = array<i64: 1, 128>}, {pipeline_mode = #tpu.pipeline_mode<synchronous>, transform_indices = @transform_5, window_bounds = array<i64: 128, 128>}, {pipeline_mode = #tpu.pipeline_mode<synchronous>, transform_indices = @transform_6, window_bounds = array<i64: 1, 128>}, {transform_indices = @transform_7, window_bounds = array<i64: 1, 256, 128>}]} {
    %c0 = arith.constant 0 : index
    %c0_0 = arith.constant 0 : index
    %c0_1 = arith.constant 0 : index
    %0 = vector.load %arg2[%c0, %c0_0, %c0_1] : memref<1x256x128xbf16, #tpu.memory_space<vmem>>, vector<1x256x128xbf16>
    %1 = vector.shape_cast %0 : vector<1x256x128xbf16> to vector<256x128xbf16>
    %c0_2 = arith.constant 0 : index
    %c0_3 = arith.constant 0 : index
    %2 = vector.load %arg7[%c0_2, %c0_3] : memref<128x128xbf16, #tpu.memory_space<vmem>>, vector<128x128xbf16>
    %cst = arith.constant dense<0.000000e+00> : vector<256x128xf32>
    %3 = tpu.matmul %1, %2, %cst {dimension_numbers = #tpu.dot_dimension_numbers<[1], [0], [0], [1], [0, 0, 1, 1], [], []>} : vector<256x128xbf16>, vector<128x128xbf16>, vector<256x128xf32> -> vector<256x128xf32>
    %c0_4 = arith.constant 0 : index
    %c0_5 = arith.constant 0 : index
    %4 = vector.load %arg8[%c0_4, %c0_5] : memref<1x128xf32, #tpu.memory_space<vmem>>, vector<1x128xf32>
    %5 = vector.broadcast %4 : vector<1x128xf32> to vector<256x128xf32>
    %6 = arith.addf %3, %5 : vector<256x128xf32>
    %7 = arith.extf %1 : vector<256x128xbf16> to vector<256x128xf32>
    %8 = arith.mulf %7, %7 : vector<256x128xf32>
    %9 = arith.mulf %7, %8 : vector<256x128xf32>
    %cst_6 = arith.constant 4.471500e-02 : f32
    %10 = vector.broadcast %cst_6 : f32 to vector<256x128xf32>
    %11 = arith.mulf %10, %9 : vector<256x128xf32>
    %12 = arith.addf %7, %11 : vector<256x128xf32>
    %cst_7 = arith.constant 0.797884583 : f32
    %13 = vector.broadcast %cst_7 : f32 to vector<256x128xf32>
    %14 = arith.mulf %13, %12 : vector<256x128xf32>
    %15 = math.tanh %14 : vector<256x128xf32>
    %cst_8 = arith.constant 1.000000e+00 : f32
    %16 = vector.broadcast %cst_8 : f32 to vector<256x128xf32>
    %17 = arith.addf %16, %15 : vector<256x128xf32>
    %cst_9 = arith.constant 5.000000e-01 : f32
    %18 = vector.broadcast %cst_9 : f32 to vector<256x128xf32>
    %19 = arith.mulf %18, %17 : vector<256x128xf32>
    %20 = arith.mulf %7, %19 : vector<256x128xf32>
    %21 = arith.truncf %20 : vector<256x128xf32> to vector<256x128xbf16>
    %c0_10 = arith.constant 0 : index
    %c0_11 = arith.constant 0 : index
    %22 = vector.load %arg3[%c0_10, %c0_11] : memref<128x128xbf16, #tpu.memory_space<vmem>>, vector<128x128xbf16>
    %cst_12 = arith.constant dense<0.000000e+00> : vector<256x128xf32>
    %23 = tpu.matmul %21, %22, %cst_12 {dimension_numbers = #tpu.dot_dimension_numbers<[1], [0], [0], [1], [0, 0, 1, 1], [], []>} : vector<256x128xbf16>, vector<128x128xbf16>, vector<256x128xf32> -> vector<256x128xf32>
    %c0_13 = arith.constant 0 : index
    %c0_14 = arith.constant 0 : index
    %24 = vector.load %arg4[%c0_13, %c0_14] : memref<1x128xf32, #tpu.memory_space<vmem>>, vector<1x128xf32>
    %25 = vector.broadcast %24 : vector<1x128xf32> to vector<256x128xf32>
    %26 = arith.addf %23, %25 : vector<256x128xf32>
    %27 = arith.mulf %26, %26 : vector<256x128xf32>
    %28 = arith.mulf %26, %27 : vector<256x128xf32>
    %cst_15 = arith.constant 4.471500e-02 : f32
    %29 = vector.broadcast %cst_15 : f32 to vector<256x128xf32>
    %30 = arith.mulf %29, %28 : vector<256x128xf32>
    %31 = arith.addf %26, %30 : vector<256x128xf32>
    %cst_16 = arith.constant 0.797884583 : f32
    %32 = vector.broadcast %cst_16 : f32 to vector<256x128xf32>
    %33 = arith.mulf %32, %31 : vector<256x128xf32>
    %34 = math.tanh %33 : vector<256x128xf32>
    %cst_17 = arith.constant 1.000000e+00 : f32
    %35 = vector.broadcast %cst_17 : f32 to vector<256x128xf32>
    %36 = arith.addf %35, %34 : vector<256x128xf32>
    %cst_18 = arith.constant 5.000000e-01 : f32
    %37 = vector.broadcast %cst_18 : f32 to vector<256x128xf32>
    %38 = arith.mulf %37, %36 : vector<256x128xf32>
    %39 = arith.mulf %26, %38 : vector<256x128xf32>
    %40 = arith.truncf %39 : vector<256x128xf32> to vector<256x128xbf16>
    %c0_19 = arith.constant 0 : index
    %c0_20 = arith.constant 0 : index
    %41 = vector.load %arg5[%c0_19, %c0_20] : memref<128x128xbf16, #tpu.memory_space<vmem>>, vector<128x128xbf16>
    %cst_21 = arith.constant dense<0.000000e+00> : vector<256x128xf32>
    %42 = tpu.matmul %40, %41, %cst_21 {dimension_numbers = #tpu.dot_dimension_numbers<[1], [0], [0], [1], [0, 0, 1, 1], [], []>} : vector<256x128xbf16>, vector<128x128xbf16>, vector<256x128xf32> -> vector<256x128xf32>
    %c0_22 = arith.constant 0 : index
    %c0_23 = arith.constant 0 : index
    %43 = vector.load %arg6[%c0_22, %c0_23] : memref<1x128xf32, #tpu.memory_space<vmem>>, vector<1x128xf32>
    %44 = vector.broadcast %43 : vector<1x128xf32> to vector<256x128xf32>
    %45 = arith.addf %42, %44 : vector<256x128xf32>
    %46 = arith.addf %6, %45 : vector<256x128xf32>
    %47 = arith.truncf %46 : vector<256x128xf32> to vector<256x128xbf16>
    %c0_24 = arith.constant 0 : index
    %c0_25 = arith.constant 0 : index
    %c0_26 = arith.constant 0 : index
    %48 = vector.load %arg9[%c0_24, %c0_25, %c0_26] : memref<1x256x128xbf16, #tpu.memory_space<vmem>>, vector<1x256x128xbf16>
    %49 = vector.shape_cast %48 : vector<1x256x128xbf16> to vector<256x128xbf16>
    %50 = vector.shape_cast %47 : vector<256x128xbf16> to vector<1x256x128xbf16>
    tpu.vector_store %arg9[%c0_24, %c0_25, %c0_26], %50 {strides = array<i32>} : memref<1x256x128xbf16, #tpu.memory_space<vmem>>, vector<1x256x128xbf16>,
    return
  }
  func.func @transform_0(%arg0: i32, %arg1: i32) -> (i32, i32, i32) {
    %c0_i32 = arith.constant 0 : i32
    %c0_i32_0 = arith.constant 0 : i32
    return %arg0, %arg1, %c0_i32 : i32, i32, i32
  }
  func.func @transform_1(%arg0: i32, %arg1: i32) -> (i32, i32) {
    %c0_i32 = arith.constant 0 : i32
    %c0_i32_0 = arith.constant 0 : i32
    %c0_i32_1 = arith.constant 0 : i32
    return %c0_i32, %c0_i32_0 : i32, i32
  }
  func.func @transform_2(%arg0: i32, %arg1: i32) -> (i32, i32) {
    %c0_i32 = arith.constant 0 : i32
    %c0_i32_0 = arith.constant 0 : i32
    %c0_i32_1 = arith.constant 0 : i32
    return %c0_i32, %c0_i32_0 : i32, i32
  }
  func.func @transform_3(%arg0: i32, %arg1: i32) -> (i32, i32) {
    %c0_i32 = arith.constant 0 : i32
    %c0_i32_0 = arith.constant 0 : i32
    %c0_i32_1 = arith.constant 0 : i32
    return %c0_i32, %c0_i32_0 : i32, i32
  }
  func.func @transform_4(%arg0: i32, %arg1: i32) -> (i32, i32) {
    %c0_i32 = arith.constant 0 : i32
    %c0_i32_0 = arith.constant 0 : i32
    %c0_i32_1 = arith.constant 0 : i32
    return %c0_i32, %c0_i32_0 : i32, i32
  }
  func.func @transform_5(%arg0: i32, %arg1: i32) -> (i32, i32) {
    %c0_i32 = arith.constant 0 : i32
    %c0_i32_0 = arith.constant 0 : i32
    %c0_i32_1 = arith.constant 0 : i32
    return %c0_i32, %c0_i32_0 : i32, i32
  }
  func.func @transform_6(%arg0: i32, %arg1: i32) -> (i32, i32) {
    %c0_i32 = arith.constant 0 : i32
    %c0_i32_0 = arith.constant 0 : i32
    %c0_i32_1 = arith.constant 0 : i32
    return %c0_i32, %c0_i32_0 : i32, i32
  }
  func.func @transform_7(%arg0: i32, %arg1: i32) -> (i32, i32, i32) {
    %c0_i32 = arith.constant 0 : i32
    %c0_i32_0 = arith.constant 0 : i32
    return %arg0, %arg1, %c0_i32 : i32, i32, i32
  }
}

module attributes {stable_mosaic.version = 11 : i64} {
  func.func @_resblock_kernel(%arg0: i32, %arg1: i32, %arg2: memref<1x64x128xbf16, #tpu.memory_space<vmem>>, %arg3: memref<128x128xbf16, #tpu.memory_space<vmem>>, %arg4: memref<1x128xf32, #tpu.memory_space<vmem>>, %arg5: memref<128x128xbf16, #tpu.memory_space<vmem>>, %arg6: memref<1x128xf32, #tpu.memory_space<vmem>>, %arg7: memref<128x128xbf16, #tpu.memory_space<vmem>>, %arg8: memref<1x128xf32, #tpu.memory_space<vmem>>, %arg9: memref<1x64x128xbf16, #tpu.memory_space<vmem>>) attributes {dimension_semantics = [#tpu.dimension_semantics<parallel>, #tpu.dimension_semantics<parallel>], iteration_bounds = array<i64: 2, 1>, scalar_prefetch = 0 : i64, scratch_operands = 0 : i64, tpu.core_type = #tpu.core_type<tc>, window_params = [{transform_indices = @transform_0, window_bounds = array<i64: 1, 64, 128>}, {pipeline_mode = #tpu.pipeline_mode<synchronous>, transform_indices = @transform_1, window_bounds = array<i64: 128, 128>}, {pipeline_mode = #tpu.pipeline_mode<synchronous>, transform_indices = @transform_2, window_bounds = array<i64: 1, 128>}, {pipeline_mode = #tpu.pipeline_mode<synchronous>, transform_indices = @transform_3, window_bounds = array<i64: 128, 128>}, {pipeline_mode = #tpu.pipeline_mode<synchronous>, transform_indices = @transform_4, window_bounds = array<i64: 1, 128>}, {pipeline_mode = #tpu.pipeline_mode<synchronous>, transform_indices = @transform_5, window_bounds = array<i64: 128, 128>}, {pipeline_mode = #tpu.pipeline_mode<synchronous>, transform_indices = @transform_6, window_bounds = array<i64: 1, 128>}, {transform_indices = @transform_7, window_bounds = array<i64: 1, 64, 128>}]} {
    %c0 = arith.constant 0 : index
    %c0_0 = arith.constant 0 : index
    %c0_1 = arith.constant 0 : index
    %0 = vector.load %arg2[%c0, %c0_0, %c0_1] : memref<1x64x128xbf16, #tpu.memory_space<vmem>>, vector<1x64x128xbf16>
    %1 = vector.shape_cast %0 : vector<1x64x128xbf16> to vector<64x128xbf16>
    %c0_2 = arith.constant 0 : index
    %c0_3 = arith.constant 0 : index
    %2 = vector.load %arg7[%c0_2, %c0_3] : memref<128x128xbf16, #tpu.memory_space<vmem>>, vector<128x128xbf16>
    %cst = arith.constant dense<0.000000e+00> : vector<64x128xf32>
    %3 = tpu.matmul %1, %2, %cst {dimension_numbers = #tpu.dot_dimension_numbers<[1], [0], [0], [1], [0, 0, 1, 1], [], []>} : vector<64x128xbf16>, vector<128x128xbf16>, vector<64x128xf32> -> vector<64x128xf32>
    %c0_4 = arith.constant 0 : index
    %c0_5 = arith.constant 0 : index
    %4 = vector.load %arg8[%c0_4, %c0_5] : memref<1x128xf32, #tpu.memory_space<vmem>>, vector<1x128xf32>
    %5 = vector.broadcast %4 : vector<1x128xf32> to vector<64x128xf32>
    %6 = arith.addf %3, %5 : vector<64x128xf32>
    %7 = arith.extf %1 : vector<64x128xbf16> to vector<64x128xf32>
    %8 = arith.mulf %7, %7 : vector<64x128xf32>
    %9 = arith.mulf %7, %8 : vector<64x128xf32>
    %cst_6 = arith.constant 4.471500e-02 : f32
    %10 = vector.broadcast %cst_6 : f32 to vector<64x128xf32>
    %11 = arith.mulf %10, %9 : vector<64x128xf32>
    %12 = arith.addf %7, %11 : vector<64x128xf32>
    %cst_7 = arith.constant 0.797884583 : f32
    %13 = vector.broadcast %cst_7 : f32 to vector<64x128xf32>
    %14 = arith.mulf %13, %12 : vector<64x128xf32>
    %15 = math.tanh %14 : vector<64x128xf32>
    %cst_8 = arith.constant 1.000000e+00 : f32
    %16 = vector.broadcast %cst_8 : f32 to vector<64x128xf32>
    %17 = arith.addf %16, %15 : vector<64x128xf32>
    %cst_9 = arith.constant 5.000000e-01 : f32
    %18 = vector.broadcast %cst_9 : f32 to vector<64x128xf32>
    %19 = arith.mulf %18, %17 : vector<64x128xf32>
    %20 = arith.mulf %7, %19 : vector<64x128xf32>
    %21 = arith.truncf %20 : vector<64x128xf32> to vector<64x128xbf16>
    %c0_10 = arith.constant 0 : index
    %c0_11 = arith.constant 0 : index
    %22 = vector.load %arg3[%c0_10, %c0_11] : memref<128x128xbf16, #tpu.memory_space<vmem>>, vector<128x128xbf16>
    %cst_12 = arith.constant dense<0.000000e+00> : vector<64x128xf32>
    %23 = tpu.matmul %21, %22, %cst_12 {dimension_numbers = #tpu.dot_dimension_numbers<[1], [0], [0], [1], [0, 0, 1, 1], [], []>} : vector<64x128xbf16>, vector<128x128xbf16>, vector<64x128xf32> -> vector<64x128xf32>
    %c0_13 = arith.constant 0 : index
    %c0_14 = arith.constant 0 : index
    %24 = vector.load %arg4[%c0_13, %c0_14] : memref<1x128xf32, #tpu.memory_space<vmem>>, vector<1x128xf32>
    %25 = vector.broadcast %24 : vector<1x128xf32> to vector<64x128xf32>
    %26 = arith.addf %23, %25 : vector<64x128xf32>
    %27 = arith.mulf %26, %26 : vector<64x128xf32>
    %28 = arith.mulf %26, %27 : vector<64x128xf32>
    %cst_15 = arith.constant 4.471500e-02 : f32
    %29 = vector.broadcast %cst_15 : f32 to vector<64x128xf32>
    %30 = arith.mulf %29, %28 : vector<64x128xf32>
    %31 = arith.addf %26, %30 : vector<64x128xf32>
    %cst_16 = arith.constant 0.797884583 : f32
    %32 = vector.broadcast %cst_16 : f32 to vector<64x128xf32>
    %33 = arith.mulf %32, %31 : vector<64x128xf32>
    %34 = math.tanh %33 : vector<64x128xf32>
    %cst_17 = arith.constant 1.000000e+00 : f32
    %35 = vector.broadcast %cst_17 : f32 to vector<64x128xf32>
    %36 = arith.addf %35, %34 : vector<64x128xf32>
    %cst_18 = arith.constant 5.000000e-01 : f32
    %37 = vector.broadcast %cst_18 : f32 to vector<64x128xf32>
    %38 = arith.mulf %37, %36 : vector<64x128xf32>
    %39 = arith.mulf %26, %38 : vector<64x128xf32>
    %40 = arith.truncf %39 : vector<64x128xf32> to vector<64x128xbf16>
    %c0_19 = arith.constant 0 : index
    %c0_20 = arith.constant 0 : index
    %41 = vector.load %arg5[%c0_19, %c0_20] : memref<128x128xbf16, #tpu.memory_space<vmem>>, vector<128x128xbf16>
    %cst_21 = arith.constant dense<0.000000e+00> : vector<64x128xf32>
    %42 = tpu.matmul %40, %41, %cst_21 {dimension_numbers = #tpu.dot_dimension_numbers<[1], [0], [0], [1], [0, 0, 1, 1], [], []>} : vector<64x128xbf16>, vector<128x128xbf16>, vector<64x128xf32> -> vector<64x128xf32>
    %c0_22 = arith.constant 0 : index
    %c0_23 = arith.constant 0 : index
    %43 = vector.load %arg6[%c0_22, %c0_23] : memref<1x128xf32, #tpu.memory_space<vmem>>, vector<1x128xf32>
    %44 = vector.broadcast %43 : vector<1x128xf32> to vector<64x128xf32>
    %45 = arith.addf %42, %44 : vector<64x128xf32>
    %46 = arith.addf %6, %45 : vector<64x128xf32>
    %47 = arith.truncf %46 : vector<64x128xf32> to vector<64x128xbf16>
    %c0_24 = arith.constant 0 : index
    %c0_25 = arith.constant 0 : index
    %c0_26 = arith.constant 0 : index
    %48 = vector.load %arg9[%c0_24, %c0_25, %c0_26] : memref<1x64x128xbf16, #tpu.memory_space<vmem>>, vector<1x64x128xbf16>
    %49 = vector.shape_cast %48 : vector<1x64x128xbf16> to vector<64x128xbf16>
    %50 = vector.shape_cast %47 : vector<64x128xbf16> to vector<1x64x128xbf16>
    tpu.vector_store %arg9[%c0_24, %c0_25, %c0_26], %50 {strides = array<i32>} : memref<1x64x128xbf16, #tpu.memory_space<vmem>>, vector<1x64x128xbf16>,
    return
  }
  func.func @transform_0(%arg0: i32, %arg1: i32) -> (i32, i32, i32) {
    %c0_i32 = arith.constant 0 : i32
    %c0_i32_0 = arith.constant 0 : i32
    return %arg0, %arg1, %c0_i32 : i32, i32, i32
  }
  func.func @transform_1(%arg0: i32, %arg1: i32) -> (i32, i32) {
    %c0_i32 = arith.constant 0 : i32
    %c0_i32_0 = arith.constant 0 : i32
    %c0_i32_1 = arith.constant 0 : i32
    return %c0_i32, %c0_i32_0 : i32, i32
  }
  func.func @transform_2(%arg0: i32, %arg1: i32) -> (i32, i32) {
    %c0_i32 = arith.constant 0 : i32
    %c0_i32_0 = arith.constant 0 : i32
    %c0_i32_1 = arith.constant 0 : i32
    return %c0_i32, %c0_i32_0 : i32, i32
  }
  func.func @transform_3(%arg0: i32, %arg1: i32) -> (i32, i32) {
    %c0_i32 = arith.constant 0 : i32
    %c0_i32_0 = arith.constant 0 : i32
    %c0_i32_1 = arith.constant 0 : i32
    return %c0_i32, %c0_i32_0 : i32, i32
  }
  func.func @transform_4(%arg0: i32, %arg1: i32) -> (i32, i32) {
    %c0_i32 = arith.constant 0 : i32
    %c0_i32_0 = arith.constant 0 : i32
    %c0_i32_1 = arith.constant 0 : i32
    return %c0_i32, %c0_i32_0 : i32, i32
  }
  func.func @transform_5(%arg0: i32, %arg1: i32) -> (i32, i32) {
    %c0_i32 = arith.constant 0 : i32
    %c0_i32_0 = arith.constant 0 : i32
    %c0_i32_1 = arith.constant 0 : i32
    return %c0_i32, %c0_i32_0 : i32, i32
  }
  func.func @transform_6(%arg0: i32, %arg1: i32) -> (i32, i32) {
    %c0_i32 = arith.constant 0 : i32
    %c0_i32_0 = arith.constant 0 : i32
    %c0_i32_1 = arith.constant 0 : i32
    return %c0_i32, %c0_i32_0 : i32, i32
  }
  func.func @transform_7(%arg0: i32, %arg1: i32) -> (i32, i32, i32) {
    %c0_i32 = arith.constant 0 : i32
    %c0_i32_0 = arith.constant 0 : i32
    return %arg0, %arg1, %c0_i32 : i32, i32, i32
  }
}

module attributes {stable_mosaic.version = 11 : i64} {
  func.func @_resblock_kernel(%arg0: i32, %arg1: i32, %arg2: memref<1x16x128xbf16, #tpu.memory_space<vmem>>, %arg3: memref<128x128xbf16, #tpu.memory_space<vmem>>, %arg4: memref<1x128xf32, #tpu.memory_space<vmem>>, %arg5: memref<128x128xbf16, #tpu.memory_space<vmem>>, %arg6: memref<1x128xf32, #tpu.memory_space<vmem>>, %arg7: memref<128x128xbf16, #tpu.memory_space<vmem>>, %arg8: memref<1x128xf32, #tpu.memory_space<vmem>>, %arg9: memref<1x16x128xbf16, #tpu.memory_space<vmem>>) attributes {dimension_semantics = [#tpu.dimension_semantics<parallel>, #tpu.dimension_semantics<parallel>], iteration_bounds = array<i64: 2, 1>, scalar_prefetch = 0 : i64, scratch_operands = 0 : i64, tpu.core_type = #tpu.core_type<tc>, window_params = [{transform_indices = @transform_0, window_bounds = array<i64: 1, 16, 128>}, {pipeline_mode = #tpu.pipeline_mode<synchronous>, transform_indices = @transform_1, window_bounds = array<i64: 128, 128>}, {pipeline_mode = #tpu.pipeline_mode<synchronous>, transform_indices = @transform_2, window_bounds = array<i64: 1, 128>}, {pipeline_mode = #tpu.pipeline_mode<synchronous>, transform_indices = @transform_3, window_bounds = array<i64: 128, 128>}, {pipeline_mode = #tpu.pipeline_mode<synchronous>, transform_indices = @transform_4, window_bounds = array<i64: 1, 128>}, {pipeline_mode = #tpu.pipeline_mode<synchronous>, transform_indices = @transform_5, window_bounds = array<i64: 128, 128>}, {pipeline_mode = #tpu.pipeline_mode<synchronous>, transform_indices = @transform_6, window_bounds = array<i64: 1, 128>}, {transform_indices = @transform_7, window_bounds = array<i64: 1, 16, 128>}]} {
    %c0 = arith.constant 0 : index
    %c0_0 = arith.constant 0 : index
    %c0_1 = arith.constant 0 : index
    %0 = vector.load %arg2[%c0, %c0_0, %c0_1] : memref<1x16x128xbf16, #tpu.memory_space<vmem>>, vector<1x16x128xbf16>
    %1 = vector.shape_cast %0 : vector<1x16x128xbf16> to vector<16x128xbf16>
    %c0_2 = arith.constant 0 : index
    %c0_3 = arith.constant 0 : index
    %2 = vector.load %arg7[%c0_2, %c0_3] : memref<128x128xbf16, #tpu.memory_space<vmem>>, vector<128x128xbf16>
    %cst = arith.constant dense<0.000000e+00> : vector<16x128xf32>
    %3 = tpu.matmul %1, %2, %cst {dimension_numbers = #tpu.dot_dimension_numbers<[1], [0], [0], [1], [0, 0, 1, 1], [], []>} : vector<16x128xbf16>, vector<128x128xbf16>, vector<16x128xf32> -> vector<16x128xf32>
    %c0_4 = arith.constant 0 : index
    %c0_5 = arith.constant 0 : index
    %4 = vector.load %arg8[%c0_4, %c0_5] : memref<1x128xf32, #tpu.memory_space<vmem>>, vector<1x128xf32>
    %5 = vector.broadcast %4 : vector<1x128xf32> to vector<16x128xf32>
    %6 = arith.addf %3, %5 : vector<16x128xf32>
    %7 = arith.extf %1 : vector<16x128xbf16> to vector<16x128xf32>
    %8 = arith.mulf %7, %7 : vector<16x128xf32>
    %9 = arith.mulf %7, %8 : vector<16x128xf32>
    %cst_6 = arith.constant 4.471500e-02 : f32
    %10 = vector.broadcast %cst_6 : f32 to vector<16x128xf32>
    %11 = arith.mulf %10, %9 : vector<16x128xf32>
    %12 = arith.addf %7, %11 : vector<16x128xf32>
    %cst_7 = arith.constant 0.797884583 : f32
    %13 = vector.broadcast %cst_7 : f32 to vector<16x128xf32>
    %14 = arith.mulf %13, %12 : vector<16x128xf32>
    %15 = math.tanh %14 : vector<16x128xf32>
    %cst_8 = arith.constant 1.000000e+00 : f32
    %16 = vector.broadcast %cst_8 : f32 to vector<16x128xf32>
    %17 = arith.addf %16, %15 : vector<16x128xf32>
    %cst_9 = arith.constant 5.000000e-01 : f32
    %18 = vector.broadcast %cst_9 : f32 to vector<16x128xf32>
    %19 = arith.mulf %18, %17 : vector<16x128xf32>
    %20 = arith.mulf %7, %19 : vector<16x128xf32>
    %21 = arith.truncf %20 : vector<16x128xf32> to vector<16x128xbf16>
    %c0_10 = arith.constant 0 : index
    %c0_11 = arith.constant 0 : index
    %22 = vector.load %arg3[%c0_10, %c0_11] : memref<128x128xbf16, #tpu.memory_space<vmem>>, vector<128x128xbf16>
    %cst_12 = arith.constant dense<0.000000e+00> : vector<16x128xf32>
    %23 = tpu.matmul %21, %22, %cst_12 {dimension_numbers = #tpu.dot_dimension_numbers<[1], [0], [0], [1], [0, 0, 1, 1], [], []>} : vector<16x128xbf16>, vector<128x128xbf16>, vector<16x128xf32> -> vector<16x128xf32>
    %c0_13 = arith.constant 0 : index
    %c0_14 = arith.constant 0 : index
    %24 = vector.load %arg4[%c0_13, %c0_14] : memref<1x128xf32, #tpu.memory_space<vmem>>, vector<1x128xf32>
    %25 = vector.broadcast %24 : vector<1x128xf32> to vector<16x128xf32>
    %26 = arith.addf %23, %25 : vector<16x128xf32>
    %27 = arith.mulf %26, %26 : vector<16x128xf32>
    %28 = arith.mulf %26, %27 : vector<16x128xf32>
    %cst_15 = arith.constant 4.471500e-02 : f32
    %29 = vector.broadcast %cst_15 : f32 to vector<16x128xf32>
    %30 = arith.mulf %29, %28 : vector<16x128xf32>
    %31 = arith.addf %26, %30 : vector<16x128xf32>
    %cst_16 = arith.constant 0.797884583 : f32
    %32 = vector.broadcast %cst_16 : f32 to vector<16x128xf32>
    %33 = arith.mulf %32, %31 : vector<16x128xf32>
    %34 = math.tanh %33 : vector<16x128xf32>
    %cst_17 = arith.constant 1.000000e+00 : f32
    %35 = vector.broadcast %cst_17 : f32 to vector<16x128xf32>
    %36 = arith.addf %35, %34 : vector<16x128xf32>
    %cst_18 = arith.constant 5.000000e-01 : f32
    %37 = vector.broadcast %cst_18 : f32 to vector<16x128xf32>
    %38 = arith.mulf %37, %36 : vector<16x128xf32>
    %39 = arith.mulf %26, %38 : vector<16x128xf32>
    %40 = arith.truncf %39 : vector<16x128xf32> to vector<16x128xbf16>
    %c0_19 = arith.constant 0 : index
    %c0_20 = arith.constant 0 : index
    %41 = vector.load %arg5[%c0_19, %c0_20] : memref<128x128xbf16, #tpu.memory_space<vmem>>, vector<128x128xbf16>
    %cst_21 = arith.constant dense<0.000000e+00> : vector<16x128xf32>
    %42 = tpu.matmul %40, %41, %cst_21 {dimension_numbers = #tpu.dot_dimension_numbers<[1], [0], [0], [1], [0, 0, 1, 1], [], []>} : vector<16x128xbf16>, vector<128x128xbf16>, vector<16x128xf32> -> vector<16x128xf32>
    %c0_22 = arith.constant 0 : index
    %c0_23 = arith.constant 0 : index
    %43 = vector.load %arg6[%c0_22, %c0_23] : memref<1x128xf32, #tpu.memory_space<vmem>>, vector<1x128xf32>
    %44 = vector.broadcast %43 : vector<1x128xf32> to vector<16x128xf32>
    %45 = arith.addf %42, %44 : vector<16x128xf32>
    %46 = arith.addf %6, %45 : vector<16x128xf32>
    %47 = arith.truncf %46 : vector<16x128xf32> to vector<16x128xbf16>
    %c0_24 = arith.constant 0 : index
    %c0_25 = arith.constant 0 : index
    %c0_26 = arith.constant 0 : index
    %48 = vector.load %arg9[%c0_24, %c0_25, %c0_26] : memref<1x16x128xbf16, #tpu.memory_space<vmem>>, vector<1x16x128xbf16>
    %49 = vector.shape_cast %48 : vector<1x16x128xbf16> to vector<16x128xbf16>
    %50 = vector.shape_cast %47 : vector<16x128xbf16> to vector<1x16x128xbf16>
    tpu.vector_store %arg9[%c0_24, %c0_25, %c0_26], %50 {strides = array<i32>} : memref<1x16x128xbf16, #tpu.memory_space<vmem>>, vector<1x16x128xbf16>,
    return
  }
  func.func @transform_0(%arg0: i32, %arg1: i32) -> (i32, i32, i32) {
    %c0_i32 = arith.constant 0 : i32
    %c0_i32_0 = arith.constant 0 : i32
    return %arg0, %arg1, %c0_i32 : i32, i32, i32
  }
  func.func @transform_1(%arg0: i32, %arg1: i32) -> (i32, i32) {
    %c0_i32 = arith.constant 0 : i32
    %c0_i32_0 = arith.constant 0 : i32
    %c0_i32_1 = arith.constant 0 : i32
    return %c0_i32, %c0_i32_0 : i32, i32
  }
  func.func @transform_2(%arg0: i32, %arg1: i32) -> (i32, i32) {
    %c0_i32 = arith.constant 0 : i32
    %c0_i32_0 = arith.constant 0 : i32
    %c0_i32_1 = arith.constant 0 : i32
    return %c0_i32, %c0_i32_0 : i32, i32
  }
  func.func @transform_3(%arg0: i32, %arg1: i32) -> (i32, i32) {
    %c0_i32 = arith.constant 0 : i32
    %c0_i32_0 = arith.constant 0 : i32
    %c0_i32_1 = arith.constant 0 : i32
    return %c0_i32, %c0_i32_0 : i32, i32
  }
  func.func @transform_4(%arg0: i32, %arg1: i32) -> (i32, i32) {
    %c0_i32 = arith.constant 0 : i32
    %c0_i32_0 = arith.constant 0 : i32
    %c0_i32_1 = arith.constant 0 : i32
    return %c0_i32, %c0_i32_0 : i32, i32
  }
  func.func @transform_5(%arg0: i32, %arg1: i32) -> (i32, i32) {
    %c0_i32 = arith.constant 0 : i32
    %c0_i32_0 = arith.constant 0 : i32
    %c0_i32_1 = arith.constant 0 : i32
    return %c0_i32, %c0_i32_0 : i32, i32
  }
  func.func @transform_6(%arg0: i32, %arg1: i32) -> (i32, i32) {
    %c0_i32 = arith.constant 0 : i32
    %c0_i32_0 = arith.constant 0 : i32
    %c0_i32_1 = arith.constant 0 : i32
    return %c0_i32, %c0_i32_0 : i32, i32
  }
  func.func @transform_7(%arg0: i32, %arg1: i32) -> (i32, i32, i32) {
    %c0_i32 = arith.constant 0 : i32
    %c0_i32_0 = arith.constant 0 : i32
    return %arg0, %arg1, %c0_i32 : i32, i32, i32
  }
}

module attributes {stable_mosaic.version = 11 : i64} {
  func.func @_resblock_kernel(%arg0: i32, %arg1: i32, %arg2: memref<1x16x256xbf16, #tpu.memory_space<vmem>>, %arg3: memref<256x128xbf16, #tpu.memory_space<vmem>>, %arg4: memref<1x128xf32, #tpu.memory_space<vmem>>, %arg5: memref<128x128xbf16, #tpu.memory_space<vmem>>, %arg6: memref<1x128xf32, #tpu.memory_space<vmem>>, %arg7: memref<256x128xbf16, #tpu.memory_space<vmem>>, %arg8: memref<1x128xf32, #tpu.memory_space<vmem>>, %arg9: memref<1x16x128xbf16, #tpu.memory_space<vmem>>) attributes {dimension_semantics = [#tpu.dimension_semantics<parallel>, #tpu.dimension_semantics<parallel>], iteration_bounds = array<i64: 2, 1>, scalar_prefetch = 0 : i64, scratch_operands = 0 : i64, tpu.core_type = #tpu.core_type<tc>, window_params = [{transform_indices = @transform_0, window_bounds = array<i64: 1, 16, 256>}, {pipeline_mode = #tpu.pipeline_mode<synchronous>, transform_indices = @transform_1, window_bounds = array<i64: 256, 128>}, {pipeline_mode = #tpu.pipeline_mode<synchronous>, transform_indices = @transform_2, window_bounds = array<i64: 1, 128>}, {pipeline_mode = #tpu.pipeline_mode<synchronous>, transform_indices = @transform_3, window_bounds = array<i64: 128, 128>}, {pipeline_mode = #tpu.pipeline_mode<synchronous>, transform_indices = @transform_4, window_bounds = array<i64: 1, 128>}, {pipeline_mode = #tpu.pipeline_mode<synchronous>, transform_indices = @transform_5, window_bounds = array<i64: 256, 128>}, {pipeline_mode = #tpu.pipeline_mode<synchronous>, transform_indices = @transform_6, window_bounds = array<i64: 1, 128>}, {transform_indices = @transform_7, window_bounds = array<i64: 1, 16, 128>}]} {
    %c0 = arith.constant 0 : index
    %c0_0 = arith.constant 0 : index
    %c0_1 = arith.constant 0 : index
    %0 = vector.load %arg2[%c0, %c0_0, %c0_1] : memref<1x16x256xbf16, #tpu.memory_space<vmem>>, vector<1x16x256xbf16>
    %1 = vector.shape_cast %0 : vector<1x16x256xbf16> to vector<16x256xbf16>
    %c0_2 = arith.constant 0 : index
    %c0_3 = arith.constant 0 : index
    %2 = vector.load %arg7[%c0_2, %c0_3] : memref<256x128xbf16, #tpu.memory_space<vmem>>, vector<256x128xbf16>
    %cst = arith.constant dense<0.000000e+00> : vector<16x128xf32>
    %3 = tpu.matmul %1, %2, %cst {dimension_numbers = #tpu.dot_dimension_numbers<[1], [0], [0], [1], [0, 0, 1, 1], [], []>} : vector<16x256xbf16>, vector<256x128xbf16>, vector<16x128xf32> -> vector<16x128xf32>
    %c0_4 = arith.constant 0 : index
    %c0_5 = arith.constant 0 : index
    %4 = vector.load %arg8[%c0_4, %c0_5] : memref<1x128xf32, #tpu.memory_space<vmem>>, vector<1x128xf32>
    %5 = vector.broadcast %4 : vector<1x128xf32> to vector<16x128xf32>
    %6 = arith.addf %3, %5 : vector<16x128xf32>
    %7 = arith.extf %1 : vector<16x256xbf16> to vector<16x256xf32>
    %8 = arith.mulf %7, %7 : vector<16x256xf32>
    %9 = arith.mulf %7, %8 : vector<16x256xf32>
    %cst_6 = arith.constant 4.471500e-02 : f32
    %10 = vector.broadcast %cst_6 : f32 to vector<16x256xf32>
    %11 = arith.mulf %10, %9 : vector<16x256xf32>
    %12 = arith.addf %7, %11 : vector<16x256xf32>
    %cst_7 = arith.constant 0.797884583 : f32
    %13 = vector.broadcast %cst_7 : f32 to vector<16x256xf32>
    %14 = arith.mulf %13, %12 : vector<16x256xf32>
    %15 = math.tanh %14 : vector<16x256xf32>
    %cst_8 = arith.constant 1.000000e+00 : f32
    %16 = vector.broadcast %cst_8 : f32 to vector<16x256xf32>
    %17 = arith.addf %16, %15 : vector<16x256xf32>
    %cst_9 = arith.constant 5.000000e-01 : f32
    %18 = vector.broadcast %cst_9 : f32 to vector<16x256xf32>
    %19 = arith.mulf %18, %17 : vector<16x256xf32>
    %20 = arith.mulf %7, %19 : vector<16x256xf32>
    %21 = arith.truncf %20 : vector<16x256xf32> to vector<16x256xbf16>
    %c0_10 = arith.constant 0 : index
    %c0_11 = arith.constant 0 : index
    %22 = vector.load %arg3[%c0_10, %c0_11] : memref<256x128xbf16, #tpu.memory_space<vmem>>, vector<256x128xbf16>
    %cst_12 = arith.constant dense<0.000000e+00> : vector<16x128xf32>
    %23 = tpu.matmul %21, %22, %cst_12 {dimension_numbers = #tpu.dot_dimension_numbers<[1], [0], [0], [1], [0, 0, 1, 1], [], []>} : vector<16x256xbf16>, vector<256x128xbf16>, vector<16x128xf32> -> vector<16x128xf32>
    %c0_13 = arith.constant 0 : index
    %c0_14 = arith.constant 0 : index
    %24 = vector.load %arg4[%c0_13, %c0_14] : memref<1x128xf32, #tpu.memory_space<vmem>>, vector<1x128xf32>
    %25 = vector.broadcast %24 : vector<1x128xf32> to vector<16x128xf32>
    %26 = arith.addf %23, %25 : vector<16x128xf32>
    %27 = arith.mulf %26, %26 : vector<16x128xf32>
    %28 = arith.mulf %26, %27 : vector<16x128xf32>
    %cst_15 = arith.constant 4.471500e-02 : f32
    %29 = vector.broadcast %cst_15 : f32 to vector<16x128xf32>
    %30 = arith.mulf %29, %28 : vector<16x128xf32>
    %31 = arith.addf %26, %30 : vector<16x128xf32>
    %cst_16 = arith.constant 0.797884583 : f32
    %32 = vector.broadcast %cst_16 : f32 to vector<16x128xf32>
    %33 = arith.mulf %32, %31 : vector<16x128xf32>
    %34 = math.tanh %33 : vector<16x128xf32>
    %cst_17 = arith.constant 1.000000e+00 : f32
    %35 = vector.broadcast %cst_17 : f32 to vector<16x128xf32>
    %36 = arith.addf %35, %34 : vector<16x128xf32>
    %cst_18 = arith.constant 5.000000e-01 : f32
    %37 = vector.broadcast %cst_18 : f32 to vector<16x128xf32>
    %38 = arith.mulf %37, %36 : vector<16x128xf32>
    %39 = arith.mulf %26, %38 : vector<16x128xf32>
    %40 = arith.truncf %39 : vector<16x128xf32> to vector<16x128xbf16>
    %c0_19 = arith.constant 0 : index
    %c0_20 = arith.constant 0 : index
    %41 = vector.load %arg5[%c0_19, %c0_20] : memref<128x128xbf16, #tpu.memory_space<vmem>>, vector<128x128xbf16>
    %cst_21 = arith.constant dense<0.000000e+00> : vector<16x128xf32>
    %42 = tpu.matmul %40, %41, %cst_21 {dimension_numbers = #tpu.dot_dimension_numbers<[1], [0], [0], [1], [0, 0, 1, 1], [], []>} : vector<16x128xbf16>, vector<128x128xbf16>, vector<16x128xf32> -> vector<16x128xf32>
    %c0_22 = arith.constant 0 : index
    %c0_23 = arith.constant 0 : index
    %43 = vector.load %arg6[%c0_22, %c0_23] : memref<1x128xf32, #tpu.memory_space<vmem>>, vector<1x128xf32>
    %44 = vector.broadcast %43 : vector<1x128xf32> to vector<16x128xf32>
    %45 = arith.addf %42, %44 : vector<16x128xf32>
    %46 = arith.addf %6, %45 : vector<16x128xf32>
    %47 = arith.truncf %46 : vector<16x128xf32> to vector<16x128xbf16>
    %c0_24 = arith.constant 0 : index
    %c0_25 = arith.constant 0 : index
    %c0_26 = arith.constant 0 : index
    %48 = vector.load %arg9[%c0_24, %c0_25, %c0_26] : memref<1x16x128xbf16, #tpu.memory_space<vmem>>, vector<1x16x128xbf16>
    %49 = vector.shape_cast %48 : vector<1x16x128xbf16> to vector<16x128xbf16>
    %50 = vector.shape_cast %47 : vector<16x128xbf16> to vector<1x16x128xbf16>
    tpu.vector_store %arg9[%c0_24, %c0_25, %c0_26], %50 {strides = array<i32>} : memref<1x16x128xbf16, #tpu.memory_space<vmem>>, vector<1x16x128xbf16>,
    return
  }
  func.func @transform_0(%arg0: i32, %arg1: i32) -> (i32, i32, i32) {
    %c0_i32 = arith.constant 0 : i32
    %c0_i32_0 = arith.constant 0 : i32
    return %arg0, %arg1, %c0_i32 : i32, i32, i32
  }
  func.func @transform_1(%arg0: i32, %arg1: i32) -> (i32, i32) {
    %c0_i32 = arith.constant 0 : i32
    %c0_i32_0 = arith.constant 0 : i32
    %c0_i32_1 = arith.constant 0 : i32
    return %c0_i32, %c0_i32_0 : i32, i32
  }
  func.func @transform_2(%arg0: i32, %arg1: i32) -> (i32, i32) {
    %c0_i32 = arith.constant 0 : i32
    %c0_i32_0 = arith.constant 0 : i32
    %c0_i32_1 = arith.constant 0 : i32
    return %c0_i32, %c0_i32_0 : i32, i32
  }
  func.func @transform_3(%arg0: i32, %arg1: i32) -> (i32, i32) {
    %c0_i32 = arith.constant 0 : i32
    %c0_i32_0 = arith.constant 0 : i32
    %c0_i32_1 = arith.constant 0 : i32
    return %c0_i32, %c0_i32_0 : i32, i32
  }
  func.func @transform_4(%arg0: i32, %arg1: i32) -> (i32, i32) {
    %c0_i32 = arith.constant 0 : i32
    %c0_i32_0 = arith.constant 0 : i32
    %c0_i32_1 = arith.constant 0 : i32
    return %c0_i32, %c0_i32_0 : i32, i32
  }
  func.func @transform_5(%arg0: i32, %arg1: i32) -> (i32, i32) {
    %c0_i32 = arith.constant 0 : i32
    %c0_i32_0 = arith.constant 0 : i32
    %c0_i32_1 = arith.constant 0 : i32
    return %c0_i32, %c0_i32_0 : i32, i32
  }
  func.func @transform_6(%arg0: i32, %arg1: i32) -> (i32, i32) {
    %c0_i32 = arith.constant 0 : i32
    %c0_i32_0 = arith.constant 0 : i32
    %c0_i32_1 = arith.constant 0 : i32
    return %c0_i32, %c0_i32_0 : i32, i32
  }
  func.func @transform_7(%arg0: i32, %arg1: i32) -> (i32, i32, i32) {
    %c0_i32 = arith.constant 0 : i32
    %c0_i32_0 = arith.constant 0 : i32
    return %arg0, %arg1, %c0_i32 : i32, i32, i32
  }
}

module attributes {stable_mosaic.version = 11 : i64} {
  func.func @_film_resblock_kernel(%arg0: i32, %arg1: i32, %arg2: memref<1x16x256xbf16, #tpu.memory_space<vmem>>, %arg3: memref<1x2x256xf32, #tpu.memory_space<vmem>>, %arg4: memref<256x128xbf16, #tpu.memory_space<vmem>>, %arg5: memref<1x128xf32, #tpu.memory_space<vmem>>, %arg6: memref<128x128xbf16, #tpu.memory_space<vmem>>, %arg7: memref<1x128xf32, #tpu.memory_space<vmem>>, %arg8: memref<256x128xbf16, #tpu.memory_space<vmem>>, %arg9: memref<1x128xf32, #tpu.memory_space<vmem>>, %arg10: memref<1x16x128xbf16, #tpu.memory_space<vmem>>) attributes {dimension_semantics = [#tpu.dimension_semantics<parallel>, #tpu.dimension_semantics<parallel>], iteration_bounds = array<i64: 2, 1>, scalar_prefetch = 0 : i64, scratch_operands = 0 : i64, tpu.core_type = #tpu.core_type<tc>, window_params = [{transform_indices = @transform_0, window_bounds = array<i64: 1, 16, 256>}, {transform_indices = @transform_1, window_bounds = array<i64: 1, 2, 256>}, {pipeline_mode = #tpu.pipeline_mode<synchronous>, transform_indices = @transform_2, window_bounds = array<i64: 256, 128>}, {pipeline_mode = #tpu.pipeline_mode<synchronous>, transform_indices = @transform_3, window_bounds = array<i64: 1, 128>}, {pipeline_mode = #tpu.pipeline_mode<synchronous>, transform_indices = @transform_4, window_bounds = array<i64: 128, 128>}, {pipeline_mode = #tpu.pipeline_mode<synchronous>, transform_indices = @transform_5, window_bounds = array<i64: 1, 128>}, {pipeline_mode = #tpu.pipeline_mode<synchronous>, transform_indices = @transform_6, window_bounds = array<i64: 256, 128>}, {pipeline_mode = #tpu.pipeline_mode<synchronous>, transform_indices = @transform_7, window_bounds = array<i64: 1, 128>}, {transform_indices = @transform_8, window_bounds = array<i64: 1, 16, 128>}]} {
    %c0 = arith.constant 0 : index
    %c0_0 = arith.constant 0 : index
    %c0_1 = arith.constant 0 : index
    %0 = vector.load %arg3[%c0, %c0_0, %c0_1] : memref<1x2x256xf32, #tpu.memory_space<vmem>>, vector<1x1x256xf32>
    %1 = vector.shape_cast %0 : vector<1x1x256xf32> to vector<1x256xf32>
    %c0_2 = arith.constant 0 : index
    %c1 = arith.constant 1 : index
    %c0_3 = arith.constant 0 : index
    %2 = vector.load %arg3[%c0_2, %c1, %c0_3] : memref<1x2x256xf32, #tpu.memory_space<vmem>>, vector<1x1x256xf32>
    %3 = vector.shape_cast %2 : vector<1x1x256xf32> to vector<1x256xf32>
    %c0_4 = arith.constant 0 : index
    %c0_5 = arith.constant 0 : index
    %c0_6 = arith.constant 0 : index
    %4 = vector.load %arg2[%c0_4, %c0_5, %c0_6] : memref<1x16x256xbf16, #tpu.memory_space<vmem>>, vector<1x16x256xbf16>
    %5 = vector.shape_cast %4 : vector<1x16x256xbf16> to vector<16x256xbf16>
    %6 = arith.extf %5 : vector<16x256xbf16> to vector<16x256xf32>
    %7 = vector.broadcast %3 : vector<1x256xf32> to vector<16x256xf32>
    %8 = arith.mulf %6, %7 : vector<16x256xf32>
    %9 = vector.broadcast %1 : vector<1x256xf32> to vector<16x256xf32>
    %10 = arith.addf %8, %9 : vector<16x256xf32>
    %11 = arith.truncf %10 : vector<16x256xf32> to vector<16x256xbf16>
    %c0_7 = arith.constant 0 : index
    %c0_8 = arith.constant 0 : index
    %12 = vector.load %arg8[%c0_7, %c0_8] : memref<256x128xbf16, #tpu.memory_space<vmem>>, vector<256x128xbf16>
    %cst = arith.constant dense<0.000000e+00> : vector<16x128xf32>
    %13 = tpu.matmul %11, %12, %cst {dimension_numbers = #tpu.dot_dimension_numbers<[1], [0], [0], [1], [0, 0, 1, 1], [], []>} : vector<16x256xbf16>, vector<256x128xbf16>, vector<16x128xf32> -> vector<16x128xf32>
    %c0_9 = arith.constant 0 : index
    %c0_10 = arith.constant 0 : index
    %14 = vector.load %arg9[%c0_9, %c0_10] : memref<1x128xf32, #tpu.memory_space<vmem>>, vector<1x128xf32>
    %15 = vector.broadcast %14 : vector<1x128xf32> to vector<16x128xf32>
    %16 = arith.addf %13, %15 : vector<16x128xf32>
    %17 = arith.mulf %10, %10 : vector<16x256xf32>
    %18 = arith.mulf %10, %17 : vector<16x256xf32>
    %cst_11 = arith.constant 4.471500e-02 : f32
    %19 = vector.broadcast %cst_11 : f32 to vector<16x256xf32>
    %20 = arith.mulf %19, %18 : vector<16x256xf32>
    %21 = arith.addf %10, %20 : vector<16x256xf32>
    %cst_12 = arith.constant 0.797884583 : f32
    %22 = vector.broadcast %cst_12 : f32 to vector<16x256xf32>
    %23 = arith.mulf %22, %21 : vector<16x256xf32>
    %24 = math.tanh %23 : vector<16x256xf32>
    %cst_13 = arith.constant 1.000000e+00 : f32
    %25 = vector.broadcast %cst_13 : f32 to vector<16x256xf32>
    %26 = arith.addf %25, %24 : vector<16x256xf32>
    %cst_14 = arith.constant 5.000000e-01 : f32
    %27 = vector.broadcast %cst_14 : f32 to vector<16x256xf32>
    %28 = arith.mulf %27, %26 : vector<16x256xf32>
    %29 = arith.mulf %10, %28 : vector<16x256xf32>
    %30 = arith.truncf %29 : vector<16x256xf32> to vector<16x256xbf16>
    %c0_15 = arith.constant 0 : index
    %c0_16 = arith.constant 0 : index
    %31 = vector.load %arg4[%c0_15, %c0_16] : memref<256x128xbf16, #tpu.memory_space<vmem>>, vector<256x128xbf16>
    %cst_17 = arith.constant dense<0.000000e+00> : vector<16x128xf32>
    %32 = tpu.matmul %30, %31, %cst_17 {dimension_numbers = #tpu.dot_dimension_numbers<[1], [0], [0], [1], [0, 0, 1, 1], [], []>} : vector<16x256xbf16>, vector<256x128xbf16>, vector<16x128xf32> -> vector<16x128xf32>
    %c0_18 = arith.constant 0 : index
    %c0_19 = arith.constant 0 : index
    %33 = vector.load %arg5[%c0_18, %c0_19] : memref<1x128xf32, #tpu.memory_space<vmem>>, vector<1x128xf32>
    %34 = vector.broadcast %33 : vector<1x128xf32> to vector<16x128xf32>
    %35 = arith.addf %32, %34 : vector<16x128xf32>
    %36 = arith.mulf %35, %35 : vector<16x128xf32>
    %37 = arith.mulf %35, %36 : vector<16x128xf32>
    %cst_20 = arith.constant 4.471500e-02 : f32
    %38 = vector.broadcast %cst_20 : f32 to vector<16x128xf32>
    %39 = arith.mulf %38, %37 : vector<16x128xf32>
    %40 = arith.addf %35, %39 : vector<16x128xf32>
    %cst_21 = arith.constant 0.797884583 : f32
    %41 = vector.broadcast %cst_21 : f32 to vector<16x128xf32>
    %42 = arith.mulf %41, %40 : vector<16x128xf32>
    %43 = math.tanh %42 : vector<16x128xf32>
    %cst_22 = arith.constant 1.000000e+00 : f32
    %44 = vector.broadcast %cst_22 : f32 to vector<16x128xf32>
    %45 = arith.addf %44, %43 : vector<16x128xf32>
    %cst_23 = arith.constant 5.000000e-01 : f32
    %46 = vector.broadcast %cst_23 : f32 to vector<16x128xf32>
    %47 = arith.mulf %46, %45 : vector<16x128xf32>
    %48 = arith.mulf %35, %47 : vector<16x128xf32>
    %49 = arith.truncf %48 : vector<16x128xf32> to vector<16x128xbf16>
    %c0_24 = arith.constant 0 : index
    %c0_25 = arith.constant 0 : index
    %50 = vector.load %arg6[%c0_24, %c0_25] : memref<128x128xbf16, #tpu.memory_space<vmem>>, vector<128x128xbf16>
    %cst_26 = arith.constant dense<0.000000e+00> : vector<16x128xf32>
    %51 = tpu.matmul %49, %50, %cst_26 {dimension_numbers = #tpu.dot_dimension_numbers<[1], [0], [0], [1], [0, 0, 1, 1], [], []>} : vector<16x128xbf16>, vector<128x128xbf16>, vector<16x128xf32> -> vector<16x128xf32>
    %c0_27 = arith.constant 0 : index
    %c0_28 = arith.constant 0 : index
    %52 = vector.load %arg7[%c0_27, %c0_28] : memref<1x128xf32, #tpu.memory_space<vmem>>, vector<1x128xf32>
    %53 = vector.broadcast %52 : vector<1x128xf32> to vector<16x128xf32>
    %54 = arith.addf %51, %53 : vector<16x128xf32>
    %55 = arith.addf %16, %54 : vector<16x128xf32>
    %56 = arith.truncf %55 : vector<16x128xf32> to vector<16x128xbf16>
    %c0_29 = arith.constant 0 : index
    %c0_30 = arith.constant 0 : index
    %c0_31 = arith.constant 0 : index
    %57 = vector.load %arg10[%c0_29, %c0_30, %c0_31] : memref<1x16x128xbf16, #tpu.memory_space<vmem>>, vector<1x16x128xbf16>
    %58 = vector.shape_cast %57 : vector<1x16x128xbf16> to vector<16x128xbf16>
    %59 = vector.shape_cast %56 : vector<16x128xbf16> to vector<1x16x128xbf16>
    tpu.vector_store %arg10[%c0_29, %c0_30, %c0_31], %59 {strides = array<i32>} : memref<1x16x128xbf16, #tpu.memory_space<vmem>>, vector<1x16x128xbf16>,
    return
  }
  func.func @transform_0(%arg0: i32, %arg1: i32) -> (i32, i32, i32) {
    %c0_i32 = arith.constant 0 : i32
    %c0_i32_0 = arith.constant 0 : i32
    return %arg0, %arg1, %c0_i32 : i32, i32, i32
  }
  func.func @transform_1(%arg0: i32, %arg1: i32) -> (i32, i32, i32) {
    %c0_i32 = arith.constant 0 : i32
    %c0_i32_0 = arith.constant 0 : i32
    %c0_i32_1 = arith.constant 0 : i32
    return %arg0, %c0_i32, %c0_i32_0 : i32, i32, i32
  }
  func.func @transform_2(%arg0: i32, %arg1: i32) -> (i32, i32) {
    %c0_i32 = arith.constant 0 : i32
    %c0_i32_0 = arith.constant 0 : i32
    %c0_i32_1 = arith.constant 0 : i32
    return %c0_i32, %c0_i32_0 : i32, i32
  }
  func.func @transform_3(%arg0: i32, %arg1: i32) -> (i32, i32) {
    %c0_i32 = arith.constant 0 : i32
    %c0_i32_0 = arith.constant 0 : i32
    %c0_i32_1 = arith.constant 0 : i32
    return %c0_i32, %c0_i32_0 : i32, i32
  }
  func.func @transform_4(%arg0: i32, %arg1: i32) -> (i32, i32) {
    %c0_i32 = arith.constant 0 : i32
    %c0_i32_0 = arith.constant 0 : i32
    %c0_i32_1 = arith.constant 0 : i32
    return %c0_i32, %c0_i32_0 : i32, i32
  }
  func.func @transform_5(%arg0: i32, %arg1: i32) -> (i32, i32) {
    %c0_i32 = arith.constant 0 : i32
    %c0_i32_0 = arith.constant 0 : i32
    %c0_i32_1 = arith.constant 0 : i32
    return %c0_i32, %c0_i32_0 : i32, i32
  }
  func.func @transform_6(%arg0: i32, %arg1: i32) -> (i32, i32) {
    %c0_i32 = arith.constant 0 : i32
    %c0_i32_0 = arith.constant 0 : i32
    %c0_i32_1 = arith.constant 0 : i32
    return %c0_i32, %c0_i32_0 : i32, i32
  }
  func.func @transform_7(%arg0: i32, %arg1: i32) -> (i32, i32) {
    %c0_i32 = arith.constant 0 : i32
    %c0_i32_0 = arith.constant 0 : i32
    %c0_i32_1 = arith.constant 0 : i32
    return %c0_i32, %c0_i32_0 : i32, i32
  }
  func.func @transform_8(%arg0: i32, %arg1: i32) -> (i32, i32, i32) {
    %c0_i32 = arith.constant 0 : i32
    %c0_i32_0 = arith.constant 0 : i32
    return %arg0, %arg1, %c0_i32 : i32, i32, i32
  }
}

module attributes {stable_mosaic.version = 11 : i64} {
  func.func @_film_resblock_kernel(%arg0: i32, %arg1: i32, %arg2: memref<1x16x512xbf16, #tpu.memory_space<vmem>>, %arg3: memref<1x2x512xf32, #tpu.memory_space<vmem>>, %arg4: memref<512x128xbf16, #tpu.memory_space<vmem>>, %arg5: memref<1x128xf32, #tpu.memory_space<vmem>>, %arg6: memref<128x128xbf16, #tpu.memory_space<vmem>>, %arg7: memref<1x128xf32, #tpu.memory_space<vmem>>, %arg8: memref<512x128xbf16, #tpu.memory_space<vmem>>, %arg9: memref<1x128xf32, #tpu.memory_space<vmem>>, %arg10: memref<1x16x128xbf16, #tpu.memory_space<vmem>>) attributes {dimension_semantics = [#tpu.dimension_semantics<parallel>, #tpu.dimension_semantics<parallel>], iteration_bounds = array<i64: 2, 1>, scalar_prefetch = 0 : i64, scratch_operands = 0 : i64, tpu.core_type = #tpu.core_type<tc>, window_params = [{transform_indices = @transform_0, window_bounds = array<i64: 1, 16, 512>}, {transform_indices = @transform_1, window_bounds = array<i64: 1, 2, 512>}, {pipeline_mode = #tpu.pipeline_mode<synchronous>, transform_indices = @transform_2, window_bounds = array<i64: 512, 128>}, {pipeline_mode = #tpu.pipeline_mode<synchronous>, transform_indices = @transform_3, window_bounds = array<i64: 1, 128>}, {pipeline_mode = #tpu.pipeline_mode<synchronous>, transform_indices = @transform_4, window_bounds = array<i64: 128, 128>}, {pipeline_mode = #tpu.pipeline_mode<synchronous>, transform_indices = @transform_5, window_bounds = array<i64: 1, 128>}, {pipeline_mode = #tpu.pipeline_mode<synchronous>, transform_indices = @transform_6, window_bounds = array<i64: 512, 128>}, {pipeline_mode = #tpu.pipeline_mode<synchronous>, transform_indices = @transform_7, window_bounds = array<i64: 1, 128>}, {transform_indices = @transform_8, window_bounds = array<i64: 1, 16, 128>}]} {
    %c0 = arith.constant 0 : index
    %c0_0 = arith.constant 0 : index
    %c0_1 = arith.constant 0 : index
    %0 = vector.load %arg3[%c0, %c0_0, %c0_1] : memref<1x2x512xf32, #tpu.memory_space<vmem>>, vector<1x1x512xf32>
    %1 = vector.shape_cast %0 : vector<1x1x512xf32> to vector<1x512xf32>
    %c0_2 = arith.constant 0 : index
    %c1 = arith.constant 1 : index
    %c0_3 = arith.constant 0 : index
    %2 = vector.load %arg3[%c0_2, %c1, %c0_3] : memref<1x2x512xf32, #tpu.memory_space<vmem>>, vector<1x1x512xf32>
    %3 = vector.shape_cast %2 : vector<1x1x512xf32> to vector<1x512xf32>
    %c0_4 = arith.constant 0 : index
    %c0_5 = arith.constant 0 : index
    %c0_6 = arith.constant 0 : index
    %4 = vector.load %arg2[%c0_4, %c0_5, %c0_6] : memref<1x16x512xbf16, #tpu.memory_space<vmem>>, vector<1x16x512xbf16>
    %5 = vector.shape_cast %4 : vector<1x16x512xbf16> to vector<16x512xbf16>
    %6 = arith.extf %5 : vector<16x512xbf16> to vector<16x512xf32>
    %7 = vector.broadcast %3 : vector<1x512xf32> to vector<16x512xf32>
    %8 = arith.mulf %6, %7 : vector<16x512xf32>
    %9 = vector.broadcast %1 : vector<1x512xf32> to vector<16x512xf32>
    %10 = arith.addf %8, %9 : vector<16x512xf32>
    %11 = arith.truncf %10 : vector<16x512xf32> to vector<16x512xbf16>
    %c0_7 = arith.constant 0 : index
    %c0_8 = arith.constant 0 : index
    %12 = vector.load %arg8[%c0_7, %c0_8] : memref<512x128xbf16, #tpu.memory_space<vmem>>, vector<512x128xbf16>
    %cst = arith.constant dense<0.000000e+00> : vector<16x128xf32>
    %13 = tpu.matmul %11, %12, %cst {dimension_numbers = #tpu.dot_dimension_numbers<[1], [0], [0], [1], [0, 0, 1, 1], [], []>} : vector<16x512xbf16>, vector<512x128xbf16>, vector<16x128xf32> -> vector<16x128xf32>
    %c0_9 = arith.constant 0 : index
    %c0_10 = arith.constant 0 : index
    %14 = vector.load %arg9[%c0_9, %c0_10] : memref<1x128xf32, #tpu.memory_space<vmem>>, vector<1x128xf32>
    %15 = vector.broadcast %14 : vector<1x128xf32> to vector<16x128xf32>
    %16 = arith.addf %13, %15 : vector<16x128xf32>
    %17 = arith.mulf %10, %10 : vector<16x512xf32>
    %18 = arith.mulf %10, %17 : vector<16x512xf32>
    %cst_11 = arith.constant 4.471500e-02 : f32
    %19 = vector.broadcast %cst_11 : f32 to vector<16x512xf32>
    %20 = arith.mulf %19, %18 : vector<16x512xf32>
    %21 = arith.addf %10, %20 : vector<16x512xf32>
    %cst_12 = arith.constant 0.797884583 : f32
    %22 = vector.broadcast %cst_12 : f32 to vector<16x512xf32>
    %23 = arith.mulf %22, %21 : vector<16x512xf32>
    %24 = math.tanh %23 : vector<16x512xf32>
    %cst_13 = arith.constant 1.000000e+00 : f32
    %25 = vector.broadcast %cst_13 : f32 to vector<16x512xf32>
    %26 = arith.addf %25, %24 : vector<16x512xf32>
    %cst_14 = arith.constant 5.000000e-01 : f32
    %27 = vector.broadcast %cst_14 : f32 to vector<16x512xf32>
    %28 = arith.mulf %27, %26 : vector<16x512xf32>
    %29 = arith.mulf %10, %28 : vector<16x512xf32>
    %30 = arith.truncf %29 : vector<16x512xf32> to vector<16x512xbf16>
    %c0_15 = arith.constant 0 : index
    %c0_16 = arith.constant 0 : index
    %31 = vector.load %arg4[%c0_15, %c0_16] : memref<512x128xbf16, #tpu.memory_space<vmem>>, vector<512x128xbf16>
    %cst_17 = arith.constant dense<0.000000e+00> : vector<16x128xf32>
    %32 = tpu.matmul %30, %31, %cst_17 {dimension_numbers = #tpu.dot_dimension_numbers<[1], [0], [0], [1], [0, 0, 1, 1], [], []>} : vector<16x512xbf16>, vector<512x128xbf16>, vector<16x128xf32> -> vector<16x128xf32>
    %c0_18 = arith.constant 0 : index
    %c0_19 = arith.constant 0 : index
    %33 = vector.load %arg5[%c0_18, %c0_19] : memref<1x128xf32, #tpu.memory_space<vmem>>, vector<1x128xf32>
    %34 = vector.broadcast %33 : vector<1x128xf32> to vector<16x128xf32>
    %35 = arith.addf %32, %34 : vector<16x128xf32>
    %36 = arith.mulf %35, %35 : vector<16x128xf32>
    %37 = arith.mulf %35, %36 : vector<16x128xf32>
    %cst_20 = arith.constant 4.471500e-02 : f32
    %38 = vector.broadcast %cst_20 : f32 to vector<16x128xf32>
    %39 = arith.mulf %38, %37 : vector<16x128xf32>
    %40 = arith.addf %35, %39 : vector<16x128xf32>
    %cst_21 = arith.constant 0.797884583 : f32
    %41 = vector.broadcast %cst_21 : f32 to vector<16x128xf32>
    %42 = arith.mulf %41, %40 : vector<16x128xf32>
    %43 = math.tanh %42 : vector<16x128xf32>
    %cst_22 = arith.constant 1.000000e+00 : f32
    %44 = vector.broadcast %cst_22 : f32 to vector<16x128xf32>
    %45 = arith.addf %44, %43 : vector<16x128xf32>
    %cst_23 = arith.constant 5.000000e-01 : f32
    %46 = vector.broadcast %cst_23 : f32 to vector<16x128xf32>
    %47 = arith.mulf %46, %45 : vector<16x128xf32>
    %48 = arith.mulf %35, %47 : vector<16x128xf32>
    %49 = arith.truncf %48 : vector<16x128xf32> to vector<16x128xbf16>
    %c0_24 = arith.constant 0 : index
    %c0_25 = arith.constant 0 : index
    %50 = vector.load %arg6[%c0_24, %c0_25] : memref<128x128xbf16, #tpu.memory_space<vmem>>, vector<128x128xbf16>
    %cst_26 = arith.constant dense<0.000000e+00> : vector<16x128xf32>
    %51 = tpu.matmul %49, %50, %cst_26 {dimension_numbers = #tpu.dot_dimension_numbers<[1], [0], [0], [1], [0, 0, 1, 1], [], []>} : vector<16x128xbf16>, vector<128x128xbf16>, vector<16x128xf32> -> vector<16x128xf32>
    %c0_27 = arith.constant 0 : index
    %c0_28 = arith.constant 0 : index
    %52 = vector.load %arg7[%c0_27, %c0_28] : memref<1x128xf32, #tpu.memory_space<vmem>>, vector<1x128xf32>
    %53 = vector.broadcast %52 : vector<1x128xf32> to vector<16x128xf32>
    %54 = arith.addf %51, %53 : vector<16x128xf32>
    %55 = arith.addf %16, %54 : vector<16x128xf32>
    %56 = arith.truncf %55 : vector<16x128xf32> to vector<16x128xbf16>
    %c0_29 = arith.constant 0 : index
    %c0_30 = arith.constant 0 : index
    %c0_31 = arith.constant 0 : index
    %57 = vector.load %arg10[%c0_29, %c0_30, %c0_31] : memref<1x16x128xbf16, #tpu.memory_space<vmem>>, vector<1x16x128xbf16>
    %58 = vector.shape_cast %57 : vector<1x16x128xbf16> to vector<16x128xbf16>
    %59 = vector.shape_cast %56 : vector<16x128xbf16> to vector<1x16x128xbf16>
    tpu.vector_store %arg10[%c0_29, %c0_30, %c0_31], %59 {strides = array<i32>} : memref<1x16x128xbf16, #tpu.memory_space<vmem>>, vector<1x16x128xbf16>,
    return
  }
  func.func @transform_0(%arg0: i32, %arg1: i32) -> (i32, i32, i32) {
    %c0_i32 = arith.constant 0 : i32
    %c0_i32_0 = arith.constant 0 : i32
    return %arg0, %arg1, %c0_i32 : i32, i32, i32
  }
  func.func @transform_1(%arg0: i32, %arg1: i32) -> (i32, i32, i32) {
    %c0_i32 = arith.constant 0 : i32
    %c0_i32_0 = arith.constant 0 : i32
    %c0_i32_1 = arith.constant 0 : i32
    return %arg0, %c0_i32, %c0_i32_0 : i32, i32, i32
  }
  func.func @transform_2(%arg0: i32, %arg1: i32) -> (i32, i32) {
    %c0_i32 = arith.constant 0 : i32
    %c0_i32_0 = arith.constant 0 : i32
    %c0_i32_1 = arith.constant 0 : i32
    return %c0_i32, %c0_i32_0 : i32, i32
  }
  func.func @transform_3(%arg0: i32, %arg1: i32) -> (i32, i32) {
    %c0_i32 = arith.constant 0 : i32
    %c0_i32_0 = arith.constant 0 : i32
    %c0_i32_1 = arith.constant 0 : i32
    return %c0_i32, %c0_i32_0 : i32, i32
  }
  func.func @transform_4(%arg0: i32, %arg1: i32) -> (i32, i32) {
    %c0_i32 = arith.constant 0 : i32
    %c0_i32_0 = arith.constant 0 : i32
    %c0_i32_1 = arith.constant 0 : i32
    return %c0_i32, %c0_i32_0 : i32, i32
  }
  func.func @transform_5(%arg0: i32, %arg1: i32) -> (i32, i32) {
    %c0_i32 = arith.constant 0 : i32
    %c0_i32_0 = arith.constant 0 : i32
    %c0_i32_1 = arith.constant 0 : i32
    return %c0_i32, %c0_i32_0 : i32, i32
  }
  func.func @transform_6(%arg0: i32, %arg1: i32) -> (i32, i32) {
    %c0_i32 = arith.constant 0 : i32
    %c0_i32_0 = arith.constant 0 : i32
    %c0_i32_1 = arith.constant 0 : i32
    return %c0_i32, %c0_i32_0 : i32, i32
  }
  func.func @transform_7(%arg0: i32, %arg1: i32) -> (i32, i32) {
    %c0_i32 = arith.constant 0 : i32
    %c0_i32_0 = arith.constant 0 : i32
    %c0_i32_1 = arith.constant 0 : i32
    return %c0_i32, %c0_i32_0 : i32, i32
  }
  func.func @transform_8(%arg0: i32, %arg1: i32) -> (i32, i32, i32) {
    %c0_i32 = arith.constant 0 : i32
    %c0_i32_0 = arith.constant 0 : i32
    return %arg0, %arg1, %c0_i32 : i32, i32, i32
  }
}

module attributes {stable_mosaic.version = 11 : i64} {
  func.func @_film_resblock_kernel(%arg0: i32, %arg1: i32, %arg2: memref<1x16x384xbf16, #tpu.memory_space<vmem>>, %arg3: memref<1x2x384xf32, #tpu.memory_space<vmem>>, %arg4: memref<384x128xbf16, #tpu.memory_space<vmem>>, %arg5: memref<1x128xf32, #tpu.memory_space<vmem>>, %arg6: memref<128x128xbf16, #tpu.memory_space<vmem>>, %arg7: memref<1x128xf32, #tpu.memory_space<vmem>>, %arg8: memref<384x128xbf16, #tpu.memory_space<vmem>>, %arg9: memref<1x128xf32, #tpu.memory_space<vmem>>, %arg10: memref<1x16x128xbf16, #tpu.memory_space<vmem>>) attributes {dimension_semantics = [#tpu.dimension_semantics<parallel>, #tpu.dimension_semantics<parallel>], iteration_bounds = array<i64: 2, 1>, scalar_prefetch = 0 : i64, scratch_operands = 0 : i64, tpu.core_type = #tpu.core_type<tc>, window_params = [{transform_indices = @transform_0, window_bounds = array<i64: 1, 16, 384>}, {transform_indices = @transform_1, window_bounds = array<i64: 1, 2, 384>}, {pipeline_mode = #tpu.pipeline_mode<synchronous>, transform_indices = @transform_2, window_bounds = array<i64: 384, 128>}, {pipeline_mode = #tpu.pipeline_mode<synchronous>, transform_indices = @transform_3, window_bounds = array<i64: 1, 128>}, {pipeline_mode = #tpu.pipeline_mode<synchronous>, transform_indices = @transform_4, window_bounds = array<i64: 128, 128>}, {pipeline_mode = #tpu.pipeline_mode<synchronous>, transform_indices = @transform_5, window_bounds = array<i64: 1, 128>}, {pipeline_mode = #tpu.pipeline_mode<synchronous>, transform_indices = @transform_6, window_bounds = array<i64: 384, 128>}, {pipeline_mode = #tpu.pipeline_mode<synchronous>, transform_indices = @transform_7, window_bounds = array<i64: 1, 128>}, {transform_indices = @transform_8, window_bounds = array<i64: 1, 16, 128>}]} {
    %c0 = arith.constant 0 : index
    %c0_0 = arith.constant 0 : index
    %c0_1 = arith.constant 0 : index
    %0 = vector.load %arg3[%c0, %c0_0, %c0_1] : memref<1x2x384xf32, #tpu.memory_space<vmem>>, vector<1x1x384xf32>
    %1 = vector.shape_cast %0 : vector<1x1x384xf32> to vector<1x384xf32>
    %c0_2 = arith.constant 0 : index
    %c1 = arith.constant 1 : index
    %c0_3 = arith.constant 0 : index
    %2 = vector.load %arg3[%c0_2, %c1, %c0_3] : memref<1x2x384xf32, #tpu.memory_space<vmem>>, vector<1x1x384xf32>
    %3 = vector.shape_cast %2 : vector<1x1x384xf32> to vector<1x384xf32>
    %c0_4 = arith.constant 0 : index
    %c0_5 = arith.constant 0 : index
    %c0_6 = arith.constant 0 : index
    %4 = vector.load %arg2[%c0_4, %c0_5, %c0_6] : memref<1x16x384xbf16, #tpu.memory_space<vmem>>, vector<1x16x384xbf16>
    %5 = vector.shape_cast %4 : vector<1x16x384xbf16> to vector<16x384xbf16>
    %6 = arith.extf %5 : vector<16x384xbf16> to vector<16x384xf32>
    %7 = vector.broadcast %3 : vector<1x384xf32> to vector<16x384xf32>
    %8 = arith.mulf %6, %7 : vector<16x384xf32>
    %9 = vector.broadcast %1 : vector<1x384xf32> to vector<16x384xf32>
    %10 = arith.addf %8, %9 : vector<16x384xf32>
    %11 = arith.truncf %10 : vector<16x384xf32> to vector<16x384xbf16>
    %c0_7 = arith.constant 0 : index
    %c0_8 = arith.constant 0 : index
    %12 = vector.load %arg8[%c0_7, %c0_8] : memref<384x128xbf16, #tpu.memory_space<vmem>>, vector<384x128xbf16>
    %cst = arith.constant dense<0.000000e+00> : vector<16x128xf32>
    %13 = tpu.matmul %11, %12, %cst {dimension_numbers = #tpu.dot_dimension_numbers<[1], [0], [0], [1], [0, 0, 1, 1], [], []>} : vector<16x384xbf16>, vector<384x128xbf16>, vector<16x128xf32> -> vector<16x128xf32>
    %c0_9 = arith.constant 0 : index
    %c0_10 = arith.constant 0 : index
    %14 = vector.load %arg9[%c0_9, %c0_10] : memref<1x128xf32, #tpu.memory_space<vmem>>, vector<1x128xf32>
    %15 = vector.broadcast %14 : vector<1x128xf32> to vector<16x128xf32>
    %16 = arith.addf %13, %15 : vector<16x128xf32>
    %17 = arith.mulf %10, %10 : vector<16x384xf32>
    %18 = arith.mulf %10, %17 : vector<16x384xf32>
    %cst_11 = arith.constant 4.471500e-02 : f32
    %19 = vector.broadcast %cst_11 : f32 to vector<16x384xf32>
    %20 = arith.mulf %19, %18 : vector<16x384xf32>
    %21 = arith.addf %10, %20 : vector<16x384xf32>
    %cst_12 = arith.constant 0.797884583 : f32
    %22 = vector.broadcast %cst_12 : f32 to vector<16x384xf32>
    %23 = arith.mulf %22, %21 : vector<16x384xf32>
    %24 = math.tanh %23 : vector<16x384xf32>
    %cst_13 = arith.constant 1.000000e+00 : f32
    %25 = vector.broadcast %cst_13 : f32 to vector<16x384xf32>
    %26 = arith.addf %25, %24 : vector<16x384xf32>
    %cst_14 = arith.constant 5.000000e-01 : f32
    %27 = vector.broadcast %cst_14 : f32 to vector<16x384xf32>
    %28 = arith.mulf %27, %26 : vector<16x384xf32>
    %29 = arith.mulf %10, %28 : vector<16x384xf32>
    %30 = arith.truncf %29 : vector<16x384xf32> to vector<16x384xbf16>
    %c0_15 = arith.constant 0 : index
    %c0_16 = arith.constant 0 : index
    %31 = vector.load %arg4[%c0_15, %c0_16] : memref<384x128xbf16, #tpu.memory_space<vmem>>, vector<384x128xbf16>
    %cst_17 = arith.constant dense<0.000000e+00> : vector<16x128xf32>
    %32 = tpu.matmul %30, %31, %cst_17 {dimension_numbers = #tpu.dot_dimension_numbers<[1], [0], [0], [1], [0, 0, 1, 1], [], []>} : vector<16x384xbf16>, vector<384x128xbf16>, vector<16x128xf32> -> vector<16x128xf32>
    %c0_18 = arith.constant 0 : index
    %c0_19 = arith.constant 0 : index
    %33 = vector.load %arg5[%c0_18, %c0_19] : memref<1x128xf32, #tpu.memory_space<vmem>>, vector<1x128xf32>
    %34 = vector.broadcast %33 : vector<1x128xf32> to vector<16x128xf32>
    %35 = arith.addf %32, %34 : vector<16x128xf32>
    %36 = arith.mulf %35, %35 : vector<16x128xf32>
    %37 = arith.mulf %35, %36 : vector<16x128xf32>
    %cst_20 = arith.constant 4.471500e-02 : f32
    %38 = vector.broadcast %cst_20 : f32 to vector<16x128xf32>
    %39 = arith.mulf %38, %37 : vector<16x128xf32>
    %40 = arith.addf %35, %39 : vector<16x128xf32>
    %cst_21 = arith.constant 0.797884583 : f32
    %41 = vector.broadcast %cst_21 : f32 to vector<16x128xf32>
    %42 = arith.mulf %41, %40 : vector<16x128xf32>
    %43 = math.tanh %42 : vector<16x128xf32>
    %cst_22 = arith.constant 1.000000e+00 : f32
    %44 = vector.broadcast %cst_22 : f32 to vector<16x128xf32>
    %45 = arith.addf %44, %43 : vector<16x128xf32>
    %cst_23 = arith.constant 5.000000e-01 : f32
    %46 = vector.broadcast %cst_23 : f32 to vector<16x128xf32>
    %47 = arith.mulf %46, %45 : vector<16x128xf32>
    %48 = arith.mulf %35, %47 : vector<16x128xf32>
    %49 = arith.truncf %48 : vector<16x128xf32> to vector<16x128xbf16>
    %c0_24 = arith.constant 0 : index
    %c0_25 = arith.constant 0 : index
    %50 = vector.load %arg6[%c0_24, %c0_25] : memref<128x128xbf16, #tpu.memory_space<vmem>>, vector<128x128xbf16>
    %cst_26 = arith.constant dense<0.000000e+00> : vector<16x128xf32>
    %51 = tpu.matmul %49, %50, %cst_26 {dimension_numbers = #tpu.dot_dimension_numbers<[1], [0], [0], [1], [0, 0, 1, 1], [], []>} : vector<16x128xbf16>, vector<128x128xbf16>, vector<16x128xf32> -> vector<16x128xf32>
    %c0_27 = arith.constant 0 : index
    %c0_28 = arith.constant 0 : index
    %52 = vector.load %arg7[%c0_27, %c0_28] : memref<1x128xf32, #tpu.memory_space<vmem>>, vector<1x128xf32>
    %53 = vector.broadcast %52 : vector<1x128xf32> to vector<16x128xf32>
    %54 = arith.addf %51, %53 : vector<16x128xf32>
    %55 = arith.addf %16, %54 : vector<16x128xf32>
    %56 = arith.truncf %55 : vector<16x128xf32> to vector<16x128xbf16>
    %c0_29 = arith.constant 0 : index
    %c0_30 = arith.constant 0 : index
    %c0_31 = arith.constant 0 : index
    %57 = vector.load %arg10[%c0_29, %c0_30, %c0_31] : memref<1x16x128xbf16, #tpu.memory_space<vmem>>, vector<1x16x128xbf16>
    %58 = vector.shape_cast %57 : vector<1x16x128xbf16> to vector<16x128xbf16>
    %59 = vector.shape_cast %56 : vector<16x128xbf16> to vector<1x16x128xbf16>
    tpu.vector_store %arg10[%c0_29, %c0_30, %c0_31], %59 {strides = array<i32>} : memref<1x16x128xbf16, #tpu.memory_space<vmem>>, vector<1x16x128xbf16>,
    return
  }
  func.func @transform_0(%arg0: i32, %arg1: i32) -> (i32, i32, i32) {
    %c0_i32 = arith.constant 0 : i32
    %c0_i32_0 = arith.constant 0 : i32
    return %arg0, %arg1, %c0_i32 : i32, i32, i32
  }
  func.func @transform_1(%arg0: i32, %arg1: i32) -> (i32, i32, i32) {
    %c0_i32 = arith.constant 0 : i32
    %c0_i32_0 = arith.constant 0 : i32
    %c0_i32_1 = arith.constant 0 : i32
    return %arg0, %c0_i32, %c0_i32_0 : i32, i32, i32
  }
  func.func @transform_2(%arg0: i32, %arg1: i32) -> (i32, i32) {
    %c0_i32 = arith.constant 0 : i32
    %c0_i32_0 = arith.constant 0 : i32
    %c0_i32_1 = arith.constant 0 : i32
    return %c0_i32, %c0_i32_0 : i32, i32
  }
  func.func @transform_3(%arg0: i32, %arg1: i32) -> (i32, i32) {
    %c0_i32 = arith.constant 0 : i32
    %c0_i32_0 = arith.constant 0 : i32
    %c0_i32_1 = arith.constant 0 : i32
    return %c0_i32, %c0_i32_0 : i32, i32
  }
  func.func @transform_4(%arg0: i32, %arg1: i32) -> (i32, i32) {
    %c0_i32 = arith.constant 0 : i32
    %c0_i32_0 = arith.constant 0 : i32
    %c0_i32_1 = arith.constant 0 : i32
    return %c0_i32, %c0_i32_0 : i32, i32
  }
  func.func @transform_5(%arg0: i32, %arg1: i32) -> (i32, i32) {
    %c0_i32 = arith.constant 0 : i32
    %c0_i32_0 = arith.constant 0 : i32
    %c0_i32_1 = arith.constant 0 : i32
    return %c0_i32, %c0_i32_0 : i32, i32
  }
  func.func @transform_6(%arg0: i32, %arg1: i32) -> (i32, i32) {
    %c0_i32 = arith.constant 0 : i32
    %c0_i32_0 = arith.constant 0 : i32
    %c0_i32_1 = arith.constant 0 : i32
    return %c0_i32, %c0_i32_0 : i32, i32
  }
  func.func @transform_7(%arg0: i32, %arg1: i32) -> (i32, i32) {
    %c0_i32 = arith.constant 0 : i32
    %c0_i32_0 = arith.constant 0 : i32
    %c0_i32_1 = arith.constant 0 : i32
    return %c0_i32, %c0_i32_0 : i32, i32
  }
  func.func @transform_8(%arg0: i32, %arg1: i32) -> (i32, i32, i32) {
    %c0_i32 = arith.constant 0 : i32
    %c0_i32_0 = arith.constant 0 : i32
    return %arg0, %arg1, %c0_i32 : i32, i32, i32
  }
}

module attributes {stable_mosaic.version = 11 : i64} {
  func.func @_film_resblock_kernel(%arg0: i32, %arg1: i32, %arg2: memref<1x64x256xbf16, #tpu.memory_space<vmem>>, %arg3: memref<1x2x256xf32, #tpu.memory_space<vmem>>, %arg4: memref<256x128xbf16, #tpu.memory_space<vmem>>, %arg5: memref<1x128xf32, #tpu.memory_space<vmem>>, %arg6: memref<128x128xbf16, #tpu.memory_space<vmem>>, %arg7: memref<1x128xf32, #tpu.memory_space<vmem>>, %arg8: memref<256x128xbf16, #tpu.memory_space<vmem>>, %arg9: memref<1x128xf32, #tpu.memory_space<vmem>>, %arg10: memref<1x64x128xbf16, #tpu.memory_space<vmem>>) attributes {dimension_semantics = [#tpu.dimension_semantics<parallel>, #tpu.dimension_semantics<parallel>], iteration_bounds = array<i64: 2, 1>, scalar_prefetch = 0 : i64, scratch_operands = 0 : i64, tpu.core_type = #tpu.core_type<tc>, window_params = [{transform_indices = @transform_0, window_bounds = array<i64: 1, 64, 256>}, {transform_indices = @transform_1, window_bounds = array<i64: 1, 2, 256>}, {pipeline_mode = #tpu.pipeline_mode<synchronous>, transform_indices = @transform_2, window_bounds = array<i64: 256, 128>}, {pipeline_mode = #tpu.pipeline_mode<synchronous>, transform_indices = @transform_3, window_bounds = array<i64: 1, 128>}, {pipeline_mode = #tpu.pipeline_mode<synchronous>, transform_indices = @transform_4, window_bounds = array<i64: 128, 128>}, {pipeline_mode = #tpu.pipeline_mode<synchronous>, transform_indices = @transform_5, window_bounds = array<i64: 1, 128>}, {pipeline_mode = #tpu.pipeline_mode<synchronous>, transform_indices = @transform_6, window_bounds = array<i64: 256, 128>}, {pipeline_mode = #tpu.pipeline_mode<synchronous>, transform_indices = @transform_7, window_bounds = array<i64: 1, 128>}, {transform_indices = @transform_8, window_bounds = array<i64: 1, 64, 128>}]} {
    %c0 = arith.constant 0 : index
    %c0_0 = arith.constant 0 : index
    %c0_1 = arith.constant 0 : index
    %0 = vector.load %arg3[%c0, %c0_0, %c0_1] : memref<1x2x256xf32, #tpu.memory_space<vmem>>, vector<1x1x256xf32>
    %1 = vector.shape_cast %0 : vector<1x1x256xf32> to vector<1x256xf32>
    %c0_2 = arith.constant 0 : index
    %c1 = arith.constant 1 : index
    %c0_3 = arith.constant 0 : index
    %2 = vector.load %arg3[%c0_2, %c1, %c0_3] : memref<1x2x256xf32, #tpu.memory_space<vmem>>, vector<1x1x256xf32>
    %3 = vector.shape_cast %2 : vector<1x1x256xf32> to vector<1x256xf32>
    %c0_4 = arith.constant 0 : index
    %c0_5 = arith.constant 0 : index
    %c0_6 = arith.constant 0 : index
    %4 = vector.load %arg2[%c0_4, %c0_5, %c0_6] : memref<1x64x256xbf16, #tpu.memory_space<vmem>>, vector<1x64x256xbf16>
    %5 = vector.shape_cast %4 : vector<1x64x256xbf16> to vector<64x256xbf16>
    %6 = arith.extf %5 : vector<64x256xbf16> to vector<64x256xf32>
    %7 = vector.broadcast %3 : vector<1x256xf32> to vector<64x256xf32>
    %8 = arith.mulf %6, %7 : vector<64x256xf32>
    %9 = vector.broadcast %1 : vector<1x256xf32> to vector<64x256xf32>
    %10 = arith.addf %8, %9 : vector<64x256xf32>
    %11 = arith.truncf %10 : vector<64x256xf32> to vector<64x256xbf16>
    %c0_7 = arith.constant 0 : index
    %c0_8 = arith.constant 0 : index
    %12 = vector.load %arg8[%c0_7, %c0_8] : memref<256x128xbf16, #tpu.memory_space<vmem>>, vector<256x128xbf16>
    %cst = arith.constant dense<0.000000e+00> : vector<64x128xf32>
    %13 = tpu.matmul %11, %12, %cst {dimension_numbers = #tpu.dot_dimension_numbers<[1], [0], [0], [1], [0, 0, 1, 1], [], []>} : vector<64x256xbf16>, vector<256x128xbf16>, vector<64x128xf32> -> vector<64x128xf32>
    %c0_9 = arith.constant 0 : index
    %c0_10 = arith.constant 0 : index
    %14 = vector.load %arg9[%c0_9, %c0_10] : memref<1x128xf32, #tpu.memory_space<vmem>>, vector<1x128xf32>
    %15 = vector.broadcast %14 : vector<1x128xf32> to vector<64x128xf32>
    %16 = arith.addf %13, %15 : vector<64x128xf32>
    %17 = arith.mulf %10, %10 : vector<64x256xf32>
    %18 = arith.mulf %10, %17 : vector<64x256xf32>
    %cst_11 = arith.constant 4.471500e-02 : f32
    %19 = vector.broadcast %cst_11 : f32 to vector<64x256xf32>
    %20 = arith.mulf %19, %18 : vector<64x256xf32>
    %21 = arith.addf %10, %20 : vector<64x256xf32>
    %cst_12 = arith.constant 0.797884583 : f32
    %22 = vector.broadcast %cst_12 : f32 to vector<64x256xf32>
    %23 = arith.mulf %22, %21 : vector<64x256xf32>
    %24 = math.tanh %23 : vector<64x256xf32>
    %cst_13 = arith.constant 1.000000e+00 : f32
    %25 = vector.broadcast %cst_13 : f32 to vector<64x256xf32>
    %26 = arith.addf %25, %24 : vector<64x256xf32>
    %cst_14 = arith.constant 5.000000e-01 : f32
    %27 = vector.broadcast %cst_14 : f32 to vector<64x256xf32>
    %28 = arith.mulf %27, %26 : vector<64x256xf32>
    %29 = arith.mulf %10, %28 : vector<64x256xf32>
    %30 = arith.truncf %29 : vector<64x256xf32> to vector<64x256xbf16>
    %c0_15 = arith.constant 0 : index
    %c0_16 = arith.constant 0 : index
    %31 = vector.load %arg4[%c0_15, %c0_16] : memref<256x128xbf16, #tpu.memory_space<vmem>>, vector<256x128xbf16>
    %cst_17 = arith.constant dense<0.000000e+00> : vector<64x128xf32>
    %32 = tpu.matmul %30, %31, %cst_17 {dimension_numbers = #tpu.dot_dimension_numbers<[1], [0], [0], [1], [0, 0, 1, 1], [], []>} : vector<64x256xbf16>, vector<256x128xbf16>, vector<64x128xf32> -> vector<64x128xf32>
    %c0_18 = arith.constant 0 : index
    %c0_19 = arith.constant 0 : index
    %33 = vector.load %arg5[%c0_18, %c0_19] : memref<1x128xf32, #tpu.memory_space<vmem>>, vector<1x128xf32>
    %34 = vector.broadcast %33 : vector<1x128xf32> to vector<64x128xf32>
    %35 = arith.addf %32, %34 : vector<64x128xf32>
    %36 = arith.mulf %35, %35 : vector<64x128xf32>
    %37 = arith.mulf %35, %36 : vector<64x128xf32>
    %cst_20 = arith.constant 4.471500e-02 : f32
    %38 = vector.broadcast %cst_20 : f32 to vector<64x128xf32>
    %39 = arith.mulf %38, %37 : vector<64x128xf32>
    %40 = arith.addf %35, %39 : vector<64x128xf32>
    %cst_21 = arith.constant 0.797884583 : f32
    %41 = vector.broadcast %cst_21 : f32 to vector<64x128xf32>
    %42 = arith.mulf %41, %40 : vector<64x128xf32>
    %43 = math.tanh %42 : vector<64x128xf32>
    %cst_22 = arith.constant 1.000000e+00 : f32
    %44 = vector.broadcast %cst_22 : f32 to vector<64x128xf32>
    %45 = arith.addf %44, %43 : vector<64x128xf32>
    %cst_23 = arith.constant 5.000000e-01 : f32
    %46 = vector.broadcast %cst_23 : f32 to vector<64x128xf32>
    %47 = arith.mulf %46, %45 : vector<64x128xf32>
    %48 = arith.mulf %35, %47 : vector<64x128xf32>
    %49 = arith.truncf %48 : vector<64x128xf32> to vector<64x128xbf16>
    %c0_24 = arith.constant 0 : index
    %c0_25 = arith.constant 0 : index
    %50 = vector.load %arg6[%c0_24, %c0_25] : memref<128x128xbf16, #tpu.memory_space<vmem>>, vector<128x128xbf16>
    %cst_26 = arith.constant dense<0.000000e+00> : vector<64x128xf32>
    %51 = tpu.matmul %49, %50, %cst_26 {dimension_numbers = #tpu.dot_dimension_numbers<[1], [0], [0], [1], [0, 0, 1, 1], [], []>} : vector<64x128xbf16>, vector<128x128xbf16>, vector<64x128xf32> -> vector<64x128xf32>
    %c0_27 = arith.constant 0 : index
    %c0_28 = arith.constant 0 : index
    %52 = vector.load %arg7[%c0_27, %c0_28] : memref<1x128xf32, #tpu.memory_space<vmem>>, vector<1x128xf32>
    %53 = vector.broadcast %52 : vector<1x128xf32> to vector<64x128xf32>
    %54 = arith.addf %51, %53 : vector<64x128xf32>
    %55 = arith.addf %16, %54 : vector<64x128xf32>
    %56 = arith.truncf %55 : vector<64x128xf32> to vector<64x128xbf16>
    %c0_29 = arith.constant 0 : index
    %c0_30 = arith.constant 0 : index
    %c0_31 = arith.constant 0 : index
    %57 = vector.load %arg10[%c0_29, %c0_30, %c0_31] : memref<1x64x128xbf16, #tpu.memory_space<vmem>>, vector<1x64x128xbf16>
    %58 = vector.shape_cast %57 : vector<1x64x128xbf16> to vector<64x128xbf16>
    %59 = vector.shape_cast %56 : vector<64x128xbf16> to vector<1x64x128xbf16>
    tpu.vector_store %arg10[%c0_29, %c0_30, %c0_31], %59 {strides = array<i32>} : memref<1x64x128xbf16, #tpu.memory_space<vmem>>, vector<1x64x128xbf16>,
    return
  }
  func.func @transform_0(%arg0: i32, %arg1: i32) -> (i32, i32, i32) {
    %c0_i32 = arith.constant 0 : i32
    %c0_i32_0 = arith.constant 0 : i32
    return %arg0, %arg1, %c0_i32 : i32, i32, i32
  }
  func.func @transform_1(%arg0: i32, %arg1: i32) -> (i32, i32, i32) {
    %c0_i32 = arith.constant 0 : i32
    %c0_i32_0 = arith.constant 0 : i32
    %c0_i32_1 = arith.constant 0 : i32
    return %arg0, %c0_i32, %c0_i32_0 : i32, i32, i32
  }
  func.func @transform_2(%arg0: i32, %arg1: i32) -> (i32, i32) {
    %c0_i32 = arith.constant 0 : i32
    %c0_i32_0 = arith.constant 0 : i32
    %c0_i32_1 = arith.constant 0 : i32
    return %c0_i32, %c0_i32_0 : i32, i32
  }
  func.func @transform_3(%arg0: i32, %arg1: i32) -> (i32, i32) {
    %c0_i32 = arith.constant 0 : i32
    %c0_i32_0 = arith.constant 0 : i32
    %c0_i32_1 = arith.constant 0 : i32
    return %c0_i32, %c0_i32_0 : i32, i32
  }
  func.func @transform_4(%arg0: i32, %arg1: i32) -> (i32, i32) {
    %c0_i32 = arith.constant 0 : i32
    %c0_i32_0 = arith.constant 0 : i32
    %c0_i32_1 = arith.constant 0 : i32
    return %c0_i32, %c0_i32_0 : i32, i32
  }
  func.func @transform_5(%arg0: i32, %arg1: i32) -> (i32, i32) {
    %c0_i32 = arith.constant 0 : i32
    %c0_i32_0 = arith.constant 0 : i32
    %c0_i32_1 = arith.constant 0 : i32
    return %c0_i32, %c0_i32_0 : i32, i32
  }
  func.func @transform_6(%arg0: i32, %arg1: i32) -> (i32, i32) {
    %c0_i32 = arith.constant 0 : i32
    %c0_i32_0 = arith.constant 0 : i32
    %c0_i32_1 = arith.constant 0 : i32
    return %c0_i32, %c0_i32_0 : i32, i32
  }
  func.func @transform_7(%arg0: i32, %arg1: i32) -> (i32, i32) {
    %c0_i32 = arith.constant 0 : i32
    %c0_i32_0 = arith.constant 0 : i32
    %c0_i32_1 = arith.constant 0 : i32
    return %c0_i32, %c0_i32_0 : i32, i32
  }
  func.func @transform_8(%arg0: i32, %arg1: i32) -> (i32, i32, i32) {
    %c0_i32 = arith.constant 0 : i32
    %c0_i32_0 = arith.constant 0 : i32
    return %arg0, %arg1, %c0_i32 : i32, i32, i32
  }
}

module attributes {stable_mosaic.version = 11 : i64} {
  func.func @_film_resblock_kernel(%arg0: i32, %arg1: i32, %arg2: memref<1x256x128xbf16, #tpu.memory_space<vmem>>, %arg3: memref<1x2x128xf32, #tpu.memory_space<vmem>>, %arg4: memref<128x128xbf16, #tpu.memory_space<vmem>>, %arg5: memref<1x128xf32, #tpu.memory_space<vmem>>, %arg6: memref<128x128xbf16, #tpu.memory_space<vmem>>, %arg7: memref<1x128xf32, #tpu.memory_space<vmem>>, %arg8: memref<128x128xbf16, #tpu.memory_space<vmem>>, %arg9: memref<1x128xf32, #tpu.memory_space<vmem>>, %arg10: memref<1x256x128xbf16, #tpu.memory_space<vmem>>) attributes {dimension_semantics = [#tpu.dimension_semantics<parallel>, #tpu.dimension_semantics<parallel>], iteration_bounds = array<i64: 2, 1>, scalar_prefetch = 0 : i64, scratch_operands = 0 : i64, tpu.core_type = #tpu.core_type<tc>, window_params = [{transform_indices = @transform_0, window_bounds = array<i64: 1, 256, 128>}, {transform_indices = @transform_1, window_bounds = array<i64: 1, 2, 128>}, {pipeline_mode = #tpu.pipeline_mode<synchronous>, transform_indices = @transform_2, window_bounds = array<i64: 128, 128>}, {pipeline_mode = #tpu.pipeline_mode<synchronous>, transform_indices = @transform_3, window_bounds = array<i64: 1, 128>}, {pipeline_mode = #tpu.pipeline_mode<synchronous>, transform_indices = @transform_4, window_bounds = array<i64: 128, 128>}, {pipeline_mode = #tpu.pipeline_mode<synchronous>, transform_indices = @transform_5, window_bounds = array<i64: 1, 128>}, {pipeline_mode = #tpu.pipeline_mode<synchronous>, transform_indices = @transform_6, window_bounds = array<i64: 128, 128>}, {pipeline_mode = #tpu.pipeline_mode<synchronous>, transform_indices = @transform_7, window_bounds = array<i64: 1, 128>}, {transform_indices = @transform_8, window_bounds = array<i64: 1, 256, 128>}]} {
    %c0 = arith.constant 0 : index
    %c0_0 = arith.constant 0 : index
    %c0_1 = arith.constant 0 : index
    %0 = vector.load %arg3[%c0, %c0_0, %c0_1] : memref<1x2x128xf32, #tpu.memory_space<vmem>>, vector<1x1x128xf32>
    %1 = vector.shape_cast %0 : vector<1x1x128xf32> to vector<1x128xf32>
    %c0_2 = arith.constant 0 : index
    %c1 = arith.constant 1 : index
    %c0_3 = arith.constant 0 : index
    %2 = vector.load %arg3[%c0_2, %c1, %c0_3] : memref<1x2x128xf32, #tpu.memory_space<vmem>>, vector<1x1x128xf32>
    %3 = vector.shape_cast %2 : vector<1x1x128xf32> to vector<1x128xf32>
    %c0_4 = arith.constant 0 : index
    %c0_5 = arith.constant 0 : index
    %c0_6 = arith.constant 0 : index
    %4 = vector.load %arg2[%c0_4, %c0_5, %c0_6] : memref<1x256x128xbf16, #tpu.memory_space<vmem>>, vector<1x256x128xbf16>
    %5 = vector.shape_cast %4 : vector<1x256x128xbf16> to vector<256x128xbf16>
    %6 = arith.extf %5 : vector<256x128xbf16> to vector<256x128xf32>
    %7 = vector.broadcast %3 : vector<1x128xf32> to vector<256x128xf32>
    %8 = arith.mulf %6, %7 : vector<256x128xf32>
    %9 = vector.broadcast %1 : vector<1x128xf32> to vector<256x128xf32>
    %10 = arith.addf %8, %9 : vector<256x128xf32>
    %11 = arith.truncf %10 : vector<256x128xf32> to vector<256x128xbf16>
    %c0_7 = arith.constant 0 : index
    %c0_8 = arith.constant 0 : index
    %12 = vector.load %arg8[%c0_7, %c0_8] : memref<128x128xbf16, #tpu.memory_space<vmem>>, vector<128x128xbf16>
    %cst = arith.constant dense<0.000000e+00> : vector<256x128xf32>
    %13 = tpu.matmul %11, %12, %cst {dimension_numbers = #tpu.dot_dimension_numbers<[1], [0], [0], [1], [0, 0, 1, 1], [], []>} : vector<256x128xbf16>, vector<128x128xbf16>, vector<256x128xf32> -> vector<256x128xf32>
    %c0_9 = arith.constant 0 : index
    %c0_10 = arith.constant 0 : index
    %14 = vector.load %arg9[%c0_9, %c0_10] : memref<1x128xf32, #tpu.memory_space<vmem>>, vector<1x128xf32>
    %15 = vector.broadcast %14 : vector<1x128xf32> to vector<256x128xf32>
    %16 = arith.addf %13, %15 : vector<256x128xf32>
    %17 = arith.mulf %10, %10 : vector<256x128xf32>
    %18 = arith.mulf %10, %17 : vector<256x128xf32>
    %cst_11 = arith.constant 4.471500e-02 : f32
    %19 = vector.broadcast %cst_11 : f32 to vector<256x128xf32>
    %20 = arith.mulf %19, %18 : vector<256x128xf32>
    %21 = arith.addf %10, %20 : vector<256x128xf32>
    %cst_12 = arith.constant 0.797884583 : f32
    %22 = vector.broadcast %cst_12 : f32 to vector<256x128xf32>
    %23 = arith.mulf %22, %21 : vector<256x128xf32>
    %24 = math.tanh %23 : vector<256x128xf32>
    %cst_13 = arith.constant 1.000000e+00 : f32
    %25 = vector.broadcast %cst_13 : f32 to vector<256x128xf32>
    %26 = arith.addf %25, %24 : vector<256x128xf32>
    %cst_14 = arith.constant 5.000000e-01 : f32
    %27 = vector.broadcast %cst_14 : f32 to vector<256x128xf32>
    %28 = arith.mulf %27, %26 : vector<256x128xf32>
    %29 = arith.mulf %10, %28 : vector<256x128xf32>
    %30 = arith.truncf %29 : vector<256x128xf32> to vector<256x128xbf16>
    %c0_15 = arith.constant 0 : index
    %c0_16 = arith.constant 0 : index
    %31 = vector.load %arg4[%c0_15, %c0_16] : memref<128x128xbf16, #tpu.memory_space<vmem>>, vector<128x128xbf16>
    %cst_17 = arith.constant dense<0.000000e+00> : vector<256x128xf32>
    %32 = tpu.matmul %30, %31, %cst_17 {dimension_numbers = #tpu.dot_dimension_numbers<[1], [0], [0], [1], [0, 0, 1, 1], [], []>} : vector<256x128xbf16>, vector<128x128xbf16>, vector<256x128xf32> -> vector<256x128xf32>
    %c0_18 = arith.constant 0 : index
    %c0_19 = arith.constant 0 : index
    %33 = vector.load %arg5[%c0_18, %c0_19] : memref<1x128xf32, #tpu.memory_space<vmem>>, vector<1x128xf32>
    %34 = vector.broadcast %33 : vector<1x128xf32> to vector<256x128xf32>
    %35 = arith.addf %32, %34 : vector<256x128xf32>
    %36 = arith.mulf %35, %35 : vector<256x128xf32>
    %37 = arith.mulf %35, %36 : vector<256x128xf32>
    %cst_20 = arith.constant 4.471500e-02 : f32
    %38 = vector.broadcast %cst_20 : f32 to vector<256x128xf32>
    %39 = arith.mulf %38, %37 : vector<256x128xf32>
    %40 = arith.addf %35, %39 : vector<256x128xf32>
    %cst_21 = arith.constant 0.797884583 : f32
    %41 = vector.broadcast %cst_21 : f32 to vector<256x128xf32>
    %42 = arith.mulf %41, %40 : vector<256x128xf32>
    %43 = math.tanh %42 : vector<256x128xf32>
    %cst_22 = arith.constant 1.000000e+00 : f32
    %44 = vector.broadcast %cst_22 : f32 to vector<256x128xf32>
    %45 = arith.addf %44, %43 : vector<256x128xf32>
    %cst_23 = arith.constant 5.000000e-01 : f32
    %46 = vector.broadcast %cst_23 : f32 to vector<256x128xf32>
    %47 = arith.mulf %46, %45 : vector<256x128xf32>
    %48 = arith.mulf %35, %47 : vector<256x128xf32>
    %49 = arith.truncf %48 : vector<256x128xf32> to vector<256x128xbf16>
    %c0_24 = arith.constant 0 : index
    %c0_25 = arith.constant 0 : index
    %50 = vector.load %arg6[%c0_24, %c0_25] : memref<128x128xbf16, #tpu.memory_space<vmem>>, vector<128x128xbf16>
    %cst_26 = arith.constant dense<0.000000e+00> : vector<256x128xf32>
    %51 = tpu.matmul %49, %50, %cst_26 {dimension_numbers = #tpu.dot_dimension_numbers<[1], [0], [0], [1], [0, 0, 1, 1], [], []>} : vector<256x128xbf16>, vector<128x128xbf16>, vector<256x128xf32> -> vector<256x128xf32>
    %c0_27 = arith.constant 0 : index
    %c0_28 = arith.constant 0 : index
    %52 = vector.load %arg7[%c0_27, %c0_28] : memref<1x128xf32, #tpu.memory_space<vmem>>, vector<1x128xf32>
    %53 = vector.broadcast %52 : vector<1x128xf32> to vector<256x128xf32>
    %54 = arith.addf %51, %53 : vector<256x128xf32>
    %55 = arith.addf %16, %54 : vector<256x128xf32>
    %56 = arith.truncf %55 : vector<256x128xf32> to vector<256x128xbf16>
    %c0_29 = arith.constant 0 : index
    %c0_30 = arith.constant 0 : index
    %c0_31 = arith.constant 0 : index
    %57 = vector.load %arg10[%c0_29, %c0_30, %c0_31] : memref<1x256x128xbf16, #tpu.memory_space<vmem>>, vector<1x256x128xbf16>
    %58 = vector.shape_cast %57 : vector<1x256x128xbf16> to vector<256x128xbf16>
    %59 = vector.shape_cast %56 : vector<256x128xbf16> to vector<1x256x128xbf16>
    tpu.vector_store %arg10[%c0_29, %c0_30, %c0_31], %59 {strides = array<i32>} : memref<1x256x128xbf16, #tpu.memory_space<vmem>>, vector<1x256x128xbf16>,
    return
  }
  func.func @transform_0(%arg0: i32, %arg1: i32) -> (i32, i32, i32) {
    %c0_i32 = arith.constant 0 : i32
    %c0_i32_0 = arith.constant 0 : i32
    return %arg0, %arg1, %c0_i32 : i32, i32, i32
  }
  func.func @transform_1(%arg0: i32, %arg1: i32) -> (i32, i32, i32) {
    %c0_i32 = arith.constant 0 : i32
    %c0_i32_0 = arith.constant 0 : i32
    %c0_i32_1 = arith.constant 0 : i32
    return %arg0, %c0_i32, %c0_i32_0 : i32, i32, i32
  }
  func.func @transform_2(%arg0: i32, %arg1: i32) -> (i32, i32) {
    %c0_i32 = arith.constant 0 : i32
    %c0_i32_0 = arith.constant 0 : i32
    %c0_i32_1 = arith.constant 0 : i32
    return %c0_i32, %c0_i32_0 : i32, i32
  }
  func.func @transform_3(%arg0: i32, %arg1: i32) -> (i32, i32) {
    %c0_i32 = arith.constant 0 : i32
    %c0_i32_0 = arith.constant 0 : i32
    %c0_i32_1 = arith.constant 0 : i32
    return %c0_i32, %c0_i32_0 : i32, i32
  }
  func.func @transform_4(%arg0: i32, %arg1: i32) -> (i32, i32) {
    %c0_i32 = arith.constant 0 : i32
    %c0_i32_0 = arith.constant 0 : i32
    %c0_i32_1 = arith.constant 0 : i32
    return %c0_i32, %c0_i32_0 : i32, i32
  }
  func.func @transform_5(%arg0: i32, %arg1: i32) -> (i32, i32) {
    %c0_i32 = arith.constant 0 : i32
    %c0_i32_0 = arith.constant 0 : i32
    %c0_i32_1 = arith.constant 0 : i32
    return %c0_i32, %c0_i32_0 : i32, i32
  }
  func.func @transform_6(%arg0: i32, %arg1: i32) -> (i32, i32) {
    %c0_i32 = arith.constant 0 : i32
    %c0_i32_0 = arith.constant 0 : i32
    %c0_i32_1 = arith.constant 0 : i32
    return %c0_i32, %c0_i32_0 : i32, i32
  }
  func.func @transform_7(%arg0: i32, %arg1: i32) -> (i32, i32) {
    %c0_i32 = arith.constant 0 : i32
    %c0_i32_0 = arith.constant 0 : i32
    %c0_i32_1 = arith.constant 0 : i32
    return %c0_i32, %c0_i32_0 : i32, i32
  }
  func.func @transform_8(%arg0: i32, %arg1: i32) -> (i32, i32, i32) {
    %c0_i32 = arith.constant 0 : i32
    %c0_i32_0 = arith.constant 0 : i32
    return %arg0, %arg1, %c0_i32 : i32, i32, i32
  }
}

</mosaic_0001>

<bundles_post_ra>
// kernel: _lambda_.10
= control target key start
LH: loop header
LB: loop body
LE: loop exit
PB: predicated region body
PF: predicated region fallthrough
CT: control target
= control target key end

     0   :  { %s2291_s24 = smov 0   ;;  %s2293_s25 = smov 0   ;;  %s3028_s0 = inlined_call_operand.vmem [shape: bf16[2,256,128], index: 0, kind: input, shape index: {}]   ;;  %s3029_s1 = inlined_call_operand.vmem [shape: bf16[128,128], index: 1, kind: input, shape index: {}]   ;;  %s3030_s2 = inlined_call_operand.vmem [shape: f32[1,128], index: 2, kind: input, shape index: {}]   ;;  %s3031_s3 = inlined_call_operand.vmem [shape: bf16[128,128], index: 3, kind: input, shape index: {}]   ;;  %s3032_s4 = inlined_call_operand.vmem [shape: f32[1,128], index: 4, kind: input, shape index: {}]   ;;  %s3033_s5 = inlined_call_operand.vmem [shape: bf16[128,128], index: 5, kind: input, shape index: {}]   ;;  %s3034_s6 = inlined_call_operand.vmem [shape: f32[1,128], index: 6, kind: input, shape index: {}]   ;;  %s3035_s7 = inlined_call_operand.vmem [shape: bf16[2,256,128], index: 7, kind: output, shape index: {}]  }
   0x1   :  { %s2295_s26 = smov 0  }
   0x2 LB: > { %s29_s27 = sadd.s32 1, %s2245_s25  ;;  %p1744_p0 = scmp.ge.s32.totalorder %s2249_s26, 1  ;;  %s2249_s26 = sphi %s2295_s26, %s17_s26   ;;  %s2245_s25 = sphi %s2293_s25, %s3037_s25   ;;  %s2241_s24 = sphi %s2291_s24, %s3036_s24  }
   0x3   : > { %p31_p1 = scmp.ge.s32.totalorder %s29_s27, 2  ;;  %p258_p2 = scmp.lt.s32.totalorder %s2249_s26, 3 }
   0x5   : > { %s3039_s27 = smov (%p31_p1, %s29_s27), 0  ;;  %p259_p3 = pnand %p1744_p0, %p258_p2 }
   0x6   : > { %p299_p4 = scmp.lt.s32.totalorder (!%p259_p3), %s2241_s24, 1 }
   0x7   : > { %262 = sbr.rel (%p259_p3) target bundleno = 529 (0x211), region = 48 }
   0xc   : > { %v1936_v0 = vld [vmem:[%s3033_s5 + $0x38] sm:$0xff]  ;;  %v1935_v2 = vld [vmem:[%s3033_s5 + $0x30] sm:$0xff]  ;;  %s3041_s24 = smov (!%p299_p4, %s2241_s24), 1  ;;  %v1934_v4 = vld [vmem:[%s3033_s5 + $0x28] sm:$0xff] }
   0xd   : > { %v2315_v1 = vld [vmem:[%s3029_s1 + $0x38] sm:$0xff]  ;;  %2048 = vmatpush.bf16.msra.mxu3 %v1936_v0  ;;  %v2324_v3 = vld [vmem:[%s3029_s1 + $0x30] sm:$0xff]  ;;  %514 = vmatpush.bf16.msra.mxu0 %v1936_v0  ;;  %s1911_s13 = sshll.u32 %s3041_s24, 7  ;;  %v2343_v5 = vld [vmem:[%s3029_s1 + $0x28] sm:$0xff] }
   0xe   : > { %1007 = vmatpush.bf16.msra.mxu1 %v2315_v1  ;;  %s2334_s16 = scalar_lea.vmem %s3028_s0, %s1911_s13  ;;  %v1933_v14 = vld [vmem:[%s3033_s5 + $0x20] sm:$0xff]  ;;  %v1932_v22 = vld [vmem:[%s3033_s5 + $0x18] sm:$0xff]  ;;  %v1931_v35 = vld [vmem:[%s3033_s5 + $0x10] sm:$0xff]  ;;  %s2924_s12 = scalar_lea.vmem %s3035_s7, %s1911_s13 }
   0xf   : > { %v318_v6 = vld [vmem:[%s2334_s16] sm:$0xff]   ;;  %v320_v9 = vld [vmem:[%s2334_s16 + $0x8] sm:$0xff]   ;;  %v2383_v25 = vld [vmem:[%s3029_s1 + $0x18] sm:$0xff] }
  0x10   : > { %v2346_v7 = vunpack.c.l.bf16 %v318_v6  ;;  %v2348_v8 = vunpack.c.h.bf16 %v318_v6  ;;  %v2351_v10 = vunpack.c.l.bf16 %v320_v9  ;;  %v2353_v11 = vunpack.c.h.bf16 %v320_v9  ;;  %v2366_v15 = vld [vmem:[%s3029_s1 + $0x20] sm:$0xff]  ;;  %v322_v28 = vld [vmem:[%s2334_s16 + $0x10] sm:$0xff]   ;;  %v1930_v41 = vld [vmem:[%s3033_s5 + $0x8] sm:$0xff] }
  0x11   : > { %2049 = vmatpush.bf16.msra.mxu3 %v1935_v2  ;;  %515 = vmatpush.bf16.msra.mxu0 %v1935_v2  ;;  %v2389_v34 = vunpack.c.l.bf16 %v322_v28  ;;  %v2398_v36 = vld [vmem:[%s3029_s1 + $0x10] sm:$0xff]  ;;  %v2401_v38 = vunpack.c.h.bf16 %v322_v28  ;;  %v2412_v42 = vld [vmem:[%s3029_s1 + $0x8] sm:$0xff]  ;;  %v1929_v48 = vld [vmem:[%s3033_s5] sm:$0xff] }
  0x12   : > { %1008 = vmatpush.bf16.msra.mxu1 %v2324_v3  ;;  %v635_v12 = vmul.f32 %v2346_v7, %v2346_v7  ;;  %v636_v13 = vmul.f32 %v2348_v8, %v2348_v8  ;;  %v637_v16 = vmul.f32 %v2351_v10, %v2351_v10  ;;  %v638_v17 = vmul.f32 %v2353_v11, %v2353_v11  ;;  %v2424_v49 = vld [vmem:[%s3029_s1] sm:$0xff]  ;;  %v324_v59 = vld [vmem:[%s2334_s16 + $0x18] sm:$0xff]  }
  0x13   : > { %v639_v40 = vmul.f32 %v2389_v34, %v2389_v34  ;;  %v640_v44 = vmul.f32 %v2401_v38, %v2401_v38  ;;  %v1925_v54 = vld [vmem:[%s2334_s16 + $0x60] sm:$0xff]  ;;  %v2434_v2 = vunpack.c.l.bf16 %v324_v59  ;;  %v2437_v6 = vunpack.c.h.bf16 %v324_v59 }
  0x14   : > { %v667_v18 = vmul.f32 %v635_v12, %v2346_v7  ;;  %v668_v19 = vmul.f32 %v636_v13, %v2348_v8  ;;  %v669_v20 = vmul.f32 %v637_v16, %v2351_v10  ;;  %v670_v21 = vmul.f32 %v638_v17, %v2353_v11 }
  0x15   : > { %2050 = vmatpush.bf16.msra.mxu3 %v1934_v4  ;;  %516 = vmatpush.bf16.msra.mxu0 %v1934_v4  ;;  %v671_v46 = vmul.f32 %v639_v40, %v2389_v34  ;;  %v672_v51 = vmul.f32 %v640_v44, %v2401_v38  ;;  %v642_v13 = vmul.f32 %v2437_v6, %v2437_v6 }
  0x16   : > { %1009 = vmatpush.bf16.msra.mxu1 %v2343_v5  ;;  %v699_v23 = vmul.f32 0.044715, %v667_v18  ;;  %v700_v24 = vmul.f32 0.044715, %v668_v19  ;;  %v701_v26 = vmul.f32 0.044715, %v669_v20 }
  0x17   : > { %v702_v27 = vmul.f32 0.044715, %v670_v21  ;;  %v703_v56 = vmul.f32 0.044715, %v671_v46  ;;  %v704_v58 = vmul.f32 0.044715, %v672_v51 }
  0x18   : > { %v731_v29 = vadd.f32 %v699_v23, %v2346_v7  ;;  %v732_v30 = vadd.f32 %v700_v24, %v2348_v8  ;;  %v733_v33 = vadd.f32 %v701_v26, %v2351_v10  ;;  %v342_v20 = vld [vmem:[%s2334_s16 + $0x60] sm:$0xff]   ;;  %v1926_v21 = vld [vmem:[%s2334_s16 + $0x68] sm:$0xff] }
  0x19   : > { %2051 = vmatpush.bf16.msra.mxu3 %v1933_v14  ;;  %517 = vmatpush.bf16.msra.mxu0 %v1933_v14  ;;  %v734_v37 = vadd.f32 %v702_v27, %v2353_v11  ;;  %v735_v0 = vadd.f32 %v703_v56, %v2389_v34  ;;  %v736_v4 = vadd.f32 %v704_v58, %v2401_v38  ;;  %v326_v24 = vld [vmem:[%s2334_s16 + $0x20] sm:$0xff]  }
  0x1a   : > { %1010 = vmatpush.bf16.msra.mxu1 %v2366_v15  ;;  %v763_v31 = vmul.f32 0.7978846, %v731_v29  ;;  %v764_v32 = vmul.f32 0.7978846, %v732_v30  ;;  %v765_v39 = vmul.f32 0.7978846, %v733_v33  ;;  %v2456_v29 = vunpack.c.h.bf16 %v342_v20 }
  0x1b   : > { %v766_v43 = vmul.f32 0.7978846, %v734_v37  ;;  %v768_v12 = vmul.f32 0.7978846, %v736_v4  ;;  %v2462_v30 = vunpack.c.h.bf16 %v326_v24 }
  0x1c   : > { %2099 = vtanh.f32 %v763_v31  ;;  %v660_v33 = vmul.f32 %v2456_v29, %v2456_v29 }
  0x1d   : > { %2052 = vmatpush.bf16.msra.mxu3 %v1932_v22  ;;  %518 = vmatpush.bf16.msra.mxu0 %v1932_v22  ;;  %2101 = vtanh.f32 %v764_v32  ;;  %v644_v40 = vmul.f32 %v2462_v30, %v2462_v30 }
  0x1e   : > { %1011 = vmatpush.bf16.msra.mxu1 %v2383_v25  ;;  %2103 = vtanh.f32 %v765_v39  ;;  %v692_v44 = vmul.f32 %v660_v33, %v2456_v29 }
  0x1f   : > { %2105 = vtanh.f32 %v766_v43  ;;  %v676_v46 = vmul.f32 %v644_v40, %v2462_v30 }
  0x20   : > { %v724_v51 = vmul.f32 0.044715, %v692_v44 }
  0x21   : > { %2053 = vmatpush.bf16.msra.mxu3 %v1931_v35  ;;  %519 = vmatpush.bf16.msra.mxu0 %v1931_v35 }
  0x22   : > { %1012 = vmatpush.bf16.msra.mxu1 %v2398_v36  ;;  %v2100_v45 = vpop.eup %2099 }
  0x23   : > { %v2102_v47 = vpop.eup %2101  ;;  %v827_v50 = vadd.f32 1.0, %v2100_v45 }
  0x24   : > { %v828_v52 = vadd.f32 1.0, %v2102_v47  ;;  %v2104_v60 = vpop.eup %2103 }
  0x25   : > { %2054 = vmatpush.bf16.msra.mxu3 %v1930_v41  ;;  %520 = vmatpush.bf16.msra.mxu0 %v1930_v41  ;;  %v859_v53 = vmul.f32 0.5, %v827_v50  ;;  %v2106_v62 = vpop.eup %2105 }
  0x26   : > { %1013 = vmatpush.bf16.msra.mxu1 %v2412_v42  ;;  %v860_v55 = vmul.f32 0.5, %v828_v52  ;;  %v830_v9 = vadd.f32 1.0, %v2106_v62  ;;  %v1927_v52 = vld [vmem:[%s2334_s16 + $0x70] sm:$0xff] }
  0x27   : > { %v891_v57 = vmul.f32 %v859_v53, %v2346_v7  ;;  %v829_v7 = vadd.f32 1.0, %v2104_v60 }
  0x28   : > { %v892_v61 = vmul.f32 %v860_v55, %v2348_v8  ;;  %v641_v8 = vmul.f32 %v2434_v2, %v2434_v2  ;;  %v862_v16 = vmul.f32 0.5, %v830_v9  ;;  %v328_v55 = vld [vmem:[%s2334_s16 + $0x28] sm:$0xff]  }
  0x29   : > { %2055 = vmatpush.bf16.msra.mxu3 %v1929_v48  ;;  %521 = vmatpush.bf16.msra.mxu0 %v1929_v48  ;;  %v861_v14 = vmul.f32 0.5, %v829_v7 }
  0x2a   : > { %1014 = vmatpush.bf16.msra.mxu1 %v2424_v49  ;;  %v923_v63 = vpack.c.bf16 %v892_v61, %v891_v57  ;;  %v673_v17 = vmul.f32 %v641_v8, %v2434_v2  ;;  %v894_v19 = vmul.f32 %v862_v16, %v2353_v11  ;;  %v2459_v11 = vunpack.c.l.bf16 %v326_v24 }
  0x2b   : > { %v893_v18 = vmul.f32 %v861_v14, %v2351_v10 }
  0x2c   : > { %582 = vmatmul.bf16.vlgmr.msra.gmra.mxu3 %v1925_v54  ;;  %v705_v22 = vmul.f32 0.044715, %v673_v17  ;;  %v643_v37 = vmul.f32 %v2459_v11, %v2459_v11  ;;  %v708_v54 = vmul.f32 0.044715, %v676_v46 }
  0x2d   : > { %2056 = vmatpush.bf16.msrb.mxu3 %v2315_v1  ;;  %1015 = vmatmul.bf16.vlgmr.msra.gmra.mxu1 %v923_v63  ;;  %v767_v1 = vmul.f32 0.7978846, %v735_v0  ;;  %v924_v27 = vpack.c.bf16 %v894_v19, %v893_v18  ;;  %v2494_v63 = vunpack.c.h.bf16 %v328_v55 }
  0x2e   : > { %v737_v10 = vadd.f32 %v705_v22, %v2434_v2  ;;  %v675_v45 = vmul.f32 %v643_v37, %v2459_v11  ;;  %v740_v62 = vadd.f32 %v708_v54, %v2462_v30 }
  0x2f   : > { %2107 = vtanh.f32 %v767_v1  ;;  %v646_v16 = vmul.f32 %v2494_v63, %v2494_v63 }
  0x30   : > { %2109 = vtanh.f32 %v768_v12  ;;  %v769_v35 = vmul.f32 0.7978846, %v737_v10  ;;  %v707_v53 = vmul.f32 0.044715, %v675_v45  ;;  %v772_v14 = vmul.f32 0.7978846, %v740_v62 }
  0x31   : > { %2057 = vmatpush.bf16.msrb.mxu3 %v2324_v3  ;;  %v674_v3 = vmul.f32 %v642_v13, %v2437_v6  ;;  %v1928_v10 = vld [vmem:[%s2334_s16 + $0x78] sm:$0xff] }
  0x32   : > { %2111 = vtanh.f32 %v769_v35 }
  0x33   : > { %v706_v23 = vmul.f32 0.044715, %v674_v3 }
  0x35   : > { %2058 = vmatpush.bf16.msrb.mxu3 %v2343_v5  ;;  %v2108_v26 = vpop.eup %2107  ;;  %v2454_v5 = vunpack.c.l.bf16 %v342_v20 }
  0x36   : > { %v2110_v28 = vpop.eup %2109  ;;  %v831_v31 = vadd.f32 1.0, %v2108_v26 }
  0x37   : > { %v832_v32 = vadd.f32 1.0, %v2110_v28 }
  0x38   : > { %v863_v41 = vmul.f32 0.5, %v831_v31  ;;  %v2112_v56 = vpop.eup %2111 }
  0x39   : > { %2059 = vmatpush.bf16.msrb.mxu3 %v2366_v15  ;;  %v738_v15 = vadd.f32 %v706_v23, %v2437_v6  ;;  %v864_v43 = vmul.f32 0.5, %v832_v32  ;;  %v833_v0 = vadd.f32 1.0, %v2112_v56 }
  0x3a   : > { %v895_v47 = vmul.f32 %v863_v41, %v2389_v34  ;;  %v756_v34 = vadd.f32 %v724_v51, %v2456_v29 }
  0x3b   : > { %v770_v39 = vmul.f32 0.7978846, %v738_v15  ;;  %v896_v48 = vmul.f32 %v864_v43, %v2401_v38  ;;  %v739_v38 = vadd.f32 %v707_v53, %v2459_v11  ;;  %v865_v17 = vmul.f32 0.5, %v833_v0 }
  0x3c   : > { %587 = vmatmul.bf16.gmra.mxu3 %v1926_v21  ;;  %v788_v1 = vmul.f32 0.7978846, %v756_v34  ;;  %v678_v21 = vmul.f32 %v646_v16, %v2494_v63 }
  0x3d   : > { %2060 = vmatpush.bf16.msrb.mxu3 %v2383_v25  ;;  %1020 = vmatmul.bf16.gmra.mxu1 %v924_v27  ;;  %v659_v25 = vmul.f32 %v2454_v5, %v2454_v5  ;;  %2113 = vtanh.f32 %v770_v39  ;;  %v925_v57 = vpack.c.bf16 %v896_v48, %v895_v47  ;;  %v771_v12 = vmul.f32 0.7978846, %v739_v38  ;;  %v346_v27 = vld [vmem:[%s2334_s16 + $0x70] sm:$0xff]  }
  0x3e   : > { %v897_v22 = vmul.f32 %v865_v17, %v2434_v2  ;;  %v710_v32 = vmul.f32 0.044715, %v678_v21  ;;  %v2514_v39 = vunpack.c.l.bf16 %v346_v27  ;;  %v2517_v41 = vunpack.c.h.bf16 %v346_v27 }
  0x40   : > { %v742_v45 = vadd.f32 %v710_v32, %v2494_v63  ;;  %v663_v51 = vmul.f32 %v2514_v39, %v2514_v39 }
  0x41   : > { %2061 = vmatpush.bf16.msrb.mxu3 %v2398_v36  ;;  %v691_v36 = vmul.f32 %v659_v25, %v2454_v5  ;;  %v330_v25 = vld [vmem:[%s2334_s16 + $0x30] sm:$0xff]  }
  0x42   : > { %v2520_v44 = vunpack.c.l.bf16 %v330_v25  ;;  %v2523_v46 = vunpack.c.h.bf16 %v330_v25  ;;  %v695_v38 = vmul.f32 %v663_v51, %v2514_v39 }
  0x43   : > { %v723_v50 = vmul.f32 0.044715, %v691_v36  ;;  %v2114_v60 = vpop.eup %2113 }
  0x44   : > { %v834_v4 = vadd.f32 1.0, %v2114_v60  ;;  %v647_v56 = vmul.f32 %v2520_v44, %v2520_v44 }
  0x45   : > { %2062 = vmatpush.bf16.msrb.mxu3 %v2412_v42  ;;  %v344_v42 = vld [vmem:[%s2334_s16 + $0x68] sm:$0xff]   ;;  %v755_v58 = vadd.f32 %v723_v50, %v2454_v5 }
  0x46   : > { %v2485_v59 = vunpack.c.l.bf16 %v344_v42  ;;  %v2488_v61 = vunpack.c.h.bf16 %v344_v42  ;;  %v866_v3 = vmul.f32 0.5, %v834_v4 }
  0x47   : > { %v787_v7 = vmul.f32 0.7978846, %v755_v58  ;;  %v648_v58 = vmul.f32 %v2523_v46, %v2523_v46 }
  0x48   : > { %v661_v9 = vmul.f32 %v2485_v59, %v2485_v59  ;;  %v662_v8 = vmul.f32 %v2488_v61, %v2488_v61  ;;  %v898_v23 = vmul.f32 %v866_v3, %v2437_v6 }
  0x49   : > { %2063 = vmatpush.bf16.msrb.mxu3 %v2424_v49  ;;  %v2491_v49 = vunpack.c.l.bf16 %v328_v55  ;;  %2115 = vtanh.f32 %v787_v7  ;;  %v679_v7 = vmul.f32 %v647_v56, %v2520_v44 }
  0x4a   : > { %v693_v18 = vmul.f32 %v661_v9, %v2485_v59  ;;  %2117 = vtanh.f32 %v788_v1  ;;  %v694_v19 = vmul.f32 %v662_v8, %v2488_v61  ;;  %v926_v35 = vpack.c.bf16 %v898_v23, %v897_v22 }
  0x4b   : > { %v645_v13 = vmul.f32 %v2491_v49, %v2491_v49  ;;  %2119 = vtanh.f32 %v771_v12  ;;  %v680_v9 = vmul.f32 %v648_v58, %v2523_v46  ;;  %v727_v12 = vmul.f32 0.044715, %v695_v38 }
  0x4c   : > { %592 = vmatmul.bf16.gmra.mxu3 %v1927_v52  ;;  %2121 = vtanh.f32 %v772_v14  ;;  %v725_v24 = vmul.f32 0.044715, %v693_v18  ;;  %v726_v26 = vmul.f32 0.044715, %v694_v19  ;;  %v664_v52 = vmul.f32 %v2517_v41, %v2517_v41  ;;  %v348_v14 = vld [vmem:[%s2334_s16 + $0x78] sm:$0xff]  }
  0x4d   : > { %1025 = vmatmul.bf16.gmra.mxu1 %v925_v57  ;;  %v677_v20 = vmul.f32 %v645_v13, %v2491_v49  ;;  %v774_v57 = vmul.f32 0.7978846, %v742_v45  ;;  %v711_v3 = vmul.f32 0.044715, %v679_v7  ;;  %v712_v18 = vmul.f32 0.044715, %v680_v9 }
  0x4e   : > { %v757_v37 = vadd.f32 %v725_v24, %v2485_v59  ;;  %v758_v2 = vadd.f32 %v726_v26, %v2488_v61  ;;  %v696_v62 = vmul.f32 %v664_v52, %v2517_v41  ;;  %v332_v19 = vld [vmem:[%s2334_s16 + $0x38] sm:$0xff]   ;;  %v759_v21 = vadd.f32 %v727_v12, %v2514_v39 }
  0x4f   : > { %v2116_v28 = vpop.eup %2115  ;;  %v709_v15 = vmul.f32 0.044715, %v677_v20  ;;  %v2544_v22 = vunpack.c.l.bf16 %v348_v14  ;;  %v2547_v24 = vunpack.c.h.bf16 %v348_v14  ;;  %v743_v27 = vadd.f32 %v711_v3, %v2520_v44 }
  0x50   : > { %v2118_v31 = vpop.eup %2117  ;;  %v851_v6 = vadd.f32 1.0, %v2116_v28  ;;  %v789_v50 = vmul.f32 0.7978846, %v757_v37  ;;  %v790_v42 = vmul.f32 0.7978846, %v758_v2  ;;  %v2550_v28 = vunpack.c.l.bf16 %v332_v19 }
  0x51   : > { %v2120_v33 = vpop.eup %2119  ;;  %v852_v43 = vadd.f32 1.0, %v2118_v31  ;;  %v741_v36 = vadd.f32 %v709_v15, %v2491_v49  ;;  %v728_v13 = vmul.f32 0.044715, %v696_v62  ;;  %v2553_v15 = vunpack.c.h.bf16 %v332_v19 }
  0x52   : > { %v2122_v40 = vpop.eup %2121  ;;  %v835_v47 = vadd.f32 1.0, %v2120_v33  ;;  %v883_v53 = vmul.f32 0.5, %v851_v6  ;;  %2123 = vtanh.f32 %v789_v50  ;;  %v791_v25 = vmul.f32 0.7978846, %v759_v21 }
  0x53   : > { %v836_v48 = vadd.f32 1.0, %v2122_v40  ;;  %v884_v54 = vmul.f32 0.5, %v852_v43  ;;  %v773_v55 = vmul.f32 0.7978846, %v741_v36  ;;  %2125 = vtanh.f32 %v790_v42 }
  0x54   : > { %v867_v60 = vmul.f32 0.5, %v835_v47  ;;  %v915_v0 = vmul.f32 %v883_v53, %v2454_v5  ;;  %v665_v33 = vmul.f32 %v2544_v22, %v2544_v22  ;;  %v666_v37 = vmul.f32 %v2547_v24, %v2547_v24 }
  0x55   : > { %v868_v34 = vmul.f32 0.5, %v836_v48  ;;  %v916_v4 = vmul.f32 %v884_v54, %v2456_v29  ;;  %2127 = vtanh.f32 %v773_v55  ;;  %v775_v6 = vmul.f32 0.7978846, %v743_v27 }
  0x56   : > { %2129 = vtanh.f32 %v774_v57  ;;  %v899_v1 = vmul.f32 %v867_v60, %v2459_v11  ;;  %v760_v11 = vadd.f32 %v728_v13, %v2517_v41  ;;  %v649_v43 = vmul.f32 %v2550_v28, %v2550_v28 }
  0x57   : > { %v900_v8 = vmul.f32 %v868_v34, %v2462_v30  ;;  %v935_v17 = vpack.c.bf16 %v916_v4, %v915_v0  ;;  %v650_v45 = vmul.f32 %v2553_v15, %v2553_v15  ;;  %2131 = vtanh.f32 %v791_v25 }
  0x58   : > { %v2124_v16 = vpop.eup %2123  ;;  %v697_v50 = vmul.f32 %v665_v33, %v2544_v22  ;;  %v698_v51 = vmul.f32 %v666_v37, %v2547_v24  ;;  %v681_v53 = vmul.f32 %v649_v43, %v2550_v28 }
  0x59   : > { %v2126_v5 = vpop.eup %2125  ;;  %v927_v20 = vpack.c.bf16 %v900_v8, %v899_v1  ;;  %v853_v30 = vadd.f32 1.0, %v2124_v16  ;;  %v682_v54 = vmul.f32 %v650_v45, %v2553_v15 }
  0x5a   : > { %v854_v26 = vadd.f32 1.0, %v2126_v5  ;;  %v729_v57 = vmul.f32 0.044715, %v697_v50  ;;  %v730_v58 = vmul.f32 0.044715, %v698_v51 }
  0x5b   : > { %v2128_v29 = vpop.eup %2127  ;;  %v885_v40 = vmul.f32 0.5, %v853_v30  ;;  %v713_v38 = vmul.f32 0.044715, %v681_v53  ;;  %v714_v0 = vmul.f32 0.044715, %v682_v54 }
  0x5c   : > { %597 = vmatmul.bf16.gmra.mxu3 %v1928_v10  ;;  %v2130_v23 = vpop.eup %2129  ;;  %v744_v10 = vadd.f32 %v712_v18, %v2523_v46  ;;  %v837_v31 = vadd.f32 1.0, %v2128_v29  ;;  %v886_v2 = vmul.f32 0.5, %v854_v26  ;;  %v761_v7 = vadd.f32 %v729_v57, %v2544_v22 }
  0x5d   : > { %1030 = vmatmul.bf16.gmra.mxu1 %v926_v35  ;;  %v838_v32 = vadd.f32 1.0, %v2130_v23  ;;  %v792_v35 = vmul.f32 0.7978846, %v760_v11  ;;  %v917_v42 = vmul.f32 %v885_v40, %v2485_v59  ;;  %v2132_v60 = vpop.eup %2131  ;;  %v334_v59 = vld [vmem:[%s2334_s16 + $0x40] sm:$0xff]   ;;  %v762_v1 = vadd.f32 %v730_v58, %v2547_v24 }
  0x5e   : > { %v776_v36 = vmul.f32 0.7978846, %v744_v10  ;;  %v869_v47 = vmul.f32 0.5, %v837_v31  ;;  %v918_v52 = vmul.f32 %v886_v2, %v2488_v61  ;;  %v855_v8 = vadd.f32 1.0, %v2132_v60 }
  0x5f   : > { %v870_v48 = vmul.f32 0.5, %v838_v32  ;;  %2133 = vtanh.f32 %v792_v35  ;;  %v2575_v12 = vunpack.c.l.bf16 %v334_v59  ;;  %v746_v13 = vadd.f32 %v714_v0, %v2553_v15 }
  0x60   : > { %2135 = vtanh.f32 %v775_v6  ;;  %v901_v55 = vmul.f32 %v869_v47, %v2491_v49  ;;  %v936_v34 = vpack.c.bf16 %v918_v52, %v917_v42  ;;  %v2578_v14 = vunpack.c.h.bf16 %v334_v59  ;;  %v336_v6 = vld [vmem:[%s2334_s16 + $0x48] sm:$0xff]   ;;  %v1952_v42 = vld [vmem:[%s3031_s3 + $0x38] sm:$0xff] }
  0x61   : > { %2137 = vtanh.f32 %v776_v36  ;;  %v902_v56 = vmul.f32 %v870_v48, %v2494_v63  ;;  %v745_v63 = vadd.f32 %v713_v38, %v2550_v28  ;;  %v793_v3 = vmul.f32 0.7978846, %v761_v7  ;;  %1468 = vmatpush.bf16.msra.mxu2 %v1952_v42  ;;  %2064 = vmatpush.bf16.msra.mxu3 %v1952_v42  ;;  %v1950_v7 = vld [vmem:[%s3031_s3 + $0x28] sm:$0xff] }
  0x62   : > { %v794_v5 = vmul.f32 0.7978846, %v762_v1  ;;  %v887_v18 = vmul.f32 0.5, %v855_v8  ;;  %v778_v21 = vmul.f32 0.7978846, %v746_v13  ;;  %v652_v23 = vmul.f32 %v2578_v14, %v2578_v14  ;;  %v338_v1 = vld [vmem:[%s2334_s16 + $0x50] sm:$0xff]  }
  0x63   : > { %v928_v61 = vpack.c.bf16 %v902_v56, %v901_v55  ;;  %v777_v29 = vmul.f32 0.7978846, %v745_v63  ;;  %2139 = vtanh.f32 %v793_v3  ;;  %v2592_v48 = vunpack.c.l.bf16 %v336_v6  ;;  %v1949_v63 = vld [vmem:[%s3031_s3 + $0x20] sm:$0xff] }
  0x64   : > { %2141 = vtanh.f32 %v794_v5  ;;  %v919_v26 = vmul.f32 %v887_v18, %v2514_v39  ;;  %v684_v31 = vmul.f32 %v652_v23, %v2578_v14  ;;  %v2595_v50 = vunpack.c.h.bf16 %v336_v6  ;;  %v1948_v18 = vld [vmem:[%s3031_s3 + $0x18] sm:$0xff] }
  0x65   : > { %v2134_v62 = vpop.eup %2133  ;;  %2143 = vtanh.f32 %v777_v29  ;;  %v653_v55 = vmul.f32 %v2592_v48, %v2592_v48 }
  0x66   : > { %v2136_v4 = vpop.eup %2135  ;;  %v856_v49 = vadd.f32 1.0, %v2134_v62  ;;  %2145 = vtanh.f32 %v778_v21  ;;  %v716_v2 = vmul.f32 0.044715, %v684_v31  ;;  %v654_v57 = vmul.f32 %v2595_v50, %v2595_v50 }
  0x67   : > { %v2138_v9 = vpop.eup %2137  ;;  %v839_v16 = vadd.f32 1.0, %v2136_v4  ;;  %v685_v0 = vmul.f32 %v653_v55, %v2592_v48 }
  0x68   : > { %v888_v19 = vmul.f32 0.5, %v856_v49  ;;  %v686_v59 = vmul.f32 %v654_v57, %v2595_v50 }
  0x69   : > { %v871_v11 = vmul.f32 0.5, %v839_v16  ;;  %v2140_v33 = vpop.eup %2139 }
  0x6a   : > { %v920_v27 = vmul.f32 %v888_v19, %v2517_v41  ;;  %v2142_v40 = vpop.eup %2141  ;;  %v857_v41 = vadd.f32 1.0, %v2140_v33 }
  0x6b   : > { %v903_v32 = vmul.f32 %v871_v11, %v2520_v44  ;;  %v2144_v43 = vpop.eup %2143  ;;  %v858_v45 = vadd.f32 1.0, %v2142_v40  ;;  %v748_v44 = vadd.f32 %v716_v2, %v2578_v14 }
  0x6c   : > { %1075 = vmatmul.bf16.vlgmr.msrb.gmra.mxu3 %v935_v17  ;;  %v840_v17 = vadd.f32 1.0, %v2138_v9  ;;  %v937_v35 = vpack.c.bf16 %v920_v27, %v919_v26  ;;  %v2146_v36 = vpop.eup %2145  ;;  %v889_v52 = vmul.f32 0.5, %v857_v41  ;;  %v717_v9 = vmul.f32 0.044715, %v685_v0 }
  0x6d   : > { %1035 = vmatmul.bf16.gmra.mxu1 %v927_v20  ;;  %v651_v20 = vmul.f32 %v2575_v12, %v2575_v12  ;;  %v842_v51 = vadd.f32 1.0, %v2146_v36  ;;  %v890_v53 = vmul.f32 0.5, %v858_v45  ;;  %v780_v56 = vmul.f32 0.7978846, %v748_v44 }
  0x6e   : > { %v872_v30 = vmul.f32 0.5, %v840_v17  ;;  %v921_v38 = vmul.f32 %v889_v52, %v2544_v22  ;;  %v2624_v17 = vunpack.c.h.bf16 %v338_v1 }
  0x6f   : > { %v683_v10 = vmul.f32 %v651_v20, %v2575_v12  ;;  %v874_v60 = vmul.f32 0.5, %v842_v51  ;;  %v922_v62 = vmul.f32 %v890_v53, %v2547_v24  ;;  %v718_v24 = vmul.f32 0.044715, %v686_v59 }
  0x70   : > { %v904_v25 = vmul.f32 %v872_v30, %v2523_v46  ;;  %v841_v46 = vadd.f32 1.0, %v2144_v43  ;;  %v656_v21 = vmul.f32 %v2624_v17, %v2624_v17  ;;  %v1947_v30 = vld [vmem:[%s3031_s3 + $0x10] sm:$0xff]  ;;  %v1913_v43 = vld [vmem:[%s2334_s16] sm:$0xff] }
  0x71   : > { %v715_v37 = vmul.f32 0.044715, %v683_v10  ;;  %v938_v22 = vpack.c.bf16 %v922_v62, %v921_v38  ;;  %v750_v16 = vadd.f32 %v718_v24, %v2595_v50  ;;  %522 = vmatmul.bf16.vlgmr.msra.gmra.mxu0 %v1913_v43 }
  0x72   : > { %v929_v39 = vpack.c.bf16 %v904_v25, %v903_v32  ;;  %v873_v58 = vmul.f32 0.5, %v841_v46  ;;  %v688_v27 = vmul.f32 %v656_v21, %v2624_v17  ;;  %v1946_v32 = vld [vmem:[%s3031_s3 + $0x8] sm:$0xff]  ;;  %v2646_v25 = vld [vmem:[%s3030_s2] ss:$0 sm:$0xff] }
  0x73   : > { %v747_v47 = vadd.f32 %v715_v37, %v2575_v12  ;;  %v782_v20 = vmul.f32 0.7978846, %v750_v16  ;;  %v340_v37 = vld [vmem:[%s2334_s16 + $0x58] sm:$0xff]  }
  0x74   : > { %v905_v4 = vmul.f32 %v873_v58, %v2550_v28  ;;  %v749_v28 = vadd.f32 %v717_v9, %v2592_v48  ;;  %v2657_v41 = vunpack.c.l.bf16 %v340_v37 }
  0x75   : > { %v779_v54 = vmul.f32 0.7978846, %v747_v47  ;;  %v2660_v47 = vunpack.c.h.bf16 %v340_v37 }
  0x76   : > { %v781_v19 = vmul.f32 0.7978846, %v749_v28 }
  0x77   : > { %2147 = vtanh.f32 %v779_v54  ;;  %v657_v54 = vmul.f32 %v2657_v41, %v2657_v41 }
  0x78   : > { %2149 = vtanh.f32 %v780_v56  ;;  %v658_v56 = vmul.f32 %v2660_v47, %v2660_v47 }
  0x79   : > { %2151 = vtanh.f32 %v781_v19  ;;  %v689_v0 = vmul.f32 %v657_v54, %v2657_v41 }
  0x7a   : > { %2153 = vtanh.f32 %v782_v20  ;;  %v690_v59 = vmul.f32 %v658_v56, %v2660_v47 }
  0x7c   : > { %1080 = vmatmul.bf16.gmra.mxu3 %v936_v34  ;;  %v1951_v34 = vld [vmem:[%s3031_s3 + $0x30] sm:$0xff] }
  0x7d   : > { %1040 = vmatmul.bf16.gmra.mxu1 %v928_v61  ;;  %1469 = vmatpush.bf16.msra.mxu2 %v1951_v34  ;;  %v906_v61 = vmul.f32 %v874_v60, %v2553_v15  ;;  %v2148_v8 = vpop.eup %2147  ;;  %v2621_v15 = vunpack.c.l.bf16 %v338_v1  ;;  %v721_v1 = vmul.f32 0.044715, %v689_v0 }
  0x7e   : > { %2065 = vmatpush.bf16.msra.mxu3 %v1951_v34  ;;  %v2150_v13 = vpop.eup %2149  ;;  %v843_v3 = vadd.f32 1.0, %v2148_v8  ;;  %v722_v8 = vmul.f32 0.044715, %v690_v59 }
  0x7f   : > { %v930_v49 = vpack.c.bf16 %v906_v61, %v905_v4  ;;  %v844_v5 = vadd.f32 1.0, %v2150_v13  ;;  %v655_v29 = vmul.f32 %v2621_v15, %v2621_v15  ;;  %v2152_v40 = vpop.eup %2151 }
  0x80   : > { %v875_v23 = vmul.f32 0.5, %v843_v3  ;;  %v845_v46 = vadd.f32 1.0, %v2152_v40  ;;  %v1914_v3 = vld [vmem:[%s2334_s16 + $0x8] sm:$0xff] }
  0x81   : > { %1470 = vmatpush.bf16.msra.mxu2 %v1950_v7  ;;  %v876_v11 = vmul.f32 0.5, %v844_v5  ;;  %v687_v26 = vmul.f32 %v655_v29, %v2621_v15  ;;  %527 = vmatmul.bf16.gmra.mxu0 %v1914_v3 }
  0x82   : > { %2066 = vmatpush.bf16.msra.mxu3 %v1950_v7  ;;  %v907_v10 = vmul.f32 %v875_v23, %v2575_v12  ;;  %v1945_v12 = vld [vmem:[%s3031_s3] sm:$0xff]  ;;  %v877_v58 = vmul.f32 0.5, %v845_v46 }
  0x83   : > { %v908_v31 = vmul.f32 %v876_v11, %v2578_v14  ;;  %v719_v33 = vmul.f32 0.044715, %v687_v26  ;;  %v2154_v14 = vpop.eup %2153 }
  0x84   : > { %v846_v51 = vadd.f32 1.0, %v2154_v14  ;;  %v909_v61 = vmul.f32 %v877_v58, %v2592_v48  ;;  %v753_v48 = vadd.f32 %v721_v1, %v2657_v41 }
  0x85   : > { %1471 = vmatpush.bf16.msra.mxu2 %v1949_v63  ;;  %v931_v2 = vpack.c.bf16 %v908_v31, %v907_v10  ;;  %v751_v36 = vadd.f32 %v719_v33, %v2621_v15 }
  0x86   : > { %2067 = vmatpush.bf16.msra.mxu3 %v1949_v63  ;;  %v878_v60 = vmul.f32 0.5, %v846_v51  ;;  %v785_v26 = vmul.f32 0.7978846, %v753_v48 }
  0x87   : > { %v783_v53 = vmul.f32 0.7978846, %v751_v36 }
  0x88   : > { %v910_v7 = vmul.f32 %v878_v60, %v2595_v50  ;;  %v754_v50 = vadd.f32 %v722_v8, %v2660_v47 }
  0x89   : > { %1472 = vmatpush.bf16.msra.mxu2 %v1948_v18  ;;  %2155 = vtanh.f32 %v783_v53 }
  0x8a   : > { %2068 = vmatpush.bf16.msra.mxu3 %v1948_v18  ;;  %v932_v13 = vpack.c.bf16 %v910_v7, %v909_v61 }
  0x8c   : > { %1085 = vmatmul.bf16.gmra.mxu3 %v937_v35  ;;  %v720_v35 = vmul.f32 0.044715, %v688_v27  ;;  %v786_v27 = vmul.f32 0.7978846, %v754_v50 }
  0x8d   : > { %1045 = vmatmul.bf16.gmra.mxu1 %v929_v39  ;;  %1473 = vmatpush.bf16.msra.mxu2 %v1947_v30 }
  0x8e   : > { %2069 = vmatpush.bf16.msra.mxu3 %v1947_v30  ;;  %v752_v45 = vadd.f32 %v720_v35, %v2624_v17 }
  0x90   : > { %v784_v55 = vmul.f32 0.7978846, %v752_v45 }
  0x91   : > { %1474 = vmatpush.bf16.msra.mxu2 %v1946_v32 }
  0x92   : > { %2070 = vmatpush.bf16.msra.mxu3 %v1946_v32  ;;  %2157 = vtanh.f32 %v784_v55 }
  0x95   : > { %1475 = vmatpush.bf16.msra.mxu2 %v1945_v12 }
  0x96   : > { %2071 = vmatpush.bf16.msra.mxu3 %v1945_v12 }
  0x9c   : > { %1090 = vmatmul.bf16.gmra.mxu3 %v938_v22 }
  0x9d   : > { %1050 = vmatmul.bf16.gmra.mxu1 %v930_v49  ;;  %v2156_v49 = vpop.eup %2155 }
  0x9e   : > { %v2158_v28 = vpop.eup %2157  ;;  %v847_v29 = vadd.f32 1.0, %v2156_v49 }
  0x9f   : > { %v848_v20 = vadd.f32 1.0, %v2158_v28 }
  0xa0   : > { %v879_v31 = vmul.f32 0.5, %v847_v29 }
  0xa1   : > { %v880_v32 = vmul.f32 0.5, %v848_v20 }
  0xa2   : > { %v911_v14 = vmul.f32 %v879_v31, %v2621_v15  ;;  %v1915_v15 = vld [vmem:[%s2334_s16 + $0x10] sm:$0xff] }
  0xa3   : > { %532 = vmatmul.bf16.gmra.mxu0 %v1915_v15  ;;  %v1917_v15 = vld [vmem:[%s2334_s16 + $0x20] sm:$0xff] }
  0xaa   : > { %v1016_v6 = vpop.f32.mrf.mxu1 }
  0xab   : > { %v2654_v39 = vadd.f32 %v2646_v25, %v1016_v6  ;;  %v912_v6 = vmul.f32 %v880_v32, %v2624_v17 }
  0xad   : > { %v1096_v44 = vmul.f32 %v2654_v39, %v2654_v39  ;;  %1055 = vmatmul.bf16.gmra.mxu1 %v931_v2  ;;  %v933_v54 = vpack.c.bf16 %v912_v6, %v911_v14 }
  0xaf   : > { %v2664_v42 = vpop.f32.mrf.mxu3  ;;  %v1128_v52 = vmul.f32 %v1096_v44, %v2654_v39 }
  0xb1   : > { %v1160_v57 = vmul.f32 0.044715, %v1128_v52 }
  0xb2   : > { %v1018_v34 = vpop.f32.mrf.mxu1 }
  0xb3   : > { %v1192_v38 = vadd.f32 %v1160_v57, %v2654_v39  ;;  %v1019_v62 = vadd.f32 %v2646_v25, %v1018_v34 }
  0xb5   : > { %v1097_v4 = vmul.f32 %v1019_v62, %v1019_v62  ;;  %v1224_v22 = vmul.f32 0.7978846, %v1192_v38 }
  0xb7   : > { %v2677_v9 = vpop.f32.mrf.mxu3  ;;  %v1129_v24 = vmul.f32 %v1097_v4, %v1019_v62  ;;  %2159 = vtanh.f32 %v1224_v22 }
  0xb9   : > { %v1161_v63 = vmul.f32 0.044715, %v1129_v24 }
  0xba   : > { %v1021_v16 = vpop.f32.mrf.mxu1 }
  0xbb   : > { %v1193_v5 = vadd.f32 %v1161_v63, %v1019_v62  ;;  %v2681_v18 = vadd.f32 %v2646_v25, %v1021_v16 }
  0xbd   : > { %v1098_v19 = vmul.f32 %v2681_v18, %v2681_v18  ;;  %1060 = vmatmul.bf16.gmra.mxu1 %v932_v13  ;;  %v1225_v21 = vmul.f32 0.7978846, %v1193_v5  ;;  %v2160_v11 = vpop.eup %2159 }
  0xbe   : > { %v1288_v35 = vadd.f32 1.0, %v2160_v11 }
  0xbf   : > { %v2687_v23 = vpop.f32.mrf.mxu3  ;;  %v1130_v30 = vmul.f32 %v1098_v19, %v2681_v18  ;;  %2161 = vtanh.f32 %v1225_v21 }
  0xc0   : > { %2163 = vtanh.f32 %v785_v26  ;;  %v1320_v44 = vmul.f32 0.5, %v1288_v35 }
  0xc1   : > { %v1162_v10 = vmul.f32 0.044715, %v1130_v30  ;;  %2165 = vtanh.f32 %v786_v27 }
  0xc2   : > { %v1023_v33 = vpop.f32.mrf.mxu1  ;;  %v1352_v57 = vmul.f32 %v1320_v44, %v2654_v39 }
  0xc3   : > { %v1194_v37 = vadd.f32 %v1162_v10, %v2681_v18  ;;  %v1024_v40 = vadd.f32 %v2646_v25, %v1023_v33  ;;  %v1916_v10 = vld [vmem:[%s2334_s16 + $0x18] sm:$0xff] }
  0xc4   : > { %537 = vmatmul.bf16.gmra.mxu0 %v1916_v10 }
  0xc5   : > { %v2162_v2 = vpop.eup %2161  ;;  %v1099_v12 = vmul.f32 %v1024_v40, %v1024_v40  ;;  %v1226_v43 = vmul.f32 0.7978846, %v1194_v37 }
  0xc6   : > { %v1289_v45 = vadd.f32 1.0, %v2162_v2  ;;  %v2164_v52 = vpop.eup %2163 }
  0xc7   : > { %v2694_v36 = vpop.f32.mrf.mxu3  ;;  %v1131_v46 = vmul.f32 %v1099_v12, %v1024_v40  ;;  %2167 = vtanh.f32 %v1226_v43  ;;  %v2166_v55 = vpop.eup %2165  ;;  %v849_v0 = vadd.f32 1.0, %v2164_v52 }
  0xc8   : > { %v1321_v51 = vmul.f32 0.5, %v1289_v45  ;;  %v850_v59 = vadd.f32 1.0, %v2166_v55 }
  0xc9   : > { %v1163_v53 = vmul.f32 0.044715, %v1131_v46  ;;  %v881_v22 = vmul.f32 0.5, %v849_v0 }
  0xca   : > { %v1026_v56 = vpop.f32.mrf.mxu1  ;;  %v1353_v58 = vmul.f32 %v1321_v51, %v1019_v62  ;;  %v882_v24 = vmul.f32 0.5, %v850_v59 }
  0xcb   : > { %v1195_v60 = vadd.f32 %v1163_v53, %v1024_v40  ;;  %v2699_v17 = vadd.f32 %v2646_v25, %v1026_v56  ;;  %v913_v16 = vmul.f32 %v881_v22, %v2657_v41 }
  0xcc   : > { %v1384_v34 = vpack.c.bf16 %v1353_v58, %v1352_v57  ;;  %v914_v3 = vmul.f32 %v882_v24, %v2660_v47 }
  0xcd   : > { %v1100_v38 = vmul.f32 %v2699_v17, %v2699_v17  ;;  %1065 = vmatmul.bf16.gmra.mxu1 %v933_v54  ;;  %v1227_v4 = vmul.f32 0.7978846, %v1195_v60  ;;  %v2168_v7 = vpop.eup %2167 }
  0xce   : > { %1476 = vmatmul.bf16.vlgmr.msra.gmra.mxu2 %v1384_v34  ;;  %v1290_v8 = vadd.f32 1.0, %v2168_v7  ;;  %v934_v11 = vpack.c.bf16 %v914_v3, %v913_v16 }
  0xcf   : > { %v2703_v61 = vpop.f32.mrf.mxu3  ;;  %v1132_v39 = vmul.f32 %v1100_v38, %v2699_v17  ;;  %2169 = vtanh.f32 %v1227_v4 }
  0xd0   : > { %v1322_v19 = vmul.f32 0.5, %v1290_v8 }
  0xd1   : > { %v1164_v62 = vmul.f32 0.044715, %v1132_v39 }
  0xd2   : > { %v1028_v1 = vpop.f32.mrf.mxu1  ;;  %v1354_v26 = vmul.f32 %v1322_v19, %v2681_v18 }
  0xd3   : > { %v1196_v49 = vadd.f32 %v1164_v62, %v2699_v17  ;;  %v1029_v63 = vadd.f32 %v2646_v25, %v1028_v1 }
  0xd4   : > { %542 = vmatmul.bf16.gmra.mxu0 %v1917_v15 }
  0xd5   : > { %v2170_v13 = vpop.eup %2169  ;;  %v1101_v28 = vmul.f32 %v1029_v63, %v1029_v63  ;;  %v1228_v5 = vmul.f32 0.7978846, %v1196_v49 }
  0xd6   : > { %v1291_v50 = vadd.f32 1.0, %v2170_v13 }
  0xd7   : > { %v2710_v48 = vpop.f32.mrf.mxu3  ;;  %v1133_v29 = vmul.f32 %v1101_v28, %v1029_v63  ;;  %2171 = vtanh.f32 %v1228_v5 }
  0xd8   : > { %v1323_v20 = vmul.f32 0.5, %v1291_v50 }
  0xd9   : > { %v1165_v21 = vmul.f32 0.044715, %v1133_v29 }
  0xda   : > { %v1031_v30 = vpop.f32.mrf.mxu1  ;;  %v1355_v27 = vmul.f32 %v1323_v20, %v1024_v40 }
  0xdb   : > { %v1197_v31 = vadd.f32 %v1165_v21, %v1029_v63  ;;  %v2715_v41 = vadd.f32 %v2646_v25, %v1031_v30 }
  0xdc   : > { %v1385_v47 = vpack.c.bf16 %v1355_v27, %v1354_v26 }
  0xdd   : > { %v1102_v32 = vmul.f32 %v2715_v41, %v2715_v41  ;;  %1070 = vmatmul.bf16.gmra.mxu1 %v934_v11  ;;  %v1229_v33 = vmul.f32 0.7978846, %v1197_v31  ;;  %v2172_v37 = vpop.eup %2171 }
  0xde   : > { %1481 = vmatmul.bf16.gmra.mxu2 %v1385_v47  ;;  %v1292_v12 = vadd.f32 1.0, %v2172_v37 }
  0xdf   : > { %v2719_v35 = vpop.f32.mrf.mxu3  ;;  %v1134_v2 = vmul.f32 %v1102_v32, %v2715_v41  ;;  %2173 = vtanh.f32 %v1229_v33  ;;  %v1918_v32 = vld [vmem:[%s2334_s16 + $0x28] sm:$0xff] }
  0xe0   : > { %v1324_v52 = vmul.f32 0.5, %v1292_v12 }
  0xe1   : > { %v1166_v18 = vmul.f32 0.044715, %v1134_v2 }
  0xe2   : > { %v1033_v40 = vpop.f32.mrf.mxu1  ;;  %v1356_v57 = vmul.f32 %v1324_v52, %v2699_v17 }
  0xe3   : > { %v1198_v14 = vadd.f32 %v1166_v18, %v2715_v41  ;;  %v1034_v6 = vadd.f32 %v2646_v25, %v1033_v40 }
  0xe4   : > { %547 = vmatmul.bf16.gmra.mxu0 %v1918_v32 }
  0xe5   : > { %v2174_v43 = vpop.eup %2173  ;;  %v1103_v45 = vmul.f32 %v1034_v6, %v1034_v6  ;;  %v1230_v44 = vmul.f32 0.7978846, %v1198_v14 }
  0xe6   : > { %v1293_v51 = vadd.f32 1.0, %v2174_v43 }
  0xe7   : > { %v2724_v46 = vpop.f32.mrf.mxu3  ;;  %v1135_v53 = vmul.f32 %v1103_v45, %v1034_v6  ;;  %2175 = vtanh.f32 %v1230_v44 }
  0xe8   : > { %v1325_v54 = vmul.f32 0.5, %v1293_v51 }
  0xe9   : > { %v1167_v55 = vmul.f32 0.044715, %v1135_v53 }
  0xea   : > { %v1036_v56 = vpop.f32.mrf.mxu1  ;;  %v1357_v58 = vmul.f32 %v1325_v54, %v1029_v63 }
  0xeb   : > { %v1199_v60 = vadd.f32 %v1167_v55, %v1034_v6  ;;  %v2729_v34 = vadd.f32 %v2646_v25, %v1036_v56 }
  0xec   : > { %v1386_v38 = vpack.c.bf16 %v1357_v58, %v1356_v57 }
  0xed   : > { %v1104_v0 = vmul.f32 %v2729_v34, %v2729_v34  ;;  %v1231_v59 = vmul.f32 0.7978846, %v1199_v60  ;;  %v2176_v7 = vpop.eup %2175 }
  0xee   : > { %1486 = vmatmul.bf16.gmra.mxu2 %v1386_v38  ;;  %v1294_v1 = vadd.f32 1.0, %v2176_v7 }
  0xef   : > { %v1076_v4 = vpop.f32.mrf.mxu3  ;;  %v1136_v39 = vmul.f32 %v1104_v0, %v2729_v34  ;;  %2177 = vtanh.f32 %v1231_v59 }
  0xf0   : > { %v2735_v62 = vadd.f32 %v2646_v25, %v1076_v4  ;;  %v1326_v19 = vmul.f32 0.5, %v1294_v1 }
  0xf1   : > { %v1168_v17 = vmul.f32 0.044715, %v1136_v39 }
  0xf2   : > { %v1120_v22 = vmul.f32 %v2735_v62, %v2735_v62  ;;  %v1038_v24 = vpop.f32.mrf.mxu1  ;;  %v1358_v31 = vmul.f32 %v1326_v19, %v2715_v41 }
  0xf3   : > { %v1200_v8 = vadd.f32 %v1168_v17, %v2729_v34  ;;  %v2742_v63 = vadd.f32 %v2646_v25, %v1038_v24 }
  0xf4   : > { %v1152_v49 = vmul.f32 %v1120_v22, %v2735_v62 }
  0xf5   : > { %v2178_v13 = vpop.eup %2177  ;;  %v1105_v16 = vmul.f32 %v2742_v63, %v2742_v63  ;;  %v1232_v3 = vmul.f32 0.7978846, %v1200_v8 }
  0xf6   : > { %v1184_v28 = vmul.f32 0.044715, %v1152_v49  ;;  %v1295_v50 = vadd.f32 1.0, %v2178_v13 }
  0xf7   : > { %v1078_v5 = vpop.f32.mrf.mxu3  ;;  %v1137_v20 = vmul.f32 %v1105_v16, %v2742_v63  ;;  %2179 = vtanh.f32 %v1232_v3 }
  0xf8   : > { %v1216_v29 = vadd.f32 %v1184_v28, %v2735_v62  ;;  %v2749_v21 = vadd.f32 %v2646_v25, %v1078_v5  ;;  %v1327_v11 = vmul.f32 0.5, %v1295_v50 }
  0xf9   : > { %v1169_v26 = vmul.f32 0.044715, %v1137_v20  ;;  %v1919_v20 = vld [vmem:[%s2334_s16 + $0x30] sm:$0xff] }
  0xfa   : > { %v1248_v30 = vmul.f32 0.7978846, %v1216_v29  ;;  %v1121_v27 = vmul.f32 %v2749_v21, %v2749_v21  ;;  %v1041_v10 = vpop.f32.mrf.mxu1  ;;  %v1359_v47 = vmul.f32 %v1327_v11, %v1034_v6  ;;  %552 = vmatmul.bf16.gmra.mxu0 %v1919_v20 }
  0xfb   : > { %v1201_v33 = vadd.f32 %v1169_v26, %v2742_v63  ;;  %v2758_v2 = vadd.f32 %v2646_v25, %v1041_v10 }
  0xfc   : > { %2181 = vtanh.f32 %v1248_v30  ;;  %v1153_v37 = vmul.f32 %v1121_v27, %v2749_v21  ;;  %v1387_v18 = vpack.c.bf16 %v1359_v47, %v1358_v31 }
  0xfd   : > { %v1106_v12 = vmul.f32 %v2758_v2, %v2758_v2  ;;  %v1233_v14 = vmul.f32 0.7978846, %v1201_v33  ;;  %v2180_v41 = vpop.eup %2179 }
  0xfe   : > { %v1185_v40 = vmul.f32 0.044715, %v1153_v37  ;;  %1491 = vmatmul.bf16.gmra.mxu2 %v1387_v18  ;;  %v1296_v56 = vadd.f32 1.0, %v2180_v41 }
  0xff   : > { %v1081_v43 = vpop.f32.mrf.mxu3  ;;  %v1138_v45 = vmul.f32 %v1106_v12, %v2758_v2  ;;  %2183 = vtanh.f32 %v1233_v14 }
 0x100   : > { %v1217_v6 = vadd.f32 %v1185_v40, %v2749_v21  ;;  %v2765_v44 = vadd.f32 %v2646_v25, %v1081_v43  ;;  %v1328_v17 = vmul.f32 0.5, %v1296_v56 }
 0x101   : > { %v1170_v53 = vmul.f32 0.044715, %v1138_v45 }
 0x102   : > { %v2182_v51 = vpop.eup %2181  ;;  %v1249_v52 = vmul.f32 0.7978846, %v1217_v6  ;;  %v1122_v54 = vmul.f32 %v2765_v44, %v2765_v44  ;;  %v1043_v55 = vpop.f32.mrf.mxu1  ;;  %v1360_v19 = vmul.f32 %v1328_v17, %v2729_v34 }
 0x103   : > { %v1202_v57 = vadd.f32 %v1170_v53, %v2758_v2  ;;  %v2772_v15 = vadd.f32 %v2646_v25, %v1043_v55  ;;  %v1312_v60 = vadd.f32 1.0, %v2182_v51 }
 0x104   : > { %2185 = vtanh.f32 %v1249_v52  ;;  %v1154_v58 = vmul.f32 %v1122_v54, %v2765_v44 }
 0x105   : > { %v2184_v38 = vpop.eup %2183  ;;  %v1107_v59 = vmul.f32 %v2772_v15, %v2772_v15  ;;  %v1234_v4 = vmul.f32 0.7978846, %v1202_v57  ;;  %v1344_v8 = vmul.f32 0.5, %v1312_v60 }
 0x106   : > { %v1186_v0 = vmul.f32 0.044715, %v1154_v58  ;;  %v1297_v39 = vadd.f32 1.0, %v2184_v38 }
 0x107   : > { %v1083_v7 = vpop.f32.mrf.mxu3  ;;  %v1139_v24 = vmul.f32 %v1107_v59, %v2772_v15  ;;  %2187 = vtanh.f32 %v1234_v4  ;;  %v1376_v27 = vmul.f32 %v1344_v8, %v2735_v62 }
 0x108   : > { %v1218_v22 = vadd.f32 %v1186_v0, %v2765_v44  ;;  %v2779_v1 = vadd.f32 %v2646_v25, %v1083_v7  ;;  %v1329_v49 = vmul.f32 0.5, %v1297_v39 }
 0x109   : > { %v1171_v28 = vmul.f32 0.044715, %v1139_v24 }
 0x10a   : > { %v2186_v13 = vpop.eup %2185  ;;  %v1123_v16 = vmul.f32 %v2779_v1, %v2779_v1  ;;  %v1250_v3 = vmul.f32 0.7978846, %v1218_v22  ;;  %v1046_v50 = vpop.f32.mrf.mxu1  ;;  %v1361_v29 = vmul.f32 %v1329_v49, %v2742_v63 }
 0x10b   : > { %v1313_v5 = vadd.f32 1.0, %v2186_v13  ;;  %v1203_v11 = vadd.f32 %v1171_v28, %v2772_v15  ;;  %v2789_v26 = vadd.f32 %v2646_v25, %v1046_v50 }
 0x10c   : > { %v1155_v30 = vmul.f32 %v1123_v16, %v2779_v1  ;;  %2189 = vtanh.f32 %v1250_v3  ;;  %v1388_v31 = vpack.c.bf16 %v1361_v29, %v1360_v19 }
 0x10d   : > { %v1345_v10 = vmul.f32 0.5, %v1313_v5  ;;  %v1108_v34 = vmul.f32 %v2789_v26, %v2789_v26  ;;  %v1235_v32 = vmul.f32 0.7978846, %v1203_v11  ;;  %v2188_v37 = vpop.eup %2187  ;;  %v1920_v5 = vld [vmem:[%s2334_s16 + $0x38] sm:$0xff] }
 0x10e   : > { %v1187_v47 = vmul.f32 0.044715, %v1155_v30  ;;  %1496 = vmatmul.bf16.gmra.mxu2 %v1388_v31  ;;  %557 = vmatmul.bf16.gmra.mxu0 %v1920_v5 }
 0x10f   : > { %v1377_v63 = vmul.f32 %v1345_v10, %v2749_v21  ;;  %v1086_v33 = vpop.f32.mrf.mxu3  ;;  %v1140_v40 = vmul.f32 %v1108_v34, %v2789_v26  ;;  %2191 = vtanh.f32 %v1235_v32  ;;  %v1298_v21 = vadd.f32 1.0, %v2188_v37 }
 0x110   : > { %v1219_v18 = vadd.f32 %v1187_v47, %v2779_v1  ;;  %v2798_v12 = vadd.f32 %v2646_v25, %v1086_v33 }
 0x111   : > { %v1396_v62 = vpack.c.bf16 %v1377_v63, %v1376_v27  ;;  %v1172_v43 = vmul.f32 0.044715, %v1140_v40  ;;  %v1330_v0 = vmul.f32 0.5, %v1298_v21 }
 0x112   : > { %v2190_v14 = vpop.eup %2189  ;;  %v1124_v41 = vmul.f32 %v2798_v12, %v2798_v12  ;;  %v1251_v6 = vmul.f32 0.7978846, %v1219_v18  ;;  %v1048_v45 = vpop.f32.mrf.mxu1 }
 0x113   : > { %1536 = vmatmul.bf16.vlgmr.msra.gmra.mxu3 %v1396_v62  ;;  %v1204_v51 = vadd.f32 %v1172_v43, %v2789_v26  ;;  %v2805_v53 = vadd.f32 %v2646_v25, %v1048_v45  ;;  %v1314_v54 = vadd.f32 1.0, %v2190_v14  ;;  %v1362_v28 = vmul.f32 %v1330_v0, %v2758_v2 }
 0x114   : > { %v1156_v52 = vmul.f32 %v1124_v41, %v2798_v12  ;;  %2193 = vtanh.f32 %v1251_v6 }
 0x115   : > { %v2192_v55 = vpop.eup %2191  ;;  %v1109_v57 = vmul.f32 %v2805_v53, %v2805_v53  ;;  %v1236_v58 = vmul.f32 0.7978846, %v1204_v51  ;;  %v1346_v17 = vmul.f32 0.5, %v1314_v54 }
 0x116   : > { %v1188_v56 = vmul.f32 0.044715, %v1156_v52  ;;  %v1299_v38 = vadd.f32 1.0, %v2192_v55 }
 0x117   : > { %v1088_v60 = vpop.f32.mrf.mxu3  ;;  %v1141_v4 = vmul.f32 %v1109_v57, %v2805_v53  ;;  %2195 = vtanh.f32 %v1236_v58  ;;  %v1378_v30 = vmul.f32 %v1346_v17, %v2765_v44 }
 0x118   : > { %v1220_v59 = vadd.f32 %v1188_v56, %v2798_v12  ;;  %v2812_v7 = vadd.f32 %v2646_v25, %v1088_v60  ;;  %v1331_v39 = vmul.f32 0.5, %v1299_v38 }
 0x119   : > { %v1173_v24 = vmul.f32 0.044715, %v1141_v4 }
 0x11a   : > { %v2194_v22 = vpop.eup %2193  ;;  %v1125_v8 = vmul.f32 %v2812_v7, %v2812_v7  ;;  %v1252_v49 = vmul.f32 0.7978846, %v1220_v59  ;;  %v1051_v13 = vpop.f32.mrf.mxu1  ;;  %v1363_v16 = vmul.f32 %v1331_v39, %v2772_v15 }
 0x11b   : > { %v1315_v3 = vadd.f32 1.0, %v2194_v22  ;;  %v1205_v50 = vadd.f32 %v1173_v24, %v2805_v53  ;;  %v2822_v29 = vadd.f32 %v2646_v25, %v1051_v13  ;;  %v2849_v22 = vpop.f32.mrf.mxu0 }
 0x11c   : > { %v1157_v19 = vmul.f32 %v1125_v8, %v2812_v7  ;;  %2197 = vtanh.f32 %v1252_v49  ;;  %v1389_v20 = vpack.c.bf16 %v1363_v16, %v1362_v28  ;;  %v1921_v28 = vld [vmem:[%s2334_s16 + $0x40] sm:$0xff] }
 0x11d   : > { %v1347_v11 = vmul.f32 0.5, %v1315_v3  ;;  %v1110_v2 = vmul.f32 %v2822_v29, %v2822_v29  ;;  %v1237_v15 = vmul.f32 0.7978846, %v1205_v50  ;;  %v2196_v47 = vpop.eup %2195 }
 0x11e   : > { %v1189_v27 = vmul.f32 0.044715, %v1157_v19  ;;  %1501 = vmatmul.bf16.gmra.mxu2 %v1389_v20  ;;  %v1300_v14 = vadd.f32 1.0, %v2196_v47  ;;  %562 = vmatmul.bf16.gmra.mxu0 %v1921_v28 }
 0x11f   : > { %v1091_v10 = vpop.f32.mrf.mxu3  ;;  %v1379_v31 = vmul.f32 %v1347_v11, %v2779_v1  ;;  %v1142_v32 = vmul.f32 %v1110_v2, %v2822_v29  ;;  %2199 = vtanh.f32 %v1237_v15 }
 0x120   : > { %v1221_v34 = vadd.f32 %v1189_v27, %v2812_v7  ;;  %v2831_v63 = vadd.f32 %v2646_v25, %v1091_v10  ;;  %v1332_v56 = vmul.f32 0.5, %v1300_v14 }
 0x121   : > { %v1397_v44 = vpack.c.bf16 %v1379_v31, %v1378_v30  ;;  %v1174_v37 = vmul.f32 0.044715, %v1142_v32 }
 0x122   : > { %v2198_v33 = vpop.eup %2197  ;;  %v1126_v18 = vmul.f32 %v2831_v63, %v2831_v63  ;;  %v1253_v40 = vmul.f32 0.7978846, %v1221_v34  ;;  %v1053_v62 = vpop.f32.mrf.mxu1  ;;  %v1364_v8 = vmul.f32 %v1332_v56, %v2789_v26 }
 0x123   : > { %1541 = vmatmul.bf16.gmra.mxu3 %v1397_v44  ;;  %v1206_v1 = vadd.f32 %v1174_v37, %v2822_v29  ;;  %v2838_v41 = vadd.f32 %v2646_v25, %v1053_v62  ;;  %v1316_v6 = vadd.f32 1.0, %v2198_v33 }
 0x124   : > { %v1158_v43 = vmul.f32 %v1126_v18, %v2831_v63  ;;  %2201 = vtanh.f32 %v1253_v40 }
 0x125   : > { %v2200_v45 = vpop.eup %2199  ;;  %v1111_v51 = vmul.f32 %v2838_v41, %v2838_v41  ;;  %v1238_v52 = vmul.f32 0.7978846, %v1206_v1  ;;  %v1348_v0 = vmul.f32 0.5, %v1316_v6 }
 0x126   : > { %v1190_v21 = vmul.f32 0.044715, %v1158_v43  ;;  %v1301_v55 = vadd.f32 1.0, %v2200_v45 }
 0x127   : > { %v1093_v54 = vpop.f32.mrf.mxu3  ;;  %v1143_v58 = vmul.f32 %v1111_v51, %v2838_v41  ;;  %2203 = vtanh.f32 %v1238_v52  ;;  %v1380_v20 = vmul.f32 %v1348_v0, %v2798_v12  ;;  %v2865_v12 = vpop.f32.mrf.mxu0 }
 0x128   : > { %v1222_v57 = vadd.f32 %v1190_v21, %v2831_v63  ;;  %v2845_v60 = vadd.f32 %v2646_v25, %v1093_v54  ;;  %v1333_v38 = vmul.f32 0.5, %v1301_v55 }
 0x129   : > { %v1175_v4 = vmul.f32 0.044715, %v1143_v58  ;;  %v1922_v58 = vld [vmem:[%s2334_s16 + $0x48] sm:$0xff] }
 0x12a   : > { %v2202_v59 = vpop.eup %2201  ;;  %v1127_v39 = vmul.f32 %v2845_v60, %v2845_v60  ;;  %v1254_v17 = vmul.f32 0.7978846, %v1222_v57  ;;  %v1056_v24 = vpop.f32.mrf.mxu1  ;;  %v1365_v49 = vmul.f32 %v1333_v38, %v2805_v53 }
 0x12b   : > { %v1317_v13 = vadd.f32 1.0, %v2202_v59  ;;  %v1207_v16 = vadd.f32 %v1175_v4, %v2838_v41  ;;  %v2857_v5 = vadd.f32 %v2646_v25, %v1056_v24 }
 0x12c   : > { %v1159_v3 = vmul.f32 %v1127_v39, %v2845_v60  ;;  %2205 = vtanh.f32 %v1254_v17  ;;  %v1390_v50 = vpack.c.bf16 %v1365_v49, %v1364_v8 }
 0x12d   : > { %v1349_v19 = vmul.f32 0.5, %v1317_v13  ;;  %v1112_v26 = vmul.f32 %v2857_v5, %v2857_v5  ;;  %v1239_v53 = vmul.f32 0.7978846, %v1207_v16  ;;  %v2204_v27 = vpop.eup %2203 }
 0x12e   : > { %v1191_v11 = vmul.f32 0.044715, %v1159_v3  ;;  %1506 = vmatmul.bf16.gmra.mxu2 %v1390_v50  ;;  %v1302_v44 = vadd.f32 1.0, %v2204_v27  ;;  %567 = vmatmul.bf16.gmra.mxu0 %v1922_v58 }
 0x12f   : > { %v1381_v30 = vmul.f32 %v1349_v19, %v2812_v7  ;;  %v1144_v15 = vmul.f32 %v1112_v26, %v2857_v5  ;;  %2207 = vtanh.f32 %v1239_v53  ;;  %v2869_v52 = vpop.f32.mrf.mxu0 }
 0x130   : > { %v1223_v2 = vadd.f32 %v1191_v11, %v2845_v60  ;;  %v1334_v1 = vmul.f32 0.5, %v1302_v44 }
 0x131   : > { %v1398_v10 = vpack.c.bf16 %v1381_v30, %v1380_v20  ;;  %v1176_v47 = vmul.f32 0.044715, %v1144_v15 }
 0x132   : > { %v2206_v31 = vpop.eup %2205  ;;  %v1255_v34 = vmul.f32 0.7978846, %v1223_v2  ;;  %v1058_v32 = vpop.f32.mrf.mxu1  ;;  %v1366_v55 = vmul.f32 %v1334_v1, %v2822_v29 }
 0x133   : > { %1546 = vmatmul.bf16.gmra.mxu3 %v1398_v10  ;;  %v1208_v33 = vadd.f32 %v1176_v47, %v2857_v5  ;;  %v1059_v37 = vadd.f32 %v2646_v25, %v1058_v32  ;;  %v1318_v7 = vadd.f32 1.0, %v2206_v31  ;;  %v1923_v47 = vld [vmem:[%s2334_s16 + $0x50] sm:$0xff] }
 0x134   : > { %2209 = vtanh.f32 %v1255_v34 }
 0x135   : > { %v2208_v18 = vpop.eup %2207  ;;  %v1113_v40 = vmul.f32 %v1059_v37, %v1059_v37  ;;  %v1240_v62 = vmul.f32 0.7978846, %v1208_v33  ;;  %v1350_v45 = vmul.f32 0.5, %v1318_v7 }
 0x136   : > { %v1303_v14 = vadd.f32 1.0, %v2208_v18 }
 0x137   : > { %v1145_v43 = vmul.f32 %v1113_v40, %v1059_v37  ;;  %2211 = vtanh.f32 %v1240_v62  ;;  %v1382_v39 = vmul.f32 %v1350_v45, %v2831_v63  ;;  %v2882_v28 = vpop.f32.mrf.mxu0  ;;  %v2903_v45 = vld [vmem:[%s3032_s4] ss:$0 sm:$0xff] }
 0x138   : > { %v1335_v6 = vmul.f32 0.5, %v1303_v14 }
 0x139   : > { %v1177_v51 = vmul.f32 0.044715, %v1145_v43 }
 0x13a   : > { %v2210_v21 = vpop.eup %2209  ;;  %v1061_v54 = vpop.f32.mrf.mxu1  ;;  %v1367_v56 = vmul.f32 %v1335_v6, %v2838_v41 }
 0x13b   : > { %v1319_v57 = vadd.f32 1.0, %v2210_v21  ;;  %v1209_v38 = vadd.f32 %v1177_v51, %v1059_v37  ;;  %v2875_v0 = vadd.f32 %v2646_v25, %v1061_v54 }
 0x13c   : > { %v1391_v59 = vpack.c.bf16 %v1367_v56, %v1366_v55  ;;  %v2908_v55 = vld [vmem:[%s3034_s6] ss:$0 sm:$0xff] }
 0x13d   : > { %v1351_v4 = vmul.f32 0.5, %v1319_v57  ;;  %v1114_v17 = vmul.f32 %v2875_v0, %v2875_v0  ;;  %v1241_v24 = vmul.f32 0.7978846, %v1209_v38  ;;  %v2212_v8 = vpop.eup %2211  ;;  %v524_v38 = vadd.f32 %v2908_v55, %v2849_v22 }
 0x13e   : > { %1511 = vmatmul.bf16.gmra.mxu2 %v1391_v59  ;;  %v1304_v3 = vadd.f32 1.0, %v2212_v8  ;;  %572 = vmatmul.bf16.gmra.mxu0 %v1923_v47 }
 0x13f   : > { %v1383_v29 = vmul.f32 %v1351_v4, %v2845_v60  ;;  %v1146_v41 = vmul.f32 %v1114_v17, %v2875_v0  ;;  %2213 = vtanh.f32 %v1241_v24  ;;  %v2886_v2 = vpop.f32.mrf.mxu0  ;;  %v526_v24 = vadd.f32 %v2908_v55, %v2865_v12 }
 0x140   : > { %v1336_v26 = vmul.f32 0.5, %v1304_v3 }
 0x141   : > { %v1399_v49 = vpack.c.bf16 %v1383_v29, %v1382_v39  ;;  %v1178_v13 = vmul.f32 0.044715, %v1146_v41 }
 0x142   : > { %v1063_v16 = vpop.f32.mrf.mxu1  ;;  %v1368_v10 = vmul.f32 %v1336_v26, %v2857_v5 }
 0x143   : > { %1551 = vmatmul.bf16.gmra.mxu3 %v1399_v49  ;;  %v1210_v63 = vadd.f32 %v1178_v13, %v2875_v0  ;;  %v1064_v50 = vadd.f32 %v2646_v25, %v1063_v16  ;;  %v1924_v13 = vld [vmem:[%s2334_s16 + $0x58] sm:$0xff] }
 0x145   : > { %v2214_v19 = vpop.eup %2213  ;;  %v1115_v20 = vmul.f32 %v1064_v50, %v1064_v50  ;;  %v1242_v11 = vmul.f32 0.7978846, %v1210_v63 }
 0x146   : > { %v1305_v60 = vadd.f32 1.0, %v2214_v19 }
 0x147   : > { %v1147_v53 = vmul.f32 %v1115_v20, %v1064_v50  ;;  %2215 = vtanh.f32 %v1242_v11  ;;  %v2898_v6 = vpop.f32.mrf.mxu0 }
 0x148   : > { %v1337_v30 = vmul.f32 0.5, %v1305_v60 }
 0x149   : > { %v1179_v27 = vmul.f32 0.044715, %v1147_v53 }
 0x14a   : > { %v1066_v15 = vpop.f32.mrf.mxu1  ;;  %v1369_v31 = vmul.f32 %v1337_v30, %v1059_v37 }
 0x14b   : > { %v1211_v34 = vadd.f32 %v1179_v27, %v1064_v50  ;;  %v2891_v32 = vadd.f32 %v2646_v25, %v1066_v15 }
 0x14c   : > { %v1392_v44 = vpack.c.bf16 %v1369_v31, %v1368_v10 }
 0x14d   : > { %v1116_v33 = vmul.f32 %v2891_v32, %v2891_v32  ;;  %v1243_v7 = vmul.f32 0.7978846, %v1211_v34  ;;  %v2216_v18 = vpop.eup %2215 }
 0x14e   : > { %1516 = vmatmul.bf16.gmra.mxu2 %v1392_v44  ;;  %v1306_v37 = vadd.f32 1.0, %v2216_v18  ;;  %577 = vmatmul.bf16.gmra.mxu0 %v1924_v13 }
 0x14f   : > { %v1148_v40 = vmul.f32 %v1116_v33, %v2891_v32  ;;  %2217 = vtanh.f32 %v1243_v7  ;;  %v2926_v11 = vpop.f32.mrf.mxu0 }
 0x150   : > { %v1338_v57 = vmul.f32 0.5, %v1306_v37 }
 0x151   : > { %v1180_v62 = vmul.f32 0.044715, %v1148_v40  ;;  %v1477_v14 = vpop.f32.mrf.mxu2  ;;  %v529_v40 = vadd.f32 %v2908_v55, %v2869_v52 }
 0x152   : > { %v1068_v5 = vpop.f32.mrf.mxu1  ;;  %v1478_v59 = vadd.f32 %v2903_v45, %v1477_v14  ;;  %v1370_v41 = vmul.f32 %v1338_v57, %v2875_v0 }
 0x153   : > { %v1212_v1 = vadd.f32 %v1180_v62, %v2891_v32  ;;  %v1069_v43 = vadd.f32 %v2646_v25, %v1068_v5 }
 0x154   : > { %v1557_v3 = vadd.f32 %v1478_v59, %v524_v38 }
 0x155   : > { %v2218_v21 = vpop.eup %2217  ;;  %v1117_v51 = vmul.f32 %v1069_v43, %v1069_v43  ;;  %v1244_v54 = vmul.f32 0.7978846, %v1212_v1 }
 0x156   : > { %v1307_v56 = vadd.f32 1.0, %v2218_v21 }
 0x157   : > { %v1149_v58 = vmul.f32 %v1117_v51, %v1069_v43  ;;  %2219 = vtanh.f32 %v1244_v54  ;;  %v540_v18 = vpop.f32.mrf.mxu0 }
 0x158   : > { %v1339_v4 = vmul.f32 0.5, %v1307_v56 }
 0x159   : > { %v1181_v39 = vmul.f32 0.044715, %v1149_v58  ;;  %v1479_v17 = vpop.f32.mrf.mxu2 }
 0x15a   : > { %v1480_v29 = vadd.f32 %v2903_v45, %v1479_v17  ;;  %v1071_v8 = vpop.f32.mrf.mxu1  ;;  %v1371_v49 = vmul.f32 %v1339_v4, %v1064_v50 }
 0x15b   : > { %v1213_v16 = vadd.f32 %v1181_v39, %v1069_v43  ;;  %v1072_v22 = vadd.f32 %v2646_v25, %v1071_v8 }
 0x15c   : > { %v1558_v63 = vadd.f32 %v1480_v29, %v526_v24  ;;  %v1393_v19 = vpack.c.bf16 %v1371_v49, %v1370_v41  ;;  %v536_v49 = vadd.f32 %v2908_v55, %v2898_v6 }
 0x15d   : > { %v1118_v12 = vmul.f32 %v1072_v22, %v1072_v22  ;;  %v1245_v20 = vmul.f32 0.7978846, %v1213_v16  ;;  %v2220_v50 = vpop.eup %2219 }
 0x15e   : > { %v1956_v0 = vpack.c.bf16 %v1558_v63, %v1557_v3  ;;  %1521 = vmatmul.bf16.gmra.mxu2 %v1393_v19  ;;  %v1308_v27 = vadd.f32 1.0, %v2220_v50 }
 0x15f   : > { %v1150_v60 = vmul.f32 %v1118_v12, %v1072_v22  ;;  %2221 = vtanh.f32 %v1245_v20  ;;  %v543_v39 = vpop.f32.mrf.mxu0 }
 0x160   : > { %1957 = vst [vmem:[%s2924_s12] sm:$0xff] %v1956_v0   ;;  %v1340_v33 = vmul.f32 0.5, %v1308_v27 }
 0x161   : > { %v1182_v26 = vmul.f32 0.044715, %v1150_v60  ;;  %v1482_v53 = vpop.f32.mrf.mxu2  ;;  %v539_v60 = vadd.f32 %v2908_v55, %v2926_v11 }
 0x162   : > { %v1073_v30 = vpop.f32.mrf.mxu1  ;;  %v1483_v62 = vadd.f32 %v2903_v45, %v1482_v53  ;;  %v1372_v21 = vmul.f32 %v1340_v33, %v2891_v32  ;;  %v534_v32 = vadd.f32 %v2908_v55, %v2886_v2  ;;  %v541_v53 = vadd.f32 %v2908_v55, %v540_v18 }
 0x163   : > { %v1214_v15 = vadd.f32 %v1182_v26, %v1072_v22  ;;  %v1074_v10 = vadd.f32 %v2646_v25, %v1073_v30  ;;  %v531_v25 = vadd.f32 %v2908_v55, %v2882_v28 }
 0x164   : > { %v1559_v56 = vadd.f32 %v1483_v62, %v529_v40 }
 0x165   : > { %v2222_v31 = vpop.eup %2221  ;;  %v1119_v47 = vmul.f32 %v1074_v10, %v1074_v10  ;;  %v1246_v34 = vmul.f32 0.7978846, %v1214_v15 }
 0x166   : > { %v1309_v44 = vadd.f32 1.0, %v2222_v31 }
 0x167   : > { %v1151_v7 = vmul.f32 %v1119_v47, %v1074_v10  ;;  %2223 = vtanh.f32 %v1246_v34  ;;  %v545_v63 = vpop.f32.mrf.mxu0  ;;  %v544_v34 = vadd.f32 %v2908_v55, %v543_v39 }
 0x168   : > { %v1341_v14 = vmul.f32 0.5, %v1309_v44 }
 0x169   : > { %v1183_v5 = vmul.f32 0.044715, %v1151_v7  ;;  %v1484_v37 = vpop.f32.mrf.mxu2  ;;  %v546_v7 = vadd.f32 %v2908_v55, %v545_v63 }
 0x16a   : > { %v1485_v1 = vadd.f32 %v2903_v45, %v1484_v37  ;;  %v1373_v51 = vmul.f32 %v1341_v14, %v1069_v43  ;;  %v584_v37 = vadd.f32 %v2908_v55, %v2664_v42 }
 0x16b   : > { %v1215_v54 = vadd.f32 %v1183_v5, %v1074_v10 }
 0x16c   : > { %v1560_v57 = vadd.f32 %v1485_v1, %v531_v25  ;;  %v1394_v58 = vpack.c.bf16 %v1373_v51, %v1372_v21  ;;  %v586_v25 = vadd.f32 %v2908_v55, %v2677_v9 }
 0x16d   : > { %v1247_v52 = vmul.f32 0.7978846, %v1215_v54  ;;  %v2224_v59 = vpop.eup %2223 }
 0x16e   : > { %v1961_v38 = vpack.c.bf16 %v1560_v57, %v1559_v56  ;;  %1526 = vmatmul.bf16.gmra.mxu2 %v1394_v58  ;;  %v1310_v17 = vadd.f32 1.0, %v2224_v59 }
 0x16f   : > { %2225 = vtanh.f32 %v1247_v52  ;;  %v548_v50 = vpop.f32.mrf.mxu0 }
 0x170   : > { %2033 = vst [vmem:[%s2924_s12 + $0x8] sm:$0xff] %v1961_v38   ;;  %v1342_v29 = vmul.f32 0.5, %v1310_v17  ;;  %v549_v38 = vadd.f32 %v2908_v55, %v548_v50 }
 0x171   : > { %v1487_v4 = vpop.f32.mrf.mxu2 }
 0x172   : > { %v1488_v43 = vadd.f32 %v2903_v45, %v1487_v4  ;;  %v1374_v16 = vmul.f32 %v1342_v29, %v1072_v22 }
 0x174   : > { %v1561_v19 = vadd.f32 %v1488_v43, %v534_v32  ;;  %v589_v32 = vadd.f32 %v2908_v55, %v2687_v23  ;;  %v591_v43 = vadd.f32 %v2908_v55, %v2694_v36 }
 0x175   : > { %v2226_v24 = vpop.eup %2225 }
 0x176   : > { %v1311_v28 = vadd.f32 1.0, %v2226_v24 }
 0x178   : > { %v1343_v8 = vmul.f32 0.5, %v1311_v28 }
 0x179   : > { %v1489_v41 = vpop.f32.mrf.mxu2 }
 0x17a   : > { %v1490_v13 = vadd.f32 %v2903_v45, %v1489_v41  ;;  %v1375_v3 = vmul.f32 %v1343_v8, %v1074_v10  ;;  %v550_v10 = vpop.f32.mrf.mxu0 }
 0x17b   : > { %v551_v4 = vadd.f32 %v2908_v55, %v550_v10 }
 0x17c   : > { %v1562_v12 = vadd.f32 %v1490_v13, %v536_v49  ;;  %v1395_v20 = vpack.c.bf16 %v1375_v3, %v1374_v16 }
 0x17e   : > { %v1966_v0 = vpack.c.bf16 %v1562_v12, %v1561_v19  ;;  %1531 = vmatmul.bf16.gmra.mxu2 %v1395_v20 }
 0x180   : > { %2034 = vst [vmem:[%s2924_s12 + $0x10] sm:$0xff] %v1966_v0  }
 0x181   : > { %v1492_v2 = vpop.f32.mrf.mxu2 }
 0x182   : > { %v1493_v26 = vadd.f32 %v2903_v45, %v1492_v2  ;;  %v553_v33 = vpop.f32.mrf.mxu0 }
 0x183   : > { %v554_v12 = vadd.f32 %v2908_v55, %v553_v33 }
 0x184   : > { %v1563_v30 = vadd.f32 %v1493_v26, %v539_v60 }
 0x189   : > { %v1494_v6 = vpop.f32.mrf.mxu2 }
 0x18a   : > { %v1495_v22 = vadd.f32 %v2903_v45, %v1494_v6  ;;  %v555_v58 = vpop.f32.mrf.mxu0  ;;  %v594_v6 = vadd.f32 %v2908_v55, %v2703_v61 }
 0x18b   : > { %v556_v0 = vadd.f32 %v2908_v55, %v555_v58 }
 0x18c   : > { %v1564_v27 = vadd.f32 %v1495_v22, %v541_v53  ;;  %v596_v53 = vadd.f32 %v2908_v55, %v2710_v48 }
 0x18e   : > { %v1971_v15 = vpack.c.bf16 %v1564_v27, %v1563_v30 }
 0x190   : > { %2035 = vst [vmem:[%s2924_s12 + $0x18] sm:$0xff] %v1971_v15  }
 0x191   : > { %v1497_v31 = vpop.f32.mrf.mxu2 }
 0x192   : > { %v1498_v44 = vadd.f32 %v2903_v45, %v1497_v31  ;;  %v558_v29 = vpop.f32.mrf.mxu0 }
 0x194   : > { %v1565_v40 = vadd.f32 %v1498_v44, %v544_v34  ;;  %v559_v44 = vadd.f32 %v2908_v55, %v558_v29 }
 0x196   : > { %v1537_v47 = vpop.f32.mrf.mxu3 }
 0x197   : > { %v1538_v62 = vadd.f32 %v2903_v45, %v1537_v47 }
 0x199   : > { %v1499_v11 = vpop.f32.mrf.mxu2  ;;  %v1581_v51 = vadd.f32 %v1538_v62, %v584_v37  ;;  %v601_v37 = vadd.f32 %v2908_v55, %v2724_v46 }
 0x19a   : > { %v1500_v18 = vadd.f32 %v2903_v45, %v1499_v11  ;;  %v560_v19 = vpop.f32.mrf.mxu0 }
 0x19b   : > { %v561_v33 = vadd.f32 %v2908_v55, %v560_v19 }
 0x19c   : > { %v1566_v14 = vadd.f32 %v1500_v18, %v546_v7 }
 0x19e   : > { %v1539_v5 = vpop.f32.mrf.mxu3  ;;  %v1976_v1 = vpack.c.bf16 %v1566_v14, %v1565_v40 }
 0x19f   : > { %v1540_v21 = vadd.f32 %v2903_v45, %v1539_v5  ;;  %v599_v5 = vadd.f32 %v2908_v55, %v2719_v35 }
 0x1a0   : > { %2036 = vst [vmem:[%s2924_s12 + $0x20] sm:$0xff] %v1976_v1  }
 0x1a1   : > { %v1582_v54 = vadd.f32 %v1540_v21, %v586_v25  ;;  %v1502_v56 = vpop.f32.mrf.mxu2 }
 0x1a2   : > { %v1503_v59 = vadd.f32 %v2903_v45, %v1502_v56  ;;  %v563_v31 = vpop.f32.mrf.mxu0 }
 0x1a3   : > { %v2016_v57 = vpack.c.bf16 %v1582_v54, %v1581_v51  ;;  %v564_v58 = vadd.f32 %v2908_v55, %v563_v31 }
 0x1a4   : > { %v1567_v39 = vadd.f32 %v1503_v59, %v549_v38 }
 0x1a5   : > { %2044 = vst [vmem:[%s2924_s12 + $0x60] sm:$0xff] %v2016_v57  }
 0x1a6   : > { %v1542_v52 = vpop.f32.mrf.mxu3 }
 0x1a7   : > { %v1543_v17 = vadd.f32 %v2903_v45, %v1542_v52 }
 0x1a9   : > { %v1504_v42 = vpop.f32.mrf.mxu2  ;;  %v1583_v49 = vadd.f32 %v1543_v17, %v589_v32 }
 0x1aa   : > { %v1505_v9 = vadd.f32 %v2903_v45, %v1504_v42  ;;  %v565_v7 = vpop.f32.mrf.mxu0 }
 0x1ab   : > { %v566_v35 = vadd.f32 %v2908_v55, %v565_v7 }
 0x1ac   : > { %v1568_v24 = vadd.f32 %v1505_v9, %v551_v4 }
 0x1ae   : > { %v1544_v28 = vpop.f32.mrf.mxu3  ;;  %v1981_v8 = vpack.c.bf16 %v1568_v24, %v1567_v39 }
 0x1af   : > { %v1545_v41 = vadd.f32 %v2903_v45, %v1544_v28 }
 0x1b0   : > { %2037 = vst [vmem:[%s2924_s12 + $0x28] sm:$0xff] %v1981_v8  }
 0x1b1   : > { %v1584_v13 = vadd.f32 %v1545_v41, %v591_v43  ;;  %v1507_v16 = vpop.f32.mrf.mxu2 }
 0x1b2   : > { %v1508_v20 = vadd.f32 %v2903_v45, %v1507_v16  ;;  %v568_v57 = vpop.f32.mrf.mxu0 }
 0x1b3   : > { %v2021_v3 = vpack.c.bf16 %v1584_v13, %v1583_v49  ;;  %v569_v17 = vadd.f32 %v2908_v55, %v568_v57 }
 0x1b4   : > { %v1569_v2 = vadd.f32 %v1508_v20, %v554_v12 }
 0x1b5   : > { %2045 = vst [vmem:[%s2924_s12 + $0x68] sm:$0xff] %v2021_v3  }
 0x1b6   : > { %v1547_v63 = vpop.f32.mrf.mxu3 }
 0x1b7   : > { %v1548_v50 = vadd.f32 %v2903_v45, %v1547_v63 }
 0x1b9   : > { %v1509_v23 = vpop.f32.mrf.mxu2  ;;  %v1585_v27 = vadd.f32 %v1548_v50, %v594_v6 }
 0x1ba   : > { %v1510_v36 = vadd.f32 %v2903_v45, %v1509_v23  ;;  %v570_v9 = vpop.f32.mrf.mxu0 }
 0x1bb   : > { %v571_v32 = vadd.f32 %v2908_v55, %v570_v9 }
 0x1bc   : > { %v1570_v60 = vadd.f32 %v1510_v36, %v556_v0 }
 0x1be   : > { %v1549_v26 = vpop.f32.mrf.mxu3  ;;  %v1986_v22 = vpack.c.bf16 %v1570_v60, %v1569_v2 }
 0x1bf   : > { %v1550_v30 = vadd.f32 %v2903_v45, %v1549_v26 }
 0x1c0   : > { %2038 = vst [vmem:[%s2924_s12 + $0x30] sm:$0xff] %v1986_v22  }
 0x1c1   : > { %v1586_v15 = vadd.f32 %v1550_v30, %v596_v53  ;;  %v1512_v10 = vpop.f32.mrf.mxu2 }
 0x1c2   : > { %v1513_v11 = vadd.f32 %v2903_v45, %v1512_v10  ;;  %v573_v28 = vpop.f32.mrf.mxu0 }
 0x1c3   : > { %v2026_v47 = vpack.c.bf16 %v1586_v15, %v1585_v27  ;;  %v574_v3 = vadd.f32 %v2908_v55, %v573_v28 }
 0x1c4   : > { %v1571_v18 = vadd.f32 %v1513_v11, %v559_v44 }
 0x1c5   : > { %2046 = vst [vmem:[%s2924_s12 + $0x70] sm:$0xff] %v2026_v47  }
 0x1c6   : > { %v1552_v34 = vpop.f32.mrf.mxu3 }
 0x1c7   : > { %v1553_v40 = vadd.f32 %v2903_v45, %v1552_v34 }
 0x1c9   : > { %v1514_v61 = vpop.f32.mrf.mxu2  ;;  %v1587_v21 = vadd.f32 %v1553_v40, %v599_v5 }
 0x1ca   : > { %v1515_v48 = vadd.f32 %v2903_v45, %v1514_v61  ;;  %v575_v16 = vpop.f32.mrf.mxu0 }
 0x1cb   : > { %v576_v12 = vadd.f32 %v2908_v55, %v575_v16 }
 0x1cc   : > { %v1572_v62 = vadd.f32 %v1515_v48, %v561_v33 }
 0x1ce   : > { %v1554_v14 = vpop.f32.mrf.mxu3  ;;  %v1991_v25 = vpack.c.bf16 %v1572_v62, %v1571_v18 }
 0x1cf   : > { %v1555_v1 = vadd.f32 %v2903_v45, %v1554_v14 }
 0x1d0   : > { %2039 = vst [vmem:[%s2924_s12 + $0x38] sm:$0xff] %v1991_v25  }
 0x1d1   : > { %v1588_v51 = vadd.f32 %v1555_v1, %v601_v37  ;;  %v1517_v54 = vpop.f32.mrf.mxu2 }
 0x1d2   : > { %v1518_v52 = vadd.f32 %v2903_v45, %v1517_v54  ;;  %v578_v36 = vpop.f32.mrf.mxu0 }
 0x1d3   : > { %v2031_v56 = vpack.c.bf16 %v1588_v51, %v1587_v21  ;;  %v579_v26 = vadd.f32 %v2908_v55, %v578_v36 }
 0x1d4   : > { %v1573_v59 = vadd.f32 %v1518_v52, %v564_v58 }
 0x1d5   : > { %2047 = vst [vmem:[%s2924_s12 + $0x78] sm:$0xff] %v2031_v56  }
 0x1d9   : > { %v1519_v38 = vpop.f32.mrf.mxu2 }
 0x1da   : > { %v1520_v46 = vadd.f32 %v2903_v45, %v1519_v38  ;;  %v580_v60 = vpop.f32.mrf.mxu0 }
 0x1db   : > { %v581_v22 = vadd.f32 %v2908_v55, %v580_v60 }
 0x1dc   : > { %v1574_v42 = vadd.f32 %v1520_v46, %v566_v35 }
 0x1de   : > { %v1996_v4 = vpack.c.bf16 %v1574_v42, %v1573_v59 }
 0x1e0   : > { %2040 = vst [vmem:[%s2924_s12 + $0x40] sm:$0xff] %v1996_v4  }
 0x1e1   : > { %v1522_v39 = vpop.f32.mrf.mxu2 }
 0x1e2   : > { %v1523_v24 = vadd.f32 %v2903_v45, %v1522_v39 }
 0x1e4   : > { %v1575_v8 = vadd.f32 %v1523_v24, %v569_v17 }
 0x1e9   : > { %v1524_v29 = vpop.f32.mrf.mxu2 }
 0x1ea   : > { %v1525_v43 = vadd.f32 %v2903_v45, %v1524_v29 }
 0x1ec   : > { %v1576_v41 = vadd.f32 %v1525_v43, %v571_v32 }
 0x1ee   : > { %v2001_v49 = vpack.c.bf16 %v1576_v41, %v1575_v8 }
 0x1f0   : > { %2041 = vst [vmem:[%s2924_s12 + $0x48] sm:$0xff] %v2001_v49  }
 0x1f1   : > { %v1527_v13 = vpop.f32.mrf.mxu2 }
 0x1f2   : > { %v1528_v63 = vadd.f32 %v2903_v45, %v1527_v13 }
 0x1f4   : > { %v1577_v23 = vadd.f32 %v1528_v63, %v574_v3 }
 0x1f9   : > { %v1529_v19 = vpop.f32.mrf.mxu2 }
 0x1fa   : > { %v1530_v20 = vadd.f32 %v2903_v45, %v1529_v19 }
 0x1fc   : > { %v1578_v0 = vadd.f32 %v1530_v20, %v576_v12 }
 0x1fe   : > { %v2006_v2 = vpack.c.bf16 %v1578_v0, %v1577_v23 }
 0x200   : > { %2042 = vst [vmem:[%s2924_s12 + $0x50] sm:$0xff] %v2006_v2  }
 0x201   : > { %v1532_v50 = vpop.f32.mrf.mxu2 }
 0x202   : > { %v1533_v6 = vadd.f32 %v2903_v45, %v1532_v50 }
 0x204   : > { %v1579_v27 = vadd.f32 %v1533_v6, %v579_v26 }
 0x209   : > { %v1534_v53 = vpop.f32.mrf.mxu2 }
 0x20a   : > { %v1535_v30 = vadd.f32 %v2903_v45, %v1534_v53 }
 0x20c   : > { %v1580_v15 = vadd.f32 %v1535_v30, %v581_v22 }
 0x20e   : > { %v2011_v10 = vpack.c.bf16 %v1580_v15, %v1579_v27 }
 0x210   : > { %2043 = vst [vmem:[%s2924_s12 + $0x58] sm:$0xff] %v2011_v10  }
 0x211 PF: > { %s17_s26 = sadd.s32 1, %s2249_s26   ;;  %s3036_s24 = smov %s2245_s25 }
 0x212   : > { %p14_p5 = scmp.ge.s32.totalorder %s17_s26, 4   ;;  %s3037_s25 = smov %s3039_s27 }
 0x214   :  { %16 = sbr.rel (!%p14_p5) target bundleno = 2 (0x2), region = 78 }

// kernel: _lambda_.11
= control target key start
LH: loop header
LB: loop body
LE: loop exit
PB: predicated region body
PF: predicated region fallthrough
CT: control target
= control target key end

     0   :  { %s1219_s24 = smov 0   ;;  %s1221_s25 = smov 0   ;;  %s1394_s0 = inlined_call_operand.vmem [shape: bf16[2,64,128], index: 0, kind: input, shape index: {}]   ;;  %s1395_s1 = inlined_call_operand.vmem [shape: bf16[128,128], index: 1, kind: input, shape index: {}]   ;;  %s1396_s2 = inlined_call_operand.vmem [shape: f32[1,128], index: 2, kind: input, shape index: {}]   ;;  %s1397_s3 = inlined_call_operand.vmem [shape: bf16[128,128], index: 3, kind: input, shape index: {}]   ;;  %s1398_s4 = inlined_call_operand.vmem [shape: f32[1,128], index: 4, kind: input, shape index: {}]   ;;  %s1399_s5 = inlined_call_operand.vmem [shape: bf16[128,128], index: 5, kind: input, shape index: {}]   ;;  %s1400_s6 = inlined_call_operand.vmem [shape: f32[1,128], index: 6, kind: input, shape index: {}]   ;;  %s1401_s7 = inlined_call_operand.vmem [shape: bf16[2,64,128], index: 7, kind: output, shape index: {}]  }
   0x1   :  { %s1223_s26 = smov 0  }
   0x2 LB: > { %s29_s27 = sadd.s32 1, %s1173_s25  ;;  %p916_p0 = scmp.ge.s32.totalorder %s1177_s26, 1  ;;  %s1177_s26 = sphi %s1223_s26, %s17_s26   ;;  %s1173_s25 = sphi %s1221_s25, %s1403_s25   ;;  %s1169_s24 = sphi %s1219_s24, %s1402_s24  }
   0x3   : > { %p31_p1 = scmp.ge.s32.totalorder %s29_s27, 2  ;;  %p258_p2 = scmp.lt.s32.totalorder %s1177_s26, 3 }
   0x5   : > { %s1405_s27 = smov (%p31_p1, %s29_s27), 0  ;;  %p259_p3 = pnand %p916_p0, %p258_p2 }
   0x6   : > { %p299_p4 = scmp.lt.s32.totalorder (!%p259_p3), %s1169_s24, 1 }
   0x7   : > { %262 = sbr.rel (%p259_p3) target bundleno = 400 (0x190), region = 48 }
   0xc   : > { %v1056_v0 = vld [vmem:[%s1395_s1 + $0x38] sm:$0xff]  ;;  %v1055_v1 = vld [vmem:[%s1395_s1 + $0x30] sm:$0xff]  ;;  %s1407_s24 = smov (!%p299_p4, %s1169_s24), 1  ;;  %v1054_v2 = vld [vmem:[%s1395_s1 + $0x28] sm:$0xff] }
   0xd   : > { %599 = vmatpush.bf16.msra.mxu1 %v1056_v0  ;;  %s1035_s9 = sshll.u32 %s1407_s24, 5  ;;  %v1053_v13 = vld [vmem:[%s1395_s1 + $0x20] sm:$0xff]  ;;  %v1052_v21 = vld [vmem:[%s1395_s1 + $0x18] sm:$0xff]  ;;  %v1051_v30 = vld [vmem:[%s1395_s1 + $0x10] sm:$0xff] }
   0xe   : > { %s1251_s12 = scalar_lea.vmem %s1394_s0, %s1035_s9  ;;  %v1050_v35 = vld [vmem:[%s1395_s1 + $0x8] sm:$0xff]  ;;  %v1049_v41 = vld [vmem:[%s1395_s1] sm:$0xff]  ;;  %s1379_s13 = scalar_lea.vmem %s1401_s7, %s1035_s9 }
   0xf   : > { %v318_v3 = vld [vmem:[%s1251_s12] sm:$0xff]   ;;  %v320_v4 = vld [vmem:[%s1251_s12 + $0x8] sm:$0xff]   ;;  %v322_v23 = vld [vmem:[%s1251_s12 + $0x10] sm:$0xff]  }
  0x10   : > { %v447_v5 = vunpack.c.l.bf16 %v318_v3  ;;  %v448_v6 = vunpack.c.h.bf16 %v318_v3  ;;  %v1258_v7 = vunpack.c.l.bf16 %v320_v4  ;;  %v1260_v8 = vunpack.c.h.bf16 %v320_v4  ;;  %v324_v50 = vld [vmem:[%s1251_s12 + $0x18] sm:$0xff]  }
  0x11   : > { %600 = vmatpush.bf16.msra.mxu1 %v1055_v1  ;;  %v1276_v29 = vunpack.c.l.bf16 %v322_v23  ;;  %v1282_v32 = vunpack.c.h.bf16 %v322_v23  ;;  %v453_v56 = vunpack.c.l.bf16 %v324_v50  ;;  %v454_v58 = vunpack.c.h.bf16 %v324_v50 }
  0x12   : > { %v455_v9 = vmul.f32 %v447_v5, %v447_v5  ;;  %v456_v10 = vmul.f32 %v448_v6, %v448_v6  ;;  %v457_v11 = vmul.f32 %v1258_v7, %v1258_v7  ;;  %v458_v12 = vmul.f32 %v1260_v8, %v1260_v8 }
  0x13   : > { %v459_v34 = vmul.f32 %v1276_v29, %v1276_v29  ;;  %v460_v37 = vmul.f32 %v1282_v32, %v1282_v32  ;;  %v461_v62 = vmul.f32 %v453_v56, %v453_v56  ;;  %v462_v0 = vmul.f32 %v454_v58, %v454_v58 }
  0x14   : > { %v463_v14 = vmul.f32 %v455_v9, %v447_v5  ;;  %v464_v15 = vmul.f32 %v456_v10, %v448_v6  ;;  %v465_v16 = vmul.f32 %v457_v11, %v1258_v7  ;;  %v466_v17 = vmul.f32 %v458_v12, %v1260_v8 }
  0x15   : > { %601 = vmatpush.bf16.msra.mxu1 %v1054_v2  ;;  %v467_v39 = vmul.f32 %v459_v34, %v1276_v29  ;;  %v468_v43 = vmul.f32 %v460_v37, %v1282_v32  ;;  %v469_v3 = vmul.f32 %v461_v62, %v453_v56  ;;  %v470_v4 = vmul.f32 %v462_v0, %v454_v58  ;;  %v1064_v34 = vld [vmem:[%s1397_s3 + $0x38] sm:$0xff]  ;;  %v1061_v37 = vld [vmem:[%s1397_s3 + $0x20] sm:$0xff] }
  0x16   : > { %v471_v18 = vmul.f32 0.044715, %v463_v14  ;;  %v472_v19 = vmul.f32 0.044715, %v464_v15  ;;  %v473_v20 = vmul.f32 0.044715, %v465_v16  ;;  %772 = vmatpush.bf16.msra.mxu2 %v1064_v34 }
  0x17   : > { %v474_v22 = vmul.f32 0.044715, %v466_v17  ;;  %v475_v47 = vmul.f32 0.044715, %v467_v39  ;;  %v476_v49 = vmul.f32 0.044715, %v468_v43 }
  0x18   : > { %v479_v24 = vadd.f32 %v471_v18, %v447_v5  ;;  %v480_v25 = vadd.f32 %v472_v19, %v448_v6  ;;  %v481_v28 = vadd.f32 %v473_v20, %v1258_v7  ;;  %v477_v9 = vmul.f32 0.044715, %v469_v3  ;;  %v1060_v39 = vld [vmem:[%s1397_s3 + $0x18] sm:$0xff]  ;;  %v1058_v43 = vld [vmem:[%s1397_s3 + $0x8] sm:$0xff] }
  0x19   : > { %602 = vmatpush.bf16.msra.mxu1 %v1053_v13  ;;  %v482_v31 = vadd.f32 %v474_v22, %v1260_v8  ;;  %v483_v55 = vadd.f32 %v475_v47, %v1276_v29  ;;  %v484_v57 = vadd.f32 %v476_v49, %v1282_v32  ;;  %v478_v10 = vmul.f32 0.044715, %v470_v4  ;;  %v1042_v49 = vld [vmem:[%s1399_s5 + $0x8] sm:$0xff] }
  0x1a   : > { %v487_v26 = vmul.f32 0.7978846, %v479_v24  ;;  %v488_v27 = vmul.f32 0.7978846, %v480_v25  ;;  %v489_v33 = vmul.f32 0.7978846, %v481_v28  ;;  %v485_v14 = vadd.f32 %v477_v9, %v453_v56 }
  0x1b   : > { %v490_v36 = vmul.f32 0.7978846, %v482_v31  ;;  %v491_v61 = vmul.f32 0.7978846, %v483_v55  ;;  %v492_v63 = vmul.f32 0.7978846, %v484_v57  ;;  %v486_v15 = vadd.f32 %v478_v10, %v454_v58 }
  0x1c   : > { %1123 = vtanh.f32 %v487_v26  ;;  %v493_v18 = vmul.f32 0.7978846, %v485_v14  ;;  %v1037_v55 = vld [vmem:[%s1251_s12] sm:$0xff] }
  0x1d   : > { %603 = vmatpush.bf16.msra.mxu1 %v1052_v21  ;;  %1125 = vtanh.f32 %v488_v27  ;;  %v494_v19 = vmul.f32 0.7978846, %v486_v15 }
  0x1e   : > { %1127 = vtanh.f32 %v489_v33 }
  0x1f   : > { %1129 = vtanh.f32 %v490_v36  ;;  %v1047_v36 = vld [vmem:[%s1399_s5 + $0x30] sm:$0xff] }
  0x20   : > { %1131 = vtanh.f32 %v491_v61 }
  0x21   : > { %604 = vmatpush.bf16.msra.mxu1 %v1051_v30  ;;  %1133 = vtanh.f32 %v492_v63 }
  0x22   : > { %v1124_v38 = vpop.eup %1123  ;;  %1135 = vtanh.f32 %v493_v18 }
  0x23   : > { %v1126_v40 = vpop.eup %1125  ;;  %v503_v42 = vadd.f32 1.0, %v1124_v38  ;;  %1137 = vtanh.f32 %v494_v19  ;;  %v1046_v38 = vld [vmem:[%s1399_s5 + $0x28] sm:$0xff] }
  0x24   : > { %v504_v44 = vadd.f32 1.0, %v1126_v40  ;;  %v1128_v51 = vpop.eup %1127  ;;  %v1045_v40 = vld [vmem:[%s1399_s5 + $0x20] sm:$0xff] }
  0x25   : > { %605 = vmatpush.bf16.msra.mxu1 %v1050_v35  ;;  %v511_v45 = vmul.f32 0.5, %v503_v42  ;;  %v1130_v53 = vpop.eup %1129  ;;  %v505_v59 = vadd.f32 1.0, %v1128_v51  ;;  %v1062_v35 = vld [vmem:[%s1397_s3 + $0x28] sm:$0xff]  ;;  %v1044_v42 = vld [vmem:[%s1399_s5 + $0x18] sm:$0xff] }
  0x26   : > { %v512_v46 = vmul.f32 0.5, %v504_v44  ;;  %v506_v60 = vadd.f32 1.0, %v1130_v53  ;;  %v1132_v11 = vpop.eup %1131  ;;  %v1342_v44 = vld [vmem:[%s1396_s2] ss:$0 sm:$0xff] }
  0x27   : > { %v519_v48 = vmul.f32 %v511_v45, %v447_v5  ;;  %v513_v1 = vmul.f32 0.5, %v505_v59  ;;  %v1134_v13 = vpop.eup %1133  ;;  %v507_v16 = vadd.f32 1.0, %v1132_v11  ;;  %v1043_v45 = vld [vmem:[%s1399_s5 + $0x10] sm:$0xff] }
  0x28   : > { %v520_v52 = vmul.f32 %v512_v46, %v448_v6  ;;  %v514_v2 = vmul.f32 0.5, %v506_v60  ;;  %v508_v17 = vadd.f32 1.0, %v1134_v13  ;;  %v1136_v22 = vpop.eup %1135  ;;  %v1057_v46 = vld [vmem:[%s1397_s3] sm:$0xff]  ;;  %v1039_v13 = vld [vmem:[%s1251_s12 + $0x10] sm:$0xff] }
  0x29   : > { %606 = vmatpush.bf16.msra.mxu1 %v1049_v41  ;;  %v521_v5 = vmul.f32 %v513_v1, %v1258_v7  ;;  %v515_v20 = vmul.f32 0.5, %v507_v16  ;;  %v1138_v24 = vpop.eup %1137  ;;  %v509_v25 = vadd.f32 1.0, %v1136_v22  ;;  %v1059_v41 = vld [vmem:[%s1397_s3 + $0x10] sm:$0xff] }
  0x2a   : > { %v527_v54 = vpack.c.bf16 %v520_v52, %v519_v48  ;;  %v522_v6 = vmul.f32 %v514_v2, %v1260_v8  ;;  %v516_v21 = vmul.f32 0.5, %v508_v17  ;;  %v510_v26 = vadd.f32 1.0, %v1138_v24  ;;  %v1041_v52 = vld [vmem:[%s1399_s5] sm:$0xff] }
  0x2b   : > { %v523_v7 = vmul.f32 %v515_v20, %v1276_v29  ;;  %v517_v27 = vmul.f32 0.5, %v509_v25  ;;  %v1063_v29 = vld [vmem:[%s1397_s3 + $0x30] sm:$0xff] }
  0x2c   : > { %607 = vmatmul.bf16.vlgmr.msra.gmra.mxu1 %v527_v54  ;;  %v528_v12 = vpack.c.bf16 %v522_v6, %v521_v5  ;;  %v524_v8 = vmul.f32 %v516_v21, %v1282_v32  ;;  %v518_v28 = vmul.f32 0.5, %v510_v26  ;;  %773 = vmatpush.bf16.msra.mxu2 %v1063_v29  ;;  %v1048_v32 = vld [vmem:[%s1399_s5 + $0x38] sm:$0xff] }
  0x2d   : > { %v525_v30 = vmul.f32 %v517_v27, %v453_v56  ;;  %418 = vmatpush.bf16.msra.mxu0 %v1048_v32  ;;  %1088 = vmatpush.bf16.msra.mxu3 %v1048_v32  ;;  %v1040_v29 = vld [vmem:[%s1251_s12 + $0x18] sm:$0xff] }
  0x2e   : > { %v529_v23 = vpack.c.bf16 %v524_v8, %v523_v7  ;;  %v526_v31 = vmul.f32 %v518_v28, %v454_v58  ;;  %v1038_v58 = vld [vmem:[%s1251_s12 + $0x8] sm:$0xff] }
  0x30   : > { %v530_v33 = vpack.c.bf16 %v526_v31, %v525_v30  ;;  %774 = vmatpush.bf16.msra.mxu2 %v1062_v35 }
  0x31   : > { %419 = vmatpush.bf16.msra.mxu0 %v1047_v36  ;;  %1089 = vmatpush.bf16.msra.mxu3 %v1047_v36 }
  0x34   : > { %775 = vmatpush.bf16.msra.mxu2 %v1061_v37 }
  0x35   : > { %420 = vmatpush.bf16.msra.mxu0 %v1046_v38  ;;  %1090 = vmatpush.bf16.msra.mxu3 %v1046_v38 }
  0x38   : > { %776 = vmatpush.bf16.msra.mxu2 %v1060_v39 }
  0x39   : > { %421 = vmatpush.bf16.msra.mxu0 %v1045_v40  ;;  %1091 = vmatpush.bf16.msra.mxu3 %v1045_v40 }
  0x3c   : > { %612 = vmatmul.bf16.gmra.mxu1 %v528_v12  ;;  %777 = vmatpush.bf16.msra.mxu2 %v1059_v41 }
  0x3d   : > { %422 = vmatpush.bf16.msra.mxu0 %v1044_v42  ;;  %1092 = vmatpush.bf16.msra.mxu3 %v1044_v42 }
  0x40   : > { %778 = vmatpush.bf16.msra.mxu2 %v1058_v43 }
  0x41   : > { %423 = vmatpush.bf16.msra.mxu0 %v1043_v45  ;;  %1093 = vmatpush.bf16.msra.mxu3 %v1043_v45 }
  0x44   : > { %779 = vmatpush.bf16.msra.mxu2 %v1057_v46 }
  0x45   : > { %424 = vmatpush.bf16.msra.mxu0 %v1042_v49  ;;  %1094 = vmatpush.bf16.msra.mxu3 %v1042_v49 }
  0x49   : > { %425 = vmatpush.bf16.msra.mxu0 %v1041_v52  ;;  %1095 = vmatpush.bf16.msra.mxu3 %v1041_v52 }
  0x4c   : > { %617 = vmatmul.bf16.gmra.mxu1 %v529_v23  ;;  %426 = vmatmul.bf16.vlgmr.msra.gmra.mxu0 %v1037_v55 }
  0x4d   : > { %431 = vmatmul.bf16.vlgmr.msra.gmra.mxu3 %v1038_v58 }
  0x5c   : > { %622 = vmatmul.bf16.gmra.mxu1 %v530_v33 }
  0x5d   : > { %436 = vmatmul.bf16.gmra.mxu3 %v1039_v13 }
  0x6d   : > { %441 = vmatmul.bf16.gmra.mxu3 %v1040_v29 }
  0xa9   : > { %v608_v47 = vpop.f32.mrf.mxu1 }
  0xaa   : > { %v609_v48 = vadd.f32 %v1342_v44, %v608_v47 }
  0xac   : > { %v628_v50 = vmul.f32 %v609_v48, %v609_v48 }
  0xae   : > { %v636_v51 = vmul.f32 %v628_v50, %v609_v48 }
  0xb0   : > { %v644_v53 = vmul.f32 0.044715, %v636_v51 }
  0xb1   : > { %v610_v54 = vpop.f32.mrf.mxu1 }
  0xb2   : > { %v652_v56 = vadd.f32 %v644_v53, %v609_v48  ;;  %v611_v57 = vadd.f32 %v1342_v44, %v610_v54 }
  0xb4   : > { %v629_v59 = vmul.f32 %v611_v57, %v611_v57  ;;  %v660_v60 = vmul.f32 0.7978846, %v652_v56 }
  0xb6   : > { %v637_v61 = vmul.f32 %v629_v59, %v611_v57  ;;  %1139 = vtanh.f32 %v660_v60 }
  0xb8   : > { %v645_v62 = vmul.f32 0.044715, %v637_v61 }
  0xb9   : > { %v613_v63 = vpop.f32.mrf.mxu1 }
  0xba   : > { %v653_v0 = vadd.f32 %v645_v62, %v611_v57  ;;  %v614_v1 = vadd.f32 %v1342_v44, %v613_v63 }
  0xbc   : > { %v630_v2 = vmul.f32 %v614_v1, %v614_v1  ;;  %v661_v3 = vmul.f32 0.7978846, %v653_v0  ;;  %v1140_v4 = vpop.eup %1139 }
  0xbd   : > { %v676_v10 = vadd.f32 1.0, %v1140_v4 }
  0xbe   : > { %v638_v5 = vmul.f32 %v630_v2, %v614_v1  ;;  %1141 = vtanh.f32 %v661_v3 }
  0xbf   : > { %v684_v18 = vmul.f32 0.5, %v676_v10 }
  0xc0   : > { %v646_v6 = vmul.f32 0.044715, %v638_v5 }
  0xc1   : > { %v615_v9 = vpop.f32.mrf.mxu1  ;;  %v692_v8 = vmul.f32 %v684_v18, %v609_v48 }
  0xc2   : > { %v654_v11 = vadd.f32 %v646_v6, %v614_v1  ;;  %v616_v12 = vadd.f32 %v1342_v44, %v615_v9 }
  0xc4   : > { %v1142_v14 = vpop.eup %1141  ;;  %v631_v15 = vmul.f32 %v616_v12, %v616_v12  ;;  %v662_v16 = vmul.f32 0.7978846, %v654_v11 }
  0xc5   : > { %v677_v17 = vadd.f32 1.0, %v1142_v14 }
  0xc6   : > { %v639_v19 = vmul.f32 %v631_v15, %v616_v12  ;;  %1143 = vtanh.f32 %v662_v16 }
  0xc7   : > { %v685_v20 = vmul.f32 0.5, %v677_v17 }
  0xc8   : > { %v647_v21 = vmul.f32 0.044715, %v639_v19 }
  0xc9   : > { %v618_v7 = vpop.f32.mrf.mxu1  ;;  %v693_v22 = vmul.f32 %v685_v20, %v611_v57  ;;  %v427_v19 = vpop.f32.mrf.mxu0 }
  0xca   : > { %v655_v23 = vadd.f32 %v647_v21, %v616_v12  ;;  %v619_v24 = vadd.f32 %v1342_v44, %v618_v7  ;;  %v1121_v21 = vld [vmem:[%s1400_s6] ss:$0 sm:$0xff] }
  0xcb   : > { %v700_v25 = vpack.c.bf16 %v693_v22, %v692_v8  ;;  %v1122_v7 = vld [vmem:[%s1398_s4] ss:$0 sm:$0xff] }
  0xcc   : > { %v632_v26 = vmul.f32 %v619_v24, %v619_v24  ;;  %v663_v27 = vmul.f32 0.7978846, %v655_v23  ;;  %v1144_v28 = vpop.eup %1143  ;;  %v428_v23 = vadd.f32 %v1121_v21, %v427_v19 }
  0xcd   : > { %780 = vmatmul.bf16.vlgmr.msra.gmra.mxu2 %v700_v25  ;;  %v678_v34 = vadd.f32 1.0, %v1144_v28 }
  0xce   : > { %v640_v30 = vmul.f32 %v632_v26, %v619_v24  ;;  %1145 = vtanh.f32 %v663_v27 }
  0xcf   : > { %v686_v40 = vmul.f32 0.5, %v678_v34 }
  0xd0   : > { %v648_v31 = vmul.f32 0.044715, %v640_v30  ;;  %v432_v22 = vpop.f32.mrf.mxu3 }
  0xd1   : > { %v620_v33 = vpop.f32.mrf.mxu1  ;;  %v694_v46 = vmul.f32 %v686_v40, %v614_v1  ;;  %v429_v8 = vpop.f32.mrf.mxu0  ;;  %v433_v29 = vadd.f32 %v1121_v21, %v432_v22 }
  0xd2   : > { %v656_v32 = vadd.f32 %v648_v31, %v619_v24  ;;  %v621_v35 = vadd.f32 %v1342_v44, %v620_v33  ;;  %v430_v25 = vadd.f32 %v1121_v21, %v429_v8 }
  0xd4   : > { %v1146_v36 = vpop.eup %1145  ;;  %v633_v37 = vmul.f32 %v621_v35, %v621_v35  ;;  %v664_v38 = vmul.f32 0.7978846, %v656_v32 }
  0xd5   : > { %v679_v39 = vadd.f32 1.0, %v1146_v36 }
  0xd6   : > { %v641_v41 = vmul.f32 %v633_v37, %v621_v35  ;;  %1147 = vtanh.f32 %v664_v38 }
  0xd7   : > { %v687_v42 = vmul.f32 0.5, %v679_v39 }
  0xd8   : > { %v649_v43 = vmul.f32 0.044715, %v641_v41  ;;  %v434_v33 = vpop.f32.mrf.mxu3 }
  0xd9   : > { %v623_v45 = vpop.f32.mrf.mxu1  ;;  %v695_v47 = vmul.f32 %v687_v42, %v616_v12  ;;  %v435_v37 = vadd.f32 %v1121_v21, %v434_v33 }
  0xda   : > { %v657_v48 = vadd.f32 %v649_v43, %v621_v35  ;;  %v624_v49 = vadd.f32 %v1342_v44, %v623_v45 }
  0xdb   : > { %v701_v50 = vpack.c.bf16 %v695_v47, %v694_v46 }
  0xdc   : > { %v634_v51 = vmul.f32 %v624_v49, %v624_v49  ;;  %v665_v52 = vmul.f32 0.7978846, %v657_v48  ;;  %v1148_v53 = vpop.eup %1147 }
  0xdd   : > { %785 = vmatmul.bf16.gmra.mxu2 %v701_v50  ;;  %v680_v57 = vadd.f32 1.0, %v1148_v53 }
  0xde   : > { %v642_v54 = vmul.f32 %v634_v51, %v624_v49  ;;  %1149 = vtanh.f32 %v665_v52 }
  0xdf   : > { %v688_v0 = vmul.f32 0.5, %v680_v57 }
  0xe0   : > { %v650_v55 = vmul.f32 0.044715, %v642_v54 }
  0xe1   : > { %v625_v56 = vpop.f32.mrf.mxu1  ;;  %v696_v4 = vmul.f32 %v688_v0, %v619_v24 }
  0xe2   : > { %v658_v58 = vadd.f32 %v650_v55, %v624_v49  ;;  %v626_v59 = vadd.f32 %v1342_v44, %v625_v56 }
  0xe4   : > { %v1150_v60 = vpop.eup %1149  ;;  %v635_v61 = vmul.f32 %v626_v59, %v626_v59  ;;  %v666_v62 = vmul.f32 0.7978846, %v658_v58 }
  0xe5   : > { %v681_v63 = vadd.f32 1.0, %v1150_v60 }
  0xe6   : > { %v643_v1 = vmul.f32 %v635_v61, %v626_v59  ;;  %1151 = vtanh.f32 %v666_v62 }
  0xe7   : > { %v689_v2 = vmul.f32 0.5, %v681_v63 }
  0xe8   : > { %v651_v3 = vmul.f32 0.044715, %v643_v1 }
  0xe9   : > { %v697_v5 = vmul.f32 %v689_v2, %v621_v35  ;;  %v437_v35 = vpop.f32.mrf.mxu3 }
  0xea   : > { %v659_v6 = vadd.f32 %v651_v3, %v626_v59  ;;  %v438_v45 = vadd.f32 %v1121_v21, %v437_v35 }
  0xeb   : > { %v702_v9 = vpack.c.bf16 %v697_v5, %v696_v4 }
  0xec   : > { %v667_v10 = vmul.f32 0.7978846, %v659_v6  ;;  %v1152_v11 = vpop.eup %1151 }
  0xed   : > { %790 = vmatmul.bf16.gmra.mxu2 %v702_v9  ;;  %v682_v12 = vadd.f32 1.0, %v1152_v11 }
  0xee   : > { %1153 = vtanh.f32 %v667_v10 }
  0xef   : > { %v690_v14 = vmul.f32 0.5, %v682_v12 }
  0xf1   : > { %v698_v16 = vmul.f32 %v690_v14, %v624_v49  ;;  %v439_v43 = vpop.f32.mrf.mxu3 }
  0xf2   : > { %v440_v48 = vadd.f32 %v1121_v21, %v439_v43 }
  0xf4   : > { %v1154_v13 = vpop.eup %1153 }
  0xf5   : > { %v683_v44 = vadd.f32 1.0, %v1154_v13 }
  0xf7   : > { %v691_v15 = vmul.f32 0.5, %v683_v44 }
  0xf9   : > { %v699_v17 = vmul.f32 %v691_v15, %v626_v59  ;;  %v442_v52 = vpop.f32.mrf.mxu3 }
  0xfa   : > { %v443_v56 = vadd.f32 %v1121_v21, %v442_v52 }
  0xfb   : > { %v703_v18 = vpack.c.bf16 %v699_v17, %v698_v16 }
  0xfd   : > { %795 = vmatmul.bf16.gmra.mxu2 %v703_v18 }
 0x101   : > { %v444_v55 = vpop.f32.mrf.mxu3 }
 0x102   : > { %v445_v59 = vadd.f32 %v1121_v21, %v444_v55 }
 0x150   : > { %v781_v20 = vpop.f32.mrf.mxu2 }
 0x151   : > { %v782_v24 = vadd.f32 %v1122_v7, %v781_v20 }
 0x153   : > { %v801_v28 = vadd.f32 %v782_v24, %v428_v23 }
 0x158   : > { %v783_v26 = vpop.f32.mrf.mxu2 }
 0x159   : > { %v784_v27 = vadd.f32 %v1122_v7, %v783_v26 }
 0x15b   : > { %v802_v30 = vadd.f32 %v784_v27, %v430_v25 }
 0x15d   : > { %v1068_v31 = vpack.c.bf16 %v802_v30, %v801_v28 }
 0x15f   : > { %1069 = vst [vmem:[%s1379_s13] sm:$0xff] %v1068_v31  }
 0x160   : > { %v786_v34 = vpop.f32.mrf.mxu2 }
 0x161   : > { %v787_v32 = vadd.f32 %v1122_v7, %v786_v34 }
 0x163   : > { %v803_v39 = vadd.f32 %v787_v32, %v433_v29 }
 0x168   : > { %v788_v36 = vpop.f32.mrf.mxu2 }
 0x169   : > { %v789_v38 = vadd.f32 %v1122_v7, %v788_v36 }
 0x16b   : > { %v804_v40 = vadd.f32 %v789_v38, %v435_v37 }
 0x16d   : > { %v1073_v41 = vpack.c.bf16 %v804_v40, %v803_v39 }
 0x16f   : > { %1085 = vst [vmem:[%s1379_s13 + $0x8] sm:$0xff] %v1073_v41  }
 0x170   : > { %v791_v42 = vpop.f32.mrf.mxu2 }
 0x171   : > { %v792_v46 = vadd.f32 %v1122_v7, %v791_v42 }
 0x173   : > { %v805_v50 = vadd.f32 %v792_v46, %v438_v45 }
 0x178   : > { %v793_v47 = vpop.f32.mrf.mxu2 }
 0x179   : > { %v794_v49 = vadd.f32 %v1122_v7, %v793_v47 }
 0x17b   : > { %v806_v51 = vadd.f32 %v794_v49, %v440_v48 }
 0x17d   : > { %v1078_v53 = vpack.c.bf16 %v806_v51, %v805_v50 }
 0x17f   : > { %1086 = vst [vmem:[%s1379_s13 + $0x10] sm:$0xff] %v1078_v53  }
 0x180   : > { %v796_v54 = vpop.f32.mrf.mxu2 }
 0x181   : > { %v797_v57 = vadd.f32 %v1122_v7, %v796_v54 }
 0x183   : > { %v807_v61 = vadd.f32 %v797_v57, %v443_v56 }
 0x188   : > { %v798_v58 = vpop.f32.mrf.mxu2 }
 0x189   : > { %v799_v60 = vadd.f32 %v1122_v7, %v798_v58 }
 0x18b   : > { %v808_v62 = vadd.f32 %v799_v60, %v445_v59 }
 0x18d   : > { %v1083_v63 = vpack.c.bf16 %v808_v62, %v807_v61 }
 0x18f   : > { %1087 = vst [vmem:[%s1379_s13 + $0x18] sm:$0xff] %v1083_v63  }
 0x190 PF: > { %s17_s26 = sadd.s32 1, %s1177_s26   ;;  %s1402_s24 = smov %s1173_s25 }
 0x191   : > { %p14_p5 = scmp.ge.s32.totalorder %s17_s26, 4   ;;  %s1403_s25 = smov %s1405_s27 }
 0x193   :  { %16 = sbr.rel (!%p14_p5) target bundleno = 2 (0x2), region = 78 }

// kernel: _lambda_.12
= control target key start
LH: loop header
LB: loop body
LE: loop exit
PB: predicated region body
PF: predicated region fallthrough
CT: control target
= control target key end

     0   :  { %s947_s24 = smov 0   ;;  %s949_s25 = smov 0   ;;  %s1072_s0 = inlined_call_operand.vmem [shape: bf16[2,16,128], index: 0, kind: input, shape index: {}]   ;;  %s1073_s1 = inlined_call_operand.vmem [shape: bf16[128,128], index: 1, kind: input, shape index: {}]   ;;  %s1074_s2 = inlined_call_operand.vmem [shape: f32[1,128], index: 2, kind: input, shape index: {}]   ;;  %s1075_s3 = inlined_call_operand.vmem [shape: bf16[128,128], index: 3, kind: input, shape index: {}]   ;;  %s1076_s4 = inlined_call_operand.vmem [shape: f32[1,128], index: 4, kind: input, shape index: {}]   ;;  %s1077_s5 = inlined_call_operand.vmem [shape: bf16[128,128], index: 5, kind: input, shape index: {}]   ;;  %s1078_s6 = inlined_call_operand.vmem [shape: f32[1,128], index: 6, kind: input, shape index: {}]   ;;  %s1079_s7 = inlined_call_operand.vmem [shape: bf16[2,16,128], index: 7, kind: output, shape index: {}]  }
   0x1   :  { %s951_s26 = smov 0  }
   0x2 LB: > { %s29_s27 = sadd.s32 1, %s901_s25  ;;  %p709_p0 = scmp.ge.s32.totalorder %s905_s26, 1  ;;  %s905_s26 = sphi %s951_s26, %s17_s26   ;;  %s901_s25 = sphi %s949_s25, %s1081_s25   ;;  %s897_s24 = sphi %s947_s24, %s1080_s24  }
   0x3   : > { %p31_p1 = scmp.ge.s32.totalorder %s29_s27, 2  ;;  %p258_p2 = scmp.lt.s32.totalorder %s905_s26, 3 }
   0x5   : > { %s1083_s27 = smov (%p31_p1, %s29_s27), 0  ;;  %p259_p3 = pnand %p709_p0, %p258_p2 }
   0x6   : > { %p299_p4 = scmp.lt.s32.totalorder (!%p259_p3), %s897_s24, 1 }
   0x7   : > { %262 = sbr.rel (%p259_p3) target bundleno = 352 (0x160), region = 48 }
   0xc   : > { %v834_v0 = vld [vmem:[%s1073_s1 + $0x38] sm:$0xff]  ;;  %v833_v1 = vld [vmem:[%s1073_s1 + $0x30] sm:$0xff]  ;;  %s1085_s24 = smov (!%p299_p4, %s897_s24), 1  ;;  %v832_v2 = vld [vmem:[%s1073_s1 + $0x28] sm:$0xff] }
   0xd   : > { %497 = vmatpush.bf16.msra.mxu1 %v834_v0  ;;  %s816_s9 = sshll.u32 %s1085_s24, 3  ;;  %v831_v8 = vld [vmem:[%s1073_s1 + $0x20] sm:$0xff]  ;;  %v830_v13 = vld [vmem:[%s1073_s1 + $0x18] sm:$0xff]  ;;  %v829_v18 = vld [vmem:[%s1073_s1 + $0x10] sm:$0xff] }
   0xe   : > { %s979_s12 = scalar_lea.vmem %s1072_s0, %s816_s9  ;;  %v828_v19 = vld [vmem:[%s1073_s1 + $0x8] sm:$0xff]  ;;  %v827_v22 = vld [vmem:[%s1073_s1] sm:$0xff]  ;;  %v826_v30 = vld [vmem:[%s1077_s5 + $0x38] sm:$0xff]  ;;  %s316_s13 = scalar_lea.vmem %s1079_s7, %s816_s9 }
   0xf   : > { %v318_v3 = vld [vmem:[%s979_s12] sm:$0xff]   ;;  %394 = vmatpush.bf16.msra.mxu0 %v826_v30  ;;  %v842_v31 = vld [vmem:[%s1075_s3 + $0x38] sm:$0xff]  ;;  %v825_v32 = vld [vmem:[%s1077_s5 + $0x30] sm:$0xff] }
  0x10   : > { %v408_v4 = vunpack.c.l.bf16 %v318_v3  ;;  %v409_v5 = vunpack.c.h.bf16 %v318_v3  ;;  %598 = vmatpush.bf16.msra.mxu2 %v842_v31  ;;  %v841_v33 = vld [vmem:[%s1075_s3 + $0x30] sm:$0xff]  ;;  %v824_v34 = vld [vmem:[%s1077_s5 + $0x28] sm:$0xff]  ;;  %v823_v36 = vld [vmem:[%s1077_s5 + $0x20] sm:$0xff] }
  0x11   : > { %498 = vmatpush.bf16.msra.mxu1 %v833_v1  ;;  %v840_v35 = vld [vmem:[%s1075_s3 + $0x28] sm:$0xff]  ;;  %v839_v37 = vld [vmem:[%s1075_s3 + $0x20] sm:$0xff]  ;;  %v822_v38 = vld [vmem:[%s1077_s5 + $0x18] sm:$0xff] }
  0x12   : > { %v410_v6 = vmul.f32 %v408_v4, %v408_v4  ;;  %v411_v7 = vmul.f32 %v409_v5, %v409_v5  ;;  %v838_v39 = vld [vmem:[%s1075_s3 + $0x18] sm:$0xff]  ;;  %v821_v40 = vld [vmem:[%s1077_s5 + $0x10] sm:$0xff]  ;;  %v820_v42 = vld [vmem:[%s1077_s5 + $0x8] sm:$0xff] }
  0x13   : > { %395 = vmatpush.bf16.msra.mxu0 %v825_v32  ;;  %v837_v41 = vld [vmem:[%s1075_s3 + $0x10] sm:$0xff]  ;;  %v836_v43 = vld [vmem:[%s1075_s3 + $0x8] sm:$0xff]  ;;  %v819_v44 = vld [vmem:[%s1077_s5] sm:$0xff] }
  0x14   : > { %v412_v9 = vmul.f32 %v410_v6, %v408_v4  ;;  %v413_v10 = vmul.f32 %v411_v7, %v409_v5  ;;  %599 = vmatpush.bf16.msra.mxu2 %v841_v33  ;;  %v872_v45 = vld [vmem:[%s1074_s2] ss:$0 sm:$0xff] }
  0x15   : > { %499 = vmatpush.bf16.msra.mxu1 %v832_v2  ;;  %v835_v46 = vld [vmem:[%s1075_s3] sm:$0xff] }
  0x16   : > { %v414_v11 = vmul.f32 0.044715, %v412_v9  ;;  %v415_v12 = vmul.f32 0.044715, %v413_v10  ;;  %v818_v47 = vld [vmem:[%s979_s12] sm:$0xff] }
  0x17   : > { %396 = vmatpush.bf16.msra.mxu0 %v824_v34  ;;  %v873_v9 = vld [vmem:[%s1078_s6] ss:$0 sm:$0xff] }
  0x18   : > { %v416_v14 = vadd.f32 %v414_v11, %v408_v4  ;;  %v417_v15 = vadd.f32 %v415_v12, %v409_v5  ;;  %600 = vmatpush.bf16.msra.mxu2 %v840_v35  ;;  %v874_v10 = vld [vmem:[%s1076_s4] ss:$0 sm:$0xff] }
  0x19   : > { %500 = vmatpush.bf16.msra.mxu1 %v831_v8 }
  0x1a   : > { %v418_v16 = vmul.f32 0.7978846, %v416_v14  ;;  %v419_v17 = vmul.f32 0.7978846, %v417_v15 }
  0x1b   : > { %397 = vmatpush.bf16.msra.mxu0 %v823_v36 }
  0x1c   : > { %875 = vtanh.f32 %v418_v16  ;;  %601 = vmatpush.bf16.msra.mxu2 %v839_v37 }
  0x1d   : > { %501 = vmatpush.bf16.msra.mxu1 %v830_v13  ;;  %877 = vtanh.f32 %v419_v17 }
  0x1f   : > { %398 = vmatpush.bf16.msra.mxu0 %v822_v38 }
  0x20   : > { %602 = vmatpush.bf16.msra.mxu2 %v838_v39 }
  0x21   : > { %502 = vmatpush.bf16.msra.mxu1 %v829_v18 }
  0x22   : > { %v876_v20 = vpop.eup %875 }
  0x23   : > { %v878_v21 = vpop.eup %877  ;;  %v422_v23 = vadd.f32 1.0, %v876_v20  ;;  %399 = vmatpush.bf16.msra.mxu0 %v821_v40 }
  0x24   : > { %v423_v24 = vadd.f32 1.0, %v878_v21  ;;  %603 = vmatpush.bf16.msra.mxu2 %v837_v41 }
  0x25   : > { %503 = vmatpush.bf16.msra.mxu1 %v828_v19  ;;  %v424_v25 = vmul.f32 0.5, %v422_v23 }
  0x26   : > { %v425_v26 = vmul.f32 0.5, %v423_v24 }
  0x27   : > { %v426_v27 = vmul.f32 %v424_v25, %v408_v4  ;;  %400 = vmatpush.bf16.msra.mxu0 %v820_v42 }
  0x28   : > { %v427_v28 = vmul.f32 %v425_v26, %v409_v5  ;;  %604 = vmatpush.bf16.msra.mxu2 %v836_v43 }
  0x29   : > { %504 = vmatpush.bf16.msra.mxu1 %v827_v22 }
  0x2a   : > { %v428_v29 = vpack.c.bf16 %v427_v28, %v426_v27 }
  0x2b   : > { %401 = vmatpush.bf16.msra.mxu0 %v819_v44 }
  0x2c   : > { %505 = vmatmul.bf16.vlgmr.msra.gmra.mxu1 %v428_v29  ;;  %605 = vmatpush.bf16.msra.mxu2 %v835_v46 }
  0x2e   : > { %402 = vmatmul.bf16.vlgmr.msra.gmra.mxu0 %v818_v47 }
  0xa9   : > { %v506_v48 = vpop.f32.mrf.mxu1 }
  0xaa   : > { %v507_v49 = vadd.f32 %v872_v45, %v506_v48 }
  0xab   : > { %v403_v7 = vpop.f32.mrf.mxu0 }
  0xac   : > { %v511_v50 = vmul.f32 %v507_v49, %v507_v49  ;;  %v404_v12 = vadd.f32 %v873_v9, %v403_v7 }
  0xae   : > { %v513_v51 = vmul.f32 %v511_v50, %v507_v49 }
  0xb0   : > { %v515_v52 = vmul.f32 0.044715, %v513_v51 }
  0xb1   : > { %v508_v53 = vpop.f32.mrf.mxu1 }
  0xb2   : > { %v517_v54 = vadd.f32 %v515_v52, %v507_v49  ;;  %v509_v55 = vadd.f32 %v872_v45, %v508_v53 }
  0xb3   : > { %v405_v11 = vpop.f32.mrf.mxu0 }
  0xb4   : > { %v512_v56 = vmul.f32 %v509_v55, %v509_v55  ;;  %v519_v57 = vmul.f32 0.7978846, %v517_v54  ;;  %v406_v15 = vadd.f32 %v873_v9, %v405_v11 }
  0xb6   : > { %v514_v58 = vmul.f32 %v512_v56, %v509_v55  ;;  %879 = vtanh.f32 %v519_v57 }
  0xb8   : > { %v516_v59 = vmul.f32 0.044715, %v514_v58 }
  0xba   : > { %v518_v60 = vadd.f32 %v516_v59, %v509_v55 }
  0xbc   : > { %v520_v61 = vmul.f32 0.7978846, %v518_v60  ;;  %v880_v62 = vpop.eup %879 }
  0xbd   : > { %v523_v63 = vadd.f32 1.0, %v880_v62 }
  0xbe   : > { %881 = vtanh.f32 %v520_v61 }
  0xbf   : > { %v525_v2 = vmul.f32 0.5, %v523_v63 }
  0xc1   : > { %v527_v4 = vmul.f32 %v525_v2, %v507_v49 }
  0xc4   : > { %v882_v0 = vpop.eup %881 }
  0xc5   : > { %v524_v1 = vadd.f32 1.0, %v882_v0 }
  0xc7   : > { %v526_v3 = vmul.f32 0.5, %v524_v1 }
  0xc9   : > { %v528_v5 = vmul.f32 %v526_v3, %v509_v55 }
  0xcb   : > { %v529_v6 = vpack.c.bf16 %v528_v5, %v527_v4 }
  0xcd   : > { %606 = vmatmul.bf16.vlgmr.msra.gmra.mxu2 %v529_v6 }
 0x150   : > { %v607_v8 = vpop.f32.mrf.mxu2 }
 0x151   : > { %v608_v13 = vadd.f32 %v874_v10, %v607_v8 }
 0x153   : > { %v612_v17 = vadd.f32 %v608_v13, %v404_v12 }
 0x158   : > { %v609_v14 = vpop.f32.mrf.mxu2 }
 0x159   : > { %v610_v16 = vadd.f32 %v874_v10, %v609_v14 }
 0x15b   : > { %v613_v18 = vadd.f32 %v610_v16, %v406_v15 }
 0x15d   : > { %v846_v19 = vpack.c.bf16 %v613_v18, %v612_v17 }
 0x15f   : > { %847 = vst [vmem:[%s316_s13] sm:$0xff] %v846_v19  }
 0x160 PF: > { %s17_s26 = sadd.s32 1, %s905_s26   ;;  %s1080_s24 = smov %s901_s25 }
 0x161   : > { %p14_p5 = scmp.ge.s32.totalorder %s17_s26, 4   ;;  %s1081_s25 = smov %s1083_s27 }
 0x163   :  { %16 = sbr.rel (!%p14_p5) target bundleno = 2 (0x2), region = 78 }

// kernel: _lambda_.13
= control target key start
LH: loop header
LB: loop body
LE: loop exit
PB: predicated region body
PF: predicated region fallthrough
CT: control target
= control target key end

     0   :  { %s1223_s24 = smov 0   ;;  %s1225_s25 = smov 0   ;;  %s1425_s0 = inlined_call_operand.vmem [shape: bf16[2,16,256], index: 0, kind: input, shape index: {}]   ;;  %s1426_s1 = inlined_call_operand.vmem [shape: bf16[256,128], index: 1, kind: input, shape index: {}]   ;;  %s1427_s2 = inlined_call_operand.vmem [shape: f32[1,128], index: 2, kind: input, shape index: {}]   ;;  %s1428_s3 = inlined_call_operand.vmem [shape: bf16[128,128], index: 3, kind: input, shape index: {}]   ;;  %s1429_s4 = inlined_call_operand.vmem [shape: f32[1,128], index: 4, kind: input, shape index: {}]   ;;  %s1430_s5 = inlined_call_operand.vmem [shape: bf16[256,128], index: 5, kind: input, shape index: {}]   ;;  %s1431_s6 = inlined_call_operand.vmem [shape: f32[1,128], index: 6, kind: input, shape index: {}]   ;;  %s1432_s7 = inlined_call_operand.vmem [shape: bf16[2,16,128], index: 7, kind: output, shape index: {}]  }
   0x1   :  { %s1227_s26 = smov 0  }
   0x2 LB: > { %s29_s27 = sadd.s32 1, %s1177_s25  ;;  %p896_p0 = scmp.ge.s32.totalorder %s1181_s26, 1  ;;  %s1181_s26 = sphi %s1227_s26, %s17_s26   ;;  %s1177_s25 = sphi %s1225_s25, %s1434_s25   ;;  %s1173_s24 = sphi %s1223_s24, %s1433_s24  }
   0x3   : > { %p31_p1 = scmp.ge.s32.totalorder %s29_s27, 2  ;;  %p259_p2 = scmp.lt.s32.totalorder %s1181_s26, 3 }
   0x5   : > { %s1436_s27 = smov (%p31_p1, %s29_s27), 0  ;;  %p260_p3 = pnand %p896_p0, %p259_p2 }
   0x6   : > { %p301_p4 = scmp.lt.s32.totalorder (!%p260_p3), %s1173_s24, 1 }
   0x7   : > { %263 = sbr.rel (%p260_p3) target bundleno = 354 (0x162), region = 48 }
   0xc   : > { %v1098_v0 = vld [vmem:[%s1426_s1 + $0x38] sm:$0xff]  ;;  %v1097_v2 = vld [vmem:[%s1426_s1 + $0x30] sm:$0xff]  ;;  %s1438_s24 = smov (!%p301_p4, %s1173_s24), 1  ;;  %v1096_v4 = vld [vmem:[%s1426_s1 + $0x28] sm:$0xff] }
   0xd   : > { %v1106_v1 = vld [vmem:[%s1426_s1 + $0x78] sm:$0xff]  ;;  %667 = vmatpush.bf16.msra.mxu2 %v1098_v0  ;;  %v1105_v3 = vld [vmem:[%s1426_s1 + $0x70] sm:$0xff]  ;;  %s1071_s13 = sshll.u32 %s1438_s24, 4  ;;  %v1104_v5 = vld [vmem:[%s1426_s1 + $0x68] sm:$0xff]  ;;  %s1072_s22 = sshll.u32 %s1438_s24, 3 }
   0xe   : > { %681 = vmatpush.bf16.msra.mxu3 %v1106_v1  ;;  %s1265_s20 = scalar_lea.vmem %s1425_s0, %s1071_s13  ;;  %v1082_v6 = vld [vmem:[%s1430_s5 + $0x38] sm:$0xff]  ;;  %v1081_v14 = vld [vmem:[%s1430_s5 + $0x30] sm:$0xff]  ;;  %v1095_v16 = vld [vmem:[%s1426_s1 + $0x20] sm:$0xff]  ;;  %s319_s29 = scalar_lea.vmem %s1432_s7, %s1072_s22 }
   0xf   : > { %v321_v7 = vld [vmem:[%s1265_s20] sm:$0xff]  ;;  %v322_v8 = vld [vmem:[%s1265_s20 + $0x8] sm:$0xff]  ;;  %v1090_v9 = vld [vmem:[%s1430_s5 + $0x78] sm:$0xff]  ;;  %465 = vmatpush.bf16.msra.mxu0 %v1082_v6 }
  0x10   : > { %v1275_v10 = vunpack.c.l.bf16 %v321_v7  ;;  %v1277_v11 = vunpack.c.l.bf16 %v322_v8  ;;  %v1279_v12 = vunpack.c.h.bf16 %v321_v7  ;;  %v1281_v13 = vunpack.c.h.bf16 %v322_v8  ;;  %479 = vmatpush.bf16.msra.mxu1 %v1090_v9  ;;  %v1089_v15 = vld [vmem:[%s1430_s5 + $0x70] sm:$0xff]  ;;  %v1103_v21 = vld [vmem:[%s1426_s1 + $0x60] sm:$0xff]  ;;  %v1080_v26 = vld [vmem:[%s1430_s5 + $0x28] sm:$0xff] }
  0x11   : > { %668 = vmatpush.bf16.msra.mxu2 %v1097_v2  ;;  %v1088_v27 = vld [vmem:[%s1430_s5 + $0x68] sm:$0xff]  ;;  %v1094_v31 = vld [vmem:[%s1426_s1 + $0x18] sm:$0xff]  ;;  %v1079_v37 = vld [vmem:[%s1430_s5 + $0x20] sm:$0xff] }
  0x12   : > { %682 = vmatpush.bf16.msra.mxu3 %v1105_v3  ;;  %v497_v17 = vmul.f32 %v1275_v10, %v1275_v10  ;;  %v499_v18 = vmul.f32 %v1277_v11, %v1277_v11  ;;  %v498_v19 = vmul.f32 %v1279_v12, %v1279_v12  ;;  %v500_v20 = vmul.f32 %v1281_v13, %v1281_v13  ;;  %v1102_v32 = vld [vmem:[%s1426_s1 + $0x58] sm:$0xff]  ;;  %v1087_v39 = vld [vmem:[%s1430_s5 + $0x60] sm:$0xff]  ;;  %v1093_v43 = vld [vmem:[%s1426_s1 + $0x10] sm:$0xff] }
  0x13   : > { %466 = vmatpush.bf16.msra.mxu0 %v1081_v14  ;;  %v1101_v44 = vld [vmem:[%s1426_s1 + $0x50] sm:$0xff]  ;;  %v1078_v46 = vld [vmem:[%s1430_s5 + $0x18] sm:$0xff]  ;;  %v1092_v47 = vld [vmem:[%s1426_s1 + $0x8] sm:$0xff] }
  0x14   : > { %v501_v22 = vmul.f32 %v497_v17, %v1275_v10  ;;  %v503_v23 = vmul.f32 %v499_v18, %v1277_v11  ;;  %v502_v24 = vmul.f32 %v498_v19, %v1279_v12  ;;  %v504_v25 = vmul.f32 %v500_v20, %v1281_v13  ;;  %480 = vmatpush.bf16.msra.mxu1 %v1089_v15  ;;  %v1100_v48 = vld [vmem:[%s1426_s1 + $0x48] sm:$0xff]  ;;  %v1077_v49 = vld [vmem:[%s1430_s5 + $0x10] sm:$0xff]  ;;  %v1091_v52 = vld [vmem:[%s1426_s1] sm:$0xff] }
  0x15   : > { %669 = vmatpush.bf16.msra.mxu2 %v1096_v4  ;;  %v1099_v53 = vld [vmem:[%s1426_s1 + $0x40] sm:$0xff]  ;;  %v1086_v6 = vld [vmem:[%s1430_s5 + $0x58] sm:$0xff]  ;;  %v1076_v7 = vld [vmem:[%s1430_s5 + $0x8] sm:$0xff] }
  0x16   : > { %683 = vmatpush.bf16.msra.mxu3 %v1104_v5  ;;  %v505_v28 = vmul.f32 0.044715, %v501_v22  ;;  %v507_v29 = vmul.f32 0.044715, %v503_v23  ;;  %v506_v30 = vmul.f32 0.044715, %v502_v24 }
  0x17   : > { %v508_v33 = vmul.f32 0.044715, %v504_v25  ;;  %467 = vmatpush.bf16.msra.mxu0 %v1080_v26  ;;  %v1085_v8 = vld [vmem:[%s1430_s5 + $0x50] sm:$0xff]  ;;  %v1075_v9 = vld [vmem:[%s1430_s5] sm:$0xff]  ;;  %v1074_v15 = vld [vmem:[%s1265_s20 + $0x4] sm:$0xf0] }
  0x18   : > { %v509_v34 = vadd.f32 %v505_v28, %v1275_v10  ;;  %v511_v35 = vadd.f32 %v507_v29, %v1277_v11  ;;  %v510_v36 = vadd.f32 %v506_v30, %v1279_v12  ;;  %481 = vmatpush.bf16.msra.mxu1 %v1088_v27  ;;  %v903_v14 = vld [vmem:[%s1265_s20] sm:$0xf]  ;;  %v1112_v17 = vld [vmem:[%s1428_s3 + $0x28] sm:$0xff]  ;;  %v1073_v18 = vld [vmem:[%s1265_s20 + $0x4] sm:$0xf] }
  0x19   : > { %670 = vmatpush.bf16.msra.mxu2 %v1095_v16  ;;  %v512_v38 = vadd.f32 %v508_v33, %v1281_v13  ;;  %v904_v16 = vor.u32 %v1074_v15, %v903_v14  ;;  %v905_v19 = vld [vmem:[%s1265_s20 + $0x8] sm:$0xf0]  ;;  %v1110_v22 = vld [vmem:[%s1428_s3 + $0x18] sm:$0xff]  ;;  %v1109_v23 = vld [vmem:[%s1428_s3 + $0x10] sm:$0xff] }
  0x1a   : > { %684 = vmatpush.bf16.msra.mxu3 %v1103_v21  ;;  %v513_v40 = vmul.f32 0.7978846, %v509_v34  ;;  %v515_v41 = vmul.f32 0.7978846, %v511_v35  ;;  %v514_v42 = vmul.f32 0.7978846, %v510_v36  ;;  %v908_v20 = vor.u32 %v1073_v18, %v905_v19 }
  0x1b   : > { %v516_v45 = vmul.f32 0.7978846, %v512_v38  ;;  %468 = vmatpush.bf16.msra.mxu0 %v1079_v37  ;;  %v1111_v21 = vld [vmem:[%s1428_s3 + $0x20] sm:$0xff]  ;;  %v1108_v25 = vld [vmem:[%s1428_s3 + $0x8] sm:$0xff] }
  0x1c   : > { %1147 = vtanh.f32 %v513_v40  ;;  %482 = vmatpush.bf16.msra.mxu1 %v1087_v39  ;;  %v1144_v24 = vld [vmem:[%s1427_s2] ss:$0 sm:$0xff] }
  0x1d   : > { %671 = vmatpush.bf16.msra.mxu2 %v1094_v31  ;;  %1149 = vtanh.f32 %v515_v41  ;;  %v1107_v28 = vld [vmem:[%s1428_s3] sm:$0xff] }
  0x1e   : > { %685 = vmatpush.bf16.msra.mxu3 %v1102_v32  ;;  %1151 = vtanh.f32 %v514_v42 }
  0x1f   : > { %1153 = vtanh.f32 %v516_v45  ;;  %469 = vmatpush.bf16.msra.mxu0 %v1078_v46 }
  0x20   : > { %483 = vmatpush.bf16.msra.mxu1 %v1086_v6 }
  0x21   : > { %672 = vmatpush.bf16.msra.mxu2 %v1093_v43 }
  0x22   : > { %686 = vmatpush.bf16.msra.mxu3 %v1101_v44  ;;  %v1148_v50 = vpop.eup %1147 }
  0x23   : > { %v1150_v51 = vpop.eup %1149  ;;  %v521_v54 = vadd.f32 1.0, %v1148_v50  ;;  %470 = vmatpush.bf16.msra.mxu0 %v1077_v49 }
  0x24   : > { %v1152_v55 = vpop.eup %1151  ;;  %v523_v56 = vadd.f32 1.0, %v1150_v51  ;;  %484 = vmatpush.bf16.msra.mxu1 %v1085_v8 }
  0x25   : > { %673 = vmatpush.bf16.msra.mxu2 %v1092_v47  ;;  %v1154_v57 = vpop.eup %1153  ;;  %v525_v58 = vmul.f32 0.5, %v521_v54  ;;  %v522_v59 = vadd.f32 1.0, %v1152_v55 }
  0x26   : > { %687 = vmatpush.bf16.msra.mxu3 %v1100_v48  ;;  %v527_v60 = vmul.f32 0.5, %v523_v56  ;;  %v524_v61 = vadd.f32 1.0, %v1154_v57 }
  0x27   : > { %v529_v62 = vmul.f32 %v525_v58, %v1275_v10  ;;  %v526_v63 = vmul.f32 0.5, %v522_v59  ;;  %471 = vmatpush.bf16.msra.mxu0 %v1076_v7  ;;  %v1114_v10 = vld [vmem:[%s1428_s3 + $0x38] sm:$0xff]  ;;  %v1145_v58 = vld [vmem:[%s1431_s6] ss:$0 sm:$0xff] }
  0x28   : > { %v531_v0 = vmul.f32 %v527_v60, %v1277_v11  ;;  %v528_v1 = vmul.f32 0.5, %v524_v61  ;;  %v1084_v11 = vld [vmem:[%s1430_s5 + $0x48] sm:$0xff]  ;;  %v1146_v59 = vld [vmem:[%s1429_s4] ss:$0 sm:$0xff] }
  0x29   : > { %674 = vmatpush.bf16.msra.mxu2 %v1091_v52  ;;  %v530_v2 = vmul.f32 %v526_v63, %v1279_v12  ;;  %485 = vmatpush.bf16.msra.mxu1 %v1084_v11  ;;  %v1113_v12 = vld [vmem:[%s1428_s3 + $0x30] sm:$0xff] }
  0x2a   : > { %688 = vmatpush.bf16.msra.mxu3 %v1099_v53  ;;  %v533_v3 = vpack.c.bf16 %v531_v0, %v529_v62  ;;  %v532_v4 = vmul.f32 %v528_v1, %v1281_v13  ;;  %v1083_v13 = vld [vmem:[%s1430_s5 + $0x40] sm:$0xff] }
  0x2b   : > { %472 = vmatpush.bf16.msra.mxu0 %v1075_v9 }
  0x2c   : > { %675 = vmatmul.bf16.vlgmr.msra.gmra.mxu2 %v533_v3  ;;  %v534_v5 = vpack.c.bf16 %v532_v4, %v530_v2 }
  0x2d   : > { %486 = vmatpush.bf16.msra.mxu1 %v1083_v13 }
  0x2e   : > { %689 = vmatmul.bf16.vlgmr.msra.gmra.mxu3 %v534_v5  ;;  %473 = vmatmul.bf16.vlgmr.msra.gmra.mxu0 %v904_v16 }
  0x2f   : > { %782 = vmatpush.bf16.msrb.mxu0 %v1114_v10 }
  0x30   : > { %487 = vmatmul.bf16.vlgmr.msra.gmra.mxu1 %v908_v20 }
  0x33   : > { %783 = vmatpush.bf16.msrb.mxu0 %v1113_v12 }
  0x37   : > { %784 = vmatpush.bf16.msrb.mxu0 %v1112_v17 }
  0x3b   : > { %785 = vmatpush.bf16.msrb.mxu0 %v1111_v21 }
  0x3f   : > { %786 = vmatpush.bf16.msrb.mxu0 %v1110_v22 }
  0x43   : > { %787 = vmatpush.bf16.msrb.mxu0 %v1109_v23 }
  0x47   : > { %788 = vmatpush.bf16.msrb.mxu0 %v1108_v25 }
  0x4b   : > { %789 = vmatpush.bf16.msrb.mxu0 %v1107_v28 }
  0xab   : > { %v474_v54 = vpop.f32.mrf.mxu0 }
  0xac   : > { %v475_v60 = vadd.f32 %v1145_v58, %v474_v54 }
  0xad   : > { %v488_v56 = vpop.f32.mrf.mxu1 }
  0xae   : > { %v489_v1 = vadd.f32 %v488_v56, %v475_v60 }
  0xaf   : > { %v676_v26 = vpop.f32.mrf.mxu2 }
  0xb0   : > { %v677_v27 = vadd.f32 %v1144_v24, %v676_v26 }
  0xb1   : > { %v690_v29 = vpop.f32.mrf.mxu3 }
  0xb2   : > { %v691_v30 = vadd.f32 %v690_v29, %v677_v27 }
  0xb3   : > { %v476_v55 = vpop.f32.mrf.mxu0 }
  0xb4   : > { %v695_v31 = vmul.f32 %v691_v30, %v691_v30  ;;  %v477_v61 = vadd.f32 %v1145_v58, %v476_v55 }
  0xb5   : > { %v490_v62 = vpop.f32.mrf.mxu1 }
  0xb6   : > { %v697_v32 = vmul.f32 %v695_v31, %v691_v30  ;;  %v491_v2 = vadd.f32 %v490_v62, %v477_v61 }
  0xb7   : > { %v678_v33 = vpop.f32.mrf.mxu2 }
  0xb8   : > { %v699_v34 = vmul.f32 0.044715, %v697_v32  ;;  %v679_v35 = vadd.f32 %v1144_v24, %v678_v33 }
  0xb9   : > { %v692_v36 = vpop.f32.mrf.mxu3 }
  0xba   : > { %v701_v37 = vadd.f32 %v699_v34, %v691_v30  ;;  %v693_v38 = vadd.f32 %v692_v36, %v679_v35 }
  0xbc   : > { %v703_v39 = vmul.f32 0.7978846, %v701_v37  ;;  %v696_v40 = vmul.f32 %v693_v38, %v693_v38 }
  0xbe   : > { %v698_v41 = vmul.f32 %v696_v40, %v693_v38  ;;  %1155 = vtanh.f32 %v703_v39 }
  0xc0   : > { %v700_v42 = vmul.f32 0.044715, %v698_v41 }
  0xc2   : > { %v702_v43 = vadd.f32 %v700_v42, %v693_v38 }
  0xc4   : > { %v704_v44 = vmul.f32 0.7978846, %v702_v43  ;;  %v1156_v45 = vpop.eup %1155 }
  0xc5   : > { %v707_v46 = vadd.f32 1.0, %v1156_v45 }
  0xc6   : > { %1157 = vtanh.f32 %v704_v44 }
  0xc7   : > { %v709_v49 = vmul.f32 0.5, %v707_v46 }
  0xc9   : > { %v711_v51 = vmul.f32 %v709_v49, %v691_v30 }
  0xcc   : > { %v1158_v47 = vpop.eup %1157 }
  0xcd   : > { %v708_v48 = vadd.f32 1.0, %v1158_v47 }
  0xcf   : > { %v710_v50 = vmul.f32 0.5, %v708_v48 }
  0xd1   : > { %v712_v52 = vmul.f32 %v710_v50, %v693_v38 }
  0xd3   : > { %v713_v53 = vpack.c.bf16 %v712_v52, %v711_v51 }
  0xd5   : > { %790 = vmatmul.bf16.vlgmr.msrb.gmra.mxu0 %v713_v53 }
 0x152   : > { %v791_v57 = vpop.f32.mrf.mxu0 }
 0x153   : > { %v792_v63 = vadd.f32 %v1146_v59, %v791_v57 }
 0x155   : > { %v796_v4 = vadd.f32 %v792_v63, %v489_v1 }
 0x15a   : > { %v793_v0 = vpop.f32.mrf.mxu0 }
 0x15b   : > { %v794_v3 = vadd.f32 %v1146_v59, %v793_v0 }
 0x15d   : > { %v797_v5 = vadd.f32 %v794_v3, %v491_v2 }
 0x15f   : > { %v1118_v6 = vpack.c.bf16 %v797_v5, %v796_v4 }
 0x161   : > { %1119 = vst [vmem:[%s319_s29] sm:$0xff] %v1118_v6  }
 0x162 PF: > { %s17_s26 = sadd.s32 1, %s1181_s26   ;;  %s1433_s24 = smov %s1177_s25 }
 0x163   : > { %p14_p5 = scmp.ge.s32.totalorder %s17_s26, 4   ;;  %s1434_s25 = smov %s1436_s27 }
 0x165   :  { %16 = sbr.rel (!%p14_p5) target bundleno = 2 (0x2), region = 78 }

// kernel: _lambda_.15
= control target key start
LH: loop header
LB: loop body
LE: loop exit
PB: predicated region body
PF: predicated region fallthrough
CT: control target
= control target key end

     0   :  { %s1294_s27 = smov 0   ;;  %s1296_s28 = smov 0   ;;  %s1496_s0 = inlined_call_operand.vmem [shape: bf16[2,16,256], index: 0, kind: input, shape index: {}]   ;;  %s1497_s1 = inlined_call_operand.vmem [shape: f32[2,2,256], index: 1, kind: input, shape index: {}]   ;;  %s1498_s2 = inlined_call_operand.vmem [shape: bf16[256,128], index: 2, kind: input, shape index: {}]   ;;  %s1499_s3 = inlined_call_operand.vmem [shape: f32[1,128], index: 3, kind: input, shape index: {}]   ;;  %s1500_s4 = inlined_call_operand.vmem [shape: bf16[128,128], index: 4, kind: input, shape index: {}]   ;;  %s1501_s5 = inlined_call_operand.vmem [shape: f32[1,128], index: 5, kind: input, shape index: {}]   ;;  %s1502_s6 = inlined_call_operand.vmem [shape: bf16[256,128], index: 6, kind: input, shape index: {}]   ;;  %s1503_s7 = inlined_call_operand.vmem [shape: f32[1,128], index: 7, kind: input, shape index: {}]   ;;  %s1504_s8 = inlined_call_operand.vmem [shape: bf16[2,16,128], index: 8, kind: output, shape index: {}]  }
   0x1   :  { %s1298_s29 = smov 0  }
   0x2 LB: > { %s30_s30 = sadd.s32 1, %s1243_s28  ;;  %p968_p0 = scmp.ge.s32.totalorder %s1247_s29, 1  ;;  %s1247_s29 = sphi %s1298_s29, %s18_s29   ;;  %s1243_s28 = sphi %s1296_s28, %s1506_s28   ;;  %s1239_s27 = sphi %s1294_s27, %s1505_s27  }
   0x3   : > { %p32_p1 = scmp.ge.s32.totalorder %s30_s30, 2  ;;  %p294_p2 = scmp.lt.s32.totalorder %s1247_s29, 3 }
   0x5   : > { %s1508_s30 = smov (%p32_p1, %s30_s30), 0  ;;  %p295_p3 = pnand %p968_p0, %p294_p2 }
   0x6   : > { %p343_p4 = scmp.lt.s32.totalorder (!%p295_p3), %s1239_s27, 1 }
   0x7   : > { %298 = sbr.rel (%p295_p3) target bundleno = 359 (0x167), region = 52 }
   0xc   : > { %v1164_v0 = vld [vmem:[%s1498_s2 + $0x38] sm:$0xff]  ;;  %v1163_v2 = vld [vmem:[%s1498_s2 + $0x30] sm:$0xff]  ;;  %s1510_s27 = smov (!%p343_p4, %s1239_s27), 1  ;;  %v1162_v4 = vld [vmem:[%s1498_s2 + $0x28] sm:$0xff] }
   0xd   : > { %v1172_v1 = vld [vmem:[%s1498_s2 + $0x78] sm:$0xff]  ;;  %727 = vmatpush.bf16.msra.mxu2 %v1164_v0  ;;  %v1171_v3 = vld [vmem:[%s1498_s2 + $0x70] sm:$0xff]  ;;  %s1138_s19 = sshll.u32 %s1510_s27, 4  ;;  %s1139_s20 = sshll.u32 %s1510_s27, 2  ;;  %v1170_v5 = vld [vmem:[%s1498_s2 + $0x68] sm:$0xff] }
   0xe   : > { %741 = vmatpush.bf16.msra.mxu3 %v1172_v1  ;;  %s351_s25 = scalar_lea.vmem %s1496_s0, %s1138_s19  ;;  %s357_s10 = scalar_lea.vmem %s1497_s1, %s1139_s20  ;;  %v1161_v18 = vld [vmem:[%s1498_s2 + $0x20] sm:$0xff]  ;;  %v1148_v23 = vld [vmem:[%s1502_s6 + $0x38] sm:$0xff]  ;;  %v1147_v29 = vld [vmem:[%s1502_s6 + $0x30] sm:$0xff] }
   0xf   : > { %v368_v6 = vld [vmem:[%s357_s10] ss:$2 sm:$0x3]  ;;  %v975_v7 = vld [vmem:[%s357_s10 + $0x1] ss:$2 sm:$0x3]  ;;  %529 = vmatpush.bf16.msra.mxu0 %v1148_v23 }
  0x10   : > { %v371_v8 = vld [vmem:[%s351_s25] sm:$0xff]  ;;  %v372_v9 = vld [vmem:[%s351_s25 + $0x8] sm:$0xff]  ;;  %v378_v10 = vperm.slane %v975_v7, 0  ;;  %v387_v11 = vperm.slane %v368_v6, 0  ;;  %v379_v12 = vperm.slane %v975_v7, 1  ;;  %v388_v13 = vperm.slane %v368_v6, 1 }
  0x11   : > { %728 = vmatpush.bf16.msra.mxu2 %v1163_v2  ;;  %v373_v14 = vunpack.c.l.bf16 %v371_v8  ;;  %v375_v15 = vunpack.c.l.bf16 %v372_v9  ;;  %v374_v16 = vunpack.c.h.bf16 %v371_v8  ;;  %v376_v17 = vunpack.c.h.bf16 %v372_v9  ;;  %v1169_v19 = vld [vmem:[%s1498_s2 + $0x60] sm:$0xff]  ;;  %v1156_v24 = vld [vmem:[%s1502_s6 + $0x78] sm:$0xff]  ;;  %v1155_v30 = vld [vmem:[%s1502_s6 + $0x70] sm:$0xff]  ;;  %s1140_s13 = sshll.u32 %s1510_s27, 3 }
  0x12   : > { %742 = vmatpush.bf16.msra.mxu3 %v1171_v3  ;;  %543 = vmatpush.bf16.msra.mxu1 %v1156_v24  ;;  %v1160_v32 = vld [vmem:[%s1498_s2 + $0x18] sm:$0xff]  ;;  %v1146_v41 = vld [vmem:[%s1502_s6 + $0x28] sm:$0xff]  ;;  %v1159_v43 = vld [vmem:[%s1498_s2 + $0x10] sm:$0xff]  ;;  %s366_s16 = scalar_lea.vmem %s1504_s8, %s1140_s13 }
  0x13   : > { %v382_v20 = vmul.f32 %v378_v10, %v373_v14  ;;  %v384_v21 = vmul.f32 %v378_v10, %v375_v15  ;;  %v383_v22 = vmul.f32 %v379_v12, %v374_v16  ;;  %v385_v25 = vmul.f32 %v379_v12, %v376_v17  ;;  %v1168_v33 = vld [vmem:[%s1498_s2 + $0x58] sm:$0xff]  ;;  %530 = vmatpush.bf16.msra.mxu0 %v1147_v29  ;;  %v1154_v42 = vld [vmem:[%s1502_s6 + $0x68] sm:$0xff]  ;;  %v1167_v44 = vld [vmem:[%s1498_s2 + $0x50] sm:$0xff] }
  0x14   : > { %v1145_v53 = vld [vmem:[%s1502_s6 + $0x20] sm:$0xff]  ;;  %v1158_v55 = vld [vmem:[%s1498_s2 + $0x8] sm:$0xff]  ;;  %v1144_v62 = vld [vmem:[%s1502_s6 + $0x18] sm:$0xff] }
  0x15   : > { %729 = vmatpush.bf16.msra.mxu2 %v1162_v4  ;;  %v1352_v26 = vadd.f32 %v387_v11, %v382_v20  ;;  %v1354_v27 = vadd.f32 %v387_v11, %v384_v21  ;;  %v1356_v28 = vadd.f32 %v388_v13, %v383_v22  ;;  %v1364_v31 = vadd.f32 %v388_v13, %v385_v25  ;;  %v1153_v54 = vld [vmem:[%s1502_s6 + $0x60] sm:$0xff]  ;;  %v1166_v56 = vld [vmem:[%s1498_s2 + $0x48] sm:$0xff]  ;;  %v1143_v1 = vld [vmem:[%s1502_s6 + $0x10] sm:$0xff] }
  0x16   : > { %743 = vmatpush.bf16.msra.mxu3 %v1170_v5  ;;  %544 = vmatpush.bf16.msra.mxu1 %v1155_v30  ;;  %v1157_v63 = vld [vmem:[%s1498_s2] sm:$0xff]  ;;  %v1152_v20 = vld [vmem:[%s1502_s6 + $0x58] sm:$0xff]  ;;  %v1142_v21 = vld [vmem:[%s1502_s6 + $0x8] sm:$0xff] }
  0x17   : > { %v557_v34 = vmul.f32 %v1352_v26, %v1352_v26  ;;  %v559_v35 = vmul.f32 %v1354_v27, %v1354_v27  ;;  %v558_v36 = vmul.f32 %v1356_v28, %v1356_v28  ;;  %v560_v37 = vmul.f32 %v1364_v31, %v1364_v31  ;;  %531 = vmatpush.bf16.msra.mxu0 %v1146_v41  ;;  %v1165_v0 = vld [vmem:[%s1498_s2 + $0x40] sm:$0xff]  ;;  %v1151_v22 = vld [vmem:[%s1502_s6 + $0x50] sm:$0xff]  ;;  %v1180_v24 = vld [vmem:[%s1500_s4 + $0x38] sm:$0xff] }
  0x18   : > { %v1141_v23 = vld [vmem:[%s1502_s6] sm:$0xff]  ;;  %v1150_v25 = vld [vmem:[%s1502_s6 + $0x48] sm:$0xff]  ;;  %v1179_v29 = vld [vmem:[%s1500_s4 + $0x30] sm:$0xff] }
  0x19   : > { %730 = vmatpush.bf16.msra.mxu2 %v1161_v18  ;;  %v561_v38 = vmul.f32 %v557_v34, %v1352_v26  ;;  %v563_v39 = vmul.f32 %v559_v35, %v1354_v27  ;;  %v562_v40 = vmul.f32 %v558_v36, %v1356_v28  ;;  %v564_v45 = vmul.f32 %v560_v37, %v1364_v31  ;;  %v1149_v30 = vld [vmem:[%s1502_s6 + $0x40] sm:$0xff] }
  0x1a   : > { %744 = vmatpush.bf16.msra.mxu3 %v1169_v19  ;;  %545 = vmatpush.bf16.msra.mxu1 %v1154_v42  ;;  %v396_v34 = vpack.c.bf16 %v1364_v31, %v1356_v28  ;;  %v1177_v35 = vld [vmem:[%s1500_s4 + $0x20] sm:$0xff] }
  0x1b   : > { %v565_v46 = vmul.f32 0.044715, %v561_v38  ;;  %v567_v47 = vmul.f32 0.044715, %v563_v39  ;;  %v566_v48 = vmul.f32 0.044715, %v562_v40  ;;  %532 = vmatpush.bf16.msra.mxu0 %v1145_v53 }
  0x1c   : > { %v568_v49 = vmul.f32 0.044715, %v564_v45  ;;  %v1173_v38 = vld [vmem:[%s1500_s4] sm:$0xff] }
  0x1d   : > { %731 = vmatpush.bf16.msra.mxu2 %v1160_v32  ;;  %v569_v50 = vadd.f32 %v565_v46, %v1352_v26  ;;  %v571_v51 = vadd.f32 %v567_v47, %v1354_v27  ;;  %v570_v52 = vadd.f32 %v566_v48, %v1356_v28  ;;  %v395_v32 = vpack.c.bf16 %v1354_v27, %v1352_v26 }
  0x1e   : > { %745 = vmatpush.bf16.msra.mxu3 %v1168_v33  ;;  %v572_v57 = vadd.f32 %v568_v49, %v1364_v31  ;;  %546 = vmatpush.bf16.msra.mxu1 %v1153_v54  ;;  %v1178_v33 = vld [vmem:[%s1500_s4 + $0x28] sm:$0xff] }
  0x1f   : > { %v573_v58 = vmul.f32 0.7978846, %v569_v50  ;;  %v575_v59 = vmul.f32 0.7978846, %v571_v51  ;;  %v574_v60 = vmul.f32 0.7978846, %v570_v52  ;;  %533 = vmatpush.bf16.msra.mxu0 %v1144_v62 }
  0x20   : > { %v576_v61 = vmul.f32 0.7978846, %v572_v57 }
  0x21   : > { %732 = vmatpush.bf16.msra.mxu2 %v1159_v43  ;;  %1213 = vtanh.f32 %v573_v58 }
  0x22   : > { %746 = vmatpush.bf16.msra.mxu3 %v1167_v44  ;;  %1215 = vtanh.f32 %v575_v59  ;;  %547 = vmatpush.bf16.msra.mxu1 %v1152_v20 }
  0x23   : > { %1217 = vtanh.f32 %v574_v60  ;;  %534 = vmatpush.bf16.msra.mxu0 %v1143_v1 }
  0x24   : > { %1219 = vtanh.f32 %v576_v61 }
  0x25   : > { %733 = vmatpush.bf16.msra.mxu2 %v1158_v55 }
  0x26   : > { %747 = vmatpush.bf16.msra.mxu3 %v1166_v56  ;;  %548 = vmatpush.bf16.msra.mxu1 %v1151_v22 }
  0x27   : > { %v1214_v2 = vpop.eup %1213  ;;  %535 = vmatpush.bf16.msra.mxu0 %v1142_v21 }
  0x28   : > { %v1216_v3 = vpop.eup %1215  ;;  %v581_v4 = vadd.f32 1.0, %v1214_v2 }
  0x29   : > { %734 = vmatpush.bf16.msra.mxu2 %v1157_v63  ;;  %v1218_v5 = vpop.eup %1217  ;;  %v583_v6 = vadd.f32 1.0, %v1216_v3 }
  0x2a   : > { %748 = vmatpush.bf16.msra.mxu3 %v1165_v0  ;;  %v1220_v7 = vpop.eup %1219  ;;  %v585_v8 = vmul.f32 0.5, %v581_v4  ;;  %v582_v9 = vadd.f32 1.0, %v1218_v5  ;;  %549 = vmatpush.bf16.msra.mxu1 %v1150_v25  ;;  %v1211_v4 = vld [vmem:[%s1503_s7] ss:$0 sm:$0xff] }
  0x2b   : > { %v587_v10 = vmul.f32 0.5, %v583_v6  ;;  %v584_v11 = vadd.f32 1.0, %v1220_v7  ;;  %536 = vmatpush.bf16.msra.mxu0 %v1141_v23  ;;  %v1212_v5 = vld [vmem:[%s1501_s5] ss:$0 sm:$0xff] }
  0x2c   : > { %v589_v12 = vmul.f32 %v585_v8, %v1352_v26  ;;  %v586_v13 = vmul.f32 0.5, %v582_v9  ;;  %v1176_v26 = vld [vmem:[%s1500_s4 + $0x18] sm:$0xff] }
  0x2d   : > { %v591_v14 = vmul.f32 %v587_v10, %v1354_v27  ;;  %v588_v15 = vmul.f32 0.5, %v584_v11  ;;  %v1175_v27 = vld [vmem:[%s1500_s4 + $0x10] sm:$0xff] }
  0x2e   : > { %v590_v16 = vmul.f32 %v586_v13, %v1356_v28  ;;  %550 = vmatpush.bf16.msra.mxu1 %v1149_v30  ;;  %537 = vmatmul.bf16.vlgmr.msra.gmra.mxu0 %v395_v32  ;;  %v1210_v28 = vld [vmem:[%s1499_s3] ss:$0 sm:$0xff] }
  0x2f   : > { %v593_v17 = vpack.c.bf16 %v591_v14, %v589_v12  ;;  %v592_v18 = vmul.f32 %v588_v15, %v1364_v31  ;;  %842 = vmatpush.bf16.msrb.mxu0 %v1180_v24  ;;  %v1174_v31 = vld [vmem:[%s1500_s4 + $0x8] sm:$0xff] }
  0x31   : > { %735 = vmatmul.bf16.vlgmr.msra.gmra.mxu2 %v593_v17  ;;  %v594_v19 = vpack.c.bf16 %v592_v18, %v590_v16  ;;  %551 = vmatmul.bf16.vlgmr.msra.gmra.mxu1 %v396_v34 }
  0x33   : > { %749 = vmatmul.bf16.vlgmr.msra.gmra.mxu3 %v594_v19  ;;  %843 = vmatpush.bf16.msrb.mxu0 %v1179_v29 }
  0x37   : > { %844 = vmatpush.bf16.msrb.mxu0 %v1178_v33 }
  0x3b   : > { %845 = vmatpush.bf16.msrb.mxu0 %v1177_v35 }
  0x3f   : > { %846 = vmatpush.bf16.msrb.mxu0 %v1176_v26 }
  0x43   : > { %847 = vmatpush.bf16.msrb.mxu0 %v1175_v27 }
  0x47   : > { %848 = vmatpush.bf16.msrb.mxu0 %v1174_v31 }
  0x4b   : > { %849 = vmatpush.bf16.msrb.mxu0 %v1173_v38 }
  0xab   : > { %v538_v0 = vpop.f32.mrf.mxu0 }
  0xac   : > { %v539_v6 = vadd.f32 %v1211_v4, %v538_v0 }
  0xae   : > { %v552_v2 = vpop.f32.mrf.mxu1 }
  0xaf   : > { %v553_v11 = vadd.f32 %v552_v2, %v539_v6 }
  0xb3   : > { %v540_v1 = vpop.f32.mrf.mxu0 }
  0xb4   : > { %v736_v36 = vpop.f32.mrf.mxu2  ;;  %v541_v7 = vadd.f32 %v1211_v4, %v540_v1 }
  0xb5   : > { %v737_v37 = vadd.f32 %v1210_v28, %v736_v36 }
  0xb6   : > { %v750_v39 = vpop.f32.mrf.mxu3  ;;  %v554_v8 = vpop.f32.mrf.mxu1 }
  0xb7   : > { %v751_v40 = vadd.f32 %v750_v39, %v737_v37  ;;  %v555_v12 = vadd.f32 %v554_v8, %v541_v7 }
  0xb9   : > { %v755_v41 = vmul.f32 %v751_v40, %v751_v40 }
  0xbb   : > { %v757_v42 = vmul.f32 %v755_v41, %v751_v40 }
  0xbc   : > { %v738_v43 = vpop.f32.mrf.mxu2 }
  0xbd   : > { %v759_v44 = vmul.f32 0.044715, %v757_v42  ;;  %v739_v45 = vadd.f32 %v1210_v28, %v738_v43 }
  0xbe   : > { %v752_v46 = vpop.f32.mrf.mxu3 }
  0xbf   : > { %v761_v47 = vadd.f32 %v759_v44, %v751_v40  ;;  %v753_v48 = vadd.f32 %v752_v46, %v739_v45 }
  0xc1   : > { %v763_v49 = vmul.f32 0.7978846, %v761_v47  ;;  %v756_v50 = vmul.f32 %v753_v48, %v753_v48 }
  0xc3   : > { %v758_v51 = vmul.f32 %v756_v50, %v753_v48  ;;  %1221 = vtanh.f32 %v763_v49 }
  0xc5   : > { %v760_v52 = vmul.f32 0.044715, %v758_v51 }
  0xc7   : > { %v762_v53 = vadd.f32 %v760_v52, %v753_v48 }
  0xc9   : > { %v764_v54 = vmul.f32 0.7978846, %v762_v53  ;;  %v1222_v55 = vpop.eup %1221 }
  0xca   : > { %v767_v56 = vadd.f32 1.0, %v1222_v55 }
  0xcb   : > { %1223 = vtanh.f32 %v764_v54 }
  0xcc   : > { %v769_v59 = vmul.f32 0.5, %v767_v56 }
  0xce   : > { %v771_v61 = vmul.f32 %v769_v59, %v751_v40 }
  0xd1   : > { %v1224_v57 = vpop.eup %1223 }
  0xd2   : > { %v768_v58 = vadd.f32 1.0, %v1224_v57 }
  0xd4   : > { %v770_v60 = vmul.f32 0.5, %v768_v58 }
  0xd6   : > { %v772_v62 = vmul.f32 %v770_v60, %v753_v48 }
  0xd8   : > { %v773_v63 = vpack.c.bf16 %v772_v62, %v771_v61 }
  0xda   : > { %850 = vmatmul.bf16.vlgmr.msrb.gmra.mxu0 %v773_v63 }
 0x157   : > { %v851_v3 = vpop.f32.mrf.mxu0 }
 0x158   : > { %v852_v9 = vadd.f32 %v1212_v5, %v851_v3 }
 0x15a   : > { %v856_v14 = vadd.f32 %v852_v9, %v553_v11 }
 0x15f   : > { %v853_v10 = vpop.f32.mrf.mxu0 }
 0x160   : > { %v854_v13 = vadd.f32 %v1212_v5, %v853_v10 }
 0x162   : > { %v857_v15 = vadd.f32 %v854_v13, %v555_v12 }
 0x164   : > { %v1184_v16 = vpack.c.bf16 %v857_v15, %v856_v14 }
 0x166   : > { %1185 = vst [vmem:[%s366_s16] sm:$0xff] %v1184_v16  }
 0x167 PF: > { %s18_s29 = sadd.s32 1, %s1247_s29   ;;  %s1505_s27 = smov %s1243_s28 }
 0x168   : > { %p15_p5 = scmp.ge.s32.totalorder %s18_s29, 4   ;;  %s1506_s28 = smov %s1508_s30 }
 0x16a   :  { %17 = sbr.rel (!%p15_p5) target bundleno = 2 (0x2), region = 86 }

// kernel: _lambda_.16
= control target key start
LH: loop header
LB: loop body
LE: loop exit
PB: predicated region body
PF: predicated region fallthrough
CT: control target
= control target key end

     0   :  { %s1836_s27 = smov 0   ;;  %s1838_s28 = smov 0   ;;  %s2184_s0 = inlined_call_operand.vmem [shape: bf16[2,16,512], index: 0, kind: input, shape index: {}]   ;;  %s2185_s1 = inlined_call_operand.vmem [shape: f32[2,2,512], index: 1, kind: input, shape index: {}]   ;;  %s2186_s2 = inlined_call_operand.vmem [shape: bf16[512,128], index: 2, kind: input, shape index: {}]   ;;  %s2187_s3 = inlined_call_operand.vmem [shape: f32[1,128], index: 3, kind: input, shape index: {}]   ;;  %s2188_s4 = inlined_call_operand.vmem [shape: bf16[128,128], index: 4, kind: input, shape index: {}]   ;;  %s2189_s5 = inlined_call_operand.vmem [shape: f32[1,128], index: 5, kind: input, shape index: {}]   ;;  %s2190_s6 = inlined_call_operand.vmem [shape: bf16[512,128], index: 6, kind: input, shape index: {}]   ;;  %s2191_s7 = inlined_call_operand.vmem [shape: f32[1,128], index: 7, kind: input, shape index: {}]   ;;  %s2192_s8 = inlined_call_operand.vmem [shape: bf16[2,16,128], index: 8, kind: output, shape index: {}]  }
   0x1   :  { %s1840_s29 = smov 0  }
   0x2 LB: > { %s30_s30 = sadd.s32 1, %s1785_s28  ;;  %p1342_p0 = scmp.ge.s32.totalorder %s1789_s29, 1  ;;  %s1789_s29 = sphi %s1840_s29, %s18_s29   ;;  %s1785_s28 = sphi %s1838_s28, %s2194_s28   ;;  %s1781_s27 = sphi %s1836_s27, %s2193_s27  }
   0x3   : > { %p32_p1 = scmp.ge.s32.totalorder %s30_s30, 2  ;;  %p294_p2 = scmp.lt.s32.totalorder %s1789_s29, 3 }
   0x5   : > { %s2196_s30 = smov (%p32_p1, %s30_s30), 0  ;;  %p295_p3 = pnand %p1342_p0, %p294_p2 }
   0x6   : > { %p343_p4 = scmp.lt.s32.totalorder (!%p295_p3), %s1781_s27, 1 }
   0x7   : > { %298 = sbr.rel (%p295_p3) target bundleno = 388 (0x184), region = 52 }
   0xc   : > { %v1650_v0 = vld [vmem:[%s2190_s6 + $0x38] sm:$0xff]  ;;  %v1649_v4 = vld [vmem:[%s2190_s6 + $0x30] sm:$0xff]  ;;  %s2198_s27 = smov (!%p343_p4, %s1781_s27), 1  ;;  %v1648_v8 = vld [vmem:[%s2190_s6 + $0x28] sm:$0xff] }
   0xd   : > { %v1658_v1 = vld [vmem:[%s2190_s6 + $0x78] sm:$0xff]  ;;  %681 = vmatpush.bf16.msra.mxu0 %v1650_v0  ;;  %v1657_v5 = vld [vmem:[%s2190_s6 + $0x70] sm:$0xff]  ;;  %v1656_v9 = vld [vmem:[%s2190_s6 + $0x68] sm:$0xff]  ;;  %s1640_s15 = sshll.u32 %s2198_s27, 5  ;;  %s1641_s16 = sshll.u32 %s2198_s27, 3 }
   0xe   : > { %v1666_v2 = vld [vmem:[%s2190_s6 + $0xb8] sm:$0xff]  ;;  %695 = vmatpush.bf16.msra.mxu1 %v1658_v1  ;;  %v1665_v6 = vld [vmem:[%s2190_s6 + $0xb0] sm:$0xff]  ;;  %v1664_v10 = vld [vmem:[%s2190_s6 + $0xa8] sm:$0xff]  ;;  %s351_s23 = scalar_lea.vmem %s2184_s0, %s1640_s15  ;;  %s357_s12 = scalar_lea.vmem %s2185_s1, %s1641_s16 }
   0xf   : > { %v1674_v3 = vld [vmem:[%s2190_s6 + $0xf8] sm:$0xff]  ;;  %709 = vmatpush.bf16.msra.mxu2 %v1666_v2  ;;  %v1673_v7 = vld [vmem:[%s2190_s6 + $0xf0] sm:$0xff]  ;;  %v1672_v11 = vld [vmem:[%s2190_s6 + $0xe8] sm:$0xff]  ;;  %s366_s14 = scalar_lea.vmem %s2192_s8, %s1641_s16 }
  0x10   : > { %723 = vmatpush.bf16.msra.mxu3 %v1674_v3  ;;  %v1647_v12 = vld [vmem:[%s2190_s6 + $0x20] sm:$0xff]  ;;  %v1646_v16 = vld [vmem:[%s2190_s6 + $0x18] sm:$0xff]  ;;  %v372_v18 = vld [vmem:[%s351_s23 + $0x8] sm:$0xff] }
  0x11   : > { %682 = vmatpush.bf16.msra.mxu0 %v1649_v4  ;;  %v1655_v13 = vld [vmem:[%s2190_s6 + $0x60] sm:$0xff]  ;;  %v1654_v19 = vld [vmem:[%s2190_s6 + $0x58] sm:$0xff]  ;;  %v377_v22 = vunpack.c.l.bf16 %v372_v18  ;;  %v378_v24 = vunpack.c.h.bf16 %v372_v18  ;;  %v373_v32 = vld [vmem:[%s351_s23 + $0x10] sm:$0xff] }
  0x12   : > { %696 = vmatpush.bf16.msra.mxu1 %v1657_v5  ;;  %v1663_v14 = vld [vmem:[%s2190_s6 + $0xa0] sm:$0xff]  ;;  %v374_v21 = vld [vmem:[%s351_s23 + $0x18] sm:$0xff]  ;;  %v379_v40 = vunpack.c.l.bf16 %v373_v32  ;;  %v1645_v41 = vld [vmem:[%s2190_s6 + $0x10] sm:$0xff]  ;;  %v380_v46 = vunpack.c.h.bf16 %v373_v32 }
  0x13   : > { %710 = vmatpush.bf16.msra.mxu2 %v1665_v6  ;;  %v1671_v15 = vld [vmem:[%s2190_s6 + $0xe0] sm:$0xff]  ;;  %v1662_v25 = vld [vmem:[%s2190_s6 + $0x98] sm:$0xff]  ;;  %v381_v27 = vunpack.c.l.bf16 %v374_v21  ;;  %v382_v33 = vunpack.c.h.bf16 %v374_v21  ;;  %v1653_v42 = vld [vmem:[%s2190_s6 + $0x50] sm:$0xff] }
  0x14   : > { %724 = vmatpush.bf16.msra.mxu3 %v1673_v7  ;;  %v1917_v17 = vld [vmem:[%s357_s12] ss:$2 sm:$0xf]  ;;  %v1349_v20 = vld [vmem:[%s357_s12 + $0x1] ss:$2 sm:$0xf] }
  0x15   : > { %683 = vmatpush.bf16.msra.mxu0 %v1648_v8  ;;  %v403_v23 = vperm.slane %v1917_v17, 2  ;;  %v1670_v26 = vld [vmem:[%s2190_s6 + $0xd8] sm:$0xff]  ;;  %v386_v28 = vperm.slane %v1349_v20, 2  ;;  %v384_v29 = vperm.slane %v1349_v20, 0  ;;  %v401_v30 = vperm.slane %v1917_v17, 0  ;;  %v371_v31 = vld [vmem:[%s351_s23] sm:$0xff] }
  0x16   : > { %697 = vmatpush.bf16.msra.mxu1 %v1656_v9  ;;  %v387_v34 = vperm.slane %v1349_v20, 3  ;;  %v404_v35 = vperm.slane %v1917_v17, 3  ;;  %v385_v36 = vperm.slane %v1349_v20, 1  ;;  %v375_v39 = vunpack.c.l.bf16 %v371_v31  ;;  %v1661_v47 = vld [vmem:[%s2190_s6 + $0x90] sm:$0xff]  ;;  %v1644_v60 = vld [vmem:[%s2190_s6 + $0x8] sm:$0xff]  ;;  %v1667_v21 = vld [vmem:[%s2190_s6 + $0xc0] sm:$0xff] }
  0x17   : > { %711 = vmatpush.bf16.msra.mxu2 %v1664_v10  ;;  %v394_v37 = vmul.f32 %v386_v28, %v377_v22  ;;  %v398_v38 = vmul.f32 %v386_v28, %v381_v27  ;;  %v376_v45 = vunpack.c.h.bf16 %v371_v31  ;;  %v1669_v48 = vld [vmem:[%s2190_s6 + $0xd0] sm:$0xff]  ;;  %v402_v52 = vperm.slane %v1917_v17, 1  ;;  %v1652_v61 = vld [vmem:[%s2190_s6 + $0x48] sm:$0xff]  ;;  %v1682_v22 = vld [vmem:[%s2186_s2 + $0x38] sm:$0xff] }
  0x18   : > { %725 = vmatpush.bf16.msra.mxu3 %v1672_v11  ;;  %v395_v43 = vmul.f32 %v387_v34, %v378_v24  ;;  %v399_v44 = vmul.f32 %v387_v34, %v382_v33  ;;  %v392_v51 = vmul.f32 %v384_v29, %v375_v39  ;;  %v396_v53 = vmul.f32 %v384_v29, %v379_v40  ;;  %v1660_v1 = vld [vmem:[%s2190_s6 + $0x88] sm:$0xff]  ;;  %v1698_v32 = vld [vmem:[%s2186_s2 + $0xb8] sm:$0xff]  ;;  %v1689_v39 = vld [vmem:[%s2186_s2 + $0x70] sm:$0xff] }
  0x19   : > { %684 = vmatpush.bf16.msra.mxu0 %v1647_v12  ;;  %v1943_v49 = vadd.f32 %v403_v23, %v394_v37  ;;  %v1945_v50 = vadd.f32 %v403_v23, %v398_v38  ;;  %v393_v56 = vmul.f32 %v385_v36, %v376_v45  ;;  %v397_v58 = vmul.f32 %v385_v36, %v380_v46  ;;  %v1668_v2 = vld [vmem:[%s2190_s6 + $0xc8] sm:$0xff]  ;;  %v1690_v23 = vld [vmem:[%s2186_s2 + $0x78] sm:$0xff]  ;;  %v1681_v38 = vld [vmem:[%s2186_s2 + $0x30] sm:$0xff] }
  0x1a   : > { %698 = vmatpush.bf16.msra.mxu1 %v1655_v13  ;;  %v1948_v54 = vadd.f32 %v404_v35, %v395_v43  ;;  %v1950_v55 = vadd.f32 %v404_v35, %v399_v44  ;;  %v1952_v57 = vadd.f32 %v401_v30, %v392_v51  ;;  %v1964_v63 = vadd.f32 %v401_v30, %v396_v53  ;;  %v1706_v33 = vld [vmem:[%s2186_s2 + $0xf8] sm:$0xff]  ;;  %v1697_v53 = vld [vmem:[%s2186_s2 + $0xb0] sm:$0xff] }
  0x1b   : > { %712 = vmatpush.bf16.msra.mxu2 %v1663_v14  ;;  %v739_v59 = vmul.f32 %v1943_v49, %v1943_v49  ;;  %v419_v62 = vpack.c.bf16 %v1945_v50, %v1943_v49  ;;  %v1966_v0 = vadd.f32 %v402_v52, %v393_v56  ;;  %v1974_v3 = vadd.f32 %v402_v52, %v397_v58  ;;  %v1643_v14 = vld [vmem:[%s2190_s6] sm:$0xff]  ;;  %v1705_v56 = vld [vmem:[%s2186_s2 + $0xf0] sm:$0xff] }
  0x1c   : > { %726 = vmatpush.bf16.msra.mxu3 %v1671_v15  ;;  %v737_v4 = vmul.f32 %v1952_v57, %v1952_v57  ;;  %v743_v5 = vmul.f32 %v1945_v50, %v1945_v50  ;;  %v420_v6 = vpack.c.bf16 %v1950_v55, %v1948_v54  ;;  %v741_v7 = vmul.f32 %v1964_v63, %v1964_v63  ;;  %v1651_v15 = vld [vmem:[%s2190_s6 + $0x40] sm:$0xff] }
  0x1d   : > { %685 = vmatpush.bf16.msra.mxu0 %v1646_v16  ;;  %v738_v8 = vmul.f32 %v1966_v0, %v1966_v0  ;;  %v747_v9 = vmul.f32 %v739_v59, %v1943_v49  ;;  %v417_v10 = vpack.c.bf16 %v1964_v63, %v1952_v57  ;;  %v742_v12 = vmul.f32 %v1974_v3, %v1974_v3  ;;  %v1659_v16 = vld [vmem:[%s2190_s6 + $0x80] sm:$0xff] }
  0x1e   : > { %699 = vmatpush.bf16.msra.mxu1 %v1654_v19  ;;  %v745_v11 = vmul.f32 %v737_v4, %v1952_v57  ;;  %v751_v13 = vmul.f32 %v743_v5, %v1945_v50  ;;  %v749_v17 = vmul.f32 %v741_v7, %v1964_v63  ;;  %v740_v20 = vmul.f32 %v1948_v54, %v1948_v54  ;;  %v1696_v4 = vld [vmem:[%s2186_s2 + $0xa8] sm:$0xff] }
  0x1f   : > { %713 = vmatpush.bf16.msra.mxu2 %v1662_v25  ;;  %v746_v18 = vmul.f32 %v738_v8, %v1966_v0  ;;  %v755_v19 = vmul.f32 0.044715, %v747_v9  ;;  %v418_v24 = vpack.c.bf16 %v1974_v3, %v1966_v0  ;;  %v744_v27 = vmul.f32 %v1950_v55, %v1950_v55  ;;  %v1704_v5 = vld [vmem:[%s2186_s2 + $0xe8] sm:$0xff]  ;;  %v1679_v9 = vld [vmem:[%s2186_s2 + $0x20] sm:$0xff] }
  0x20   : > { %727 = vmatpush.bf16.msra.mxu3 %v1670_v26  ;;  %v753_v25 = vmul.f32 0.044715, %v745_v11  ;;  %v750_v26 = vmul.f32 %v742_v12, %v1974_v3  ;;  %v757_v28 = vmul.f32 0.044715, %v749_v17  ;;  %v759_v30 = vmul.f32 0.044715, %v751_v13 }
  0x21   : > { %686 = vmatpush.bf16.msra.mxu0 %v1645_v41  ;;  %v754_v29 = vmul.f32 0.044715, %v746_v18  ;;  %v763_v31 = vadd.f32 %v755_v19, %v1943_v49  ;;  %v748_v36 = vmul.f32 %v740_v20, %v1948_v54  ;;  %v752_v37 = vmul.f32 %v744_v27, %v1950_v55  ;;  %v1695_v12 = vld [vmem:[%s2186_s2 + $0xa0] sm:$0xff]  ;;  %v1678_v17 = vld [vmem:[%s2186_s2 + $0x18] sm:$0xff]  ;;  %v1677_v27 = vld [vmem:[%s2186_s2 + $0x10] sm:$0xff] }
  0x22   : > { %700 = vmatpush.bf16.msra.mxu1 %v1653_v42  ;;  %v761_v34 = vadd.f32 %v753_v25, %v1952_v57  ;;  %v758_v35 = vmul.f32 0.044715, %v750_v26  ;;  %v765_v40 = vadd.f32 %v757_v28, %v1964_v63  ;;  %v767_v42 = vadd.f32 %v759_v30, %v1945_v50  ;;  %v1703_v13 = vld [vmem:[%s2186_s2 + $0xe0] sm:$0xff]  ;;  %v1686_v18 = vld [vmem:[%s2186_s2 + $0x58] sm:$0xff]  ;;  %v1685_v28 = vld [vmem:[%s2186_s2 + $0x50] sm:$0xff] }
  0x23   : > { %714 = vmatpush.bf16.msra.mxu2 %v1661_v47  ;;  %v762_v41 = vadd.f32 %v754_v29, %v1966_v0  ;;  %v771_v43 = vmul.f32 0.7978846, %v763_v31  ;;  %v756_v46 = vmul.f32 0.044715, %v748_v36  ;;  %v760_v47 = vmul.f32 0.044715, %v752_v37 }
  0x24   : > { %728 = vmatpush.bf16.msra.mxu3 %v1669_v48  ;;  %v769_v44 = vmul.f32 0.7978846, %v761_v34  ;;  %v766_v45 = vadd.f32 %v758_v35, %v1974_v3  ;;  %v773_v48 = vmul.f32 0.7978846, %v765_v40  ;;  %v775_v52 = vmul.f32 0.7978846, %v767_v42 }
  0x25   : > { %687 = vmatpush.bf16.msra.mxu0 %v1644_v60  ;;  %v770_v51 = vmul.f32 0.7978846, %v762_v41  ;;  %1747 = vtanh.f32 %v771_v43  ;;  %v764_v59 = vadd.f32 %v756_v46, %v1948_v54  ;;  %v768_v60 = vadd.f32 %v760_v47, %v1950_v55  ;;  %v1694_v20 = vld [vmem:[%s2186_s2 + $0x98] sm:$0xff]  ;;  %v1684_v40 = vld [vmem:[%s2186_s2 + $0x48] sm:$0xff] }
  0x26   : > { %701 = vmatpush.bf16.msra.mxu1 %v1652_v61  ;;  %1749 = vtanh.f32 %v769_v44  ;;  %v774_v58 = vmul.f32 0.7978846, %v766_v45  ;;  %v1692_v44 = vld [vmem:[%s2186_s2 + $0x88] sm:$0xff] }
  0x27   : > { %715 = vmatpush.bf16.msra.mxu2 %v1660_v1  ;;  %1751 = vtanh.f32 %v773_v48  ;;  %v772_v61 = vmul.f32 0.7978846, %v764_v59  ;;  %v776_v1 = vmul.f32 0.7978846, %v768_v60  ;;  %v1700_v45 = vld [vmem:[%s2186_s2 + $0xc8] sm:$0xff] }
  0x28   : > { %729 = vmatpush.bf16.msra.mxu3 %v1668_v2  ;;  %1753 = vtanh.f32 %v770_v51  ;;  %v1680_v2 = vld [vmem:[%s2186_s2 + $0x28] sm:$0xff] }
  0x29   : > { %688 = vmatpush.bf16.msra.mxu0 %v1643_v14  ;;  %1755 = vtanh.f32 %v774_v58 }
  0x2a   : > { %702 = vmatpush.bf16.msra.mxu1 %v1651_v15  ;;  %1757 = vtanh.f32 %v775_v52 }
  0x2b   : > { %716 = vmatpush.bf16.msra.mxu2 %v1659_v16  ;;  %1759 = vtanh.f32 %v772_v61 }
  0x2c   : > { %730 = vmatpush.bf16.msra.mxu3 %v1667_v21  ;;  %689 = vmatmul.bf16.vlgmr.msra.gmra.mxu0 %v417_v10  ;;  %1761 = vtanh.f32 %v776_v1  ;;  %v1687_v10 = vld [vmem:[%s2186_s2 + $0x60] sm:$0xff]  ;;  %v1702_v21 = vld [vmem:[%s2186_s2 + $0xd8] sm:$0xff] }
  0x2d   : > { %1073 = vmatpush.bf16.msrb.mxu0 %v1682_v22  ;;  %703 = vmatmul.bf16.vlgmr.msra.gmra.mxu1 %v418_v24 }
  0x2e   : > { %1087 = vmatpush.bf16.msrb.mxu1 %v1690_v23  ;;  %717 = vmatmul.bf16.vlgmr.msra.gmra.mxu2 %v419_v62  ;;  %v1688_v62 = vld [vmem:[%s2186_s2 + $0x68] sm:$0xff] }
  0x2f   : > { %1101 = vmatpush.bf16.msrb.mxu2 %v1698_v32  ;;  %731 = vmatmul.bf16.vlgmr.msra.gmra.mxu3 %v420_v6  ;;  %v1748_v6 = vpop.eup %1747  ;;  %v1693_v32 = vld [vmem:[%s2186_s2 + $0x90] sm:$0xff] }
  0x30   : > { %1115 = vmatpush.bf16.msrb.mxu3 %v1706_v33  ;;  %v1750_v7 = vpop.eup %1749  ;;  %v787_v22 = vadd.f32 1.0, %v1748_v6  ;;  %v1701_v33 = vld [vmem:[%s2186_s2 + $0xd0] sm:$0xff] }
  0x31   : > { %1074 = vmatpush.bf16.msrb.mxu0 %v1681_v38  ;;  %v1752_v8 = vpop.eup %1751  ;;  %v785_v23 = vadd.f32 1.0, %v1750_v7 }
  0x32   : > { %1088 = vmatpush.bf16.msrb.mxu1 %v1689_v39  ;;  %v1754_v11 = vpop.eup %1753  ;;  %v789_v24 = vadd.f32 1.0, %v1752_v8  ;;  %v795_v34 = vmul.f32 0.5, %v787_v22  ;;  %v1676_v39 = vld [vmem:[%s2186_s2 + $0x8] sm:$0xff]  ;;  %v1709_v22 = vld [vmem:[%s2188_s4 + $0x10] sm:$0xff] }
  0x33   : > { %1102 = vmatpush.bf16.msrb.mxu2 %v1697_v53  ;;  %v1756_v14 = vpop.eup %1755  ;;  %v786_v25 = vadd.f32 1.0, %v1754_v11  ;;  %v793_v35 = vmul.f32 0.5, %v785_v23  ;;  %v1675_v53 = vld [vmem:[%s2186_s2] sm:$0xff] }
  0x34   : > { %1116 = vmatpush.bf16.msrb.mxu3 %v1705_v56  ;;  %v1758_v15 = vpop.eup %1757  ;;  %v790_v26 = vadd.f32 1.0, %v1756_v14  ;;  %v797_v36 = vmul.f32 0.5, %v789_v24  ;;  %v803_v46 = vmul.f32 %v795_v34, %v1943_v49  ;;  %v1683_v56 = vld [vmem:[%s2186_s2 + $0x40] sm:$0xff] }
  0x35   : > { %1075 = vmatpush.bf16.msrb.mxu0 %v1680_v2  ;;  %v1760_v16 = vpop.eup %1759  ;;  %v791_v29 = vadd.f32 1.0, %v1758_v15  ;;  %v794_v37 = vmul.f32 0.5, %v786_v25  ;;  %v801_v47 = vmul.f32 %v793_v35, %v1952_v57 }
  0x36   : > { %1089 = vmatpush.bf16.msrb.mxu1 %v1688_v62  ;;  %v1762_v19 = vpop.eup %1761  ;;  %v788_v30 = vadd.f32 1.0, %v1760_v16  ;;  %v798_v38 = vmul.f32 0.5, %v790_v26  ;;  %v805_v48 = vmul.f32 %v797_v36, %v1964_v63  ;;  %v1708_v26 = vld [vmem:[%s2188_s4 + $0x8] sm:$0xff] }
  0x37   : > { %1103 = vmatpush.bf16.msrb.mxu2 %v1696_v4  ;;  %v792_v31 = vadd.f32 1.0, %v1762_v19  ;;  %v799_v41 = vmul.f32 0.5, %v791_v29  ;;  %v802_v51 = vmul.f32 %v794_v37, %v1966_v0  ;;  %v1691_v0 = vld [vmem:[%s2186_s2 + $0x80] sm:$0xff]  ;;  %v1710_v19 = vld [vmem:[%s2188_s4 + $0x18] sm:$0xff] }
  0x38   : > { %1117 = vmatpush.bf16.msrb.mxu3 %v1704_v5  ;;  %v796_v42 = vmul.f32 0.5, %v788_v30  ;;  %v806_v52 = vmul.f32 %v798_v38, %v1974_v3  ;;  %v1699_v3 = vld [vmem:[%s2186_s2 + $0xc0] sm:$0xff]  ;;  %v809_v58 = vpack.c.bf16 %v805_v48, %v801_v47 }
  0x39   : > { %1076 = vmatpush.bf16.msrb.mxu0 %v1679_v9  ;;  %v800_v43 = vmul.f32 0.5, %v792_v31  ;;  %v807_v49 = vmul.f32 %v799_v41, %v1945_v50  ;;  %v1707_v31 = vld [vmem:[%s2188_s4] sm:$0xff] }
  0x3a   : > { %1090 = vmatpush.bf16.msrb.mxu1 %v1687_v10  ;;  %v804_v57 = vmul.f32 %v796_v42, %v1948_v54  ;;  %v810_v59 = vpack.c.bf16 %v806_v52, %v802_v51  ;;  %v1744_v54 = vld [vmem:[%s2191_s7] ss:$0 sm:$0xff]  ;;  %v1714_v10 = vld [vmem:[%s2188_s4 + $0x38] sm:$0xff] }
  0x3b   : > { %1104 = vmatpush.bf16.msrb.mxu2 %v1695_v12  ;;  %v808_v63 = vmul.f32 %v800_v43, %v1950_v55  ;;  %v811_v60 = vpack.c.bf16 %v807_v49, %v803_v46  ;;  %v1713_v12 = vld [vmem:[%s2188_s4 + $0x30] sm:$0xff] }
  0x3c   : > { %1118 = vmatpush.bf16.msrb.mxu3 %v1703_v13 }
  0x3d   : > { %1077 = vmatpush.bf16.msrb.mxu0 %v1678_v17  ;;  %v812_v50 = vpack.c.bf16 %v808_v63, %v804_v57  ;;  %v1712_v17 = vld [vmem:[%s2188_s4 + $0x28] sm:$0xff] }
  0x3e   : > { %1091 = vmatpush.bf16.msrb.mxu1 %v1686_v18  ;;  %v1711_v18 = vld [vmem:[%s2188_s4 + $0x20] sm:$0xff] }
  0x3f   : > { %1105 = vmatpush.bf16.msrb.mxu2 %v1694_v20  ;;  %v1745_v20 = vld [vmem:[%s2187_s3] ss:$0 sm:$0xff] }
  0x40   : > { %1119 = vmatpush.bf16.msrb.mxu3 %v1702_v21 }
  0x41   : > { %1078 = vmatpush.bf16.msrb.mxu0 %v1677_v27 }
  0x42   : > { %1092 = vmatpush.bf16.msrb.mxu1 %v1685_v28 }
  0x43   : > { %1106 = vmatpush.bf16.msrb.mxu2 %v1693_v32 }
  0x44   : > { %1120 = vmatpush.bf16.msrb.mxu3 %v1701_v33 }
  0x45   : > { %1079 = vmatpush.bf16.msrb.mxu0 %v1676_v39 }
  0x46   : > { %1093 = vmatpush.bf16.msrb.mxu1 %v1684_v40 }
  0x47   : > { %1107 = vmatpush.bf16.msrb.mxu2 %v1692_v44 }
  0x48   : > { %1121 = vmatpush.bf16.msrb.mxu3 %v1700_v45 }
  0x49   : > { %1080 = vmatpush.bf16.msrb.mxu0 %v1675_v53 }
  0x4a   : > { %1094 = vmatpush.bf16.msrb.mxu1 %v1683_v56 }
  0x4b   : > { %1108 = vmatpush.bf16.msrb.mxu2 %v1691_v0 }
  0x4c   : > { %1122 = vmatpush.bf16.msrb.mxu3 %v1699_v3  ;;  %1081 = vmatmul.bf16.vlgmr.msrb.gmra.mxu0 %v809_v58 }
  0x4d   : > { %1095 = vmatmul.bf16.vlgmr.msrb.gmra.mxu1 %v810_v59  ;;  %1216 = vmatpush.bf16.msra.mxu0 %v1714_v10 }
  0x4e   : > { %1109 = vmatmul.bf16.vlgmr.msrb.gmra.mxu2 %v811_v60  ;;  %v1746_v60 = vld [vmem:[%s2189_s5] ss:$0 sm:$0xff] }
  0x4f   : > { %1123 = vmatmul.bf16.vlgmr.msrb.gmra.mxu3 %v812_v50 }
  0x51   : > { %1217 = vmatpush.bf16.msra.mxu0 %v1713_v12 }
  0x55   : > { %1218 = vmatpush.bf16.msra.mxu0 %v1712_v17 }
  0x59   : > { %1219 = vmatpush.bf16.msra.mxu0 %v1711_v18 }
  0x5d   : > { %1220 = vmatpush.bf16.msra.mxu0 %v1710_v19 }
  0x61   : > { %1221 = vmatpush.bf16.msra.mxu0 %v1709_v22 }
  0x65   : > { %1222 = vmatpush.bf16.msra.mxu0 %v1708_v26 }
  0x69   : > { %1223 = vmatpush.bf16.msra.mxu0 %v1707_v31 }
  0xa9   : > { %v690_v55 = vpop.f32.mrf.mxu0 }
  0xaa   : > { %v691_v61 = vadd.f32 %v1744_v54, %v690_v55  ;;  %v704_v1 = vpop.f32.mrf.mxu1 }
  0xac   : > { %v705_v2 = vadd.f32 %v704_v1, %v691_v61 }
  0xb1   : > { %v718_v62 = vpop.f32.mrf.mxu2  ;;  %v692_v6 = vpop.f32.mrf.mxu0 }
  0xb2   : > { %v719_v4 = vadd.f32 %v718_v62, %v705_v2  ;;  %v732_v5 = vpop.f32.mrf.mxu3  ;;  %v693_v8 = vadd.f32 %v1744_v54, %v692_v6  ;;  %v706_v9 = vpop.f32.mrf.mxu1 }
  0xb4   : > { %v2137_v7 = vadd.f32 %v732_v5, %v719_v4  ;;  %v707_v11 = vadd.f32 %v706_v9, %v693_v8 }
  0xb9   : > { %v720_v13 = vpop.f32.mrf.mxu2 }
  0xba   : > { %v721_v14 = vadd.f32 %v720_v13, %v707_v11  ;;  %v734_v15 = vpop.f32.mrf.mxu3 }
  0xbc   : > { %v735_v16 = vadd.f32 %v734_v15, %v721_v14 }
  0xc9   : > { %v1082_v21 = vpop.f32.mrf.mxu0 }
  0xca   : > { %v1083_v23 = vadd.f32 %v1745_v20, %v1082_v21  ;;  %v1096_v24 = vpop.f32.mrf.mxu1 }
  0xcc   : > { %v1097_v25 = vadd.f32 %v1096_v24, %v1083_v23 }
  0xd1   : > { %v1110_v27 = vpop.f32.mrf.mxu2  ;;  %v1084_v30 = vpop.f32.mrf.mxu0 }
  0xd2   : > { %v1124_v28 = vpop.f32.mrf.mxu3  ;;  %v1111_v29 = vadd.f32 %v1110_v27, %v1097_v25  ;;  %v1085_v33 = vadd.f32 %v1745_v20, %v1084_v30  ;;  %v1098_v35 = vpop.f32.mrf.mxu1 }
  0xd4   : > { %v1125_v32 = vadd.f32 %v1124_v28, %v1111_v29  ;;  %v1099_v37 = vadd.f32 %v1098_v35, %v1085_v33 }
  0xd6   : > { %v1129_v34 = vmul.f32 %v1125_v32, %v1125_v32 }
  0xd8   : > { %v1131_v36 = vmul.f32 %v1129_v34, %v1125_v32 }
  0xd9   : > { %v1112_v38 = vpop.f32.mrf.mxu2 }
  0xda   : > { %v1133_v39 = vmul.f32 0.044715, %v1131_v36  ;;  %v1113_v40 = vadd.f32 %v1112_v38, %v1099_v37  ;;  %v1126_v41 = vpop.f32.mrf.mxu3 }
  0xdc   : > { %v1135_v42 = vadd.f32 %v1133_v39, %v1125_v32  ;;  %v1127_v43 = vadd.f32 %v1126_v41, %v1113_v40 }
  0xde   : > { %v1137_v44 = vmul.f32 0.7978846, %v1135_v42  ;;  %v1130_v45 = vmul.f32 %v1127_v43, %v1127_v43 }
  0xe0   : > { %v1132_v46 = vmul.f32 %v1130_v45, %v1127_v43  ;;  %1763 = vtanh.f32 %v1137_v44 }
  0xe2   : > { %v1134_v47 = vmul.f32 0.044715, %v1132_v46 }
  0xe4   : > { %v1136_v48 = vadd.f32 %v1134_v47, %v1127_v43 }
  0xe6   : > { %v1138_v51 = vmul.f32 0.7978846, %v1136_v48  ;;  %v1764_v52 = vpop.eup %1763 }
  0xe7   : > { %v1141_v53 = vadd.f32 1.0, %v1764_v52 }
  0xe8   : > { %1765 = vtanh.f32 %v1138_v51 }
  0xe9   : > { %v1143_v49 = vmul.f32 0.5, %v1141_v53 }
  0xeb   : > { %v1145_v0 = vmul.f32 %v1143_v49, %v1125_v32 }
  0xee   : > { %v1766_v56 = vpop.eup %1765 }
  0xef   : > { %v1142_v57 = vadd.f32 1.0, %v1766_v56 }
  0xf1   : > { %v1144_v63 = vmul.f32 0.5, %v1142_v57 }
  0xf3   : > { %v1146_v3 = vmul.f32 %v1144_v63, %v1127_v43 }
  0xf5   : > { %v1147_v58 = vpack.c.bf16 %v1146_v3, %v1145_v0 }
  0xf7   : > { %1224 = vmatmul.bf16.vlgmr.msra.gmra.mxu0 %v1147_v58 }
 0x174   : > { %v1225_v59 = vpop.f32.mrf.mxu0 }
 0x175   : > { %v1226_v50 = vadd.f32 %v1746_v60, %v1225_v59 }
 0x177   : > { %v1230_v61 = vadd.f32 %v1226_v50, %v2137_v7 }
 0x17c   : > { %v1227_v54 = vpop.f32.mrf.mxu0 }
 0x17d   : > { %v1228_v55 = vadd.f32 %v1746_v60, %v1227_v54 }
 0x17f   : > { %v1231_v1 = vadd.f32 %v1228_v55, %v735_v16 }
 0x181   : > { %v1718_v2 = vpack.c.bf16 %v1231_v1, %v1230_v61 }
 0x183   : > { %1719 = vst [vmem:[%s366_s14] sm:$0xff] %v1718_v2  }
 0x184 PF: > { %s18_s29 = sadd.s32 1, %s1789_s29   ;;  %s2193_s27 = smov %s1785_s28 }
 0x185   : > { %p15_p5 = scmp.ge.s32.totalorder %s18_s29, 4   ;;  %s2194_s28 = smov %s2196_s30 }
 0x187   :  { %17 = sbr.rel (!%p15_p5) target bundleno = 2 (0x2), region = 86 }

// kernel: _lambda_.17
= control target key start
LH: loop header
LB: loop body
LE: loop exit
PB: predicated region body
PF: predicated region fallthrough
CT: control target
= control target key end

     0   :  { %s1564_s27 = smov 0   ;;  %s1566_s28 = smov 0   ;;  %s1830_s0 = inlined_call_operand.vmem [shape: bf16[2,16,384], index: 0, kind: input, shape index: {}]   ;;  %s1831_s1 = inlined_call_operand.vmem [shape: f32[2,2,384], index: 1, kind: input, shape index: {}]   ;;  %s1832_s2 = inlined_call_operand.vmem [shape: bf16[384,128], index: 2, kind: input, shape index: {}]   ;;  %s1833_s3 = inlined_call_operand.vmem [shape: f32[1,128], index: 3, kind: input, shape index: {}]   ;;  %s1834_s4 = inlined_call_operand.vmem [shape: bf16[128,128], index: 4, kind: input, shape index: {}]   ;;  %s1835_s5 = inlined_call_operand.vmem [shape: f32[1,128], index: 5, kind: input, shape index: {}]   ;;  %s1836_s6 = inlined_call_operand.vmem [shape: bf16[384,128], index: 6, kind: input, shape index: {}]   ;;  %s1837_s7 = inlined_call_operand.vmem [shape: f32[1,128], index: 7, kind: input, shape index: {}]   ;;  %s1838_s8 = inlined_call_operand.vmem [shape: bf16[2,16,128], index: 8, kind: output, shape index: {}]  }
   0x1   :  { %s1568_s29 = smov 0  }
   0x2 LB: > { %s30_s30 = sadd.s32 1, %s1513_s28  ;;  %p1156_p0 = scmp.ge.s32.totalorder %s1517_s29, 1  ;;  %s1517_s29 = sphi %s1568_s29, %s18_s29   ;;  %s1513_s28 = sphi %s1566_s28, %s1840_s28   ;;  %s1509_s27 = sphi %s1564_s27, %s1839_s27  }
   0x3   : > { %p32_p1 = scmp.ge.s32.totalorder %s30_s30, 2  ;;  %p294_p2 = scmp.lt.s32.totalorder %s1517_s29, 3 }
   0x5   : > { %s1842_s30 = smov (%p32_p1, %s30_s30), 0  ;;  %p295_p3 = pnand %p1156_p0, %p294_p2 }
   0x6   : > { %p343_p4 = scmp.lt.s32.totalorder (!%p295_p3), %s1509_s27, 1 }
   0x7   : > { %298 = sbr.rel (%p295_p3) target bundleno = 386 (0x182), region = 52 }
   0xc   : > { %v1396_v0 = vld [vmem:[%s1836_s6 + $0x38] sm:$0xff]  ;;  %v1395_v3 = vld [vmem:[%s1836_s6 + $0x30] sm:$0xff]  ;;  %s1844_s27 = smov (!%p343_p4, %s1509_s27), 1  ;;  %v1394_v8 = vld [vmem:[%s1836_s6 + $0x28] sm:$0xff] }
   0xd   : > { %v1404_v1 = vld [vmem:[%s1836_s6 + $0x78] sm:$0xff]  ;;  %606 = vmatpush.bf16.msra.mxu0 %v1396_v0  ;;  %v1403_v4 = vld [vmem:[%s1836_s6 + $0x70] sm:$0xff]  ;;  %s1451_s25 = smul.u32 6, %s1844_s27  ;;  %v1402_v9 = vld [vmem:[%s1836_s6 + $0x68] sm:$0xff]  ;;  %s1388_s10 = sshll.u32 %s1844_s27, 3 }
   0xe   : > { %v1412_v2 = vld [vmem:[%s1836_s6 + $0xb8] sm:$0xff]  ;;  %620 = vmatpush.bf16.msra.mxu1 %v1404_v1  ;;  %v1411_v5 = vld [vmem:[%s1836_s6 + $0xb0] sm:$0xff]  ;;  %s1450_s12 = smul.u32 24, %s1844_s27  ;;  %v1410_v10 = vld [vmem:[%s1836_s6 + $0xa8] sm:$0xff]  ;;  %s366_s13 = scalar_lea.vmem %s1838_s8, %s1388_s10 }
   0xf   : > { %634 = vmatpush.bf16.msra.mxu2 %v1412_v2  ;;  %v1420_v6 = vld [vmem:[%s1832_s2 + $0x38] sm:$0xff]  ;;  %v1419_v7 = vld [vmem:[%s1832_s2 + $0x30] sm:$0xff]  ;;  %v1418_v11 = vld [vmem:[%s1832_s2 + $0x28] sm:$0xff]  ;;  %s357_s19 = scalar_lea.vmem %s1831_s1, %s1451_s25 }
  0x10   : > { %901 = vmatpush.bf16.msra.mxu3 %v1420_v6  ;;  %v1393_v12 = vld [vmem:[%s1836_s6 + $0x20] sm:$0xff]  ;;  %s351_s9 = scalar_lea.vmem %s1830_s0, %s1450_s12  ;;  %v1392_v28 = vld [vmem:[%s1836_s6 + $0x18] sm:$0xff]  ;;  %v1391_v45 = vld [vmem:[%s1836_s6 + $0x10] sm:$0xff] }
  0x11   : > { %607 = vmatpush.bf16.msra.mxu0 %v1395_v3  ;;  %v1401_v13 = vld [vmem:[%s1836_s6 + $0x60] sm:$0xff]  ;;  %v372_v16 = vld [vmem:[%s351_s9 + $0x8] sm:$0xf]  ;;  %v374_v18 = vld [vmem:[%s351_s9 + $0x14] sm:$0xf] }
  0x12   : > { %621 = vmatpush.bf16.msra.mxu1 %v1403_v4  ;;  %v1409_v14 = vld [vmem:[%s1836_s6 + $0xa0] sm:$0xff]  ;;  %v377_v19 = vunpack.c.l.bf16 %v372_v16  ;;  %v380_v22 = vunpack.c.l.bf16 %v374_v18  ;;  %v373_v25 = vld [vmem:[%s351_s9 + $0xc] sm:$0xff]  ;;  %v1400_v29 = vld [vmem:[%s1836_s6 + $0x58] sm:$0xff] }
  0x13   : > { %635 = vmatpush.bf16.msra.mxu2 %v1411_v5  ;;  %v368_v15 = vld [vmem:[%s357_s19] ss:$2 sm:$0x7]  ;;  %v1161_v17 = vld [vmem:[%s357_s19 + $0x1] ss:$2 sm:$0x7]  ;;  %v378_v31 = vunpack.c.l.bf16 %v373_v25  ;;  %v379_v33 = vunpack.c.h.bf16 %v373_v25 }
  0x14   : > { %902 = vmatpush.bf16.msra.mxu3 %v1419_v7  ;;  %v397_v20 = vperm.slane %v368_v15, 2  ;;  %v1417_v21 = vld [vmem:[%s1832_s2 + $0x20] sm:$0xff]  ;;  %v384_v23 = vperm.slane %v1161_v17, 2  ;;  %v382_v26 = vperm.slane %v1161_v17, 0  ;;  %v395_v27 = vperm.slane %v368_v15, 0  ;;  %v1408_v34 = vld [vmem:[%s1836_s6 + $0x98] sm:$0xff] }
  0x15   : > { %608 = vmatpush.bf16.msra.mxu0 %v1394_v8  ;;  %v371_v24 = vld [vmem:[%s351_s9] sm:$0xff]  ;;  %v383_v37 = vperm.slane %v1161_v17, 1  ;;  %v396_v38 = vperm.slane %v368_v15, 1  ;;  %v1416_v41 = vld [vmem:[%s1832_s2 + $0x18] sm:$0xff]  ;;  %v1399_v46 = vld [vmem:[%s1836_s6 + $0x50] sm:$0xff] }
  0x16   : > { %622 = vmatpush.bf16.msra.mxu1 %v1402_v9  ;;  %v375_v30 = vunpack.c.l.bf16 %v371_v24  ;;  %v376_v32 = vunpack.c.h.bf16 %v371_v24  ;;  %v390_v35 = vmul.f32 %v384_v23, %v377_v19  ;;  %v393_v36 = vmul.f32 %v384_v23, %v380_v22  ;;  %v1407_v50 = vld [vmem:[%s1836_s6 + $0x90] sm:$0xff]  ;;  %v1390_v61 = vld [vmem:[%s1836_s6 + $0x8] sm:$0xff]  ;;  %v1428_v17 = vld [vmem:[%s1832_s2 + $0x78] sm:$0xff] }
  0x17   : > { %636 = vmatpush.bf16.msra.mxu2 %v1410_v10  ;;  %v391_v40 = vmul.f32 %v382_v26, %v378_v31  ;;  %v392_v44 = vmul.f32 %v383_v37, %v379_v33  ;;  %v1415_v57 = vld [vmem:[%s1832_s2 + $0x10] sm:$0xff]  ;;  %v1398_v62 = vld [vmem:[%s1836_s6 + $0x48] sm:$0xff]  ;;  %v1436_v18 = vld [vmem:[%s1832_s2 + $0xb8] sm:$0xff] }
  0x18   : > { %903 = vmatpush.bf16.msra.mxu3 %v1418_v11  ;;  %v388_v39 = vmul.f32 %v382_v26, %v375_v30  ;;  %v1652_v42 = vadd.f32 %v397_v20, %v390_v35  ;;  %v389_v43 = vmul.f32 %v383_v37, %v376_v32  ;;  %v1660_v47 = vadd.f32 %v397_v20, %v393_v36  ;;  %v1406_v2 = vld [vmem:[%s1836_s6 + $0x88] sm:$0xff]  ;;  %v1405_v20 = vld [vmem:[%s1836_s6 + $0x80] sm:$0xff]  ;;  %v1435_v30 = vld [vmem:[%s1832_s2 + $0xb0] sm:$0xff] }
  0x19   : > { %609 = vmatpush.bf16.msra.mxu0 %v1393_v12  ;;  %v1664_v49 = vadd.f32 %v395_v27, %v391_v40  ;;  %v1671_v52 = vadd.f32 %v396_v38, %v392_v44  ;;  %v1414_v6 = vld [vmem:[%s1832_s2 + $0x8] sm:$0xff]  ;;  %v1389_v12 = vld [vmem:[%s1836_s6] sm:$0xff] }
  0x1a   : > { %623 = vmatpush.bf16.msra.mxu1 %v1401_v13  ;;  %v1662_v48 = vadd.f32 %v395_v27, %v388_v39  ;;  %v1669_v51 = vadd.f32 %v396_v38, %v389_v43  ;;  %v650_v53 = vmul.f32 %v1652_v42, %v1652_v42  ;;  %v653_v56 = vmul.f32 %v1660_v47, %v1660_v47  ;;  %v1397_v13 = vld [vmem:[%s1836_s6 + $0x40] sm:$0xff]  ;;  %v1426_v35 = vld [vmem:[%s1832_s2 + $0x68] sm:$0xff] }
  0x1b   : > { %637 = vmatpush.bf16.msra.mxu2 %v1409_v14  ;;  %v651_v55 = vmul.f32 %v1664_v49, %v1664_v49  ;;  %v652_v59 = vmul.f32 %v1671_v52, %v1671_v52  ;;  %v1413_v27 = vld [vmem:[%s1832_s2] sm:$0xff]  ;;  %v409_v32 = vpack.c.bf16 %v1660_v47, %v1652_v42  ;;  %v1434_v36 = vld [vmem:[%s1832_s2 + $0xa8] sm:$0xff] }
  0x1c   : > { %904 = vmatpush.bf16.msra.mxu3 %v1417_v21  ;;  %v648_v54 = vmul.f32 %v1662_v48, %v1662_v48  ;;  %v649_v58 = vmul.f32 %v1669_v51, %v1669_v51  ;;  %v656_v60 = vmul.f32 %v650_v53, %v1652_v42  ;;  %v659_v1 = vmul.f32 %v653_v56, %v1660_v47  ;;  %v1433_v43 = vld [vmem:[%s1832_s2 + $0xa0] sm:$0xff] }
  0x1d   : > { %610 = vmatpush.bf16.msra.mxu0 %v1392_v28  ;;  %v657_v0 = vmul.f32 %v651_v55, %v1664_v49  ;;  %v658_v4 = vmul.f32 %v652_v59, %v1671_v52  ;;  %v407_v24 = vpack.c.bf16 %v1664_v49, %v1662_v48  ;;  %v408_v25 = vpack.c.bf16 %v1671_v52, %v1669_v51 }
  0x1e   : > { %624 = vmatpush.bf16.msra.mxu1 %v1400_v29  ;;  %v654_v63 = vmul.f32 %v648_v54, %v1662_v48  ;;  %v655_v3 = vmul.f32 %v649_v58, %v1669_v51  ;;  %v662_v5 = vmul.f32 0.044715, %v656_v60  ;;  %v665_v11 = vmul.f32 0.044715, %v659_v1  ;;  %v1427_v29 = vld [vmem:[%s1832_s2 + $0x70] sm:$0xff]  ;;  %v1432_v58 = vld [vmem:[%s1832_s2 + $0x98] sm:$0xff] }
  0x1f   : > { %638 = vmatpush.bf16.msra.mxu2 %v1408_v34  ;;  %v663_v8 = vmul.f32 0.044715, %v657_v0  ;;  %v664_v10 = vmul.f32 0.044715, %v658_v4  ;;  %v1422_v4 = vld [vmem:[%s1832_s2 + $0x48] sm:$0xff] }
  0x20   : > { %905 = vmatpush.bf16.msra.mxu3 %v1416_v41  ;;  %v660_v7 = vmul.f32 0.044715, %v654_v63  ;;  %v661_v9 = vmul.f32 0.044715, %v655_v3  ;;  %v668_v16 = vadd.f32 %v662_v5, %v1652_v42  ;;  %v671_v26 = vadd.f32 %v665_v11, %v1660_v47  ;;  %v1425_v41 = vld [vmem:[%s1832_s2 + $0x60] sm:$0xff]  ;;  %v1431_v63 = vld [vmem:[%s1832_s2 + $0x90] sm:$0xff] }
  0x21   : > { %611 = vmatpush.bf16.msra.mxu0 %v1391_v45  ;;  %v669_v15 = vadd.f32 %v663_v8, %v1664_v49  ;;  %v670_v23 = vadd.f32 %v664_v10, %v1671_v52  ;;  %v1430_v5 = vld [vmem:[%s1832_s2 + $0x88] sm:$0xff]  ;;  %v1421_v10 = vld [vmem:[%s1832_s2 + $0x40] sm:$0xff] }
  0x22   : > { %625 = vmatpush.bf16.msra.mxu1 %v1399_v46  ;;  %v666_v14 = vadd.f32 %v660_v7, %v1662_v48  ;;  %v667_v19 = vadd.f32 %v661_v9, %v1669_v51  ;;  %v674_v28 = vmul.f32 0.7978846, %v668_v16  ;;  %v677_v34 = vmul.f32 0.7978846, %v671_v26  ;;  %v1429_v11 = vld [vmem:[%s1832_s2 + $0x80] sm:$0xff]  ;;  %v1443_v16 = vld [vmem:[%s1834_s4 + $0x30] sm:$0xff] }
  0x23   : > { %639 = vmatpush.bf16.msra.mxu2 %v1407_v50  ;;  %v675_v22 = vmul.f32 0.7978846, %v669_v15  ;;  %v676_v33 = vmul.f32 0.7978846, %v670_v23  ;;  %v1440_v23 = vld [vmem:[%s1834_s4 + $0x18] sm:$0xff] }
  0x24   : > { %906 = vmatpush.bf16.msra.mxu3 %v1415_v57  ;;  %v672_v21 = vmul.f32 0.7978846, %v666_v14  ;;  %v673_v31 = vmul.f32 0.7978846, %v667_v19  ;;  %v1424_v57 = vld [vmem:[%s1832_s2 + $0x58] sm:$0xff] }
  0x25   : > { %612 = vmatpush.bf16.msra.mxu0 %v1390_v61  ;;  %v1444_v14 = vld [vmem:[%s1834_s4 + $0x38] sm:$0xff] }
  0x26   : > { %626 = vmatpush.bf16.msra.mxu1 %v1398_v62  ;;  %1479 = vtanh.f32 %v672_v21 }
  0x27   : > { %640 = vmatpush.bf16.msra.mxu2 %v1406_v2  ;;  %1481 = vtanh.f32 %v675_v22  ;;  %v1441_v22 = vld [vmem:[%s1834_s4 + $0x20] sm:$0xff] }
  0x28   : > { %907 = vmatpush.bf16.msra.mxu3 %v1414_v6  ;;  %1483 = vtanh.f32 %v674_v28 }
  0x29   : > { %613 = vmatpush.bf16.msra.mxu0 %v1389_v12  ;;  %1485 = vtanh.f32 %v673_v31 }
  0x2a   : > { %627 = vmatpush.bf16.msra.mxu1 %v1397_v13  ;;  %1487 = vtanh.f32 %v676_v33 }
  0x2b   : > { %641 = vmatpush.bf16.msra.mxu2 %v1405_v20  ;;  %1489 = vtanh.f32 %v677_v34  ;;  %v1442_v20 = vld [vmem:[%s1834_s4 + $0x28] sm:$0xff] }
  0x2c   : > { %614 = vmatmul.bf16.vlgmr.msra.gmra.mxu0 %v407_v24  ;;  %908 = vmatpush.bf16.msra.mxu3 %v1413_v27  ;;  %v1480_v37 = vpop.eup %1479  ;;  %v1439_v24 = vld [vmem:[%s1834_s4 + $0x10] sm:$0xff]  ;;  %v1438_v27 = vld [vmem:[%s1834_s4 + $0x8] sm:$0xff] }
  0x2d   : > { %915 = vmatpush.bf16.msrb.mxu0 %v1428_v17  ;;  %628 = vmatmul.bf16.vlgmr.msra.gmra.mxu1 %v408_v25  ;;  %v1482_v38 = vpop.eup %1481  ;;  %v684_v39 = vadd.f32 1.0, %v1480_v37  ;;  %v1477_v25 = vld [vmem:[%s1833_s3] ss:$0 sm:$0xff] }
  0x2e   : > { %929 = vmatpush.bf16.msrb.mxu1 %v1436_v18  ;;  %642 = vmatmul.bf16.vlgmr.msra.gmra.mxu2 %v409_v32  ;;  %v687_v40 = vadd.f32 1.0, %v1482_v38  ;;  %v1484_v45 = vpop.eup %1483 }
  0x2f   : > { %v690_v44 = vmul.f32 0.5, %v684_v39  ;;  %v1486_v50 = vpop.eup %1485  ;;  %v686_v62 = vadd.f32 1.0, %v1484_v45  ;;  %1030 = vmatpush.bf16.msrb.mxu2 %v1444_v14 }
  0x30   : > { %v693_v46 = vmul.f32 0.5, %v687_v40  ;;  %v1488_v54 = vpop.eup %1487  ;;  %v685_v60 = vadd.f32 1.0, %v1486_v50 }
  0x31   : > { %916 = vmatpush.bf16.msrb.mxu0 %v1427_v29  ;;  %v696_v53 = vmul.f32 %v690_v44, %v1662_v48  ;;  %v1490_v56 = vpop.eup %1489  ;;  %v688_v61 = vadd.f32 1.0, %v1488_v54  ;;  %v692_v2 = vmul.f32 0.5, %v686_v62  ;;  %v1437_v29 = vld [vmem:[%s1834_s4] sm:$0xff] }
  0x32   : > { %930 = vmatpush.bf16.msrb.mxu1 %v1435_v30  ;;  %v699_v55 = vmul.f32 %v693_v46, %v1664_v49  ;;  %v689_v48 = vadd.f32 1.0, %v1490_v56  ;;  %v1423_v49 = vld [vmem:[%s1832_s2 + $0x50] sm:$0xff]  ;;  %v691_v0 = vmul.f32 0.5, %v685_v60 }
  0x33   : > { %v694_v1 = vmul.f32 0.5, %v688_v61  ;;  %v698_v8 = vmul.f32 %v692_v2, %v1652_v42  ;;  %v1476_v42 = vld [vmem:[%s1837_s7] ss:$0 sm:$0xff]  ;;  %1031 = vmatpush.bf16.msrb.mxu2 %v1443_v16 }
  0x34   : > { %v702_v59 = vpack.c.bf16 %v699_v55, %v696_v53  ;;  %v695_v3 = vmul.f32 0.5, %v689_v48  ;;  %v697_v6 = vmul.f32 %v691_v0, %v1669_v51  ;;  %v1478_v2 = vld [vmem:[%s1835_s5] ss:$0 sm:$0xff] }
  0x35   : > { %917 = vmatpush.bf16.msrb.mxu0 %v1426_v35  ;;  %v700_v7 = vmul.f32 %v694_v1, %v1671_v52 }
  0x36   : > { %931 = vmatpush.bf16.msrb.mxu1 %v1434_v36  ;;  %909 = vmatmul.bf16.vlgmr.msra.gmra.mxu3 %v702_v59  ;;  %v701_v9 = vmul.f32 %v695_v3, %v1660_v47 }
  0x37   : > { %v703_v12 = vpack.c.bf16 %v700_v7, %v697_v6  ;;  %1032 = vmatpush.bf16.msrb.mxu2 %v1442_v20 }
  0x38   : > { %v704_v13 = vpack.c.bf16 %v701_v9, %v698_v8 }
  0x39   : > { %918 = vmatpush.bf16.msrb.mxu0 %v1425_v41 }
  0x3a   : > { %932 = vmatpush.bf16.msrb.mxu1 %v1433_v43 }
  0x3b   : > { %1033 = vmatpush.bf16.msrb.mxu2 %v1441_v22 }
  0x3d   : > { %919 = vmatpush.bf16.msrb.mxu0 %v1424_v57 }
  0x3e   : > { %933 = vmatpush.bf16.msrb.mxu1 %v1432_v58 }
  0x3f   : > { %1034 = vmatpush.bf16.msrb.mxu2 %v1440_v23 }
  0x41   : > { %920 = vmatpush.bf16.msrb.mxu0 %v1423_v49 }
  0x42   : > { %934 = vmatpush.bf16.msrb.mxu1 %v1431_v63 }
  0x43   : > { %1035 = vmatpush.bf16.msrb.mxu2 %v1439_v24 }
  0x45   : > { %921 = vmatpush.bf16.msrb.mxu0 %v1422_v4 }
  0x46   : > { %935 = vmatpush.bf16.msrb.mxu1 %v1430_v5 }
  0x47   : > { %1036 = vmatpush.bf16.msrb.mxu2 %v1438_v27 }
  0x49   : > { %922 = vmatpush.bf16.msrb.mxu0 %v1421_v10 }
  0x4a   : > { %936 = vmatpush.bf16.msrb.mxu1 %v1429_v11 }
  0x4b   : > { %1037 = vmatpush.bf16.msrb.mxu2 %v1437_v29 }
  0x4c   : > { %923 = vmatmul.bf16.vlgmr.msrb.gmra.mxu0 %v703_v12 }
  0x4d   : > { %937 = vmatmul.bf16.vlgmr.msrb.gmra.mxu1 %v704_v13 }
  0xa9   : > { %v615_v47 = vpop.f32.mrf.mxu0 }
  0xaa   : > { %v629_v51 = vpop.f32.mrf.mxu1  ;;  %v616_v52 = vadd.f32 %v1476_v42, %v615_v47 }
  0xac   : > { %v630_v15 = vadd.f32 %v629_v51, %v616_v52 }
  0xb1   : > { %v617_v17 = vpop.f32.mrf.mxu0  ;;  %v643_v63 = vpop.f32.mrf.mxu2 }
  0xb2   : > { %v631_v18 = vpop.f32.mrf.mxu1  ;;  %v618_v19 = vadd.f32 %v1476_v42, %v617_v17  ;;  %v644_v5 = vadd.f32 %v643_v63, %v630_v15 }
  0xb4   : > { %v632_v21 = vadd.f32 %v631_v18, %v618_v19 }
  0xb9   : > { %v910_v26 = vpop.f32.mrf.mxu3  ;;  %v645_v0 = vpop.f32.mrf.mxu2 }
  0xba   : > { %v911_v28 = vadd.f32 %v1477_v25, %v910_v26  ;;  %v646_v6 = vadd.f32 %v645_v0, %v632_v21 }
  0xc1   : > { %v912_v34 = vpop.f32.mrf.mxu3 }
  0xc2   : > { %v913_v36 = vadd.f32 %v1477_v25, %v912_v34 }
  0xc9   : > { %v924_v30 = vpop.f32.mrf.mxu0 }
  0xca   : > { %v938_v31 = vpop.f32.mrf.mxu1  ;;  %v925_v32 = vadd.f32 %v924_v30, %v911_v28 }
  0xcc   : > { %v939_v33 = vadd.f32 %v938_v31, %v925_v32 }
  0xce   : > { %v943_v35 = vmul.f32 %v939_v33, %v939_v33 }
  0xd0   : > { %v945_v37 = vmul.f32 %v943_v35, %v939_v33 }
  0xd1   : > { %v926_v38 = vpop.f32.mrf.mxu0 }
  0xd2   : > { %v947_v39 = vmul.f32 0.044715, %v945_v37  ;;  %v927_v40 = vadd.f32 %v926_v38, %v913_v36  ;;  %v940_v41 = vpop.f32.mrf.mxu1 }
  0xd4   : > { %v949_v43 = vadd.f32 %v947_v39, %v939_v33  ;;  %v941_v44 = vadd.f32 %v940_v41, %v927_v40 }
  0xd6   : > { %v951_v45 = vmul.f32 0.7978846, %v949_v43  ;;  %v944_v46 = vmul.f32 %v941_v44, %v941_v44 }
  0xd8   : > { %v946_v50 = vmul.f32 %v944_v46, %v941_v44  ;;  %1491 = vtanh.f32 %v951_v45 }
  0xda   : > { %v948_v53 = vmul.f32 0.044715, %v946_v50 }
  0xdc   : > { %v950_v54 = vadd.f32 %v948_v53, %v941_v44 }
  0xde   : > { %v952_v55 = vmul.f32 0.7978846, %v950_v54  ;;  %v1492_v56 = vpop.eup %1491 }
  0xdf   : > { %v955_v57 = vadd.f32 1.0, %v1492_v56 }
  0xe0   : > { %1493 = vtanh.f32 %v952_v55 }
  0xe1   : > { %v957_v60 = vmul.f32 0.5, %v955_v57 }
  0xe3   : > { %v959_v62 = vmul.f32 %v957_v60, %v939_v33 }
  0xe6   : > { %v1494_v58 = vpop.eup %1493 }
  0xe7   : > { %v956_v59 = vadd.f32 1.0, %v1494_v58 }
  0xe9   : > { %v958_v61 = vmul.f32 0.5, %v956_v59 }
  0xeb   : > { %v960_v48 = vmul.f32 %v958_v61, %v941_v44 }
  0xed   : > { %v961_v49 = vpack.c.bf16 %v960_v48, %v959_v62 }
  0xef   : > { %1038 = vmatmul.bf16.vlgmr.msrb.gmra.mxu2 %v961_v49 }
 0x172   : > { %v1039_v1 = vpop.f32.mrf.mxu2 }
 0x173   : > { %v1040_v3 = vadd.f32 %v1478_v2, %v1039_v1 }
 0x175   : > { %v1044_v8 = vadd.f32 %v1040_v3, %v644_v5 }
 0x17a   : > { %v1041_v4 = vpop.f32.mrf.mxu2 }
 0x17b   : > { %v1042_v7 = vadd.f32 %v1478_v2, %v1041_v4 }
 0x17d   : > { %v1045_v9 = vadd.f32 %v1042_v7, %v646_v6 }
 0x17f   : > { %v1448_v10 = vpack.c.bf16 %v1045_v9, %v1044_v8 }
 0x181   : > { %1449 = vst [vmem:[%s366_s13] sm:$0xff] %v1448_v10  }
 0x182 PF: > { %s18_s29 = sadd.s32 1, %s1517_s29   ;;  %s1839_s27 = smov %s1513_s28 }
 0x183   : > { %p15_p5 = scmp.ge.s32.totalorder %s18_s29, 4   ;;  %s1840_s28 = smov %s1842_s30 }
 0x185   :  { %17 = sbr.rel (!%p15_p5) target bundleno = 2 (0x2), region = 86 }

// kernel: _lambda_.18
= control target key start
LH: loop header
LB: loop body
LE: loop exit
PB: predicated region body
PF: predicated region fallthrough
CT: control target
= control target key end

     0   :  { %s1676_s27 = smov 0   ;;  %s1678_s28 = smov 0   ;;  %s2052_s0 = inlined_call_operand.vmem [shape: bf16[2,64,256], index: 0, kind: input, shape index: {}]   ;;  %s2053_s1 = inlined_call_operand.vmem [shape: f32[2,2,256], index: 1, kind: input, shape index: {}]   ;;  %s2054_s2 = inlined_call_operand.vmem [shape: bf16[256,128], index: 2, kind: input, shape index: {}]   ;;  %s2055_s3 = inlined_call_operand.vmem [shape: f32[1,128], index: 3, kind: input, shape index: {}]   ;;  %s2056_s4 = inlined_call_operand.vmem [shape: bf16[128,128], index: 4, kind: input, shape index: {}]   ;;  %s2057_s5 = inlined_call_operand.vmem [shape: f32[1,128], index: 5, kind: input, shape index: {}]   ;;  %s2058_s6 = inlined_call_operand.vmem [shape: bf16[256,128], index: 6, kind: input, shape index: {}]   ;;  %s2059_s7 = inlined_call_operand.vmem [shape: f32[1,128], index: 7, kind: input, shape index: {}]   ;;  %s2060_s8 = inlined_call_operand.vmem [shape: bf16[2,64,128], index: 8, kind: output, shape index: {}]  }
   0x1   :  { %s1680_s29 = smov 0  }
   0x2 LB: > { %s30_s30 = sadd.s32 1, %s1625_s28  ;;  %p1280_p0 = scmp.ge.s32.totalorder %s1629_s29, 1  ;;  %s1629_s29 = sphi %s1680_s29, %s18_s29   ;;  %s1625_s28 = sphi %s1678_s28, %s2062_s28   ;;  %s1621_s27 = sphi %s1676_s27, %s2061_s27  }
   0x3   : > { %p32_p1 = scmp.ge.s32.totalorder %s30_s30, 2  ;;  %p294_p2 = scmp.lt.s32.totalorder %s1629_s29, 3 }
   0x5   : > { %s2064_s30 = smov (%p32_p1, %s30_s30), 0  ;;  %p295_p3 = pnand %p1280_p0, %p294_p2 }
   0x6   : > { %p343_p4 = scmp.lt.s32.totalorder (!%p295_p3), %s1621_s27, 1 }
   0x7   : > { %298 = sbr.rel (%p295_p3) target bundleno = 413 (0x19d), region = 52 }
   0xc   : > { %v1476_v0 = vld [vmem:[%s2054_s2 + $0x38] sm:$0xff]  ;;  %v1475_v2 = vld [vmem:[%s2054_s2 + $0x30] sm:$0xff]  ;;  %s2066_s27 = smov (!%p343_p4, %s1621_s27), 1  ;;  %v1474_v4 = vld [vmem:[%s2054_s2 + $0x28] sm:$0xff] }
   0xd   : > { %v1484_v1 = vld [vmem:[%s2054_s2 + $0x78] sm:$0xff]  ;;  %919 = vmatpush.bf16.msra.mxu2 %v1476_v0  ;;  %v1483_v3 = vld [vmem:[%s2054_s2 + $0x70] sm:$0xff]  ;;  %s1450_s19 = sshll.u32 %s2066_s27, 6  ;;  %s1451_s20 = sshll.u32 %s2066_s27, 2  ;;  %v1482_v5 = vld [vmem:[%s2054_s2 + $0x68] sm:$0xff] }
   0xe   : > { %948 = vmatpush.bf16.msra.mxu3 %v1484_v1  ;;  %s1719_s25 = scalar_lea.vmem %s2052_s0, %s1450_s19  ;;  %s357_s10 = scalar_lea.vmem %s2053_s1, %s1451_s20  ;;  %v1473_v24 = vld [vmem:[%s2054_s2 + $0x20] sm:$0xff]  ;;  %v1472_v42 = vld [vmem:[%s2054_s2 + $0x18] sm:$0xff]  ;;  %v1471_v56 = vld [vmem:[%s2054_s2 + $0x10] sm:$0xff] }
   0xf   : > { %v368_v6 = vld [vmem:[%s357_s10] ss:$2 sm:$0x3]  ;;  %v1287_v7 = vld [vmem:[%s357_s10 + $0x1] ss:$2 sm:$0x3] }
  0x10   : > { %v371_v8 = vld [vmem:[%s1719_s25] sm:$0xff]  ;;  %v372_v9 = vld [vmem:[%s1719_s25 + $0x8] sm:$0xff]  ;;  %v1726_v10 = vperm.slane %v1287_v7, 0  ;;  %v1728_v11 = vperm.slane %v1287_v7, 1  ;;  %v1730_v12 = vperm.slane %v368_v6, 0  ;;  %v1732_v13 = vperm.slane %v368_v6, 1 }
  0x11   : > { %920 = vmatpush.bf16.msra.mxu2 %v1475_v2  ;;  %v379_v14 = vunpack.c.l.bf16 %v371_v8  ;;  %v381_v15 = vunpack.c.l.bf16 %v372_v9  ;;  %v380_v16 = vunpack.c.h.bf16 %v371_v8  ;;  %v382_v17 = vunpack.c.h.bf16 %v372_v9  ;;  %v373_v18 = vld [vmem:[%s1719_s25 + $0x10] sm:$0xff]  ;;  %v374_v19 = vld [vmem:[%s1719_s25 + $0x18] sm:$0xff]  ;;  %v1481_v25 = vld [vmem:[%s2054_s2 + $0x60] sm:$0xff] }
  0x12   : > { %949 = vmatpush.bf16.msra.mxu3 %v1483_v3  ;;  %v383_v20 = vunpack.c.l.bf16 %v373_v18  ;;  %v385_v21 = vunpack.c.l.bf16 %v374_v19  ;;  %v384_v22 = vunpack.c.h.bf16 %v373_v18  ;;  %v386_v23 = vunpack.c.h.bf16 %v374_v19  ;;  %v1750_v33 = vld [vmem:[%s1719_s25 + $0x20] sm:$0xff]  ;;  %v1480_v43 = vld [vmem:[%s2054_s2 + $0x58] sm:$0xff]  ;;  %v1479_v57 = vld [vmem:[%s2054_s2 + $0x50] sm:$0xff] }
  0x13   : > { %v400_v26 = vmul.f32 %v1726_v10, %v379_v14  ;;  %v402_v27 = vmul.f32 %v1726_v10, %v381_v15  ;;  %v401_v28 = vmul.f32 %v1728_v11, %v380_v16  ;;  %v403_v29 = vmul.f32 %v1728_v11, %v382_v17  ;;  %v1470_v14 = vld [vmem:[%s2054_s2 + $0x8] sm:$0xff] }
  0x14   : > { %v404_v30 = vmul.f32 %v1726_v10, %v383_v20  ;;  %v406_v31 = vmul.f32 %v1726_v10, %v385_v21  ;;  %v405_v32 = vmul.f32 %v1728_v11, %v384_v22  ;;  %v407_v37 = vmul.f32 %v1728_v11, %v386_v23  ;;  %v1478_v15 = vld [vmem:[%s2054_s2 + $0x48] sm:$0xff] }
  0x15   : > { %921 = vmatpush.bf16.msra.mxu2 %v1474_v4  ;;  %v1753_v34 = vadd.f32 %v1730_v12, %v400_v26  ;;  %v1756_v35 = vadd.f32 %v1730_v12, %v402_v27  ;;  %v1759_v36 = vadd.f32 %v1732_v13, %v401_v28  ;;  %v1763_v38 = vadd.f32 %v1732_v13, %v403_v29  ;;  %v376_v18 = vld [vmem:[%s1719_s25 + $0x28] sm:$0xff] }
  0x16   : > { %950 = vmatpush.bf16.msra.mxu3 %v1482_v5  ;;  %v1766_v39 = vadd.f32 %v1730_v12, %v404_v30  ;;  %v1769_v40 = vadd.f32 %v1730_v12, %v406_v31  ;;  %v1772_v41 = vadd.f32 %v1732_v13, %v405_v32  ;;  %v387_v47 = vunpack.c.l.bf16 %v1750_v33  ;;  %v1469_v31 = vld [vmem:[%s2054_s2] sm:$0xff] }
  0x17   : > { %v635_v44 = vmul.f32 %v1753_v34, %v1753_v34  ;;  %v637_v45 = vmul.f32 %v1756_v35, %v1756_v35  ;;  %v636_v46 = vmul.f32 %v1759_v36, %v1759_v36  ;;  %v638_v48 = vmul.f32 %v1763_v38, %v1763_v38  ;;  %v1477_v32 = vld [vmem:[%s2054_s2 + $0x40] sm:$0xff] }
  0x18   : > { %v639_v49 = vmul.f32 %v1766_v39, %v1766_v39  ;;  %v641_v50 = vmul.f32 %v1769_v40, %v1769_v40  ;;  %v1794_v51 = vadd.f32 %v1732_v13, %v407_v37  ;;  %v640_v55 = vmul.f32 %v1772_v41, %v1772_v41 }
  0x19   : > { %922 = vmatpush.bf16.msra.mxu2 %v1473_v24  ;;  %v651_v52 = vmul.f32 %v635_v44, %v1753_v34  ;;  %v653_v53 = vmul.f32 %v637_v45, %v1756_v35  ;;  %v652_v54 = vmul.f32 %v636_v46, %v1759_v36  ;;  %v654_v58 = vmul.f32 %v638_v48, %v1763_v38  ;;  %v1844_v46 = vld [vmem:[%s1719_s25 + $0x30] sm:$0xff] }
  0x1a   : > { %951 = vmatpush.bf16.msra.mxu3 %v1481_v25  ;;  %v655_v59 = vmul.f32 %v639_v49, %v1766_v39  ;;  %v657_v60 = vmul.f32 %v641_v50, %v1769_v40  ;;  %v642_v61 = vmul.f32 %v1794_v51, %v1794_v51  ;;  %v656_v1 = vmul.f32 %v640_v55, %v1772_v41  ;;  %v1852_v50 = vld [vmem:[%s1719_s25 + $0x38] sm:$0xff]  ;;  %s1452_s25 = sshll.u32 %s2066_s27, 5 }
  0x1b   : > { %v667_v62 = vmul.f32 0.044715, %v651_v52  ;;  %v669_v63 = vmul.f32 0.044715, %v653_v53  ;;  %v668_v0 = vmul.f32 0.044715, %v652_v54  ;;  %v389_v26 = vunpack.c.l.bf16 %v376_v18  ;;  %s2037_s16 = scalar_lea.vmem %s2060_s8, %s1452_s25 }
  0x1c   : > { %v670_v2 = vmul.f32 0.044715, %v654_v58  ;;  %v671_v3 = vmul.f32 0.044715, %v655_v59  ;;  %v673_v4 = vmul.f32 0.044715, %v657_v60  ;;  %v658_v5 = vmul.f32 %v642_v61, %v1794_v51 }
  0x1d   : > { %923 = vmatpush.bf16.msra.mxu2 %v1472_v42  ;;  %v683_v6 = vadd.f32 %v667_v62, %v1753_v34  ;;  %v685_v7 = vadd.f32 %v669_v63, %v1756_v35  ;;  %v684_v8 = vadd.f32 %v668_v0, %v1759_v36  ;;  %v672_v9 = vmul.f32 0.044715, %v656_v1 }
  0x1e   : > { %952 = vmatpush.bf16.msra.mxu3 %v1480_v43  ;;  %v686_v16 = vadd.f32 %v670_v2, %v1763_v38  ;;  %v674_v17 = vmul.f32 0.044715, %v658_v5  ;;  %v687_v22 = vadd.f32 %v671_v3, %v1766_v39  ;;  %v689_v24 = vadd.f32 %v673_v4, %v1769_v40 }
  0x1f   : > { %v699_v19 = vmul.f32 0.7978846, %v683_v6  ;;  %v701_v20 = vmul.f32 0.7978846, %v685_v7  ;;  %v700_v21 = vmul.f32 0.7978846, %v684_v8  ;;  %v688_v25 = vadd.f32 %v672_v9, %v1772_v41 }
  0x20   : > { %v702_v23 = vmul.f32 0.7978846, %v686_v16  ;;  %v408_v27 = vmul.f32 %v1726_v10, %v387_v47  ;;  %v690_v28 = vadd.f32 %v674_v17, %v1794_v51  ;;  %v388_v29 = vunpack.c.h.bf16 %v1750_v33 }
  0x21   : > { %924 = vmatpush.bf16.msra.mxu2 %v1471_v56  ;;  %1559 = vtanh.f32 %v699_v19  ;;  %v390_v30 = vunpack.c.h.bf16 %v376_v18  ;;  %v703_v37 = vmul.f32 0.7978846, %v687_v22  ;;  %v410_v42 = vmul.f32 %v1726_v10, %v389_v26 }
  0x22   : > { %953 = vmatpush.bf16.msra.mxu3 %v1479_v57  ;;  %1561 = vtanh.f32 %v701_v20  ;;  %v1839_v43 = vadd.f32 %v1730_v12, %v408_v27  ;;  %v705_v33 = vmul.f32 0.7978846, %v689_v24  ;;  %v409_v44 = vmul.f32 %v1728_v11, %v388_v29 }
  0x23   : > { %1563 = vtanh.f32 %v700_v21  ;;  %v411_v45 = vmul.f32 %v1728_v11, %v390_v30  ;;  %v704_v47 = vmul.f32 0.7978846, %v688_v25  ;;  %v1847_v48 = vadd.f32 %v1730_v12, %v410_v42 }
  0x24   : > { %1565 = vtanh.f32 %v702_v23  ;;  %v643_v49 = vmul.f32 %v1839_v43, %v1839_v43  ;;  %v706_v52 = vmul.f32 0.7978846, %v690_v28  ;;  %v1855_v53 = vadd.f32 %v1732_v13, %v409_v44 }
  0x25   : > { %925 = vmatpush.bf16.msra.mxu2 %v1470_v14  ;;  %v1858_v54 = vadd.f32 %v1732_v13, %v411_v45  ;;  %1567 = vtanh.f32 %v703_v37  ;;  %v645_v56 = vmul.f32 %v1847_v48, %v1847_v48  ;;  %v391_v58 = vunpack.c.l.bf16 %v1844_v46 }
  0x26   : > { %954 = vmatpush.bf16.msra.mxu3 %v1478_v15  ;;  %v659_v57 = vmul.f32 %v643_v49, %v1839_v43  ;;  %1569 = vtanh.f32 %v705_v33  ;;  %v644_v61 = vmul.f32 %v1855_v53, %v1855_v53  ;;  %v393_v62 = vunpack.c.l.bf16 %v1852_v50 }
  0x27   : > { %v1560_v55 = vpop.eup %1559  ;;  %1571 = vtanh.f32 %v704_v47  ;;  %v661_v1 = vmul.f32 %v645_v56, %v1847_v48  ;;  %v646_v2 = vmul.f32 %v1858_v54, %v1858_v54  ;;  %v412_v14 = vmul.f32 %v1726_v10, %v391_v58  ;;  %v1460_v56 = vld [vmem:[%s2058_s6 + $0x38] sm:$0xff] }
  0x28   : > { %v1562_v59 = vpop.eup %1561  ;;  %v731_v60 = vadd.f32 1.0, %v1560_v55  ;;  %1573 = vtanh.f32 %v706_v52  ;;  %v660_v6 = vmul.f32 %v644_v61, %v1855_v53  ;;  %v675_v9 = vmul.f32 0.044715, %v659_v57  ;;  %1516 = vmatpush.bf16.msra.mxu1 %v1460_v56  ;;  %577 = vmatpush.bf16.msra.mxu0 %v1460_v56 }
  0x29   : > { %926 = vmatpush.bf16.msra.mxu2 %v1469_v31  ;;  %v1564_v63 = vpop.eup %1563  ;;  %v733_v0 = vadd.f32 1.0, %v1562_v59  ;;  %v677_v17 = vmul.f32 0.044715, %v661_v1  ;;  %v662_v21 = vmul.f32 %v646_v2, %v1858_v54  ;;  %v414_v25 = vmul.f32 %v1726_v10, %v393_v62 }
  0x2a   : > { %955 = vmatpush.bf16.msra.mxu3 %v1477_v32  ;;  %v1566_v3 = vpop.eup %1565  ;;  %v747_v4 = vmul.f32 0.5, %v731_v60  ;;  %v732_v5 = vadd.f32 1.0, %v1564_v63  ;;  %v676_v24 = vmul.f32 0.044715, %v660_v6  ;;  %v691_v29 = vadd.f32 %v675_v9, %v1839_v43 }
  0x2b   : > { %v749_v7 = vmul.f32 0.5, %v733_v0  ;;  %v734_v8 = vadd.f32 1.0, %v1566_v3  ;;  %v1568_v18 = vpop.eup %1567  ;;  %v1880_v30 = vadd.f32 %v1730_v12, %v412_v14  ;;  %v693_v32 = vadd.f32 %v677_v17, %v1847_v48  ;;  %v1459_v0 = vld [vmem:[%s2058_s6 + $0x30] sm:$0xff] }
  0x2c   : > { %v763_v15 = vmul.f32 %v747_v4, %v1753_v34  ;;  %v748_v16 = vmul.f32 0.5, %v732_v5  ;;  %v1570_v22 = vpop.eup %1569  ;;  %v735_v42 = vadd.f32 1.0, %v1568_v18  ;;  %v678_v44 = vmul.f32 0.044715, %v662_v21  ;;  %1517 = vmatpush.bf16.msra.mxu1 %v1459_v0  ;;  %578 = vmatpush.bf16.msra.mxu0 %v1459_v0 }
  0x2d   : > { %v765_v19 = vmul.f32 %v749_v7, %v1756_v35  ;;  %v750_v20 = vmul.f32 0.5, %v734_v8  ;;  %v1572_v26 = vpop.eup %1571  ;;  %v737_v33 = vadd.f32 1.0, %v1570_v22  ;;  %v692_v10 = vadd.f32 %v676_v24, %v1855_v53 }
  0x2e   : > { %v764_v23 = vmul.f32 %v748_v16, %v1759_v36  ;;  %v1574_v31 = vpop.eup %1573  ;;  %v736_v45 = vadd.f32 1.0, %v1572_v26  ;;  %v1885_v47 = vadd.f32 %v1730_v12, %v414_v25  ;;  %v707_v52 = vmul.f32 0.7978846, %v691_v29 }
  0x2f   : > { %v779_v27 = vpack.c.bf16 %v765_v19, %v763_v15  ;;  %v766_v28 = vmul.f32 %v750_v20, %v1763_v38  ;;  %v738_v49 = vadd.f32 1.0, %v1574_v31  ;;  %v694_v55 = vadd.f32 %v678_v44, %v1858_v54 }
  0x30   : > { %v647_v57 = vmul.f32 %v1880_v30, %v1880_v30  ;;  %v709_v58 = vmul.f32 0.7978846, %v693_v32  ;;  %v649_v59 = vmul.f32 %v1885_v47, %v1885_v47  ;;  %v392_v60 = vunpack.c.h.bf16 %v1844_v46 }
  0x31   : > { %927 = vmatmul.bf16.vlgmr.msra.gmra.mxu2 %v779_v27  ;;  %v780_v37 = vpack.c.bf16 %v766_v28, %v764_v23  ;;  %v394_v12 = vunpack.c.h.bf16 %v1852_v50  ;;  %v751_v61 = vmul.f32 0.5, %v735_v42  ;;  %v753_v62 = vmul.f32 0.5, %v737_v33 }
  0x32   : > { %v708_v63 = vmul.f32 0.7978846, %v692_v10  ;;  %v710_v1 = vmul.f32 0.7978846, %v694_v55  ;;  %v413_v2 = vmul.f32 %v1728_v11, %v392_v60  ;;  %v752_v4 = vmul.f32 0.5, %v736_v45  ;;  %v1458_v10 = vld [vmem:[%s2058_s6 + $0x28] sm:$0xff] }
  0x33   : > { %956 = vmatmul.bf16.vlgmr.msra.gmra.mxu3 %v780_v37  ;;  %v415_v3 = vmul.f32 %v1728_v11, %v394_v12  ;;  %v754_v5 = vmul.f32 0.5, %v738_v49  ;;  %1575 = vtanh.f32 %v707_v52  ;;  %v663_v46 = vmul.f32 %v647_v57, %v1880_v30  ;;  %1518 = vmatpush.bf16.msra.mxu1 %v1458_v10  ;;  %v1457_v57 = vld [vmem:[%s2058_s6 + $0x20] sm:$0xff] }
  0x34   : > { %1577 = vtanh.f32 %v709_v58  ;;  %v665_v50 = vmul.f32 %v649_v59, %v1885_v47  ;;  %v1905_v6 = vadd.f32 %v1732_v13, %v413_v2  ;;  %v767_v8 = vmul.f32 %v751_v61, %v1766_v39  ;;  %579 = vmatpush.bf16.msra.mxu0 %v1458_v10 }
  0x35   : > { %v1908_v7 = vadd.f32 %v1732_v13, %v415_v3  ;;  %v769_v9 = vmul.f32 %v753_v62, %v1769_v40  ;;  %1579 = vtanh.f32 %v708_v63  ;;  %v768_v15 = vmul.f32 %v752_v4, %v1772_v41  ;;  %v1456_v62 = vld [vmem:[%s2058_s6 + $0x18] sm:$0xff]  ;;  %v1455_v3 = vld [vmem:[%s2058_s6 + $0x10] sm:$0xff] }
  0x36   : > { %1581 = vtanh.f32 %v710_v1  ;;  %v648_v11 = vmul.f32 %v1905_v6, %v1905_v6  ;;  %v770_v16 = vmul.f32 %v754_v5, %v1794_v51  ;;  %v679_v13 = vmul.f32 0.044715, %v663_v46 }
  0x37   : > { %v650_v14 = vmul.f32 %v1908_v7, %v1908_v7  ;;  %v681_v17 = vmul.f32 0.044715, %v665_v50  ;;  %v781_v21 = vpack.c.bf16 %v769_v9, %v767_v8  ;;  %1519 = vmatpush.bf16.msra.mxu1 %v1457_v57 }
  0x38   : > { %v664_v18 = vmul.f32 %v648_v11, %v1905_v6  ;;  %v782_v26 = vpack.c.bf16 %v770_v16, %v768_v15  ;;  %v695_v27 = vadd.f32 %v679_v13, %v1880_v30  ;;  %580 = vmatpush.bf16.msra.mxu0 %v1457_v57  ;;  %v1454_v11 = vld [vmem:[%s2058_s6 + $0x8] sm:$0xff] }
  0x39   : > { %v666_v19 = vmul.f32 %v650_v14, %v1908_v7  ;;  %v1576_v20 = vpop.eup %1575  ;;  %v697_v29 = vadd.f32 %v681_v17, %v1885_v47  ;;  %v1453_v17 = vld [vmem:[%s2058_s6] sm:$0xff] }
  0x3a   : > { %v1578_v22 = vpop.eup %1577  ;;  %v680_v23 = vmul.f32 0.044715, %v664_v18  ;;  %v739_v31 = vadd.f32 1.0, %v1576_v20  ;;  %v711_v45 = vmul.f32 0.7978846, %v695_v27  ;;  %v1468_v18 = vld [vmem:[%s2058_s6 + $0x78] sm:$0xff] }
  0x3b   : > { %v682_v24 = vmul.f32 0.044715, %v666_v19  ;;  %v1580_v25 = vpop.eup %1579  ;;  %v741_v32 = vadd.f32 1.0, %v1578_v22  ;;  %v713_v49 = vmul.f32 0.7978846, %v697_v29  ;;  %1520 = vmatpush.bf16.msra.mxu1 %v1456_v62  ;;  %v438_v19 = vpack.c.bf16 %v1763_v38, %v1759_v36  ;;  %v1465_v27 = vld [vmem:[%s2058_s6 + $0x60] sm:$0xff] }
  0x3c   : > { %v1582_v28 = vpop.eup %1581  ;;  %v696_v37 = vadd.f32 %v680_v23, %v1905_v6  ;;  %v740_v33 = vadd.f32 1.0, %v1580_v25  ;;  %v755_v52 = vmul.f32 0.5, %v739_v31  ;;  %1583 = vtanh.f32 %v711_v45  ;;  %581 = vmatpush.bf16.msra.mxu0 %v1456_v62  ;;  %v1467_v25 = vld [vmem:[%s2058_s6 + $0x70] sm:$0xff]  ;;  %v2011_v45 = vld [vmem:[%s2055_s3] ss:$0 sm:$0xff] }
  0x3d   : > { %v698_v42 = vadd.f32 %v682_v24, %v1908_v7  ;;  %v742_v44 = vadd.f32 1.0, %v1582_v28  ;;  %v757_v55 = vmul.f32 0.5, %v741_v32  ;;  %1585 = vtanh.f32 %v713_v49  ;;  %v1464_v28 = vld [vmem:[%s2058_s6 + $0x58] sm:$0xff]  ;;  %v1463_v31 = vld [vmem:[%s2058_s6 + $0x50] sm:$0xff]  ;;  %v1462_v32 = vld [vmem:[%s2058_s6 + $0x48] sm:$0xff] }
  0x3e   : > { %v712_v56 = vmul.f32 0.7978846, %v696_v37  ;;  %v756_v59 = vmul.f32 0.5, %v740_v33  ;;  %v771_v12 = vmul.f32 %v755_v52, %v1839_v43  ;;  %v441_v22 = vpack.c.bf16 %v1847_v48, %v1839_v43  ;;  %v1466_v43 = vld [vmem:[%s2058_s6 + $0x68] sm:$0xff]  ;;  %v1461_v37 = vld [vmem:[%s2058_s6 + $0x40] sm:$0xff]  ;;  %v1492_v33 = vld [vmem:[%s2056_s4 + $0x38] sm:$0xff] }
  0x3f   : > { %v714_v58 = vmul.f32 0.7978846, %v698_v42  ;;  %v758_v60 = vmul.f32 0.5, %v742_v44  ;;  %v773_v61 = vmul.f32 %v757_v55, %v1847_v48  ;;  %1521 = vmatpush.bf16.msra.mxu1 %v1455_v3  ;;  %v443_v29 = vpack.c.bf16 %v1885_v47, %v1880_v30  ;;  %1524 = vmatpush.bf16.msrb.mxu2 %v1492_v33  ;;  %v1491_v44 = vld [vmem:[%s2056_s4 + $0x30] sm:$0xff]  ;;  %v1485_v49 = vld [vmem:[%s2056_s4] sm:$0xff] }
  0x40   : > { %1587 = vtanh.f32 %v712_v56  ;;  %v772_v63 = vmul.f32 %v756_v59, %v1855_v53  ;;  %582 = vmatpush.bf16.msra.mxu0 %v1455_v3  ;;  %v442_v42 = vpack.c.bf16 %v1858_v54, %v1855_v53  ;;  %v1488_v53 = vld [vmem:[%s2056_s4 + $0x18] sm:$0xff] }
  0x41   : > { %932 = vmatmul.bf16.gmra.mxu2 %v781_v21  ;;  %1589 = vtanh.f32 %v714_v58  ;;  %v774_v0 = vmul.f32 %v758_v60, %v1858_v54  ;;  %v783_v2 = vpack.c.bf16 %v773_v61, %v771_v12  ;;  %v1487_v54 = vld [vmem:[%s2056_s4 + $0x10] sm:$0xff] }
  0x42   : > { %v1584_v1 = vpop.eup %1583 }
  0x43   : > { %961 = vmatmul.bf16.gmra.mxu3 %v782_v26  ;;  %v1586_v4 = vpop.eup %1585  ;;  %v784_v46 = vpack.c.bf16 %v774_v0, %v772_v63  ;;  %v743_v8 = vadd.f32 1.0, %v1584_v1  ;;  %1522 = vmatpush.bf16.msra.mxu1 %v1454_v11 }
  0x44   : > { %v745_v9 = vadd.f32 1.0, %v1586_v4  ;;  %583 = vmatpush.bf16.msra.mxu0 %v1454_v11  ;;  %1525 = vmatpush.bf16.msrb.mxu2 %v1491_v44 }
  0x45   : > { %v759_v16 = vmul.f32 0.5, %v743_v8 }
  0x46   : > { %v1588_v5 = vpop.eup %1587  ;;  %v761_v13 = vmul.f32 0.5, %v745_v9 }
  0x47   : > { %v1590_v50 = vpop.eup %1589  ;;  %v744_v14 = vadd.f32 1.0, %v1588_v5  ;;  %v775_v23 = vmul.f32 %v759_v16, %v1880_v30  ;;  %1523 = vmatpush.bf16.msra.mxu1 %v1453_v17  ;;  %v440_v30 = vpack.c.bf16 %v1794_v51, %v1772_v41  ;;  %v439_v41 = vpack.c.bf16 %v1769_v40, %v1766_v39  ;;  %v1486_v39 = vld [vmem:[%s2056_s4 + $0x8] sm:$0xff] }
  0x48   : > { %v746_v15 = vadd.f32 1.0, %v1590_v50  ;;  %v777_v24 = vmul.f32 %v761_v13, %v1885_v47  ;;  %584 = vmatpush.bf16.msra.mxu0 %v1453_v17  ;;  %v437_v47 = vpack.c.bf16 %v1756_v35, %v1753_v34  ;;  %v1490_v34 = vld [vmem:[%s2056_s4 + $0x28] sm:$0xff]  ;;  %v1489_v35 = vld [vmem:[%s2056_s4 + $0x20] sm:$0xff]  ;;  %v444_v51 = vpack.c.bf16 %v1908_v7, %v1905_v6 }
  0x49   : > { %v760_v20 = vmul.f32 0.5, %v744_v14  ;;  %1526 = vmatpush.bf16.msrb.mxu2 %v1490_v34 }
  0x4a   : > { %v762_v21 = vmul.f32 0.5, %v746_v15  ;;  %595 = vmatmul.bf16.vlgmr.msra.gmra.mxu1 %v441_v22  ;;  %v785_v38 = vpack.c.bf16 %v777_v24, %v775_v23 }
  0x4b   : > { %606 = vmatpush.bf16.msrb.mxu1 %v1468_v18  ;;  %v776_v26 = vmul.f32 %v760_v20, %v1905_v6  ;;  %585 = vmatmul.bf16.vlgmr.msra.gmra.mxu0 %v437_v47 }
  0x4c   : > { %v778_v36 = vmul.f32 %v762_v21, %v1908_v7  ;;  %1121 = vmatpush.bf16.msrb.mxu0 %v1492_v33 }
  0x4d   : > { %1527 = vmatpush.bf16.msrb.mxu2 %v1489_v35 }
  0x4e   : > { %v786_v48 = vpack.c.bf16 %v778_v36, %v776_v26 }
  0x4f   : > { %607 = vmatpush.bf16.msrb.mxu1 %v1467_v25 }
  0x50   : > { %1122 = vmatpush.bf16.msrb.mxu0 %v1491_v44 }
  0x51   : > { %937 = vmatmul.bf16.gmra.mxu2 %v783_v2 }
  0x52   : > { %1528 = vmatpush.bf16.msrb.mxu2 %v1488_v53 }
  0x53   : > { %966 = vmatmul.bf16.gmra.mxu3 %v784_v46  ;;  %608 = vmatpush.bf16.msrb.mxu1 %v1466_v43 }
  0x54   : > { %1123 = vmatpush.bf16.msrb.mxu0 %v1490_v34 }
  0x56   : > { %1529 = vmatpush.bf16.msrb.mxu2 %v1487_v54 }
  0x57   : > { %609 = vmatpush.bf16.msrb.mxu1 %v1465_v27 }
  0x58   : > { %1124 = vmatpush.bf16.msrb.mxu0 %v1489_v35 }
  0x5a   : > { %600 = vmatmul.bf16.gmra.mxu1 %v443_v29  ;;  %1530 = vmatpush.bf16.msrb.mxu2 %v1486_v39 }
  0x5b   : > { %610 = vmatpush.bf16.msrb.mxu1 %v1464_v28  ;;  %590 = vmatmul.bf16.gmra.mxu0 %v439_v41 }
  0x5c   : > { %1125 = vmatpush.bf16.msrb.mxu0 %v1488_v53 }
  0x5e   : > { %1531 = vmatpush.bf16.msrb.mxu2 %v1485_v49 }
  0x5f   : > { %611 = vmatpush.bf16.msrb.mxu1 %v1463_v31 }
  0x60   : > { %1126 = vmatpush.bf16.msrb.mxu0 %v1487_v54 }
  0x61   : > { %942 = vmatmul.bf16.gmra.mxu2 %v785_v38 }
  0x63   : > { %971 = vmatmul.bf16.gmra.mxu3 %v786_v48  ;;  %612 = vmatpush.bf16.msrb.mxu1 %v1462_v32 }
  0x64   : > { %1127 = vmatpush.bf16.msrb.mxu0 %v1486_v39 }
  0x67   : > { %613 = vmatpush.bf16.msrb.mxu1 %v1461_v37 }
  0x68   : > { %1128 = vmatpush.bf16.msrb.mxu0 %v1485_v49 }
  0x6a   : > { %614 = vmatmul.bf16.vlgmr.msrb.gmra.mxu1 %v438_v19 }
  0x7a   : > { %619 = vmatmul.bf16.gmra.mxu1 %v440_v30 }
  0x8a   : > { %624 = vmatmul.bf16.gmra.mxu1 %v442_v42 }
  0x9a   : > { %629 = vmatmul.bf16.gmra.mxu1 %v444_v51 }
  0xb4   : > { %v928_v40 = vpop.f32.mrf.mxu2 }
  0xb5   : > { %v929_v6 = vadd.f32 %v2011_v45, %v928_v40 }
  0xb6   : > { %v957_v7 = vpop.f32.mrf.mxu3 }
  0xb7   : > { %v958_v10 = vadd.f32 %v957_v7, %v929_v6 }
  0xb9   : > { %v977_v52 = vmul.f32 %v958_v10, %v958_v10 }
  0xbb   : > { %v985_v55 = vmul.f32 %v977_v52, %v958_v10 }
  0xbc   : > { %v930_v56 = vpop.f32.mrf.mxu2 }
  0xbd   : > { %v993_v57 = vmul.f32 0.044715, %v985_v55  ;;  %v931_v58 = vadd.f32 %v2011_v45, %v930_v56 }
  0xbe   : > { %v959_v59 = vpop.f32.mrf.mxu3 }
  0xbf   : > { %v1001_v60 = vadd.f32 %v993_v57, %v958_v10  ;;  %v960_v12 = vadd.f32 %v959_v59, %v931_v58 }
  0xc1   : > { %v1009_v61 = vmul.f32 0.7978846, %v1001_v60  ;;  %v978_v62 = vmul.f32 %v960_v12, %v960_v12 }
  0xc3   : > { %v986_v63 = vmul.f32 %v978_v62, %v960_v12  ;;  %1591 = vtanh.f32 %v1009_v61 }
  0xc4   : > { %v933_v0 = vpop.f32.mrf.mxu2 }
  0xc5   : > { %v994_v1 = vmul.f32 0.044715, %v986_v63  ;;  %v934_v2 = vadd.f32 %v2011_v45, %v933_v0 }
  0xc6   : > { %v962_v3 = vpop.f32.mrf.mxu3 }
  0xc7   : > { %v1002_v4 = vadd.f32 %v994_v1, %v960_v12  ;;  %v963_v5 = vadd.f32 %v962_v3, %v934_v2 }
  0xc9   : > { %v1010_v46 = vmul.f32 0.7978846, %v1002_v4  ;;  %v979_v50 = vmul.f32 %v963_v5, %v963_v5  ;;  %v1592_v8 = vpop.eup %1591 }
  0xca   : > { %v1025_v13 = vadd.f32 1.0, %v1592_v8 }
  0xcb   : > { %1593 = vtanh.f32 %v1010_v46  ;;  %v987_v9 = vmul.f32 %v979_v50, %v963_v5 }
  0xcc   : > { %v935_v11 = vpop.f32.mrf.mxu2  ;;  %v1033_v23 = vmul.f32 0.5, %v1025_v13 }
  0xcd   : > { %v995_v14 = vmul.f32 0.044715, %v987_v9  ;;  %v936_v15 = vadd.f32 %v2011_v45, %v935_v11 }
  0xce   : > { %v964_v16 = vpop.f32.mrf.mxu3  ;;  %v1041_v48 = vmul.f32 %v1033_v23, %v958_v10 }
  0xcf   : > { %v1003_v17 = vadd.f32 %v995_v14, %v963_v5  ;;  %v965_v18 = vadd.f32 %v964_v16, %v936_v15 }
  0xd1   : > { %v1594_v19 = vpop.eup %1593  ;;  %v980_v20 = vmul.f32 %v965_v18, %v965_v18  ;;  %v1011_v21 = vmul.f32 0.7978846, %v1003_v17 }
  0xd2   : > { %v1026_v22 = vadd.f32 1.0, %v1594_v19 }
  0xd3   : > { %v988_v24 = vmul.f32 %v980_v20, %v965_v18  ;;  %1595 = vtanh.f32 %v1011_v21 }
  0xd4   : > { %v938_v25 = vpop.f32.mrf.mxu2  ;;  %v1034_v26 = vmul.f32 0.5, %v1026_v22 }
  0xd5   : > { %v996_v36 = vmul.f32 0.044715, %v988_v24  ;;  %v939_v38 = vadd.f32 %v2011_v45, %v938_v25 }
  0xd6   : > { %v967_v43 = vpop.f32.mrf.mxu3  ;;  %v1042_v27 = vmul.f32 %v1034_v26, %v960_v12 }
  0xd7   : > { %v1004_v28 = vadd.f32 %v996_v36, %v965_v18  ;;  %v968_v29 = vadd.f32 %v967_v43, %v939_v38 }
  0xd8   : > { %v1049_v31 = vpack.c.bf16 %v1042_v27, %v1041_v48  ;;  %v596_v27 = vpop.f32.mrf.mxu1 }
  0xd9   : > { %v981_v32 = vmul.f32 %v968_v29, %v968_v29  ;;  %v1012_v37 = vmul.f32 0.7978846, %v1004_v28  ;;  %v1596_v30 = vpop.eup %1595 }
  0xda   : > { %1129 = vmatmul.bf16.vlgmr.msrb.gmra.mxu0 %v1049_v31  ;;  %v1027_v35 = vadd.f32 1.0, %v1596_v30  ;;  %v586_v31 = vpop.f32.mrf.mxu0 }
  0xdb   : > { %v989_v47 = vmul.f32 %v981_v32, %v968_v29  ;;  %1597 = vtanh.f32 %v1012_v37 }
  0xdc   : > { %v940_v42 = vpop.f32.mrf.mxu2  ;;  %v1035_v6 = vmul.f32 0.5, %v1027_v35  ;;  %v1558_v35 = vld [vmem:[%s2057_s5] ss:$0 sm:$0xff] }
  0xdd   : > { %v997_v33 = vmul.f32 0.044715, %v989_v47  ;;  %v941_v44 = vadd.f32 %v2011_v45, %v940_v42 }
  0xde   : > { %v969_v34 = vpop.f32.mrf.mxu3  ;;  %v1043_v57 = vmul.f32 %v1035_v6, %v963_v5 }
  0xdf   : > { %v1005_v41 = vadd.f32 %v997_v33, %v968_v29  ;;  %v970_v51 = vadd.f32 %v969_v34, %v941_v44  ;;  %v1557_v34 = vld [vmem:[%s2059_s7] ss:$0 sm:$0xff] }
  0xe0   : > { %v598_v28 = vpop.f32.mrf.mxu1 }
  0xe1   : > { %v1598_v53 = vpop.eup %1597  ;;  %v982_v54 = vmul.f32 %v970_v51, %v970_v51  ;;  %v1013_v39 = vmul.f32 0.7978846, %v1005_v41  ;;  %v587_v41 = vadd.f32 %v1557_v34, %v586_v31 }
  0xe2   : > { %v1028_v40 = vadd.f32 1.0, %v1598_v53  ;;  %v588_v32 = vpop.f32.mrf.mxu0 }
  0xe3   : > { %v990_v7 = vmul.f32 %v982_v54, %v970_v51  ;;  %1599 = vtanh.f32 %v1013_v39 }
  0xe4   : > { %v943_v10 = vpop.f32.mrf.mxu2  ;;  %v1036_v49 = vmul.f32 0.5, %v1028_v40 }
  0xe5   : > { %v998_v52 = vmul.f32 0.044715, %v990_v7  ;;  %v944_v55 = vadd.f32 %v2011_v45, %v943_v10 }
  0xe6   : > { %v972_v56 = vpop.f32.mrf.mxu3  ;;  %v1044_v58 = vmul.f32 %v1036_v49, %v965_v18 }
  0xe7   : > { %v1006_v59 = vadd.f32 %v998_v52, %v970_v51  ;;  %v973_v60 = vadd.f32 %v972_v56, %v944_v55 }
  0xe8   : > { %v1050_v12 = vpack.c.bf16 %v1044_v58, %v1043_v57 }
  0xe9   : > { %v983_v61 = vmul.f32 %v973_v60, %v973_v60  ;;  %v1014_v62 = vmul.f32 0.7978846, %v1006_v59  ;;  %v1600_v63 = vpop.eup %1599 }
  0xea   : > { %1134 = vmatmul.bf16.gmra.mxu0 %v1050_v12  ;;  %v1029_v46 = vadd.f32 1.0, %v1600_v63  ;;  %v591_v30 = vpop.f32.mrf.mxu0 }
  0xeb   : > { %v991_v0 = vmul.f32 %v983_v61, %v973_v60  ;;  %1601 = vtanh.f32 %v1014_v62  ;;  %v592_v57 = vadd.f32 %v1557_v34, %v591_v30 }
  0xec   : > { %v945_v1 = vpop.f32.mrf.mxu2  ;;  %v1037_v15 = vmul.f32 0.5, %v1029_v46  ;;  %v599_v46 = vadd.f32 %v1557_v34, %v598_v28 }
  0xed   : > { %v999_v2 = vmul.f32 0.044715, %v991_v0  ;;  %v946_v3 = vadd.f32 %v2011_v45, %v945_v1 }
  0xee   : > { %v974_v4 = vpop.f32.mrf.mxu3  ;;  %v1045_v18 = vmul.f32 %v1037_v15, %v968_v29  ;;  %v601_v29 = vpop.f32.mrf.mxu1 }
  0xef   : > { %v1007_v50 = vadd.f32 %v999_v2, %v973_v60  ;;  %v975_v8 = vadd.f32 %v974_v4, %v946_v3  ;;  %v597_v4 = vadd.f32 %v1557_v34, %v596_v27 }
  0xf1   : > { %v1602_v9 = vpop.eup %1601  ;;  %v1015_v5 = vmul.f32 0.7978846, %v1007_v50  ;;  %v984_v11 = vmul.f32 %v975_v8, %v975_v8 }
  0xf2   : > { %v1030_v14 = vadd.f32 1.0, %v1602_v9  ;;  %v593_v42 = vpop.f32.mrf.mxu0 }
  0xf3   : > { %v992_v16 = vmul.f32 %v984_v11, %v975_v8  ;;  %1603 = vtanh.f32 %v1015_v5  ;;  %v594_v58 = vadd.f32 %v1557_v34, %v593_v42 }
  0xf4   : > { %v1038_v13 = vmul.f32 0.5, %v1030_v14 }
  0xf5   : > { %v1000_v17 = vmul.f32 0.044715, %v992_v16 }
  0xf6   : > { %v1046_v19 = vmul.f32 %v1038_v13, %v970_v51  ;;  %v603_v37 = vpop.f32.mrf.mxu1  ;;  %v589_v51 = vadd.f32 %v1557_v34, %v588_v32 }
  0xf7   : > { %v1008_v20 = vadd.f32 %v1000_v17, %v975_v8 }
  0xf8   : > { %v1051_v21 = vpack.c.bf16 %v1046_v19, %v1045_v18  ;;  %v602_v19 = vadd.f32 %v1557_v34, %v601_v29 }
  0xf9   : > { %v1016_v22 = vmul.f32 0.7978846, %v1008_v20  ;;  %v1604_v45 = vpop.eup %1603  ;;  %v604_v20 = vadd.f32 %v1557_v34, %v603_v37 }
  0xfa   : > { %1139 = vmatmul.bf16.gmra.mxu0 %v1051_v21  ;;  %v1031_v23 = vadd.f32 1.0, %v1604_v45 }
  0xfb   : > { %1605 = vtanh.f32 %v1016_v22 }
  0xfc   : > { %v1039_v26 = vmul.f32 0.5, %v1031_v23 }
  0xfe   : > { %v1047_v38 = vmul.f32 %v1039_v26, %v973_v60  ;;  %v615_v47 = vpop.f32.mrf.mxu1 }
  0xff   : > { %v616_v40 = vadd.f32 %v615_v47, %v587_v41 }
 0x101   : > { %v1606_v24 = vpop.eup %1605 }
 0x102   : > { %v1032_v25 = vadd.f32 1.0, %v1606_v24 }
 0x104   : > { %v1040_v36 = vmul.f32 0.5, %v1032_v25 }
 0x106   : > { %v1048_v43 = vmul.f32 %v1040_v36, %v975_v8  ;;  %v617_v33 = vpop.f32.mrf.mxu1 }
 0x107   : > { %v618_v6 = vadd.f32 %v617_v33, %v589_v51 }
 0x108   : > { %v1052_v48 = vpack.c.bf16 %v1048_v43, %v1047_v38 }
 0x10a   : > { %1144 = vmatmul.bf16.vlgmr.msrb.gmra.mxu2 %v1052_v48 }
 0x10e   : > { %v620_v54 = vpop.f32.mrf.mxu1 }
 0x10f   : > { %v621_v12 = vadd.f32 %v620_v54, %v592_v57 }
 0x116   : > { %v622_v56 = vpop.f32.mrf.mxu1 }
 0x117   : > { %v623_v61 = vadd.f32 %v622_v56, %v594_v58 }
 0x11e   : > { %v625_v1 = vpop.f32.mrf.mxu1 }
 0x11f   : > { %v626_v5 = vadd.f32 %v625_v1, %v597_v4 }
 0x126   : > { %v627_v50 = vpop.f32.mrf.mxu1 }
 0x127   : > { %v628_v11 = vadd.f32 %v627_v50, %v599_v46 }
 0x12e   : > { %v630_v17 = vpop.f32.mrf.mxu1 }
 0x12f   : > { %v631_v23 = vadd.f32 %v630_v17, %v602_v19 }
 0x136   : > { %v632_v21 = vpop.f32.mrf.mxu1 }
 0x137   : > { %v633_v24 = vadd.f32 %v632_v21, %v604_v20 }
 0x157   : > { %v1130_v44 = vpop.f32.mrf.mxu0 }
 0x158   : > { %v1131_v53 = vadd.f32 %v1558_v35, %v1130_v44 }
 0x15a   : > { %v1150_v10 = vadd.f32 %v1131_v53, %v616_v40 }
 0x15f   : > { %v1132_v39 = vpop.f32.mrf.mxu0 }
 0x160   : > { %v1133_v7 = vadd.f32 %v1558_v35, %v1132_v39 }
 0x162   : > { %v1151_v49 = vadd.f32 %v1133_v7, %v618_v6 }
 0x164   : > { %v1496_v52 = vpack.c.bf16 %v1151_v49, %v1150_v10 }
 0x166   : > { %1497 = vst [vmem:[%s2037_s16] sm:$0xff] %v1496_v52  }
 0x167   : > { %v1135_v55 = vpop.f32.mrf.mxu0 }
 0x168   : > { %v1136_v59 = vadd.f32 %v1558_v35, %v1135_v55 }
 0x16a   : > { %v1152_v63 = vadd.f32 %v1136_v59, %v621_v12 }
 0x16f   : > { %v1137_v60 = vpop.f32.mrf.mxu0 }
 0x170   : > { %v1138_v62 = vadd.f32 %v1558_v35, %v1137_v60 }
 0x172   : > { %v1153_v0 = vadd.f32 %v1138_v62, %v623_v61 }
 0x174   : > { %v1501_v2 = vpack.c.bf16 %v1153_v0, %v1152_v63 }
 0x176   : > { %1513 = vst [vmem:[%s2037_s16 + $0x8] sm:$0xff] %v1501_v2  }
 0x177   : > { %v1140_v3 = vpop.f32.mrf.mxu0 }
 0x178   : > { %v1141_v8 = vadd.f32 %v1558_v35, %v1140_v3 }
 0x17a   : > { %v1154_v15 = vadd.f32 %v1141_v8, %v626_v5 }
 0x17f   : > { %v1142_v9 = vpop.f32.mrf.mxu0 }
 0x180   : > { %v1143_v14 = vadd.f32 %v1558_v35, %v1142_v9 }
 0x182   : > { %v1155_v16 = vadd.f32 %v1143_v14, %v628_v11 }
 0x184   : > { %v1506_v13 = vpack.c.bf16 %v1155_v16, %v1154_v15 }
 0x186   : > { %1514 = vst [vmem:[%s2037_s16 + $0x10] sm:$0xff] %v1506_v13  }
 0x18d   : > { %v1145_v18 = vpop.f32.mrf.mxu2 }
 0x18e   : > { %v1146_v22 = vadd.f32 %v1558_v35, %v1145_v18 }
 0x190   : > { %v1156_v26 = vadd.f32 %v1146_v22, %v631_v23 }
 0x195   : > { %v1147_v45 = vpop.f32.mrf.mxu2 }
 0x196   : > { %v1148_v25 = vadd.f32 %v1558_v35, %v1147_v45 }
 0x198   : > { %v1157_v36 = vadd.f32 %v1148_v25, %v633_v24 }
 0x19a   : > { %v1511_v38 = vpack.c.bf16 %v1157_v36, %v1156_v26 }
 0x19c   : > { %1515 = vst [vmem:[%s2037_s16 + $0x18] sm:$0xff] %v1511_v38  }
 0x19d PF: > { %s18_s29 = sadd.s32 1, %s1629_s29   ;;  %s2061_s27 = smov %s1625_s28 }
 0x19e   : > { %p15_p5 = scmp.ge.s32.totalorder %s18_s29, 4   ;;  %s2062_s28 = smov %s2064_s30 }
 0x1a0   :  { %17 = sbr.rel (!%p15_p5) target bundleno = 2 (0x2), region = 86 }

// kernel: _lambda_.19
= control target key start
LH: loop header
LB: loop body
LE: loop exit
PB: predicated region body
PF: predicated region fallthrough
CT: control target
= control target key end

     0   :  { %s2342_s27 = smov 0   ;;  %s2344_s28 = smov 0   ;;  %s3167_s0 = inlined_call_operand.vmem [shape: bf16[2,256,128], index: 0, kind: input, shape index: {}]   ;;  %s3168_s1 = inlined_call_operand.vmem [shape: f32[2,2,128], index: 1, kind: input, shape index: {}]   ;;  %s3169_s2 = inlined_call_operand.vmem [shape: bf16[128,128], index: 2, kind: input, shape index: {}]   ;;  %s3170_s3 = inlined_call_operand.vmem [shape: f32[1,128], index: 3, kind: input, shape index: {}]   ;;  %s3171_s4 = inlined_call_operand.vmem [shape: bf16[128,128], index: 4, kind: input, shape index: {}]   ;;  %s3172_s5 = inlined_call_operand.vmem [shape: f32[1,128], index: 5, kind: input, shape index: {}]   ;;  %s3173_s6 = inlined_call_operand.vmem [shape: bf16[128,128], index: 6, kind: input, shape index: {}]   ;;  %s3174_s7 = inlined_call_operand.vmem [shape: f32[1,128], index: 7, kind: input, shape index: {}]   ;;  %s3175_s8 = inlined_call_operand.vmem [shape: bf16[2,256,128], index: 8, kind: output, shape index: {}]  }
   0x1   :  { %s2346_s29 = smov 0  }
   0x2 LB: > { %s30_s30 = sadd.s32 1, %s2291_s28  ;;  %p1788_p0 = scmp.ge.s32.totalorder %s2295_s29, 1  ;;  %s2295_s29 = sphi %s2346_s29, %s18_s29   ;;  %s2291_s28 = sphi %s2344_s28, %s3177_s28   ;;  %s2287_s27 = sphi %s2342_s27, %s3176_s27  }
   0x3   : > { %p32_p1 = scmp.ge.s32.totalorder %s30_s30, 2  ;;  %p292_p2 = scmp.lt.s32.totalorder %s2295_s29, 3 }
   0x5   : > { %s3179_s30 = smov (%p32_p1, %s30_s30), 0  ;;  %p293_p3 = pnand %p1788_p0, %p292_p2 }
   0x6   : > { %p339_p4 = scmp.lt.s32.totalorder (!%p293_p3), %s2287_s27, 1 }
   0x7   : > { %296 = sbr.rel (%p293_p3) target bundleno = 535 (0x217), region = 52 }
   0xc   : > { %v1901_v0 = vld [vmem:[%s3173_s6 + $0x38] sm:$0xff]  ;;  %v1900_v2 = vld [vmem:[%s3173_s6 + $0x30] sm:$0xff]  ;;  %s3181_s27 = smov (!%p339_p4, %s2287_s27), 1  ;;  %v1899_v4 = vld [vmem:[%s3173_s6 + $0x28] sm:$0xff] }
   0xd   : > { %v2366_v1 = vld [vmem:[%s3169_s2 + $0x38] sm:$0xff]  ;;  %2092 = vmatpush.bf16.msra.mxu3 %v1901_v0  ;;  %v2375_v3 = vld [vmem:[%s3169_s2 + $0x30] sm:$0xff]  ;;  %578 = vmatpush.bf16.msra.mxu0 %v1901_v0  ;;  %s1892_s17 = sshll.u32 %s3181_s27, 7  ;;  %s1791_s18 = sshll.u32 %s3181_s27, 1  ;;  %v2398_v5 = vld [vmem:[%s3169_s2 + $0x28] sm:$0xff] }
   0xe   : > { %1039 = vmatpush.bf16.msra.mxu1 %v2366_v1  ;;  %s2389_s23 = scalar_lea.vmem %s3167_s0, %s1892_s17  ;;  %s351_s26 = scalar_lea.vmem %s3168_s1, %s1791_s18  ;;  %v1898_v12 = vld [vmem:[%s3173_s6 + $0x20] sm:$0xff]  ;;  %v1897_v23 = vld [vmem:[%s3173_s6 + $0x18] sm:$0xff]  ;;  %v1896_v38 = vld [vmem:[%s3173_s6 + $0x10] sm:$0xff] }
   0xf   : > { %v2400_v6 = vld [vmem:[%s351_s26 + $0x1] ss:$0 sm:$0xff]  ;;  %v2403_v8 = vld [vmem:[%s351_s26] ss:$0 sm:$0xff]  ;;  %v2062_v11 = vld [vmem:[%s2389_s23 + $0x8] sm:$0xff]   ;;  %s3063_s24 = scalar_lea.vmem %s3175_s8, %s1892_s17 }
  0x10   : > { %v1919_v7 = vld [vmem:[%s2389_s23] sm:$0xff]   ;;  %v1924_v16 = vunpack.c.l.bf16 %v2062_v11  ;;  %v1925_v17 = vunpack.c.h.bf16 %v2062_v11  ;;  %v2063_v18 = vld [vmem:[%s2389_s23 + $0x10] sm:$0xff]   ;;  %v2433_v24 = vld [vmem:[%s3169_s2 + $0x18] sm:$0xff] }
  0x11   : > { %2093 = vmatpush.bf16.msra.mxu3 %v1900_v2  ;;  %579 = vmatpush.bf16.msra.mxu0 %v1900_v2  ;;  %v1920_v9 = vunpack.c.l.bf16 %v1919_v7  ;;  %v1921_v10 = vunpack.c.h.bf16 %v1919_v7  ;;  %v2413_v13 = vld [vmem:[%s3169_s2 + $0x20] sm:$0xff]  ;;  %v1928_v29 = vunpack.c.l.bf16 %v2063_v18  ;;  %v1929_v31 = vunpack.c.h.bf16 %v2063_v18  ;;  %v2459_v39 = vld [vmem:[%s3169_s2 + $0x10] sm:$0xff]  ;;  %v1895_v52 = vld [vmem:[%s3173_s6 + $0x8] sm:$0xff] }
  0x12   : > { %1040 = vmatpush.bf16.msra.mxu1 %v2375_v3  ;;  %v431_v21 = vmul.f32 %v2400_v6, %v1924_v16  ;;  %v432_v22 = vmul.f32 %v2400_v6, %v1925_v17  ;;  %v2073_v25 = vld [vmem:[%s2389_s23 + $0x60] sm:$0xff]   ;;  %v2476_v53 = vld [vmem:[%s3169_s2 + $0x8] sm:$0xff] }
  0x13   : > { %v429_v14 = vmul.f32 %v2400_v6, %v1920_v9  ;;  %v430_v15 = vmul.f32 %v2400_v6, %v1921_v10  ;;  %v1968_v35 = vunpack.c.l.bf16 %v2073_v25  ;;  %v1969_v36 = vunpack.c.h.bf16 %v2073_v25  ;;  %v1894_v62 = vld [vmem:[%s3173_s6] sm:$0xff]  ;;  %v2064_v9 = vld [vmem:[%s2389_s23 + $0x18] sm:$0xff]  }
  0x14   : > { %v2441_v28 = vadd.f32 %v2403_v8, %v431_v21  ;;  %v2444_v30 = vadd.f32 %v2403_v8, %v432_v22  ;;  %v433_v43 = vmul.f32 %v2400_v6, %v1928_v29  ;;  %v434_v45 = vmul.f32 %v2400_v6, %v1929_v31  ;;  %v2499_v63 = vld [vmem:[%s3169_s2] sm:$0xff] }
  0x15   : > { %2094 = vmatpush.bf16.msra.mxu3 %v1899_v4  ;;  %580 = vmatpush.bf16.msra.mxu0 %v1899_v4  ;;  %v2419_v19 = vadd.f32 %v2403_v8, %v429_v14  ;;  %v2422_v20 = vadd.f32 %v2403_v8, %v430_v15  ;;  %v453_v49 = vmul.f32 %v2400_v6, %v1968_v35  ;;  %v1932_v15 = vunpack.c.l.bf16 %v2064_v9 }
  0x16   : > { %1041 = vmatpush.bf16.msra.mxu1 %v2398_v5  ;;  %v669_v34 = vmul.f32 %v2441_v28, %v2441_v28  ;;  %v670_v37 = vmul.f32 %v2444_v30, %v2444_v30  ;;  %v454_v50 = vmul.f32 %v2400_v6, %v1969_v36  ;;  %v2480_v57 = vadd.f32 %v2403_v8, %v433_v43 }
  0x17   : > { %v667_v26 = vmul.f32 %v2419_v19, %v2419_v19  ;;  %v668_v27 = vmul.f32 %v2422_v20, %v2422_v20  ;;  %v2484_v59 = vadd.f32 %v2403_v8, %v434_v45  ;;  %v2487_v60 = vadd.f32 %v2403_v8, %v453_v49 }
  0x18   : > { %v701_v42 = vmul.f32 %v669_v34, %v2441_v28  ;;  %v702_v44 = vmul.f32 %v670_v37, %v2444_v30  ;;  %v2490_v61 = vadd.f32 %v2403_v8, %v454_v50  ;;  %v671_v2 = vmul.f32 %v2480_v57, %v2480_v57 }
  0x19   : > { %2095 = vmatpush.bf16.msra.mxu3 %v1898_v12  ;;  %581 = vmatpush.bf16.msra.mxu0 %v1898_v12  ;;  %v699_v32 = vmul.f32 %v667_v26, %v2419_v19  ;;  %v700_v33 = vmul.f32 %v668_v27, %v2422_v20  ;;  %v672_v7 = vmul.f32 %v2484_v59, %v2484_v59  ;;  %v2074_v12 = vld [vmem:[%s2389_s23 + $0x68] sm:$0xff]   ;;  %v1933_v21 = vunpack.c.h.bf16 %v2064_v9 }
  0x1a   : > { %1042 = vmatpush.bf16.msra.mxu1 %v2413_v13  ;;  %v733_v48 = vmul.f32 0.044715, %v701_v42  ;;  %v734_v51 = vmul.f32 0.044715, %v702_v44  ;;  %v506_v10 = vpack.c.bf16 %v2490_v61, %v2487_v60  ;;  %v703_v14 = vmul.f32 %v671_v2, %v2480_v57 }
  0x1b   : > { %v731_v40 = vmul.f32 0.044715, %v699_v32  ;;  %v732_v41 = vmul.f32 0.044715, %v700_v33  ;;  %v704_v18 = vmul.f32 %v672_v7, %v2484_v59  ;;  %v1972_v25 = vunpack.c.l.bf16 %v2074_v12 }
  0x1c   : > { %v765_v56 = vadd.f32 %v733_v48, %v2441_v28  ;;  %v766_v58 = vadd.f32 %v734_v51, %v2444_v30  ;;  %v1973_v26 = vunpack.c.h.bf16 %v2074_v12  ;;  %v735_v29 = vmul.f32 0.044715, %v703_v14  ;;  %v2065_v51 = vld [vmem:[%s2389_s23 + $0x20] sm:$0xff]  }
  0x1d   : > { %2096 = vmatpush.bf16.msra.mxu3 %v1897_v23  ;;  %582 = vmatpush.bf16.msra.mxu0 %v1897_v23  ;;  %v763_v46 = vadd.f32 %v731_v40, %v2419_v19  ;;  %v764_v47 = vadd.f32 %v732_v41, %v2422_v20  ;;  %v435_v31 = vmul.f32 %v2400_v6, %v1932_v15  ;;  %v736_v33 = vmul.f32 0.044715, %v704_v18 }
  0x1e   : > { %1043 = vmatpush.bf16.msra.mxu1 %v2433_v24  ;;  %v797_v0 = vmul.f32 0.7978846, %v765_v56  ;;  %v798_v4 = vmul.f32 0.7978846, %v766_v58  ;;  %v455_v37 = vmul.f32 %v2400_v6, %v1972_v25  ;;  %v767_v41 = vadd.f32 %v735_v29, %v2480_v57  ;;  %v2075_v56 = vld [vmem:[%s2389_s23 + $0x70] sm:$0xff]  }
  0x1f   : > { %v795_v54 = vmul.f32 0.7978846, %v763_v46  ;;  %v796_v55 = vmul.f32 0.7978846, %v764_v47  ;;  %v2522_v42 = vadd.f32 %v2403_v8, %v435_v31  ;;  %v768_v43 = vadd.f32 %v736_v33, %v2484_v59 }
  0x20   : > { %v2530_v46 = vadd.f32 %v2403_v8, %v455_v37  ;;  %v799_v48 = vmul.f32 0.7978846, %v767_v41  ;;  %v1976_v7 = vunpack.c.l.bf16 %v2075_v56  ;;  %v1977_v9 = vunpack.c.h.bf16 %v2075_v56 }
  0x21   : > { %2097 = vmatpush.bf16.msra.mxu3 %v1896_v38  ;;  %583 = vmatpush.bf16.msra.mxu0 %v1896_v38  ;;  %2145 = vtanh.f32 %v795_v54  ;;  %v456_v38 = vmul.f32 %v2400_v6, %v1973_v26  ;;  %v673_v49 = vmul.f32 %v2522_v42, %v2522_v42  ;;  %v800_v50 = vmul.f32 0.7978846, %v768_v43 }
  0x22   : > { %1044 = vmatpush.bf16.msra.mxu1 %v2459_v39  ;;  %2147 = vtanh.f32 %v796_v55  ;;  %v691_v14 = vmul.f32 %v2487_v60, %v2487_v60 }
  0x23   : > { %2149 = vtanh.f32 %v797_v0  ;;  %v2533_v47 = vadd.f32 %v2403_v8, %v456_v38  ;;  %v705_v58 = vmul.f32 %v673_v49, %v2522_v42  ;;  %v2066_v38 = vld [vmem:[%s2389_s23 + $0x28] sm:$0xff]  }
  0x24   : > { %2151 = vtanh.f32 %v798_v4  ;;  %v723_v26 = vmul.f32 %v691_v14, %v2487_v60  ;;  %v1940_v49 = vunpack.c.l.bf16 %v2066_v38 }
  0x25   : > { %2098 = vmatpush.bf16.msra.mxu3 %v1895_v52  ;;  %584 = vmatpush.bf16.msra.mxu0 %v1895_v52  ;;  %v507_v55 = vpack.c.bf16 %v2533_v47, %v2530_v46  ;;  %2153 = vtanh.f32 %v799_v48 }
  0x26   : > { %1045 = vmatpush.bf16.msra.mxu1 %v2476_v53  ;;  %2155 = vtanh.f32 %v800_v50 }
  0x27   : > { %v2146_v11 = vpop.eup %2145 }
  0x28   : > { %v2148_v16 = vpop.eup %2147  ;;  %v859_v17 = vadd.f32 1.0, %v2146_v11 }
  0x29   : > { %2099 = vmatpush.bf16.msra.mxu3 %v1894_v62  ;;  %585 = vmatpush.bf16.msra.mxu0 %v1894_v62  ;;  %v860_v22 = vadd.f32 1.0, %v2148_v16  ;;  %v2150_v34 = vpop.eup %2149  ;;  %v1936_v62 = vunpack.c.l.bf16 %v2065_v51 }
  0x2a   : > { %1046 = vmatpush.bf16.msra.mxu1 %v2499_v63  ;;  %v891_v23 = vmul.f32 0.5, %v859_v17  ;;  %v2152_v36 = vpop.eup %2151  ;;  %v861_v44 = vadd.f32 1.0, %v2150_v34  ;;  %v692_v17 = vmul.f32 %v2490_v61, %v2490_v61 }
  0x2b   : > { %v892_v27 = vmul.f32 0.5, %v860_v22  ;;  %v862_v45 = vadd.f32 1.0, %v2152_v36  ;;  %v437_v11 = vmul.f32 %v2400_v6, %v1936_v62  ;;  %v2154_v15 = vpop.eup %2153  ;;  %v458_v22 = vmul.f32 %v2400_v6, %v1977_v9 }
  0x2c   : > { %646 = vmatmul.bf16.vlgmr.msra.gmra.mxu3 %v506_v10  ;;  %v923_v32 = vmul.f32 %v891_v23, %v2419_v19  ;;  %v893_v52 = vmul.f32 0.5, %v861_v44  ;;  %v737_v10 = vmul.f32 0.044715, %v705_v58  ;;  %v2156_v18 = vpop.eup %2155  ;;  %v863_v29 = vadd.f32 1.0, %v2154_v15 }
  0x2d   : > { %2100 = vmatpush.bf16.msrb.mxu3 %v2366_v1  ;;  %v436_v1 = vmul.f32 %v2400_v6, %v1933_v21  ;;  %v924_v35 = vmul.f32 %v892_v27, %v2422_v20  ;;  %v894_v54 = vmul.f32 0.5, %v862_v45  ;;  %v457_v21 = vmul.f32 %v2400_v6, %v1976_v7  ;;  %v2076_v45 = vld [vmem:[%s2389_s23 + $0x78] sm:$0xff]  }
  0x2e   : > { %v925_v2 = vmul.f32 %v893_v52, %v2441_v28  ;;  %v769_v23 = vadd.f32 %v737_v10, %v2522_v42  ;;  %v2560_v25 = vadd.f32 %v2403_v8, %v437_v11  ;;  %v864_v31 = vadd.f32 1.0, %v2156_v18 }
  0x2f   : > { %v955_v40 = vpack.c.bf16 %v924_v35, %v923_v32  ;;  %v926_v4 = vmul.f32 %v894_v54, %v2444_v30  ;;  %v724_v32 = vmul.f32 %v692_v17, %v2490_v61  ;;  %v2570_v33 = vadd.f32 %v2403_v8, %v457_v21 }
  0x30   : > { %v801_v34 = vmul.f32 0.7978846, %v769_v23  ;;  %v755_v36 = vmul.f32 0.044715, %v723_v26  ;;  %v896_v41 = vmul.f32 0.5, %v864_v31  ;;  %v1981_v56 = vunpack.c.h.bf16 %v2076_v45 }
  0x31   : > { %2101 = vmatpush.bf16.msrb.mxu3 %v2375_v3  ;;  %v2527_v3 = vadd.f32 %v2403_v8, %v436_v1  ;;  %1047 = vmatmul.bf16.vlgmr.msra.gmra.mxu1 %v955_v40  ;;  %v956_v16 = vpack.c.bf16 %v926_v4, %v925_v2  ;;  %v2573_v1 = vadd.f32 %v2403_v8, %v458_v22  ;;  %v895_v40 = vmul.f32 0.5, %v863_v29 }
  0x32   : > { %v756_v43 = vmul.f32 0.044715, %v724_v32  ;;  %2157 = vtanh.f32 %v801_v34  ;;  %v787_v50 = vadd.f32 %v755_v36, %v2487_v60  ;;  %v928_v52 = vmul.f32 %v896_v41, %v2484_v59  ;;  %v2067_v36 = vld [vmem:[%s2389_s23 + $0x30] sm:$0xff]  }
  0x33   : > { %v508_v44 = vpack.c.bf16 %v2573_v1, %v2570_v33  ;;  %v439_v62 = vmul.f32 %v2400_v6, %v1940_v49  ;;  %v693_v2 = vmul.f32 %v2530_v46, %v2530_v46  ;;  %v694_v11 = vmul.f32 %v2533_v47, %v2533_v47 }
  0x34   : > { %v788_v54 = vadd.f32 %v756_v43, %v2490_v61 }
  0x35   : > { %2102 = vmatpush.bf16.msrb.mxu3 %v2398_v5  ;;  %v674_v5 = vmul.f32 %v2527_v3, %v2527_v3  ;;  %v725_v18 = vmul.f32 %v693_v2, %v2530_v46 }
  0x36   : > { %v820_v10 = vmul.f32 0.7978846, %v788_v54 }
  0x37   : > { %v706_v0 = vmul.f32 %v674_v5, %v2527_v3  ;;  %v1941_v5 = vunpack.c.h.bf16 %v2066_v38 }
  0x38   : > { %v2158_v7 = vpop.eup %2157 }
  0x39   : > { %2103 = vmatpush.bf16.msrb.mxu3 %v2413_v13  ;;  %v1937_v13 = vunpack.c.h.bf16 %v2065_v51  ;;  %v738_v12 = vmul.f32 0.044715, %v706_v0  ;;  %v927_v51 = vmul.f32 %v895_v40, %v2480_v57  ;;  %v819_v0 = vmul.f32 0.7978846, %v787_v50 }
  0x3a   : > { %v440_v4 = vmul.f32 %v2400_v6, %v1941_v5  ;;  %v865_v22 = vadd.f32 1.0, %v2158_v7 }
  0x3b   : > { %v957_v9 = vpack.c.bf16 %v928_v52, %v927_v51 }
  0x3c   : > { %651 = vmatmul.bf16.gmra.mxu3 %v507_v55  ;;  %v1980_v55 = vunpack.c.l.bf16 %v2076_v45  ;;  %v2605_v21 = vadd.f32 %v2403_v8, %v440_v4 }
  0x3d   : > { %2104 = vmatpush.bf16.msrb.mxu3 %v2433_v24  ;;  %v438_v24 = vmul.f32 %v2400_v6, %v1937_v13 }
  0x3e   : > { %v459_v14 = vmul.f32 %v2400_v6, %v1980_v55 }
  0x3f   : > { %v2566_v27 = vadd.f32 %v2403_v8, %v438_v24  ;;  %v460_v24 = vmul.f32 %v2400_v6, %v1981_v56 }
  0x40   : > { %v2609_v26 = vadd.f32 %v2403_v8, %v459_v14 }
  0x41   : > { %2105 = vmatpush.bf16.msrb.mxu3 %v2459_v39  ;;  %v770_v39 = vadd.f32 %v738_v12, %v2527_v3  ;;  %1052 = vmatmul.bf16.gmra.mxu1 %v956_v16  ;;  %v676_v37 = vmul.f32 %v2566_v27, %v2566_v27  ;;  %v2600_v16 = vadd.f32 %v2403_v8, %v439_v62 }
  0x42   : > { %v2612_v29 = vadd.f32 %v2403_v8, %v460_v24 }
  0x43   : > { %v802_v35 = vmul.f32 0.7978846, %v770_v39  ;;  %v726_v39 = vmul.f32 %v694_v11, %v2533_v47  ;;  %v677_v32 = vmul.f32 %v2600_v16, %v2600_v16 }
  0x44   : > { %v509_v43 = vpack.c.bf16 %v2612_v29, %v2609_v26 }
  0x45   : > { %2106 = vmatpush.bf16.msrb.mxu3 %v2476_v53  ;;  %v675_v53 = vmul.f32 %v2560_v25, %v2560_v25  ;;  %2159 = vtanh.f32 %v802_v35  ;;  %v678_v35 = vmul.f32 %v2605_v21, %v2605_v21  ;;  %v758_v40 = vmul.f32 0.044715, %v726_v39 }
  0x46   : > { %2161 = vtanh.f32 %v819_v0  ;;  %v709_v45 = vmul.f32 %v677_v32, %v2600_v16 }
  0x47   : > { %v707_v48 = vmul.f32 %v675_v53, %v2560_v25  ;;  %2163 = vtanh.f32 %v820_v10  ;;  %v757_v53 = vmul.f32 0.044715, %v725_v18  ;;  %v710_v50 = vmul.f32 %v678_v35, %v2605_v21 }
  0x48   : > { %v790_v52 = vadd.f32 %v758_v40, %v2533_v47  ;;  %v741_v56 = vmul.f32 0.044715, %v709_v45  ;;  %v696_v10 = vmul.f32 %v2573_v1, %v2573_v1  ;;  %v2068_v40 = vld [vmem:[%s2389_s23 + $0x38] sm:$0xff]  }
  0x49   : > { %2107 = vmatpush.bf16.msrb.mxu3 %v2499_v63  ;;  %v708_v63 = vmul.f32 %v676_v37, %v2566_v27  ;;  %v739_v58 = vmul.f32 0.044715, %v707_v48  ;;  %v897_v37 = vmul.f32 0.5, %v865_v22  ;;  %v1944_v48 = vunpack.c.l.bf16 %v2067_v36 }
  0x4a   : > { %v789_v49 = vadd.f32 %v757_v53, %v2530_v46  ;;  %v742_v0 = vmul.f32 0.044715, %v710_v50  ;;  %v773_v24 = vadd.f32 %v741_v56, %v2600_v16 }
  0x4b   : > { %v740_v13 = vmul.f32 0.044715, %v708_v63  ;;  %v2160_v12 = vpop.eup %2159  ;;  %v771_v15 = vadd.f32 %v739_v58, %v2560_v25  ;;  %v1945_v63 = vunpack.c.h.bf16 %v2067_v36  ;;  %v929_v5 = vmul.f32 %v897_v37, %v2522_v42 }
  0x4c   : > { %656 = vmatmul.bf16.gmra.mxu3 %v508_v44  ;;  %v866_v23 = vadd.f32 1.0, %v2160_v12  ;;  %v2162_v41 = vpop.eup %2161  ;;  %v441_v58 = vmul.f32 %v2400_v6, %v1944_v48  ;;  %v821_v62 = vmul.f32 0.7978846, %v789_v49  ;;  %v805_v53 = vmul.f32 0.7978846, %v773_v24 }
  0x4d   : > { %v772_v17 = vadd.f32 %v740_v13, %v2566_v27  ;;  %v803_v31 = vmul.f32 0.7978846, %v771_v15  ;;  %v2164_v44 = vpop.eup %2163  ;;  %v883_v54 = vadd.f32 1.0, %v2162_v41  ;;  %v695_v13 = vmul.f32 %v2570_v33, %v2570_v33 }
  0x4e   : > { %v898_v38 = vmul.f32 0.5, %v866_v23  ;;  %v884_v55 = vadd.f32 1.0, %v2164_v44  ;;  %v442_v2 = vmul.f32 %v2400_v6, %v1945_v63  ;;  %v2635_v15 = vadd.f32 %v2403_v8, %v441_v58 }
  0x4f   : > { %v804_v34 = vmul.f32 0.7978846, %v772_v17  ;;  %2165 = vtanh.f32 %v803_v31  ;;  %v915_v12 = vmul.f32 0.5, %v883_v54  ;;  %v774_v17 = vadd.f32 %v742_v0, %v2605_v21 }
  0x50   : > { %v930_v51 = vmul.f32 %v898_v38, %v2527_v3  ;;  %v916_v14 = vmul.f32 0.5, %v884_v55  ;;  %v727_v18 = vmul.f32 %v695_v13, %v2570_v33  ;;  %v2640_v22 = vadd.f32 %v2403_v8, %v442_v2 }
  0x51   : > { %1057 = vmatmul.bf16.gmra.mxu1 %v957_v9  ;;  %2167 = vtanh.f32 %v804_v34  ;;  %v822_v9 = vmul.f32 0.7978846, %v790_v52  ;;  %v728_v31 = vmul.f32 %v696_v10, %v2573_v1  ;;  %v947_v32 = vmul.f32 %v915_v12, %v2487_v60 }
  0x52   : > { %v958_v7 = vpack.c.bf16 %v930_v51, %v929_v5  ;;  %2169 = vtanh.f32 %v821_v62  ;;  %v948_v34 = vmul.f32 %v916_v14, %v2490_v61  ;;  %v679_v35 = vmul.f32 %v2635_v15, %v2635_v15 }
  0x53   : > { %2171 = vtanh.f32 %v822_v9  ;;  %v806_v36 = vmul.f32 0.7978846, %v774_v17  ;;  %v759_v37 = vmul.f32 0.044715, %v727_v18  ;;  %v680_v38 = vmul.f32 %v2640_v22, %v2640_v22 }
  0x54   : > { %v760_v44 = vmul.f32 0.044715, %v728_v31  ;;  %v967_v48 = vpack.c.bf16 %v948_v34, %v947_v32  ;;  %2173 = vtanh.f32 %v805_v53  ;;  %v711_v60 = vmul.f32 %v679_v35, %v2635_v15 }
  0x55   : > { %v2166_v4 = vpop.eup %2165  ;;  %v1948_v61 = vunpack.c.l.bf16 %v2068_v40  ;;  %2175 = vtanh.f32 %v806_v36  ;;  %v791_v50 = vadd.f32 %v759_v37, %v2570_v33  ;;  %v712_v63 = vmul.f32 %v680_v38, %v2640_v22 }
  0x56   : > { %v867_v23 = vadd.f32 1.0, %v2166_v4  ;;  %v1949_v5 = vunpack.c.h.bf16 %v2068_v40  ;;  %v792_v54 = vadd.f32 %v760_v44, %v2573_v1  ;;  %v743_v58 = vmul.f32 0.044715, %v711_v60  ;;  %v2069_v44 = vld [vmem:[%s2389_s23 + $0x40] sm:$0xff]  }
  0x57   : > { %v2168_v11 = vpop.eup %2167  ;;  %v443_v62 = vmul.f32 %v2400_v6, %v1948_v61  ;;  %v823_v0 = vmul.f32 0.7978846, %v791_v50  ;;  %v744_v13 = vmul.f32 0.044715, %v712_v63  ;;  %v697_v2 = vmul.f32 %v2609_v26, %v2609_v26 }
  0x58   : > { %v868_v39 = vadd.f32 1.0, %v2168_v11  ;;  %v899_v41 = vmul.f32 0.5, %v867_v23  ;;  %v2170_v45 = vpop.eup %2169  ;;  %v444_v4 = vmul.f32 %v2400_v6, %v1949_v5  ;;  %v824_v10 = vmul.f32 0.7978846, %v792_v54 }
  0x59   : > { %v2172_v49 = vpop.eup %2171  ;;  %v885_v55 = vadd.f32 1.0, %v2170_v45  ;;  %v698_v11 = vmul.f32 %v2612_v29, %v2612_v29  ;;  %v775_v17 = vadd.f32 %v743_v58, %v2635_v15  ;;  %v2664_v18 = vadd.f32 %v2403_v8, %v443_v62 }
  0x5a   : > { %v931_v51 = vmul.f32 %v899_v41, %v2560_v25  ;;  %v886_v56 = vadd.f32 1.0, %v2172_v49  ;;  %2177 = vtanh.f32 %v823_v0  ;;  %v776_v23 = vadd.f32 %v744_v13, %v2640_v22 }
  0x5b   : > { %v917_v14 = vmul.f32 0.5, %v885_v55  ;;  %v2669_v31 = vadd.f32 %v2403_v8, %v444_v4  ;;  %2179 = vtanh.f32 %v824_v10  ;;  %v730_v53 = vmul.f32 %v698_v11, %v2612_v29 }
  0x5c   : > { %661 = vmatmul.bf16.gmra.mxu3 %v509_v43  ;;  %v900_v43 = vmul.f32 0.5, %v868_v39  ;;  %v918_v24 = vmul.f32 0.5, %v886_v56  ;;  %v729_v39 = vmul.f32 %v697_v2, %v2609_v26  ;;  %v807_v37 = vmul.f32 0.7978846, %v775_v17 }
  0x5d   : > { %v949_v35 = vmul.f32 %v917_v14, %v2530_v46  ;;  %v681_v38 = vmul.f32 %v2664_v18, %v2664_v18  ;;  %v808_v40 = vmul.f32 0.7978846, %v776_v23  ;;  %v762_v49 = vmul.f32 0.044715, %v730_v53 }
  0x5e   : > { %v932_v52 = vmul.f32 %v900_v43, %v2566_v27  ;;  %v950_v36 = vmul.f32 %v918_v24, %v2533_v47  ;;  %v761_v41 = vmul.f32 0.044715, %v729_v39  ;;  %v682_v43 = vmul.f32 %v2669_v31, %v2669_v31 }
  0x5f   : > { %2181 = vtanh.f32 %v807_v37  ;;  %v713_v46 = vmul.f32 %v681_v38, %v2664_v18  ;;  %v1952_v47 = vunpack.c.l.bf16 %v2069_v44  ;;  %v794_v55 = vadd.f32 %v762_v49, %v2612_v29 }
  0x60   : > { %v959_v9 = vpack.c.bf16 %v932_v52, %v931_v51  ;;  %v968_v61 = vpack.c.bf16 %v950_v36, %v949_v35  ;;  %2183 = vtanh.f32 %v808_v40  ;;  %v793_v63 = vadd.f32 %v761_v41, %v2609_v26  ;;  %v2070_v41 = vld [vmem:[%s2389_s23 + $0x48] sm:$0xff]  }
  0x61   : > { %1062 = vmatmul.bf16.gmra.mxu1 %v958_v7  ;;  %v2174_v7 = vpop.eup %2173  ;;  %v714_v5 = vmul.f32 %v682_v43, %v2669_v31  ;;  %v1953_v51 = vunpack.c.h.bf16 %v2069_v44  ;;  %v745_v62 = vmul.f32 0.044715, %v713_v46  ;;  %v445_v0 = vmul.f32 %v2400_v6, %v1952_v47 }
  0x62   : > { %v2176_v12 = vpop.eup %2175  ;;  %v869_v32 = vadd.f32 1.0, %v2174_v7  ;;  %v825_v13 = vmul.f32 0.7978846, %v793_v63  ;;  %v826_v10 = vmul.f32 0.7978846, %v794_v55 }
  0x63   : > { %v870_v34 = vadd.f32 1.0, %v2176_v12  ;;  %v2178_v60 = vpop.eup %2177  ;;  %v746_v2 = vmul.f32 0.044715, %v714_v5  ;;  %v446_v4 = vmul.f32 %v2400_v6, %v1953_v51  ;;  %v777_v24 = vadd.f32 %v745_v62, %v2664_v18 }
  0x64   : > { %v901_v45 = vmul.f32 0.5, %v869_v32  ;;  %v2180_v50 = vpop.eup %2179  ;;  %v887_v56 = vadd.f32 1.0, %v2178_v60  ;;  %v2689_v17 = vadd.f32 %v2403_v8, %v445_v0  ;;  %2185 = vtanh.f32 %v825_v13 }
  0x65   : > { %v888_v58 = vadd.f32 1.0, %v2180_v50  ;;  %v2182_v7 = vpop.eup %2181  ;;  %v778_v23 = vadd.f32 %v746_v2, %v2669_v31  ;;  %v2693_v39 = vadd.f32 %v2403_v8, %v446_v4  ;;  %2187 = vtanh.f32 %v826_v10 }
  0x66   : > { %v933_v52 = vmul.f32 %v901_v45, %v2600_v16  ;;  %v2184_v11 = vpop.eup %2183  ;;  %v919_v12 = vmul.f32 0.5, %v887_v56  ;;  %v871_v32 = vadd.f32 1.0, %v2182_v7  ;;  %v809_v36 = vmul.f32 0.7978846, %v777_v24 }
  0x67   : > { %v920_v14 = vmul.f32 0.5, %v888_v58  ;;  %v683_v37 = vmul.f32 %v2689_v17, %v2689_v17  ;;  %v810_v38 = vmul.f32 0.7978846, %v778_v23  ;;  %v684_v40 = vmul.f32 %v2693_v39, %v2693_v39 }
  0x68   : > { %v951_v53 = vmul.f32 %v919_v12, %v2570_v33  ;;  %v903_v43 = vmul.f32 0.5, %v871_v32  ;;  %2189 = vtanh.f32 %v809_v36  ;;  %v1956_v33 = vunpack.c.l.bf16 %v2070_v41 }
  0x69   : > { %v952_v35 = vmul.f32 %v920_v14, %v2573_v1  ;;  %v715_v60 = vmul.f32 %v683_v37, %v2689_v17  ;;  %2191 = vtanh.f32 %v810_v38  ;;  %v716_v1 = vmul.f32 %v684_v40, %v2693_v39  ;;  %v1916_v37 = vld [vmem:[%s3171_s4 + $0x30] sm:$0xff] }
  0x6a   : > { %v2186_v45 = vpop.eup %2185  ;;  %v935_v50 = vmul.f32 %v903_v43, %v2635_v15  ;;  %v447_v51 = vmul.f32 %v2400_v6, %v1956_v33 }
  0x6b   : > { %v2188_v49 = vpop.eup %2187  ;;  %v889_v47 = vadd.f32 1.0, %v2186_v45  ;;  %v747_v5 = vmul.f32 0.044715, %v715_v60  ;;  %v1915_v45 = vld [vmem:[%s3171_s4 + $0x28] sm:$0xff] }
  0x6c   : > { %1107 = vmatmul.bf16.vlgmr.msrb.gmra.mxu3 %v967_v48  ;;  %v902_v48 = vmul.f32 0.5, %v870_v34  ;;  %v872_v34 = vadd.f32 1.0, %v2184_v11  ;;  %v890_v63 = vadd.f32 1.0, %v2188_v49  ;;  %v2710_v2 = vadd.f32 %v2403_v8, %v447_v51  ;;  %v1917_v11 = vld [vmem:[%s3171_s4 + $0x38] sm:$0xff] }
  0x6d   : > { %v921_v62 = vmul.f32 0.5, %v889_v47  ;;  %v779_v13 = vadd.f32 %v747_v5, %v2689_v17  ;;  %1500 = vmatpush.bf16.msra.mxu2 %v1917_v11  ;;  %2108 = vmatpush.bf16.msra.mxu3 %v1917_v11 }
  0x6e   : > { %v934_v54 = vmul.f32 %v902_v48, %v2605_v21  ;;  %v904_v44 = vmul.f32 0.5, %v872_v34  ;;  %v969_v48 = vpack.c.bf16 %v952_v35, %v951_v53  ;;  %v2190_v55 = vpop.eup %2189  ;;  %v922_v0 = vmul.f32 0.5, %v890_v63  ;;  %v2071_v53 = vld [vmem:[%s2389_s23 + $0x50] sm:$0xff]  }
  0x6f   : > { %v2192_v58 = vpop.eup %2191  ;;  %v953_v12 = vmul.f32 %v921_v62, %v2609_v26  ;;  %v811_v24 = vmul.f32 0.7978846, %v779_v13  ;;  %v685_v23 = vmul.f32 %v2710_v2, %v2710_v2  ;;  %v1960_v38 = vunpack.c.l.bf16 %v2071_v53  ;;  %v2072_v13 = vld [vmem:[%s2389_s23 + $0x58] sm:$0xff]  }
  0x70   : > { %v936_v46 = vmul.f32 %v904_v44, %v2640_v22  ;;  %v874_v10 = vadd.f32 1.0, %v2192_v58  ;;  %v954_v14 = vmul.f32 %v922_v0, %v2612_v29 }
  0x71   : > { %1067 = vmatmul.bf16.gmra.mxu1 %v959_v9  ;;  %v960_v9 = vpack.c.bf16 %v934_v54, %v933_v52  ;;  %v748_v52 = vmul.f32 0.044715, %v716_v1  ;;  %2193 = vtanh.f32 %v811_v24  ;;  %1501 = vmatpush.bf16.msra.mxu2 %v1916_v37  ;;  %v717_v29 = vmul.f32 %v685_v23, %v2710_v2 }
  0x72   : > { %v961_v56 = vpack.c.bf16 %v936_v46, %v935_v50  ;;  %v906_v36 = vmul.f32 0.5, %v874_v10  ;;  %v970_v26 = vpack.c.bf16 %v954_v14, %v953_v12  ;;  %2109 = vmatpush.bf16.msra.mxu3 %v1916_v37  ;;  %v449_v49 = vmul.f32 %v2400_v6, %v1960_v38  ;;  %v1914_v50 = vld [vmem:[%s3171_s4 + $0x20] sm:$0xff]  ;;  %v1912_v10 = vld [vmem:[%s3171_s4 + $0x10] sm:$0xff] }
  0x73   : > { %v780_v4 = vadd.f32 %v748_v52, %v2693_v39  ;;  %v1964_v12 = vunpack.c.l.bf16 %v2072_v13  ;;  %v1965_v24 = vunpack.c.h.bf16 %v2072_v13 }
  0x74   : > { %v938_v44 = vmul.f32 %v906_v36, %v2669_v31  ;;  %v2743_v63 = vadd.f32 %v2403_v8, %v449_v49 }
  0x75   : > { %v812_v32 = vmul.f32 0.7978846, %v780_v4  ;;  %1502 = vmatpush.bf16.msra.mxu2 %v1915_v45  ;;  %v451_v36 = vmul.f32 %v2400_v6, %v1964_v12 }
  0x76   : > { %2110 = vmatpush.bf16.msra.mxu3 %v1915_v45  ;;  %v687_v58 = vmul.f32 %v2743_v63, %v2743_v63  ;;  %v494_v45 = vpack.c.bf16 %v2422_v20, %v2419_v19 }
  0x77   : > { %2195 = vtanh.f32 %v812_v32  ;;  %v2194_v1 = vpop.eup %2193 }
  0x78   : > { %v875_v52 = vadd.f32 1.0, %v2194_v1  ;;  %v719_v11 = vmul.f32 %v687_v58, %v2743_v63  ;;  %586 = vmatmul.bf16.vlgmr.msra.gmra.mxu0 %v494_v45 }
  0x79   : > { %1503 = vmatpush.bf16.msra.mxu2 %v1914_v50 }
  0x7a   : > { %2111 = vmatpush.bf16.msra.mxu3 %v1914_v50  ;;  %v907_v4 = vmul.f32 0.5, %v875_v52 }
  0x7c   : > { %1112 = vmatmul.bf16.gmra.mxu3 %v968_v61  ;;  %v1957_v61 = vunpack.c.h.bf16 %v2070_v41  ;;  %v1961_v41 = vunpack.c.h.bf16 %v2071_v53  ;;  %v939_v23 = vmul.f32 %v907_v4, %v2689_v17  ;;  %v2770_v53 = vld [vmem:[%s3170_s3] ss:$0 sm:$0xff] }
  0x7d   : > { %v2196_v46 = vpop.eup %2195 }
  0x7e   : > { %v448_v54 = vmul.f32 %v2400_v6, %v1957_v61  ;;  %v450_v33 = vmul.f32 %v2400_v6, %v1961_v41  ;;  %v1910_v41 = vld [vmem:[%s3171_s4] sm:$0xff] }
  0x80   : > { %v2714_v7 = vadd.f32 %v2403_v8, %v448_v54  ;;  %v2747_v51 = vadd.f32 %v2403_v8, %v450_v33  ;;  %v876_v54 = vadd.f32 1.0, %v2196_v46 }
  0x81   : > { %1072 = vmatmul.bf16.gmra.mxu1 %v960_v9  ;;  %v873_v9 = vadd.f32 1.0, %v2190_v55  ;;  %v1913_v55 = vld [vmem:[%s3171_s4 + $0x18] sm:$0xff] }
  0x82   : > { %v686_v34 = vmul.f32 %v2714_v7, %v2714_v7  ;;  %1504 = vmatpush.bf16.msra.mxu2 %v1913_v55  ;;  %2112 = vmatpush.bf16.msra.mxu3 %v1913_v55  ;;  %v688_v0 = vmul.f32 %v2747_v51, %v2747_v51 }
  0x83   : > { %v905_v35 = vmul.f32 0.5, %v873_v9  ;;  %v908_v9 = vmul.f32 0.5, %v876_v54 }
  0x84   : > { %v718_v40 = vmul.f32 %v686_v34, %v2714_v7  ;;  %v720_v14 = vmul.f32 %v688_v0, %v2747_v51  ;;  %v1911_v34 = vld [vmem:[%s3171_s4 + $0x8] sm:$0xff] }
  0x85   : > { %v937_v43 = vmul.f32 %v905_v35, %v2664_v18  ;;  %v940_v32 = vmul.f32 %v908_v9, %v2693_v39  ;;  %v751_v35 = vmul.f32 0.044715, %v719_v11 }
  0x86   : > { %v750_v60 = vmul.f32 0.044715, %v718_v40  ;;  %1505 = vmatpush.bf16.msra.mxu2 %v1912_v10  ;;  %2113 = vmatpush.bf16.msra.mxu3 %v1912_v10  ;;  %v752_v37 = vmul.f32 0.044715, %v720_v14 }
  0x87   : > { %v962_v61 = vpack.c.bf16 %v938_v44, %v937_v43  ;;  %v963_v40 = vpack.c.bf16 %v940_v32, %v939_v23  ;;  %v783_v49 = vadd.f32 %v751_v35, %v2743_v63 }
  0x88   : > { %v782_v5 = vadd.f32 %v750_v60, %v2714_v7  ;;  %v784_v60 = vadd.f32 %v752_v37, %v2747_v51 }
  0x89   : > { %v815_v50 = vmul.f32 0.7978846, %v783_v49 }
  0x8a   : > { %v814_v62 = vmul.f32 0.7978846, %v782_v5  ;;  %1506 = vmatpush.bf16.msra.mxu2 %v1911_v34  ;;  %2114 = vmatpush.bf16.msra.mxu3 %v1911_v34 }
  0x8c   : > { %1117 = vmatmul.bf16.gmra.mxu3 %v969_v48  ;;  %v749_v48 = vmul.f32 0.044715, %v717_v29 }
  0x8e   : > { %v781_v47 = vadd.f32 %v749_v48, %v2710_v2  ;;  %1507 = vmatpush.bf16.msra.mxu2 %v1910_v41  ;;  %2115 = vmatpush.bf16.msra.mxu3 %v1910_v41 }
  0x91   : > { %1077 = vmatmul.bf16.gmra.mxu1 %v961_v56  ;;  %v813_v56 = vmul.f32 0.7978846, %v781_v47  ;;  %v816_v47 = vmul.f32 0.7978846, %v784_v60 }
  0x93   : > { %2197 = vtanh.f32 %v813_v56 }
  0x94   : > { %2199 = vtanh.f32 %v814_v62 }
  0x95   : > { %2201 = vtanh.f32 %v815_v50 }
  0x96   : > { %2203 = vtanh.f32 %v816_v47 }
  0x99   : > { %v2198_v29 = vpop.eup %2197 }
  0x9a   : > { %v2200_v43 = vpop.eup %2199  ;;  %v877_v19 = vadd.f32 1.0, %v2198_v29 }
  0x9b   : > { %v878_v20 = vadd.f32 1.0, %v2200_v43  ;;  %v2202_v23 = vpop.eup %2201 }
  0x9c   : > { %1122 = vmatmul.bf16.gmra.mxu3 %v970_v26  ;;  %v452_v26 = vmul.f32 %v2400_v6, %v1965_v24  ;;  %v2786_v6 = vadd.f32 %v2403_v8, %v451_v36  ;;  %v2204_v36 = vpop.eup %2203  ;;  %v879_v45 = vadd.f32 1.0, %v2202_v23 }
  0x9d   : > { %v910_v55 = vmul.f32 0.5, %v878_v20  ;;  %v880_v49 = vadd.f32 1.0, %v2204_v36 }
  0x9e   : > { %v2790_v33 = vadd.f32 %v2403_v8, %v452_v26  ;;  %v689_v46 = vmul.f32 %v2786_v6, %v2786_v6  ;;  %v909_v8 = vmul.f32 0.5, %v877_v19  ;;  %v495_v26 = vpack.c.bf16 %v2444_v30, %v2441_v28 }
  0x9f   : > { %v942_v10 = vmul.f32 %v910_v55, %v2714_v7  ;;  %v911_v50 = vmul.f32 0.5, %v879_v45 }
  0xa0   : > { %v690_v5 = vmul.f32 %v2790_v33, %v2790_v33  ;;  %v721_v0 = vmul.f32 %v689_v46, %v2786_v6  ;;  %v941_v9 = vmul.f32 %v909_v8, %v2710_v2  ;;  %591 = vmatmul.bf16.gmra.mxu0 %v495_v26  ;;  %v912_v46 = vmul.f32 0.5, %v880_v49 }
  0xa1   : > { %1082 = vmatmul.bf16.gmra.mxu1 %v962_v61  ;;  %v496_v26 = vpack.c.bf16 %v2484_v59, %v2480_v57 }
  0xa2   : > { %v722_v13 = vmul.f32 %v690_v5, %v2790_v33  ;;  %v753_v14 = vmul.f32 0.044715, %v721_v0  ;;  %v964_v35 = vpack.c.bf16 %v942_v10, %v941_v9  ;;  %v944_v0 = vmul.f32 %v912_v46, %v2747_v51 }
  0xa4   : > { %v754_v24 = vmul.f32 0.044715, %v722_v13  ;;  %v785_v41 = vadd.f32 %v753_v14, %v2786_v6 }
  0xa6   : > { %v786_v43 = vadd.f32 %v754_v24, %v2790_v33  ;;  %v817_v28 = vmul.f32 0.7978846, %v785_v41 }
  0xa8   : > { %v818_v30 = vmul.f32 0.7978846, %v786_v43 }
  0xae   : > { %v1048_v44 = vpop.f32.mrf.mxu1 }
  0xaf   : > { %v2774_v38 = vpop.f32.mrf.mxu3  ;;  %v2782_v48 = vadd.f32 %v2770_v53, %v1048_v44 }
  0xb0   : > { %596 = vmatmul.bf16.gmra.mxu0 %v496_v26 }
  0xb1   : > { %v1128_v1 = vmul.f32 %v2782_v48, %v2782_v48  ;;  %1087 = vmatmul.bf16.gmra.mxu1 %v963_v40 }
  0xb3   : > { %v1160_v61 = vmul.f32 %v1128_v1, %v2782_v48 }
  0xb5   : > { %v1192_v52 = vmul.f32 0.044715, %v1160_v61 }
  0xb6   : > { %v1050_v56 = vpop.f32.mrf.mxu1 }
  0xb7   : > { %v2799_v54 = vpop.f32.mrf.mxu3  ;;  %v1224_v58 = vadd.f32 %v1192_v52, %v2782_v48  ;;  %v1051_v62 = vadd.f32 %v2770_v53, %v1050_v56 }
  0xb9   : > { %v1129_v4 = vmul.f32 %v1051_v62, %v1051_v62  ;;  %v1256_v11 = vmul.f32 0.7978846, %v1224_v58  ;;  %v943_v58 = vmul.f32 %v911_v50, %v2743_v63 }
  0xbb   : > { %v1161_v12 = vmul.f32 %v1129_v4, %v1051_v62  ;;  %2205 = vtanh.f32 %v1256_v11  ;;  %v965_v23 = vpack.c.bf16 %v944_v0, %v943_v58 }
  0xbd   : > { %v1193_v32 = vmul.f32 0.044715, %v1161_v12 }
  0xbe   : > { %v1053_v37 = vpop.f32.mrf.mxu1 }
  0xbf   : > { %v2807_v34 = vpop.f32.mrf.mxu3  ;;  %v1225_v29 = vadd.f32 %v1193_v32, %v1051_v62  ;;  %v2812_v40 = vadd.f32 %v2770_v53, %v1053_v37 }
  0xc1   : > { %v1130_v44 = vmul.f32 %v2812_v40, %v2812_v40  ;;  %1092 = vmatmul.bf16.gmra.mxu1 %v964_v35  ;;  %v1257_v60 = vmul.f32 0.7978846, %v1225_v29  ;;  %v2206_v1 = vpop.eup %2205 }
  0xc2   : > { %v1320_v5 = vadd.f32 1.0, %v2206_v1 }
  0xc3   : > { %v1162_v19 = vmul.f32 %v1130_v44, %v2812_v40  ;;  %2207 = vtanh.f32 %v1257_v60 }
  0xc4   : > { %2209 = vtanh.f32 %v817_v28  ;;  %v1352_v9 = vmul.f32 0.5, %v1320_v5 }
  0xc5   : > { %v1194_v20 = vmul.f32 0.044715, %v1162_v19  ;;  %2211 = vtanh.f32 %v818_v30 }
  0xc6   : > { %v1055_v47 = vpop.f32.mrf.mxu1  ;;  %v1384_v36 = vmul.f32 %v1352_v9, %v2782_v48 }
  0xc7   : > { %v2819_v61 = vpop.f32.mrf.mxu3  ;;  %v1226_v52 = vadd.f32 %v1194_v20, %v2812_v40  ;;  %v1056_v8 = vadd.f32 %v2770_v53, %v1055_v47 }
  0xc9   : > { %v2208_v55 = vpop.eup %2207  ;;  %v1131_v56 = vmul.f32 %v1056_v8, %v1056_v8  ;;  %v1258_v13 = vmul.f32 0.7978846, %v1226_v52 }
  0xca   : > { %v1321_v4 = vadd.f32 1.0, %v2208_v55  ;;  %v2210_v12 = vpop.eup %2209 }
  0xcb   : > { %v1163_v10 = vmul.f32 %v1131_v56, %v1056_v8  ;;  %2213 = vtanh.f32 %v1258_v13  ;;  %v2212_v32 = vpop.eup %2211  ;;  %v881_v45 = vadd.f32 1.0, %v2210_v12 }
  0xcc   : > { %v1353_v11 = vmul.f32 0.5, %v1321_v4  ;;  %v882_v49 = vadd.f32 1.0, %v2212_v32 }
  0xcd   : > { %v1195_v14 = vmul.f32 0.044715, %v1163_v10  ;;  %v913_v59 = vmul.f32 0.5, %v881_v45 }
  0xce   : > { %v1058_v35 = vpop.f32.mrf.mxu1  ;;  %v1385_v37 = vmul.f32 %v1353_v11, %v1051_v62  ;;  %v914_v19 = vmul.f32 0.5, %v882_v49 }
  0xcf   : > { %v2825_v24 = vpop.f32.mrf.mxu3  ;;  %v1227_v29 = vadd.f32 %v1195_v14, %v1056_v8  ;;  %v2831_v41 = vadd.f32 %v2770_v53, %v1058_v35  ;;  %v945_v5 = vmul.f32 %v913_v59, %v2786_v6 }
  0xd0   : > { %v1416_v43 = vpack.c.bf16 %v1385_v37, %v1384_v36  ;;  %v946_v52 = vmul.f32 %v914_v19, %v2790_v33 }
  0xd1   : > { %v1132_v44 = vmul.f32 %v2831_v41, %v2831_v41  ;;  %1097 = vmatmul.bf16.gmra.mxu1 %v965_v23  ;;  %v1259_v60 = vmul.f32 0.7978846, %v1227_v29  ;;  %v2214_v1 = vpop.eup %2213  ;;  %v497_v23 = vpack.c.bf16 %v2527_v3, %v2522_v42 }
  0xd2   : > { %1508 = vmatmul.bf16.vlgmr.msra.gmra.mxu2 %v1416_v43  ;;  %v1322_v30 = vadd.f32 1.0, %v2214_v1  ;;  %v966_v10 = vpack.c.bf16 %v946_v52, %v945_v5  ;;  %v498_v52 = vpack.c.bf16 %v2566_v27, %v2560_v25 }
  0xd3   : > { %v1164_v48 = vmul.f32 %v1132_v44, %v2831_v41  ;;  %2215 = vtanh.f32 %v1259_v60  ;;  %601 = vmatmul.bf16.gmra.mxu0 %v497_v23 }
  0xd4   : > { %v1354_v58 = vmul.f32 0.5, %v1322_v30 }
  0xd5   : > { %v1196_v62 = vmul.f32 0.044715, %v1164_v48 }
  0xd6   : > { %v1060_v28 = vpop.f32.mrf.mxu1  ;;  %v1386_v12 = vmul.f32 %v1354_v58, %v2812_v40 }
  0xd7   : > { %v2836_v57 = vpop.f32.mrf.mxu3  ;;  %v1228_v20 = vadd.f32 %v1196_v62, %v2831_v41  ;;  %v1061_v50 = vadd.f32 %v2770_v53, %v1060_v28 }
  0xd9   : > { %v2216_v46 = vpop.eup %2215  ;;  %v1133_v47 = vmul.f32 %v1061_v50, %v1061_v50  ;;  %v1260_v55 = vmul.f32 0.7978846, %v1228_v20 }
  0xda   : > { %v1323_v56 = vadd.f32 1.0, %v2216_v46 }
  0xdb   : > { %v1165_v0 = vmul.f32 %v1133_v47, %v1061_v50  ;;  %2217 = vtanh.f32 %v1260_v55 }
  0xdc   : > { %v1355_v13 = vmul.f32 0.5, %v1323_v56 }
  0xdd   : > { %v1197_v4 = vmul.f32 0.044715, %v1165_v0 }
  0xde   : > { %v1063_v11 = vpop.f32.mrf.mxu1  ;;  %v1387_v14 = vmul.f32 %v1355_v13, %v1056_v8 }
  0xdf   : > { %v2842_v9 = vpop.f32.mrf.mxu3  ;;  %v1229_v32 = vadd.f32 %v1197_v4, %v1061_v50  ;;  %v2848_v35 = vadd.f32 %v2770_v53, %v1063_v11 }
  0xe0   : > { %v1417_v36 = vpack.c.bf16 %v1387_v14, %v1386_v12 }
  0xe1   : > { %v1134_v37 = vmul.f32 %v2848_v35, %v2848_v35  ;;  %1102 = vmatmul.bf16.gmra.mxu1 %v966_v10  ;;  %v1261_v26 = vmul.f32 0.7978846, %v1229_v32  ;;  %v2218_v29 = vpop.eup %2217 }
  0xe2   : > { %1513 = vmatmul.bf16.gmra.mxu2 %v1417_v36  ;;  %v1324_v3 = vadd.f32 1.0, %v2218_v29 }
  0xe3   : > { %v1166_v43 = vmul.f32 %v1134_v37, %v2848_v35  ;;  %2219 = vtanh.f32 %v1261_v26  ;;  %606 = vmatmul.bf16.gmra.mxu0 %v498_v52 }
  0xe4   : > { %v1356_v62 = vmul.f32 0.5, %v1324_v3 }
  0xe5   : > { %v1198_v40 = vmul.f32 0.044715, %v1166_v43 }
  0xe6   : > { %v1065_v42 = vpop.f32.mrf.mxu1  ;;  %v1388_v47 = vmul.f32 %v1356_v62, %v2831_v41 }
  0xe7   : > { %v2853_v8 = vpop.f32.mrf.mxu3  ;;  %v1230_v44 = vadd.f32 %v1198_v40, %v2848_v35  ;;  %v1066_v45 = vadd.f32 %v2770_v53, %v1065_v42 }
  0xe9   : > { %v2220_v49 = vpop.eup %2219  ;;  %v1135_v60 = vmul.f32 %v1066_v45, %v1066_v45  ;;  %v1262_v1 = vmul.f32 0.7978846, %v1230_v44 }
  0xea   : > { %v1325_v48 = vadd.f32 1.0, %v2220_v49 }
  0xeb   : > { %v1167_v59 = vmul.f32 %v1135_v60, %v1066_v45  ;;  %2221 = vtanh.f32 %v1262_v1 }
  0xec   : > { %v1357_v19 = vmul.f32 0.5, %v1325_v48 }
  0xed   : > { %v1199_v28 = vmul.f32 0.044715, %v1167_v59 }
  0xee   : > { %v1068_v20 = vpop.f32.mrf.mxu1  ;;  %v1389_v5 = vmul.f32 %v1357_v19, %v1061_v50 }
  0xef   : > { %v1108_v30 = vpop.f32.mrf.mxu3  ;;  %v1231_v55 = vadd.f32 %v1199_v28, %v1066_v45  ;;  %v2864_v56 = vadd.f32 %v2770_v53, %v1068_v20 }
  0xf0   : > { %v2858_v46 = vadd.f32 %v2770_v53, %v1108_v30  ;;  %v1418_v0 = vpack.c.bf16 %v1389_v5, %v1388_v47  ;;  %v499_v5 = vpack.c.bf16 %v2605_v21, %v2600_v16 }
  0xf1   : > { %v1136_v13 = vmul.f32 %v2864_v56, %v2864_v56  ;;  %v1263_v4 = vmul.f32 0.7978846, %v1231_v55  ;;  %v2222_v10 = vpop.eup %2221 }
  0xf2   : > { %v1152_v58 = vmul.f32 %v2858_v46, %v2858_v46  ;;  %1518 = vmatmul.bf16.gmra.mxu2 %v1418_v0  ;;  %v1326_v12 = vadd.f32 1.0, %v2222_v10 }
  0xf3   : > { %v1168_v50 = vmul.f32 %v1136_v13, %v2864_v56  ;;  %2223 = vtanh.f32 %v1263_v4  ;;  %611 = vmatmul.bf16.gmra.mxu0 %v499_v5 }
  0xf4   : > { %v1184_v41 = vmul.f32 %v1152_v58, %v2858_v46  ;;  %v1358_v42 = vmul.f32 0.5, %v1326_v12 }
  0xf5   : > { %v1200_v27 = vmul.f32 0.044715, %v1168_v50 }
  0xf6   : > { %v1216_v25 = vmul.f32 0.044715, %v1184_v41  ;;  %v1070_v23 = vpop.f32.mrf.mxu1  ;;  %v1390_v19 = vmul.f32 %v1358_v42, %v2848_v35 }
  0xf7   : > { %v1110_v11 = vpop.f32.mrf.mxu3  ;;  %v1232_v36 = vadd.f32 %v1200_v27, %v2864_v56  ;;  %v2878_v37 = vadd.f32 %v2770_v53, %v1070_v23 }
  0xf8   : > { %v1248_v14 = vadd.f32 %v1216_v25, %v2858_v46  ;;  %v2874_v32 = vadd.f32 %v2770_v53, %v1110_v11 }
  0xf9   : > { %v2224_v43 = vpop.eup %2223  ;;  %v1137_v40 = vmul.f32 %v2878_v37, %v2878_v37  ;;  %v1264_v3 = vmul.f32 0.7978846, %v1232_v36 }
  0xfa   : > { %v1280_v26 = vmul.f32 0.7978846, %v1248_v14  ;;  %v1153_v29 = vmul.f32 %v2874_v32, %v2874_v32  ;;  %v1327_v49 = vadd.f32 1.0, %v2224_v43 }
  0xfb   : > { %v1169_v60 = vmul.f32 %v1137_v40, %v2878_v37 }
  0xfc   : > { %2225 = vtanh.f32 %v1280_v26  ;;  %v1185_v44 = vmul.f32 %v1153_v29, %v2874_v32  ;;  %v1359_v48 = vmul.f32 0.5, %v1327_v49 }
  0xfd   : > { %2227 = vtanh.f32 %v1264_v3  ;;  %v1201_v62 = vmul.f32 0.044715, %v1169_v60 }
  0xfe   : > { %v1217_v1 = vmul.f32 0.044715, %v1185_v44  ;;  %v1073_v30 = vpop.f32.mrf.mxu1  ;;  %v1391_v47 = vmul.f32 %v1359_v48, %v1066_v45 }
  0xff   : > { %v1113_v59 = vpop.f32.mrf.mxu3  ;;  %v1233_v52 = vadd.f32 %v1201_v62, %v2878_v37  ;;  %v2895_v55 = vadd.f32 %v2770_v53, %v1073_v30 }
 0x100   : > { %v1249_v28 = vadd.f32 %v1217_v1, %v2874_v32  ;;  %v2889_v20 = vadd.f32 %v2770_v53, %v1113_v59  ;;  %v1419_v13 = vpack.c.bf16 %v1391_v47, %v1390_v19 }
 0x101   : > { %v1138_v4 = vmul.f32 %v2895_v55, %v2895_v55  ;;  %v1265_v10 = vmul.f32 0.7978846, %v1233_v52 }
 0x102   : > { %v2226_v58 = vpop.eup %2225  ;;  %v1281_v0 = vmul.f32 0.7978846, %v1249_v28  ;;  %v1154_v35 = vmul.f32 %v2889_v20, %v2889_v20  ;;  %1523 = vmatmul.bf16.gmra.mxu2 %v1419_v13 }
 0x103   : > { %v2228_v45 = vpop.eup %2227  ;;  %v1344_v21 = vadd.f32 1.0, %v2226_v58  ;;  %v1170_v41 = vmul.f32 %v1138_v4, %v2895_v55 }
 0x104   : > { %2229 = vtanh.f32 %v1281_v0  ;;  %v1186_v16 = vmul.f32 %v1154_v35, %v2889_v20  ;;  %v1328_v11 = vadd.f32 1.0, %v2228_v45 }
 0x105   : > { %2231 = vtanh.f32 %v1265_v10  ;;  %v1202_v25 = vmul.f32 0.044715, %v1170_v41  ;;  %v1376_v36 = vmul.f32 0.5, %v1344_v21  ;;  %v500_v10 = vpack.c.bf16 %v2640_v22, %v2635_v15 }
 0x106   : > { %v1218_v50 = vmul.f32 0.044715, %v1186_v16  ;;  %v1075_v14 = vpop.f32.mrf.mxu1  ;;  %v1360_v60 = vmul.f32 0.5, %v1328_v11 }
 0x107   : > { %v1115_v27 = vpop.f32.mrf.mxu3  ;;  %v1234_v26 = vadd.f32 %v1202_v25, %v2895_v55  ;;  %v2909_v29 = vadd.f32 %v2770_v53, %v1075_v14  ;;  %v1408_v59 = vmul.f32 %v1376_v36, %v2858_v46  ;;  %616 = vmatmul.bf16.gmra.mxu0 %v500_v10 }
 0x108   : > { %v1250_v12 = vadd.f32 %v1218_v50, %v2889_v20  ;;  %v2905_v23 = vadd.f32 %v2770_v53, %v1115_v27  ;;  %v1392_v0 = vmul.f32 %v1360_v60, %v2864_v56 }
 0x109   : > { %v1139_v49 = vmul.f32 %v2909_v29, %v2909_v29  ;;  %v1266_v1 = vmul.f32 0.7978846, %v1234_v26 }
 0x10a   : > { %v2230_v43 = vpop.eup %2229  ;;  %v1155_v40 = vmul.f32 %v2905_v23, %v2905_v23  ;;  %v1282_v42 = vmul.f32 0.7978846, %v1250_v12 }
 0x10b   : > { %v2232_v3 = vpop.eup %2231  ;;  %v1345_v44 = vadd.f32 1.0, %v2230_v43  ;;  %v1171_v28 = vmul.f32 %v1139_v49, %v2909_v29 }
 0x10c   : > { %v1187_v48 = vmul.f32 %v1155_v40, %v2905_v23  ;;  %v1329_v62 = vadd.f32 1.0, %v2232_v3  ;;  %2233 = vtanh.f32 %v1282_v42 }
 0x10d   : > { %v1377_v19 = vmul.f32 0.5, %v1345_v44  ;;  %2235 = vtanh.f32 %v1266_v1  ;;  %v1203_v52 = vmul.f32 0.044715, %v1171_v28 }
 0x10e   : > { %v1219_v30 = vmul.f32 0.044715, %v1187_v48  ;;  %v1361_v47 = vmul.f32 0.5, %v1329_v62  ;;  %v1078_v13 = vpop.f32.mrf.mxu1 }
 0x10f   : > { %v1409_v5 = vmul.f32 %v1377_v19, %v2874_v32  ;;  %v1118_v58 = vpop.f32.mrf.mxu3  ;;  %v1235_v45 = vadd.f32 %v1203_v52, %v2909_v29  ;;  %v2929_v16 = vadd.f32 %v2770_v53, %v1078_v13 }
 0x110   : > { %v1251_v35 = vadd.f32 %v1219_v30, %v2905_v23  ;;  %v2922_v4 = vadd.f32 %v2770_v53, %v1118_v58  ;;  %v1393_v46 = vmul.f32 %v1361_v47, %v2878_v37 }
 0x111   : > { %v1428_v32 = vpack.c.bf16 %v1409_v5, %v1408_v59  ;;  %v1140_v25 = vmul.f32 %v2929_v16, %v2929_v16  ;;  %v1267_v37 = vmul.f32 0.7978846, %v1235_v45 }
 0x112   : > { %v2234_v21 = vpop.eup %2233  ;;  %v1156_v56 = vmul.f32 %v2922_v4, %v2922_v4  ;;  %v1420_v41 = vpack.c.bf16 %v1393_v46, %v1392_v0  ;;  %v1283_v50 = vmul.f32 0.7978846, %v1251_v35 }
 0x113   : > { %1568 = vmatmul.bf16.vlgmr.msra.gmra.mxu3 %v1428_v32  ;;  %v2236_v27 = vpop.eup %2235  ;;  %v1172_v22 = vmul.f32 %v1140_v25, %v2929_v16  ;;  %v1346_v11 = vadd.f32 1.0, %v2234_v21 }
 0x114   : > { %v1188_v15 = vmul.f32 %v1156_v56, %v2922_v4  ;;  %1528 = vmatmul.bf16.gmra.mxu2 %v1420_v41  ;;  %2237 = vtanh.f32 %v1283_v50  ;;  %v1330_v26 = vadd.f32 1.0, %v2236_v27 }
 0x115   : > { %2239 = vtanh.f32 %v1267_v37  ;;  %v1204_v14 = vmul.f32 0.044715, %v1172_v22  ;;  %v1378_v49 = vmul.f32 0.5, %v1346_v11 }
 0x116   : > { %v1220_v12 = vmul.f32 0.044715, %v1188_v15  ;;  %v1080_v40 = vpop.f32.mrf.mxu1  ;;  %v1362_v19 = vmul.f32 0.5, %v1330_v26 }
 0x117   : > { %v1120_v36 = vpop.f32.mrf.mxu3  ;;  %v1236_v3 = vadd.f32 %v1204_v14, %v2929_v16  ;;  %v2943_v44 = vadd.f32 %v2770_v53, %v1080_v40  ;;  %v1410_v0 = vmul.f32 %v1378_v49, %v2889_v20  ;;  %v501_v20 = vpack.c.bf16 %v2669_v31, %v2664_v18 }
 0x118   : > { %v1252_v43 = vadd.f32 %v1220_v12, %v2922_v4  ;;  %v2939_v42 = vadd.f32 %v2770_v53, %v1120_v36  ;;  %v1394_v45 = vmul.f32 %v1362_v19, %v2895_v55 }
 0x119   : > { %v1141_v59 = vmul.f32 %v2943_v44, %v2943_v44  ;;  %v1268_v30 = vmul.f32 0.7978846, %v1236_v3  ;;  %621 = vmatmul.bf16.gmra.mxu0 %v501_v20 }
 0x11a   : > { %v2238_v60 = vpop.eup %2237  ;;  %v1157_v1 = vmul.f32 %v2939_v42, %v2939_v42  ;;  %v1284_v48 = vmul.f32 0.7978846, %v1252_v43 }
 0x11b   : > { %v2240_v62 = vpop.eup %2239  ;;  %v1347_v28 = vadd.f32 1.0, %v2238_v60  ;;  %v1173_v52 = vmul.f32 %v1141_v59, %v2943_v44 }
 0x11c   : > { %v1189_v47 = vmul.f32 %v1157_v1, %v2939_v42  ;;  %v1331_v5 = vadd.f32 1.0, %v2240_v62  ;;  %2241 = vtanh.f32 %v1284_v48 }
 0x11d   : > { %v1379_v58 = vmul.f32 0.5, %v1347_v28  ;;  %v1205_v46 = vmul.f32 0.044715, %v1173_v52  ;;  %2243 = vtanh.f32 %v1268_v30 }
 0x11e   : > { %v1221_v35 = vmul.f32 0.044715, %v1189_v47  ;;  %v1363_v13 = vmul.f32 0.5, %v1331_v5  ;;  %v1083_v56 = vpop.f32.mrf.mxu1 }
 0x11f   : > { %v1123_v10 = vpop.f32.mrf.mxu3  ;;  %v1411_v32 = vmul.f32 %v1379_v58, %v2905_v23  ;;  %v1237_v25 = vadd.f32 %v1205_v46, %v2943_v44  ;;  %v2963_v37 = vadd.f32 %v2770_v53, %v1083_v56 }
 0x120   : > { %v1253_v21 = vadd.f32 %v1221_v35, %v2939_v42  ;;  %v2956_v41 = vadd.f32 %v2770_v53, %v1123_v10  ;;  %v1395_v50 = vmul.f32 %v1363_v13, %v2909_v29 }
 0x121   : > { %v1429_v55 = vpack.c.bf16 %v1411_v32, %v1410_v0  ;;  %v1142_v11 = vmul.f32 %v2963_v37, %v2963_v37  ;;  %v1269_v29 = vmul.f32 0.7978846, %v1237_v25 }
 0x122   : > { %v2242_v27 = vpop.eup %2241  ;;  %v1158_v23 = vmul.f32 %v2956_v41, %v2956_v41  ;;  %v1421_v15 = vpack.c.bf16 %v1395_v50, %v1394_v45  ;;  %v1285_v22 = vmul.f32 0.7978846, %v1253_v21  ;;  %v2987_v50 = vpop.f32.mrf.mxu0 }
 0x123   : > { %1573 = vmatmul.bf16.gmra.mxu3 %v1429_v55  ;;  %v2244_v31 = vpop.eup %2243  ;;  %v1174_v12 = vmul.f32 %v1142_v11, %v2963_v37  ;;  %v1348_v14 = vadd.f32 1.0, %v2242_v27 }
 0x124   : > { %v1190_v18 = vmul.f32 %v1158_v23, %v2956_v41  ;;  %1533 = vmatmul.bf16.gmra.mxu2 %v1421_v15  ;;  %2245 = vtanh.f32 %v1285_v22  ;;  %v1332_v60 = vadd.f32 1.0, %v2244_v31  ;;  %v502_v23 = vpack.c.bf16 %v2693_v39, %v2689_v17 }
 0x125   : > { %2247 = vtanh.f32 %v1269_v29  ;;  %v1206_v26 = vmul.f32 0.044715, %v1174_v12  ;;  %v1380_v62 = vmul.f32 0.5, %v1348_v14 }
 0x126   : > { %v1222_v36 = vmul.f32 0.044715, %v1190_v18  ;;  %v1085_v3 = vpop.f32.mrf.mxu1  ;;  %v1364_v35 = vmul.f32 0.5, %v1332_v60 }
 0x127   : > { %v1125_v43 = vpop.f32.mrf.mxu3  ;;  %v1238_v1 = vadd.f32 %v1206_v26, %v2963_v37  ;;  %v2977_v48 = vadd.f32 %v2770_v53, %v1085_v3  ;;  %v1412_v10 = vmul.f32 %v1380_v62, %v2922_v4 }
 0x128   : > { %v1254_v40 = vadd.f32 %v1222_v36, %v2956_v41  ;;  %v2973_v49 = vadd.f32 %v2770_v53, %v1125_v43  ;;  %v1396_v55 = vmul.f32 %v1364_v35, %v2929_v16 }
 0x129   : > { %v1143_v47 = vmul.f32 %v2977_v48, %v2977_v48  ;;  %v1270_v52 = vmul.f32 0.7978846, %v1238_v1  ;;  %626 = vmatmul.bf16.gmra.mxu0 %v502_v23 }
 0x12a   : > { %v2246_v59 = vpop.eup %2245  ;;  %v1159_v19 = vmul.f32 %v2973_v49, %v2973_v49  ;;  %v1286_v28 = vmul.f32 0.7978846, %v1254_v40  ;;  %v3001_v12 = vpop.f32.mrf.mxu0 }
 0x12b   : > { %v2248_v30 = vpop.eup %2247  ;;  %v1349_v5 = vadd.f32 1.0, %v2246_v59  ;;  %v1175_v13 = vmul.f32 %v1143_v47, %v2977_v48 }
 0x12c   : > { %v1191_v58 = vmul.f32 %v1159_v19, %v2973_v49  ;;  %v1333_v0 = vadd.f32 1.0, %v2248_v30  ;;  %2249 = vtanh.f32 %v1286_v28 }
 0x12d   : > { %v1381_v46 = vmul.f32 0.5, %v1349_v5  ;;  %v1207_v21 = vmul.f32 0.044715, %v1175_v13  ;;  %2251 = vtanh.f32 %v1270_v52 }
 0x12e   : > { %v1223_v45 = vmul.f32 0.044715, %v1191_v58  ;;  %v1365_v32 = vmul.f32 0.5, %v1333_v0  ;;  %v1088_v25 = vpop.f32.mrf.mxu1 }
 0x12f   : > { %v1413_v56 = vmul.f32 %v1381_v46, %v2939_v42  ;;  %v1239_v4 = vadd.f32 %v1207_v21, %v2977_v48  ;;  %v2996_v15 = vadd.f32 %v2770_v53, %v1088_v25 }
 0x130   : > { %v1255_v20 = vadd.f32 %v1223_v45, %v2973_v49  ;;  %v1397_v27 = vmul.f32 %v1365_v32, %v2943_v44  ;;  %v503_v45 = vpack.c.bf16 %v2714_v7, %v2710_v2 }
 0x131   : > { %v1430_v22 = vpack.c.bf16 %v1413_v56, %v1412_v10  ;;  %v1144_v18 = vmul.f32 %v2996_v15, %v2996_v15  ;;  %v1271_v16 = vmul.f32 0.7978846, %v1239_v4 }
 0x132   : > { %v2250_v42 = vpop.eup %2249  ;;  %v1422_v11 = vpack.c.bf16 %v1397_v27, %v1396_v55  ;;  %v1287_v29 = vmul.f32 0.7978846, %v1255_v20  ;;  %v3007_v35 = vpop.f32.mrf.mxu0 }
 0x133   : > { %1578 = vmatmul.bf16.gmra.mxu3 %v1430_v22  ;;  %v2252_v44 = vpop.eup %2251  ;;  %v1176_v17 = vmul.f32 %v1144_v18, %v2996_v15  ;;  %v1350_v39 = vadd.f32 1.0, %v2250_v42 }
 0x134   : > { %1538 = vmatmul.bf16.gmra.mxu2 %v1422_v11  ;;  %2253 = vtanh.f32 %v1287_v29  ;;  %v1334_v36 = vadd.f32 1.0, %v2252_v44 }
 0x135   : > { %2255 = vtanh.f32 %v1271_v16  ;;  %v1208_v31 = vmul.f32 0.044715, %v1176_v17  ;;  %v1382_v40 = vmul.f32 0.5, %v1350_v39 }
 0x136   : > { %v1090_v14 = vpop.f32.mrf.mxu1  ;;  %v1366_v28 = vmul.f32 0.5, %v1334_v36  ;;  %v504_v36 = vpack.c.bf16 %v2747_v51, %v2743_v63 }
 0x137   : > { %v1240_v26 = vadd.f32 %v1208_v31, %v2996_v15  ;;  %v1091_v43 = vadd.f32 %v2770_v53, %v1090_v14  ;;  %v1414_v5 = vmul.f32 %v1382_v40, %v2956_v41 }
 0x138   : > { %v1398_v46 = vmul.f32 %v1366_v28, %v2963_v37 }
 0x139   : > { %v1145_v1 = vmul.f32 %v1091_v43, %v1091_v43  ;;  %v1272_v59 = vmul.f32 0.7978846, %v1240_v26  ;;  %631 = vmatmul.bf16.gmra.mxu0 %v503_v45 }
 0x13a   : > { %v2254_v3 = vpop.eup %2253  ;;  %v3019_v55 = vpop.f32.mrf.mxu0 }
 0x13b   : > { %v2256_v60 = vpop.eup %2255  ;;  %v1351_v62 = vadd.f32 1.0, %v2254_v3  ;;  %v1177_v30 = vmul.f32 %v1145_v1, %v1091_v43  ;;  %2257 = vtanh.f32 %v1272_v59 }
 0x13c   : > { %v1335_v19 = vadd.f32 1.0, %v2256_v60 }
 0x13d   : > { %v1383_v47 = vmul.f32 0.5, %v1351_v62  ;;  %v1209_v58 = vmul.f32 0.044715, %v1177_v30 }
 0x13e   : > { %v1367_v52 = vmul.f32 0.5, %v1335_v19  ;;  %v1093_v13 = vpop.f32.mrf.mxu1 }
 0x13f   : > { %v1415_v0 = vmul.f32 %v1383_v47, %v2973_v49  ;;  %v1241_v32 = vadd.f32 %v1209_v58, %v1091_v43  ;;  %v3014_v21 = vadd.f32 %v2770_v53, %v1093_v13  ;;  %v3041_v47 = vld [vmem:[%s3172_s5] ss:$0 sm:$0xff] }
 0x140   : > { %v1399_v10 = vmul.f32 %v1367_v52, %v2977_v48 }
 0x141   : > { %v1431_v41 = vpack.c.bf16 %v1415_v0, %v1414_v5  ;;  %v1146_v49 = vmul.f32 %v3014_v21, %v3014_v21  ;;  %v1273_v20 = vmul.f32 0.7978846, %v1241_v32  ;;  %v2258_v25 = vpop.eup %2257  ;;  %v3046_v0 = vld [vmem:[%s3174_s7] ss:$0 sm:$0xff] }
 0x142   : > { %v1423_v56 = vpack.c.bf16 %v1399_v10, %v1398_v46  ;;  %v1336_v7 = vadd.f32 1.0, %v2258_v25  ;;  %v3023_v17 = vpop.f32.mrf.mxu0  ;;  %v588_v45 = vadd.f32 %v3046_v0, %v2987_v50 }
 0x143   : > { %1583 = vmatmul.bf16.gmra.mxu3 %v1431_v41  ;;  %v1178_v37 = vmul.f32 %v1146_v49, %v3014_v21  ;;  %2259 = vtanh.f32 %v1273_v20 }
 0x144   : > { %1543 = vmatmul.bf16.gmra.mxu2 %v1423_v56  ;;  %v1368_v29 = vmul.f32 0.5, %v1336_v7  ;;  %v590_v56 = vadd.f32 %v3046_v0, %v3001_v12  ;;  %v505_v7 = vpack.c.bf16 %v2790_v33, %v2786_v6 }
 0x145   : > { %v1210_v48 = vmul.f32 0.044715, %v1178_v37 }
 0x146   : > { %v1095_v2 = vpop.f32.mrf.mxu1  ;;  %v1400_v31 = vmul.f32 %v1368_v29, %v2996_v15 }
 0x147   : > { %v1242_v27 = vadd.f32 %v1210_v48, %v3014_v21  ;;  %v1096_v23 = vadd.f32 %v2770_v53, %v1095_v2 }
 0x149   : > { %v2260_v4 = vpop.eup %2259  ;;  %v1147_v22 = vmul.f32 %v1096_v23, %v1096_v23  ;;  %v1274_v42 = vmul.f32 0.7978846, %v1242_v27  ;;  %636 = vmatmul.bf16.gmra.mxu0 %v504_v36 }
 0x14a   : > { %v1337_v11 = vadd.f32 1.0, %v2260_v4  ;;  %v3036_v30 = vpop.f32.mrf.mxu0 }
 0x14b   : > { %v1179_v18 = vmul.f32 %v1147_v22, %v1096_v23  ;;  %2261 = vtanh.f32 %v1274_v42 }
 0x14c   : > { %v1369_v16 = vmul.f32 0.5, %v1337_v11 }
 0x14d   : > { %v1211_v44 = vmul.f32 0.044715, %v1179_v18 }
 0x14e   : > { %v1098_v39 = vpop.f32.mrf.mxu1  ;;  %v1401_v14 = vmul.f32 %v1369_v16, %v1091_v43 }
 0x14f   : > { %v1243_v26 = vadd.f32 %v1211_v44, %v1096_v23  ;;  %v3029_v40 = vadd.f32 %v2770_v53, %v1098_v39 }
 0x150   : > { %v1424_v3 = vpack.c.bf16 %v1401_v14, %v1400_v31 }
 0x151   : > { %v1148_v60 = vmul.f32 %v3029_v40, %v3029_v40  ;;  %v1275_v1 = vmul.f32 0.7978846, %v1243_v26  ;;  %v2262_v62 = vpop.eup %2261 }
 0x152   : > { %v1338_v28 = vadd.f32 1.0, %v2262_v62 }
 0x153   : > { %v1180_v59 = vmul.f32 %v1148_v60, %v3029_v40  ;;  %2263 = vtanh.f32 %v1275_v1 }
 0x154   : > { %1548 = vmatmul.bf16.gmra.mxu2 %v1424_v3  ;;  %v1370_v46 = vmul.f32 0.5, %v1338_v28 }
 0x155   : > { %v1212_v15 = vmul.f32 0.044715, %v1180_v59  ;;  %v1509_v43 = vpop.f32.mrf.mxu2  ;;  %v593_v59 = vadd.f32 %v3046_v0, %v3007_v35 }
 0x156   : > { %v1100_v19 = vpop.f32.mrf.mxu1  ;;  %v1510_v32 = vadd.f32 %v3041_v47, %v1509_v43  ;;  %v1402_v48 = vmul.f32 %v1370_v46, %v3014_v21 }
 0x157   : > { %v1244_v63 = vadd.f32 %v1212_v15, %v3029_v40  ;;  %v1101_v51 = vadd.f32 %v2770_v53, %v1100_v19 }
 0x158   : > { %v1589_v4 = vadd.f32 %v1510_v32, %v588_v45 }
 0x159   : > { %v2264_v5 = vpop.eup %2263  ;;  %v1149_v52 = vmul.f32 %v1101_v51, %v1101_v51  ;;  %v1276_v58 = vmul.f32 0.7978846, %v1244_v63  ;;  %641 = vmatmul.bf16.gmra.mxu0 %v505_v7 }
 0x15a   : > { %v1339_v13 = vadd.f32 1.0, %v2264_v5 }
 0x15b   : > { %v1181_v10 = vmul.f32 %v1149_v52, %v1101_v51  ;;  %2265 = vtanh.f32 %v1276_v58 }
 0x15c   : > { %v1371_v41 = vmul.f32 0.5, %v1339_v13 }
 0x15d   : > { %v1213_v49 = vmul.f32 0.044715, %v1181_v10  ;;  %v1511_v20 = vpop.f32.mrf.mxu2 }
 0x15e   : > { %v1512_v25 = vadd.f32 %v3041_v47, %v1511_v20  ;;  %v1103_v37 = vpop.f32.mrf.mxu1  ;;  %v1403_v2 = vmul.f32 %v1371_v41, %v1096_v23  ;;  %v3065_v23 = vpop.f32.mrf.mxu0 }
 0x15f   : > { %v1245_v50 = vadd.f32 %v1213_v49, %v1101_v51  ;;  %v1104_v27 = vadd.f32 %v2770_v53, %v1103_v37 }
 0x160   : > { %v1590_v22 = vadd.f32 %v1512_v25, %v590_v56  ;;  %v1425_v42 = vpack.c.bf16 %v1403_v2, %v1402_v48  ;;  %v600_v2 = vadd.f32 %v3046_v0, %v3036_v30 }
 0x161   : > { %v1150_v12 = vmul.f32 %v1104_v27, %v1104_v27  ;;  %v1277_v21 = vmul.f32 0.7978846, %v1245_v50  ;;  %v2266_v6 = vpop.eup %2265 }
 0x162   : > { %v1985_v11 = vpack.c.bf16 %v1590_v22, %v1589_v4  ;;  %v1340_v44 = vadd.f32 1.0, %v2266_v6 }
 0x163   : > { %v1182_v33 = vmul.f32 %v1150_v12, %v1104_v27  ;;  %2267 = vtanh.f32 %v1277_v21 }
 0x164   : > { %1553 = vmatmul.bf16.gmra.mxu2 %v1425_v42  ;;  %1986 = vst [vmem:[%s3063_s24] sm:$0xff] %v1985_v11   ;;  %v1372_v60 = vmul.f32 0.5, %v1340_v44 }
 0x165   : > { %v1214_v29 = vmul.f32 0.044715, %v1182_v33  ;;  %v1514_v18 = vpop.f32.mrf.mxu2  ;;  %v603_v33 = vadd.f32 %v3046_v0, %v3065_v23 }
 0x166   : > { %v1105_v16 = vpop.f32.mrf.mxu1  ;;  %v604_v62 = vpop.f32.mrf.mxu0  ;;  %v1515_v15 = vadd.f32 %v3041_v47, %v1514_v18  ;;  %v1404_v5 = vmul.f32 %v1372_v60, %v3029_v40  ;;  %v598_v40 = vadd.f32 %v3046_v0, %v3023_v17 }
 0x167   : > { %v1246_v39 = vadd.f32 %v1214_v29, %v1104_v27  ;;  %v1106_v31 = vadd.f32 %v2770_v53, %v1105_v16  ;;  %v595_v53 = vadd.f32 %v3046_v0, %v3019_v55  ;;  %v605_v18 = vadd.f32 %v3046_v0, %v604_v62 }
 0x168   : > { %v1591_v13 = vadd.f32 %v1515_v15, %v593_v59  ;;  %v650_v62 = vadd.f32 %v3046_v0, %v2799_v54 }
 0x169   : > { %v2268_v14 = vpop.eup %2267  ;;  %v1151_v36 = vmul.f32 %v1106_v31, %v1106_v31  ;;  %v1278_v26 = vmul.f32 0.7978846, %v1246_v39 }
 0x16a   : > { %v1341_v3 = vadd.f32 1.0, %v2268_v14 }
 0x16b   : > { %v1183_v1 = vmul.f32 %v1151_v36, %v1106_v31  ;;  %2269 = vtanh.f32 %v1278_v26 }
 0x16c   : > { %v1373_v43 = vmul.f32 0.5, %v1341_v3 }
 0x16d   : > { %v1215_v19 = vmul.f32 0.044715, %v1183_v1  ;;  %v1516_v28 = vpop.f32.mrf.mxu2  ;;  %v648_v1 = vadd.f32 %v3046_v0, %v2774_v38 }
 0x16e   : > { %v1517_v63 = vadd.f32 %v3041_v47, %v1516_v28  ;;  %v1405_v52 = vmul.f32 %v1373_v43, %v1101_v51  ;;  %v607_v56 = vpop.f32.mrf.mxu0 }
 0x16f   : > { %v1247_v58 = vadd.f32 %v1215_v19, %v1106_v31  ;;  %v608_v3 = vadd.f32 %v3046_v0, %v607_v56  ;;  %v655_v56 = vadd.f32 %v3046_v0, %v2819_v61 }
 0x170   : > { %v1592_v46 = vadd.f32 %v1517_v63, %v595_v53  ;;  %v1426_v10 = vpack.c.bf16 %v1405_v52, %v1404_v5 }
 0x171   : > { %v1279_v35 = vmul.f32 0.7978846, %v1247_v58  ;;  %v2270_v32 = vpop.eup %2269 }
 0x172   : > { %v1990_v45 = vpack.c.bf16 %v1592_v46, %v1591_v13  ;;  %v1342_v49 = vadd.f32 1.0, %v2270_v32 }
 0x173   : > { %2271 = vtanh.f32 %v1279_v35 }
 0x174   : > { %1558 = vmatmul.bf16.gmra.mxu2 %v1426_v10  ;;  %2077 = vst [vmem:[%s3063_s24 + $0x8] sm:$0xff] %v1990_v45   ;;  %v1374_v25 = vmul.f32 0.5, %v1342_v49 }
 0x175   : > { %v1519_v41 = vpop.f32.mrf.mxu2 }
 0x176   : > { %v1520_v51 = vadd.f32 %v3041_v47, %v1519_v41  ;;  %v1406_v50 = vmul.f32 %v1374_v25, %v1104_v27  ;;  %v609_v22 = vpop.f32.mrf.mxu0  ;;  %v653_v41 = vadd.f32 %v3046_v0, %v2807_v34 }
 0x177   : > { %v610_v19 = vadd.f32 %v3046_v0, %v609_v22 }
 0x178   : > { %v1593_v42 = vadd.f32 %v1520_v51, %v598_v40 }
 0x179   : > { %v2272_v20 = vpop.eup %2271 }
 0x17a   : > { %v1343_v55 = vadd.f32 1.0, %v2272_v20 }
 0x17c   : > { %v1375_v37 = vmul.f32 0.5, %v1343_v55 }
 0x17d   : > { %v1521_v48 = vpop.f32.mrf.mxu2 }
 0x17e   : > { %v1522_v7 = vadd.f32 %v3041_v47, %v1521_v48  ;;  %v1407_v4 = vmul.f32 %v1375_v37, %v1106_v31  ;;  %v612_v6 = vpop.f32.mrf.mxu0 }
 0x17f   : > { %v613_v35 = vadd.f32 %v3046_v0, %v612_v6 }
 0x180   : > { %v1594_v12 = vadd.f32 %v1522_v7, %v600_v2  ;;  %v1427_v21 = vpack.c.bf16 %v1407_v4, %v1406_v50 }
 0x182   : > { %v1995_v11 = vpack.c.bf16 %v1594_v12, %v1593_v42 }
 0x184   : > { %1563 = vmatmul.bf16.gmra.mxu2 %v1427_v21  ;;  %2078 = vst [vmem:[%s3063_s24 + $0x10] sm:$0xff] %v1995_v11   ;;  %v658_v11 = vadd.f32 %v3046_v0, %v2825_v24 }
 0x185   : > { %v1524_v17 = vpop.f32.mrf.mxu2 }
 0x186   : > { %v1525_v29 = vadd.f32 %v3041_v47, %v1524_v17  ;;  %v614_v31 = vpop.f32.mrf.mxu0  ;;  %v660_v17 = vadd.f32 %v3046_v0, %v2836_v57 }
 0x187   : > { %v615_v55 = vadd.f32 %v3046_v0, %v614_v31 }
 0x188   : > { %v1595_v16 = vadd.f32 %v1525_v29, %v603_v33 }
 0x18d   : > { %v1526_v30 = vpop.f32.mrf.mxu2 }
 0x18e   : > { %v1527_v27 = vadd.f32 %v3041_v47, %v1526_v30  ;;  %v617_v43 = vpop.f32.mrf.mxu0 }
 0x18f   : > { %v618_v42 = vadd.f32 %v3046_v0, %v617_v43 }
 0x190   : > { %v1596_v44 = vadd.f32 %v1527_v27, %v605_v18 }
 0x192   : > { %v2000_v39 = vpack.c.bf16 %v1596_v44, %v1595_v16 }
 0x194   : > { %2079 = vst [vmem:[%s3063_s24 + $0x18] sm:$0xff] %v2000_v39  }
 0x196   : > { %v1569_v14 = vpop.f32.mrf.mxu3  ;;  %v619_v10 = vpop.f32.mrf.mxu0 }
 0x197   : > { %v1529_v36 = vpop.f32.mrf.mxu2  ;;  %v1570_v26 = vadd.f32 %v3041_v47, %v1569_v14  ;;  %v620_v29 = vadd.f32 %v3046_v0, %v619_v10 }
 0x198   : > { %v1530_v23 = vadd.f32 %v3041_v47, %v1529_v36 }
 0x199   : > { %v1613_v53 = vadd.f32 %v1570_v26, %v648_v1  ;;  %v665_v1 = vadd.f32 %v3046_v0, %v2853_v8 }
 0x19a   : > { %v1597_v5 = vadd.f32 %v1530_v23, %v608_v3 }
 0x19e   : > { %v1571_v60 = vpop.f32.mrf.mxu3  ;;  %v622_v7 = vpop.f32.mrf.mxu0 }
 0x19f   : > { %v1531_v59 = vpop.f32.mrf.mxu2  ;;  %v1572_v15 = vadd.f32 %v3041_v47, %v1571_v60  ;;  %v623_v26 = vadd.f32 %v3046_v0, %v622_v7  ;;  %v663_v60 = vadd.f32 %v3046_v0, %v2842_v9 }
 0x1a0   : > { %v1532_v28 = vadd.f32 %v3041_v47, %v1531_v59 }
 0x1a1   : > { %v1614_v63 = vadd.f32 %v1572_v15, %v650_v62 }
 0x1a2   : > { %v1598_v52 = vadd.f32 %v1532_v28, %v610_v19 }
 0x1a3   : > { %v2045_v58 = vpack.c.bf16 %v1614_v63, %v1613_v53 }
 0x1a4   : > { %v2005_v13 = vpack.c.bf16 %v1598_v52, %v1597_v5 }
 0x1a5   : > { %2088 = vst [vmem:[%s3063_s24 + $0x60] sm:$0xff] %v2045_v58  }
 0x1a6   : > { %2080 = vst [vmem:[%s3063_s24 + $0x20] sm:$0xff] %v2005_v13   ;;  %v1574_v38 = vpop.f32.mrf.mxu3  ;;  %v624_v22 = vpop.f32.mrf.mxu0 }
 0x1a7   : > { %v1534_v46 = vpop.f32.mrf.mxu2  ;;  %v1575_v54 = vadd.f32 %v3041_v47, %v1574_v38  ;;  %v625_v15 = vadd.f32 %v3046_v0, %v624_v22 }
 0x1a8   : > { %v1535_v45 = vadd.f32 %v3041_v47, %v1534_v46 }
 0x1a9   : > { %v1615_v40 = vadd.f32 %v1575_v54, %v653_v41 }
 0x1aa   : > { %v1599_v37 = vadd.f32 %v1535_v45, %v613_v35 }
 0x1ae   : > { %v1576_v32 = vpop.f32.mrf.mxu3  ;;  %v627_v36 = vpop.f32.mrf.mxu0 }
 0x1af   : > { %v1536_v49 = vpop.f32.mrf.mxu2  ;;  %v1577_v20 = vadd.f32 %v3041_v47, %v1576_v32  ;;  %v628_v8 = vadd.f32 %v3046_v0, %v627_v36 }
 0x1b0   : > { %v1537_v25 = vadd.f32 %v3041_v47, %v1536_v49 }
 0x1b1   : > { %v1616_v51 = vadd.f32 %v1577_v20, %v655_v56 }
 0x1b2   : > { %v1600_v48 = vadd.f32 %v1537_v25, %v615_v55 }
 0x1b3   : > { %v2050_v2 = vpack.c.bf16 %v1616_v51, %v1615_v40 }
 0x1b4   : > { %v2010_v50 = vpack.c.bf16 %v1600_v48, %v1599_v37 }
 0x1b5   : > { %2089 = vst [vmem:[%s3063_s24 + $0x68] sm:$0xff] %v2050_v2  }
 0x1b6   : > { %2081 = vst [vmem:[%s3063_s24 + $0x28] sm:$0xff] %v2010_v50   ;;  %v1579_v34 = vpop.f32.mrf.mxu3  ;;  %v629_v53 = vpop.f32.mrf.mxu0 }
 0x1b7   : > { %v1539_v4 = vpop.f32.mrf.mxu2  ;;  %v1580_v61 = vadd.f32 %v3041_v47, %v1579_v34  ;;  %v630_v10 = vadd.f32 %v3046_v0, %v629_v53 }
 0x1b8   : > { %v1540_v12 = vadd.f32 %v3041_v47, %v1539_v4 }
 0x1b9   : > { %v1617_v18 = vadd.f32 %v1580_v61, %v658_v11 }
 0x1ba   : > { %v1601_v16 = vadd.f32 %v1540_v12, %v618_v42 }
 0x1be   : > { %v1581_v21 = vpop.f32.mrf.mxu3  ;;  %v632_v13 = vpop.f32.mrf.mxu0 }
 0x1bf   : > { %v1541_v6 = vpop.f32.mrf.mxu2  ;;  %v1582_v33 = vadd.f32 %v3041_v47, %v1581_v21  ;;  %v633_v49 = vadd.f32 %v3046_v0, %v632_v13 }
 0x1c0   : > { %v1542_v30 = vadd.f32 %v3041_v47, %v1541_v6 }
 0x1c1   : > { %v1618_v27 = vadd.f32 %v1582_v33, %v660_v17 }
 0x1c2   : > { %v1602_v44 = vadd.f32 %v1542_v30, %v620_v29 }
 0x1c3   : > { %v2055_v39 = vpack.c.bf16 %v1618_v27, %v1617_v18 }
 0x1c4   : > { %v2015_v31 = vpack.c.bf16 %v1602_v44, %v1601_v16 }
 0x1c5   : > { %2090 = vst [vmem:[%s3063_s24 + $0x70] sm:$0xff] %v2055_v39  }
 0x1c6   : > { %2082 = vst [vmem:[%s3063_s24 + $0x30] sm:$0xff] %v2015_v31   ;;  %v1584_v14 = vpop.f32.mrf.mxu3  ;;  %v634_v41 = vpop.f32.mrf.mxu0 }
 0x1c7   : > { %v1544_v24 = vpop.f32.mrf.mxu2  ;;  %v1585_v57 = vadd.f32 %v3041_v47, %v1584_v14  ;;  %v635_v40 = vadd.f32 %v3046_v0, %v634_v41 }
 0x1c8   : > { %v1545_v3 = vadd.f32 %v3041_v47, %v1544_v24 }
 0x1c9   : > { %v1619_v19 = vadd.f32 %v1585_v57, %v663_v60 }
 0x1ca   : > { %v1603_v63 = vadd.f32 %v1545_v3, %v623_v26 }
 0x1ce   : > { %v1586_v23 = vpop.f32.mrf.mxu3  ;;  %v637_v55 = vpop.f32.mrf.mxu0 }
 0x1cf   : > { %v1546_v62 = vpop.f32.mrf.mxu2  ;;  %v1587_v59 = vadd.f32 %v3041_v47, %v1586_v23  ;;  %v638_v34 = vadd.f32 %v3046_v0, %v637_v55 }
 0x1d0   : > { %v1547_v43 = vadd.f32 %v3041_v47, %v1546_v62 }
 0x1d1   : > { %v1620_v28 = vadd.f32 %v1587_v59, %v665_v1 }
 0x1d2   : > { %v1604_v5 = vadd.f32 %v1547_v43, %v625_v15 }
 0x1d3   : > { %v2060_v52 = vpack.c.bf16 %v1620_v28, %v1619_v19 }
 0x1d4   : > { %v2020_v58 = vpack.c.bf16 %v1604_v5, %v1603_v63 }
 0x1d5   : > { %2091 = vst [vmem:[%s3063_s24 + $0x78] sm:$0xff] %v2060_v52  }
 0x1d6   : > { %2083 = vst [vmem:[%s3063_s24 + $0x38] sm:$0xff] %v2020_v58   ;;  %v639_v50 = vpop.f32.mrf.mxu0 }
 0x1d7   : > { %v1549_v9 = vpop.f32.mrf.mxu2  ;;  %v640_v22 = vadd.f32 %v3046_v0, %v639_v50 }
 0x1d8   : > { %v1550_v38 = vadd.f32 %v3041_v47, %v1549_v9 }
 0x1da   : > { %v1605_v35 = vadd.f32 %v1550_v38, %v628_v8 }
 0x1de   : > { %v642_v11 = vpop.f32.mrf.mxu0 }
 0x1df   : > { %v1551_v46 = vpop.f32.mrf.mxu2  ;;  %v643_v29 = vadd.f32 %v3046_v0, %v642_v11 }
 0x1e0   : > { %v1552_v54 = vadd.f32 %v3041_v47, %v1551_v46 }
 0x1e2   : > { %v1606_v45 = vadd.f32 %v1552_v54, %v630_v10 }
 0x1e4   : > { %v2025_v32 = vpack.c.bf16 %v1606_v45, %v1605_v35 }
 0x1e6   : > { %2084 = vst [vmem:[%s3063_s24 + $0x40] sm:$0xff] %v2025_v32   ;;  %v644_v33 = vpop.f32.mrf.mxu0 }
 0x1e7   : > { %v1554_v56 = vpop.f32.mrf.mxu2  ;;  %v645_v27 = vadd.f32 %v3046_v0, %v644_v33 }
 0x1e8   : > { %v1555_v20 = vadd.f32 %v3041_v47, %v1554_v56 }
 0x1ea   : > { %v1607_v37 = vadd.f32 %v1555_v20, %v633_v49 }
 0x1ef   : > { %v1556_v25 = vpop.f32.mrf.mxu2 }
 0x1f0   : > { %v1557_v51 = vadd.f32 %v3041_v47, %v1556_v25 }
 0x1f2   : > { %v1608_v48 = vadd.f32 %v1557_v51, %v635_v40 }
 0x1f4   : > { %v2030_v2 = vpack.c.bf16 %v1608_v48, %v1607_v37 }
 0x1f6   : > { %2085 = vst [vmem:[%s3063_s24 + $0x48] sm:$0xff] %v2030_v2  }
 0x1f7   : > { %v1559_v7 = vpop.f32.mrf.mxu2 }
 0x1f8   : > { %v1560_v4 = vadd.f32 %v3041_v47, %v1559_v7 }
 0x1fa   : > { %v1609_v12 = vadd.f32 %v1560_v4, %v638_v34 }
 0x1ff   : > { %v1561_v61 = vpop.f32.mrf.mxu2 }
 0x200   : > { %v1562_v42 = vadd.f32 %v3041_v47, %v1561_v61 }
 0x202   : > { %v1610_v21 = vadd.f32 %v1562_v42, %v640_v22 }
 0x204   : > { %v2035_v17 = vpack.c.bf16 %v1610_v21, %v1609_v12 }
 0x206   : > { %2086 = vst [vmem:[%s3063_s24 + $0x50] sm:$0xff] %v2035_v17  }
 0x207   : > { %v1564_v6 = vpop.f32.mrf.mxu2 }
 0x208   : > { %v1565_v30 = vadd.f32 %v3041_v47, %v1564_v6 }
 0x20a   : > { %v1611_v44 = vadd.f32 %v1565_v30, %v643_v29 }
 0x20f   : > { %v1566_v18 = vpop.f32.mrf.mxu2 }
 0x210   : > { %v1567_v16 = vadd.f32 %v3041_v47, %v1566_v18 }
 0x212   : > { %v1612_v39 = vadd.f32 %v1567_v16, %v645_v27 }
 0x214   : > { %v2040_v31 = vpack.c.bf16 %v1612_v39, %v1611_v44 }
 0x216   : > { %2087 = vst [vmem:[%s3063_s24 + $0x58] sm:$0xff] %v2040_v31  }
 0x217 PF: > { %s18_s29 = sadd.s32 1, %s2295_s29   ;;  %s3176_s27 = smov %s2291_s28 }
 0x218   : > { %p15_p5 = scmp.ge.s32.totalorder %s18_s29, 4   ;;  %s3177_s28 = smov %s3179_s30 }
 0x21a   :  { %17 = sbr.rel (!%p15_p5) target bundleno = 2 (0x2), region = 85 }

</bundles_post_ra>
